<compile_context>
chip_gen: v5e
topology: v5e:2x2
jax: 0.10.0
libtpu: 0.0.40
codegen_flags: <defaults>
</compile_context>

<pallas_src>
import jax
import jax.numpy as jnp
from jax.experimental import pallas as pl
from jax.experimental.pallas import tpu as pltpu

_MEAN = jnp.array([0.485, 0.456, 0.406], dtype=jnp.float32)
_INV_STD = 1.0 / jnp.array([0.229, 0.224, 0.225], dtype=jnp.float32)
_LANES = 128
_K1 = 32                               # conv1 im2col K (27 taps, padded to 32)
_VMEM_LIMIT = 48 * 1024 * 1024         # < 64 MiB physical on v7x
_CONV_VMEM_BUDGET = 20 * 1024 * 1024   # rough per-step working-set budget


# ------------------------------ tiling helpers -------------------------------

def _pick_row_tile(n, max_tile=8192):
    """Largest sublane-aligned row tile <= max_tile that divides n."""
    for t in range(min(max_tile, n), 7, -1):
        if n % t == 0 and t % 8 == 0:
            return t
    return n


def _conv_vmem_estimate(th, W, cin, cout, pooled):
    bf, f32 = 2, 4
    oh, ow = (th // 2, W // 2) if pooled else (th, W)
    inp = 2 * 2 * (th + 2) * (W + 2) * cin * bf          # input blocks, dbl buffered
    out = 2 * oh * ow * cout * bf                        # output blocks, dbl buffered
    xp = (th + 2) * W * 3 * cin * bf                     # packed-LHS scratch
    acc = th * W * cout * f32                            # f32 accumulator scratch
    tmp = th * W * 3 * cin * bf + th * W * cout * f32    # large in-kernel temporaries
    wts = 2 * 3 * 3 * cin * cout * bf
    return inp + out + xp + acc + tmp + wts


def _pick_th(H, W, cin, cout, pooled):
    cands = [t for t in (32, 28, 16, 14, 8, 4, 2, 1)
             if t <= H and H % t == 0 and (not pooled or t % 2 == 0)]
    for t in cands:
        if _conv_vmem_estimate(t, W, cin, cout, pooled) <= _CONV_VMEM_BUDGET:
            return t
    return cands[-1]


# ------------------------ conv3x3 + ReLU (+ fused pool) -----------------------

def _make_conv_kernel(TH, W, Cin, Cout, pool):
    M = TH * W

    def kernel(body_ref, h1_ref, h2_ref, w_ref, b_ref, o_ref, xp_sc, acc_sc):
        # 1) Pack the 3 kw-shifted views of the (TH+2)-row halo window along the
        #    channel (lane) axis -> K = 3*Cin, at 128-lane boundaries.
        for kw in range(3):
            lanes = slice(kw * Cin, (kw + 1) * Cin)
            xp_sc[0:TH, :, lanes] = body_ref[:, kw:kw + W, :]
            xp_sc[TH, :, lanes] = h1_ref[0, kw:kw + W, :]
            xp_sc[TH + 1, :, lanes] = h2_ref[0, kw:kw + W, :]

        # 2) Three MXU dots with M = TH*W (whole tile batched into the GEMM M
        #    dim), accumulated into an explicit f32 VMEM scratch.
        # TODO(synk): on v7x verify this lowers to MRB in-place accumulation.
        for kh in range(3):
            lhs = xp_sc[kh:kh + TH].reshape(M, 3 * Cin)
            contrib = jnp.dot(lhs, w_ref[kh], preferred_element_type=jnp.float32)
            if kh == 0:
                acc_sc[...] = contrib
            else:
                acc_sc[...] = acc_sc[...] + contrib

        bias = b_ref[...]                                 # (1, Cout) f32
        if pool:
            # Fused 2x2 maxpool (bias/relu commute with max): horizontal max via
            # two sublane-strided reads of the accumulator, then vertical max of
            # adjacent row pairs, then bias + ReLU + bf16 store.
            Wp, Mp = W // 2, M // 2
            hmax = jnp.maximum(acc_sc[pl.ds(0, Mp, 2), :],
                               acc_sc[pl.ds(1, Mp, 2), :])        # (M/2, Cout)
            for ip in range(TH // 2):
                top = hmax[(2 * ip) * Wp:(2 * ip + 1) * Wp]
                bot = hmax[(2 * ip + 1) * Wp:(2 * ip + 2) * Wp]
                o_ref[ip] = jnp.maximum(jnp.maximum(top, bot) + bias,
                                        0.0).astype(o_ref.dtype)
        else:
            y = jnp.maximum(acc_sc[...] + bias, 0.0).astype(o_ref.dtype)
            o_ref[...] = y.reshape(TH, W, Cout)

    return kernel


def _conv3x3_relu(x, wp, b, pool=False):
    """3x3 conv (pad=1, stride=1) + ReLU, optionally with a fused 2x2 maxpool.
    x: (N,H,W,Cin) bf16, wp: (3, 3*Cin, Cout) bf16 (kw packed into K),
    b: (1,Cout) f32."""
    N, H, W, Cin = x.shape
    Cout = wp.shape[-1]
    assert W % 8 == 0, "W must be sublane-aligned (multiple of 8)"
    if pool:
        assert H % 2 == 0 and W % 2 == 0
    TH = _pick_th(H, W, Cin, Cout, pool)
    xpad = jnp.pad(x, ((0, 0), (1, 1), (1, 1), (0, 0)))     # zero pad, pad=1

    # Three streams: one TH-row body block plus two single-row bottom halos.
    body_spec = pl.BlockSpec((None, TH, W + 2, Cin), lambda n, r: (n, r, 0, 0))
    halo1_spec = pl.BlockSpec((None, 1, W + 2, Cin),
                              lambda n, r: (n, r * TH + TH, 0, 0))
    halo2_spec = pl.BlockSpec((None, 1, W + 2, Cin),
                              lambda n, r: (n, r * TH + TH + 1, 0, 0))
    w_spec = pl.BlockSpec((3, 3 * Cin, Cout), lambda n, r: (0, 0, 0))
    b_spec = pl.BlockSpec((1, Cout), lambda n, r: (0, 0))

    if pool:
        oh, ow = H // 2, W // 2
        out_spec = pl.BlockSpec((None, TH // 2, ow, Cout), lambda n, r: (n, r, 0, 0))
    else:
        oh, ow = H, W
        out_spec = pl.BlockSpec((None, TH, W, Cout), lambda n, r: (n, r, 0, 0))
    out_shape = jax.ShapeDtypeStruct((N, oh, ow, Cout), jnp.bfloat16)

    flops = 2 * N * H * W * 9 * Cin * Cout
    bytes_accessed = (N * (H // TH) * (TH + 2) * (W + 2) * Cin * 2
                      + int(wp.size) * 2 + int(b.size) * 4
                      + N * oh * ow * Cout * 2)

    return pl.pallas_call(
        _make_conv_kernel(TH, W, Cin, Cout, pool),
        out_shape=out_shape,
        grid=(N, H // TH),
        in_specs=[body_spec, halo1_spec, halo2_spec, w_spec, b_spec],
        out_specs=out_spec,
        scratch_shapes=[pltpu.VMEM((TH + 2, W, 3 * Cin), jnp.bfloat16),
                        pltpu.VMEM((TH * W, Cout), jnp.float32)],
        compiler_params=pltpu.CompilerParams(
            dimension_semantics=("parallel", "parallel"),
            vmem_limit_bytes=_VMEM_LIMIT),
        cost_estimate=pl.CostEstimate(flops=flops, transcendentals=0,
                                      bytes_accessed=bytes_accessed),
    )(xpad, xpad, xpad, wp, b)


# --------------------- conv1 (Cin=3) as a K=32 matmul -------------------------

def _conv1_relu(x32, w, b, N, H, W):
    """First conv after host-side im2col: rows x (K=32) matmul + bias + ReLU."""
    K = x32.shape[-1]
    Cout = w.shape[-1]
    rows = N * H * W
    x2 = x32.reshape(rows, K)
    TR = _pick_row_tile(rows, 8192)
    nblk = rows // TR

    def kernel(x_ref, w_ref, b_ref, o_ref):
        y = jnp.dot(x_ref[...], w_ref[...], preferred_element_type=jnp.float32)
        o_ref[...] = jnp.maximum(y + b_ref[...], 0.0).astype(o_ref.dtype)

    out = pl.pallas_call(
        kernel,
        out_shape=jax.ShapeDtypeStruct((rows, Cout), jnp.bfloat16),
        grid=(nblk,),
        in_specs=[pl.BlockSpec((TR, K), lambda i: (i, 0)),
                  pl.BlockSpec((K, Cout), lambda i: (0, 0)),
                  pl.BlockSpec((1, Cout), lambda i: (0, 0))],
        out_specs=pl.BlockSpec((TR, Cout), lambda i: (i, 0)),
        compiler_params=pltpu.CompilerParams(
            dimension_semantics=("parallel",),
            vmem_limit_bytes=_VMEM_LIMIT),
        cost_estimate=pl.CostEstimate(
            flops=2 * rows * K * Cout, transcendentals=0,
            bytes_accessed=rows * K * 2 + K * Cout * 2 + rows * Cout * 2),
    )(x2, w, b)
    return out.reshape(N, H, W, Cout)


# ----------------------------------- MSE -------------------------------------

def _mse_mean(feats, sep):
    """mean((feats[:sep] - feats[sep:])**2), reduction='mean'."""
    twoB, H2, W2, C = feats.shape
    rows_half = sep * H2 * W2
    f2 = feats.reshape(twoB * H2 * W2, C)     # free reshape; halves stay paired
    total = float(rows_half * C)

    # 2-way split over a leading parallel axis so both v7x TensorCores stream
    # HBM; each core accumulates a (1, C) partial sum reduced outside.
    ncore = 2 if (rows_half % 2 == 0 and (rows_half // 2) % 8 == 0) else 1
    rows_per_core = rows_half // ncore
    TR = _pick_row_tile(rows_per_core, 8192)
    nblk = rows_per_core // TR
    tgt_off = rows_half // TR                 # offset of the target half (blocks)

    def kernel(a_ref, b_ref, o_ref):
        i = pl.program_id(1)

        @pl.when(i == 0)
        def _init():
            o_ref[...] = jnp.zeros_like(o_ref)

        d = a_ref[...].astype(jnp.float32) - b_ref[...].astype(jnp.float32)
        o_ref[...] = o_ref[...] + jnp.sum(d * d, axis=0, keepdims=True)

    partial = pl.pallas_call(
        kernel,
        out_shape=jax.ShapeDtypeStruct((ncore, 1, C), jnp.float32),
        grid=(ncore, nblk),
        in_specs=[pl.BlockSpec((TR, C), lambda c, i: (c * nblk + i, 0)),
                  pl.BlockSpec((TR, C), lambda c, i: (tgt_off + c * nblk + i, 0))],
        out_specs=pl.BlockSpec((None, 1, C), lambda c, i: (c, 0, 0)),
        compiler_params=pltpu.CompilerParams(
            dimension_semantics=("parallel", "arbitrary"),
            vmem_limit_bytes=_VMEM_LIMIT),
    )(f2, f2)
    # Tiny final reduce + scale outside the kernel (a (ncore, 1, C) array).
    return jnp.sum(partial) * (1.0 / total)


# ------------------------------ params / forward ------------------------------

def init_vgg_params(key):
    """Synthetic deterministic He-normal weights for vgg16.features[:9] convs.
    # TODO(synk): real torchvision IMAGENET1K_V1 weights cannot be bundled in-script."""
    dims = [(3, 64), (64, 64), (64, 128), (128, 128)]
    params = []
    for cin, cout in dims:
        kw_key, kb_key, key = jax.random.split(key, 3)
        w = jax.random.normal(kw_key, (3, 3, cin, cout), jnp.float32) \
            * jnp.sqrt(2.0 / (9 * cin))                                 # HWIO
        b = jax.random.normal(kb_key, (1, cout), jnp.float32) * 0.01
        params.append((w, b))
    return params


def prepare_params(raw_params):
    """Fold 1/std into conv1, lay conv1 out as an im2col (32,128) matmul weight,
    zero-pad 64-channel dims to 128 lanes, pack kw into K for the 3x3 convs,
    and cast weights to bf16 (biases stay f32 for the epilogues)."""
    (w1, b1), (w2, b2), (w3, b3), (w4, b4) = raw_params

    # conv1: fold Normalize's 1/std; im2col weight order is (kh, kw, cin)-major.
    w1 = w1 * _INV_STD[None, None, :, None]
    w1m = w1.reshape(27, w1.shape[-1])                        # (27, 64)
    w1m = jnp.pad(w1m, ((0, _K1 - 27), (0, _LANES - w1m.shape[-1])))
    b1p = jnp.pad(b1, ((0, 0), (0, _LANES - b1.shape[-1])))

    # Pad 64-channel dims to 128 lanes: padded channels stay exactly zero
    # through ReLU / maxpool and meet zero weight rows in the next conv.
    pad64 = _LANES - 64
    w2p = jnp.pad(w2, ((0, 0), (0, 0), (0, pad64), (0, pad64)))
    b2p = jnp.pad(b2, ((0, 0), (0, pad64)))
    w3p = jnp.pad(w3, ((0, 0), (0, 0), (0, pad64), (0, 0)))

    def pack_kw(w):            # (3,3,Cin,Cout) -> (3, 3*Cin, Cout); K = kw*Cin + cin
        return w.reshape(3, 3 * w.shape[2], w.shape[3])

    return [
        (w1m.astype(jnp.bfloat16), b1p.astype(jnp.float32)),
        (pack_kw(w2p).astype(jnp.bfloat16), b2p.astype(jnp.float32)),
        (pack_kw(w3p).astype(jnp.bfloat16), b3.astype(jnp.float32)),
        (pack_kw(w4).astype(jnp.bfloat16), b4.astype(jnp.float32)),
    ]


def vgg_loss(input_nchw, target_nchw, params):
    """VGGLoss.forward(input, target, target_is_features=False), eval mode
    (shift inactive), reduction='mean'.
    # TODO(synk): shift/RandomCrop training branch, target_is_features branch
    # and reductions other than 'mean' are not implemented."""
    sep = input_nchw.shape[0]
    batch = jnp.concatenate([input_nchw, target_nchw], axis=0)
    x = jnp.transpose(batch, (0, 2, 3, 1)).astype(jnp.float32)      # NCHW->NHWC
    x = x - _MEAN.reshape(1, 1, 1, 3)   # mean here; 1/std folded into conv1 weight
    N, H, W, _ = x.shape

    # conv1 special case (Cin=3): tiny host-side im2col (K=27 -> 32) so the
    # first layer is one lane-friendly K=32 matmul per tile.
    xpad = jnp.pad(x, ((0, 0), (1, 1), (1, 1), (0, 0)))
    taps = [xpad[:, kh:kh + H, kw:kw + W, :] for kh in range(3) for kw in range(3)]
    x32 = jnp.pad(jnp.concatenate(taps, axis=-1),
                  ((0, 0), (0, 0), (0, 0), (0, _K1 - 27))).astype(jnp.bfloat16)

    (w1, b1), (w2, b2), (w3, b3), (w4, b4) = params
    x = _conv1_relu(x32, w1, b1, N, H, W)        # features[0:2]
    x = _conv3x3_relu(x, w2, b2, pool=True)      # features[2:5] (pool fused)
    x = _conv3x3_relu(x, w3, b3)                 # features[5:7]
    x = _conv3x3_relu(x, w4, b4)                 # features[7:9]
    return _mse_mean(x, sep)


if __name__ == "__main__":
    key = jax.random.PRNGKey(0)
    k_in, k_tgt, k_params = jax.random.split(key, 3)
    x = jax.random.uniform(k_in, (2, 3, 16, 16), dtype=jnp.float32)   # images in [0,1]
    y = jax.random.uniform(k_tgt, (2, 3, 16, 16), dtype=jnp.float32)
    params = prepare_params(init_vgg_params(k_params))

    loss = jax.jit(vgg_loss)(x, y, params)
    jax.block_until_ready(loss)
    print("KERNEL_OK")
</pallas_src>

<mosaic_0001>
module attributes {stable_mosaic.version = 11 : i64} {
  func.func @kernel(%arg0: i32, %arg1: i32, %arg2: memref<1x16x18x128xbf16, #tpu.memory_space<vmem>>, %arg3: memref<1x1x18x128xbf16, #tpu.memory_space<vmem>>, %arg4: memref<1x1x18x128xbf16, #tpu.memory_space<vmem>>, %arg5: memref<3x384x128xbf16, #tpu.memory_space<vmem>>, %arg6: memref<1x128xf32, #tpu.memory_space<vmem>>, %arg7: memref<1x8x8x128xbf16, #tpu.memory_space<vmem>>, %arg8: memref<18x16x384xbf16, #tpu.memory_space<vmem>>, %arg9: memref<256x128xf32, #tpu.memory_space<vmem>>) attributes {dimension_semantics = [#tpu.dimension_semantics<parallel>, #tpu.dimension_semantics<parallel>], iteration_bounds = array<i64: 4, 1>, scalar_prefetch = 0 : i64, scratch_operands = 2 : i64, tpu.core_type = #tpu.core_type<tc>, window_params = [{transform_indices = @transform_0, window_bounds = array<i64: 1, 16, 18, 128>}, {transform_indices = @transform_1, window_bounds = array<i64: 1, 1, 18, 128>}, {transform_indices = @transform_2, window_bounds = array<i64: 1, 1, 18, 128>}, {pipeline_mode = #tpu.pipeline_mode<synchronous>, transform_indices = @transform_3, window_bounds = array<i64: 3, 384, 128>}, {pipeline_mode = #tpu.pipeline_mode<synchronous>, transform_indices = @transform_4, window_bounds = array<i64: 1, 128>}, {transform_indices = @transform_5, window_bounds = array<i64: 1, 8, 8, 128>}]} {
    %c0 = arith.constant 0 : index
    %c0_0 = arith.constant 0 : index
    %c0_1 = arith.constant 0 : index
    %c0_2 = arith.constant 0 : index
    %0 = vector.load %arg2[%c0, %c0_0, %c0_1, %c0_2] : memref<1x16x18x128xbf16, #tpu.memory_space<vmem>>, vector<1x16x16x128xbf16>
    %1 = vector.shape_cast %0 : vector<1x16x16x128xbf16> to vector<16x16x128xbf16>
    %c0_3 = arith.constant 0 : index
    %c0_4 = arith.constant 0 : index
    %c0_5 = arith.constant 0 : index
    %2 = vector.load %arg8[%c0_3, %c0_4, %c0_5] : memref<18x16x384xbf16, #tpu.memory_space<vmem>>, vector<16x16x128xbf16>
    tpu.vector_store %arg8[%c0_3, %c0_4, %c0_5], %1 {strides = array<i32>} : memref<18x16x384xbf16, #tpu.memory_space<vmem>>, vector<16x16x128xbf16>,
    %c0_6 = arith.constant 0 : index
    %c0_7 = arith.constant 0 : index
    %c0_8 = arith.constant 0 : index
    %c0_9 = arith.constant 0 : index
    %3 = vector.load %arg3[%c0_6, %c0_7, %c0_8, %c0_9] : memref<1x1x18x128xbf16, #tpu.memory_space<vmem>>, vector<1x1x16x128xbf16>
    %4 = vector.shape_cast %3 : vector<1x1x16x128xbf16> to vector<16x128xbf16>
    %c16 = arith.constant 16 : index
    %c0_10 = arith.constant 0 : index
    %c0_11 = arith.constant 0 : index
    %5 = vector.load %arg8[%c16, %c0_10, %c0_11] : memref<18x16x384xbf16, #tpu.memory_space<vmem>>, vector<1x16x128xbf16>
    %6 = vector.shape_cast %5 : vector<1x16x128xbf16> to vector<16x128xbf16>
    %7 = vector.shape_cast %4 : vector<16x128xbf16> to vector<1x16x128xbf16>
    tpu.vector_store %arg8[%c16, %c0_10, %c0_11], %7 {strides = array<i32>} : memref<18x16x384xbf16, #tpu.memory_space<vmem>>, vector<1x16x128xbf16>,
    %c0_12 = arith.constant 0 : index
    %c0_13 = arith.constant 0 : index
    %c0_14 = arith.constant 0 : index
    %c0_15 = arith.constant 0 : index
    %8 = vector.load %arg4[%c0_12, %c0_13, %c0_14, %c0_15] : memref<1x1x18x128xbf16, #tpu.memory_space<vmem>>, vector<1x1x16x128xbf16>
    %9 = vector.shape_cast %8 : vector<1x1x16x128xbf16> to vector<16x128xbf16>
    %c17 = arith.constant 17 : index
    %c0_16 = arith.constant 0 : index
    %c0_17 = arith.constant 0 : index
    %10 = vector.load %arg8[%c17, %c0_16, %c0_17] : memref<18x16x384xbf16, #tpu.memory_space<vmem>>, vector<1x16x128xbf16>
    %11 = vector.shape_cast %10 : vector<1x16x128xbf16> to vector<16x128xbf16>
    %12 = vector.shape_cast %9 : vector<16x128xbf16> to vector<1x16x128xbf16>
    tpu.vector_store %arg8[%c17, %c0_16, %c0_17], %12 {strides = array<i32>} : memref<18x16x384xbf16, #tpu.memory_space<vmem>>, vector<1x16x128xbf16>,
    %c0_18 = arith.constant 0 : index
    %c0_19 = arith.constant 0 : index
    %c1 = arith.constant 1 : index
    %c0_20 = arith.constant 0 : index
    %13 = vector.load %arg2[%c0_18, %c0_19, %c1, %c0_20] : memref<1x16x18x128xbf16, #tpu.memory_space<vmem>>, vector<1x16x16x128xbf16>
    %14 = vector.shape_cast %13 : vector<1x16x16x128xbf16> to vector<16x16x128xbf16>
    %c0_21 = arith.constant 0 : index
    %c0_22 = arith.constant 0 : index
    %c128 = arith.constant 128 : index
    %15 = vector.load %arg8[%c0_21, %c0_22, %c128] : memref<18x16x384xbf16, #tpu.memory_space<vmem>>, vector<16x16x128xbf16>
    tpu.vector_store %arg8[%c0_21, %c0_22, %c128], %14 {strides = array<i32>} : memref<18x16x384xbf16, #tpu.memory_space<vmem>>, vector<16x16x128xbf16>,
    %c0_23 = arith.constant 0 : index
    %c0_24 = arith.constant 0 : index
    %c1_25 = arith.constant 1 : index
    %c0_26 = arith.constant 0 : index
    %16 = vector.load %arg3[%c0_23, %c0_24, %c1_25, %c0_26] : memref<1x1x18x128xbf16, #tpu.memory_space<vmem>>, vector<1x1x16x128xbf16>
    %17 = vector.shape_cast %16 : vector<1x1x16x128xbf16> to vector<16x128xbf16>
    %c16_27 = arith.constant 16 : index
    %c0_28 = arith.constant 0 : index
    %c128_29 = arith.constant 128 : index
    %18 = vector.load %arg8[%c16_27, %c0_28, %c128_29] : memref<18x16x384xbf16, #tpu.memory_space<vmem>>, vector<1x16x128xbf16>
    %19 = vector.shape_cast %18 : vector<1x16x128xbf16> to vector<16x128xbf16>
    %20 = vector.shape_cast %17 : vector<16x128xbf16> to vector<1x16x128xbf16>
    tpu.vector_store %arg8[%c16_27, %c0_28, %c128_29], %20 {strides = array<i32>} : memref<18x16x384xbf16, #tpu.memory_space<vmem>>, vector<1x16x128xbf16>,
    %c0_30 = arith.constant 0 : index
    %c0_31 = arith.constant 0 : index
    %c1_32 = arith.constant 1 : index
    %c0_33 = arith.constant 0 : index
    %21 = vector.load %arg4[%c0_30, %c0_31, %c1_32, %c0_33] : memref<1x1x18x128xbf16, #tpu.memory_space<vmem>>, vector<1x1x16x128xbf16>
    %22 = vector.shape_cast %21 : vector<1x1x16x128xbf16> to vector<16x128xbf16>
    %c17_34 = arith.constant 17 : index
    %c0_35 = arith.constant 0 : index
    %c128_36 = arith.constant 128 : index
    %23 = vector.load %arg8[%c17_34, %c0_35, %c128_36] : memref<18x16x384xbf16, #tpu.memory_space<vmem>>, vector<1x16x128xbf16>
    %24 = vector.shape_cast %23 : vector<1x16x128xbf16> to vector<16x128xbf16>
    %25 = vector.shape_cast %22 : vector<16x128xbf16> to vector<1x16x128xbf16>
    tpu.vector_store %arg8[%c17_34, %c0_35, %c128_36], %25 {strides = array<i32>} : memref<18x16x384xbf16, #tpu.memory_space<vmem>>, vector<1x16x128xbf16>,
    %c0_37 = arith.constant 0 : index
    %c0_38 = arith.constant 0 : index
    %c2 = arith.constant 2 : index
    %c0_39 = arith.constant 0 : index
    %26 = vector.load %arg2[%c0_37, %c0_38, %c2, %c0_39] : memref<1x16x18x128xbf16, #tpu.memory_space<vmem>>, vector<1x16x16x128xbf16>
    %27 = vector.shape_cast %26 : vector<1x16x16x128xbf16> to vector<16x16x128xbf16>
    %c0_40 = arith.constant 0 : index
    %c0_41 = arith.constant 0 : index
    %c256 = arith.constant 256 : index
    %28 = vector.load %arg8[%c0_40, %c0_41, %c256] : memref<18x16x384xbf16, #tpu.memory_space<vmem>>, vector<16x16x128xbf16>
    tpu.vector_store %arg8[%c0_40, %c0_41, %c256], %27 {strides = array<i32>} : memref<18x16x384xbf16, #tpu.memory_space<vmem>>, vector<16x16x128xbf16>,
    %c0_42 = arith.constant 0 : index
    %c0_43 = arith.constant 0 : index
    %c2_44 = arith.constant 2 : index
    %c0_45 = arith.constant 0 : index
    %29 = vector.load %arg3[%c0_42, %c0_43, %c2_44, %c0_45] : memref<1x1x18x128xbf16, #tpu.memory_space<vmem>>, vector<1x1x16x128xbf16>
    %30 = vector.shape_cast %29 : vector<1x1x16x128xbf16> to vector<16x128xbf16>
    %c16_46 = arith.constant 16 : index
    %c0_47 = arith.constant 0 : index
    %c256_48 = arith.constant 256 : index
    %31 = vector.load %arg8[%c16_46, %c0_47, %c256_48] : memref<18x16x384xbf16, #tpu.memory_space<vmem>>, vector<1x16x128xbf16>
    %32 = vector.shape_cast %31 : vector<1x16x128xbf16> to vector<16x128xbf16>
    %33 = vector.shape_cast %30 : vector<16x128xbf16> to vector<1x16x128xbf16>
    tpu.vector_store %arg8[%c16_46, %c0_47, %c256_48], %33 {strides = array<i32>} : memref<18x16x384xbf16, #tpu.memory_space<vmem>>, vector<1x16x128xbf16>,
    %c0_49 = arith.constant 0 : index
    %c0_50 = arith.constant 0 : index
    %c2_51 = arith.constant 2 : index
    %c0_52 = arith.constant 0 : index
    %34 = vector.load %arg4[%c0_49, %c0_50, %c2_51, %c0_52] : memref<1x1x18x128xbf16, #tpu.memory_space<vmem>>, vector<1x1x16x128xbf16>
    %35 = vector.shape_cast %34 : vector<1x1x16x128xbf16> to vector<16x128xbf16>
    %c17_53 = arith.constant 17 : index
    %c0_54 = arith.constant 0 : index
    %c256_55 = arith.constant 256 : index
    %36 = vector.load %arg8[%c17_53, %c0_54, %c256_55] : memref<18x16x384xbf16, #tpu.memory_space<vmem>>, vector<1x16x128xbf16>
    %37 = vector.shape_cast %36 : vector<1x16x128xbf16> to vector<16x128xbf16>
    %38 = vector.shape_cast %35 : vector<16x128xbf16> to vector<1x16x128xbf16>
    tpu.vector_store %arg8[%c17_53, %c0_54, %c256_55], %38 {strides = array<i32>} : memref<18x16x384xbf16, #tpu.memory_space<vmem>>, vector<1x16x128xbf16>,
    %c0_56 = arith.constant 0 : index
    %c0_57 = arith.constant 0 : index
    %c0_58 = arith.constant 0 : index
    %39 = vector.load %arg8[%c0_56, %c0_57, %c0_58] : memref<18x16x384xbf16, #tpu.memory_space<vmem>>, vector<16x16x384xbf16>
    %40 = vector.shape_cast %39 : vector<16x16x384xbf16> to vector<256x384xbf16>
    %c0_59 = arith.constant 0 : index
    %c0_60 = arith.constant 0 : index
    %c0_61 = arith.constant 0 : index
    %41 = vector.load %arg5[%c0_59, %c0_60, %c0_61] : memref<3x384x128xbf16, #tpu.memory_space<vmem>>, vector<1x384x128xbf16>
    %42 = vector.shape_cast %41 : vector<1x384x128xbf16> to vector<384x128xbf16>
    %cst = arith.constant dense<0.000000e+00> : vector<256x128xf32>
    %43 = tpu.matmul %40, %42, %cst {dimension_numbers = #tpu.dot_dimension_numbers<[1], [0], [0], [1], [0, 0, 1, 1], [], []>} : vector<256x384xbf16>, vector<384x128xbf16>, vector<256x128xf32> -> vector<256x128xf32>
    %c0_62 = arith.constant 0 : index
    %c0_63 = arith.constant 0 : index
    %44 = vector.load %arg9[%c0_62, %c0_63] : memref<256x128xf32, #tpu.memory_space<vmem>>, vector<256x128xf32>
    tpu.vector_store %arg9[%c0_62, %c0_63], %43 {strides = array<i32>} : memref<256x128xf32, #tpu.memory_space<vmem>>, vector<256x128xf32>,
    %c1_64 = arith.constant 1 : index
    %c0_65 = arith.constant 0 : index
    %c0_66 = arith.constant 0 : index
    %45 = vector.load %arg8[%c1_64, %c0_65, %c0_66] : memref<18x16x384xbf16, #tpu.memory_space<vmem>>, vector<16x16x384xbf16>
    %46 = vector.shape_cast %45 : vector<16x16x384xbf16> to vector<256x384xbf16>
    %c1_67 = arith.constant 1 : index
    %c0_68 = arith.constant 0 : index
    %c0_69 = arith.constant 0 : index
    %47 = vector.load %arg5[%c1_67, %c0_68, %c0_69] : memref<3x384x128xbf16, #tpu.memory_space<vmem>>, vector<1x384x128xbf16>
    %48 = vector.shape_cast %47 : vector<1x384x128xbf16> to vector<384x128xbf16>
    %cst_70 = arith.constant dense<0.000000e+00> : vector<256x128xf32>
    %49 = tpu.matmul %46, %48, %cst_70 {dimension_numbers = #tpu.dot_dimension_numbers<[1], [0], [0], [1], [0, 0, 1, 1], [], []>} : vector<256x384xbf16>, vector<384x128xbf16>, vector<256x128xf32> -> vector<256x128xf32>
    %c0_71 = arith.constant 0 : index
    %c0_72 = arith.constant 0 : index
    %50 = vector.load %arg9[%c0_71, %c0_72] : memref<256x128xf32, #tpu.memory_space<vmem>>, vector<256x128xf32>
    %51 = arith.addf %50, %49 : vector<256x128xf32>
    %c0_73 = arith.constant 0 : index
    %c0_74 = arith.constant 0 : index
    %52 = vector.load %arg9[%c0_73, %c0_74] : memref<256x128xf32, #tpu.memory_space<vmem>>, vector<256x128xf32>
    tpu.vector_store %arg9[%c0_73, %c0_74], %51 {strides = array<i32>} : memref<256x128xf32, #tpu.memory_space<vmem>>, vector<256x128xf32>,
    %c2_75 = arith.constant 2 : index
    %c0_76 = arith.constant 0 : index
    %c0_77 = arith.constant 0 : index
    %53 = vector.load %arg8[%c2_75, %c0_76, %c0_77] : memref<18x16x384xbf16, #tpu.memory_space<vmem>>, vector<16x16x384xbf16>
    %54 = vector.shape_cast %53 : vector<16x16x384xbf16> to vector<256x384xbf16>
    %c2_78 = arith.constant 2 : index
    %c0_79 = arith.constant 0 : index
    %c0_80 = arith.constant 0 : index
    %55 = vector.load %arg5[%c2_78, %c0_79, %c0_80] : memref<3x384x128xbf16, #tpu.memory_space<vmem>>, vector<1x384x128xbf16>
    %56 = vector.shape_cast %55 : vector<1x384x128xbf16> to vector<384x128xbf16>
    %cst_81 = arith.constant dense<0.000000e+00> : vector<256x128xf32>
    %57 = tpu.matmul %54, %56, %cst_81 {dimension_numbers = #tpu.dot_dimension_numbers<[1], [0], [0], [1], [0, 0, 1, 1], [], []>} : vector<256x384xbf16>, vector<384x128xbf16>, vector<256x128xf32> -> vector<256x128xf32>
    %c0_82 = arith.constant 0 : index
    %c0_83 = arith.constant 0 : index
    %58 = vector.load %arg9[%c0_82, %c0_83] : memref<256x128xf32, #tpu.memory_space<vmem>>, vector<256x128xf32>
    %59 = arith.addf %58, %57 : vector<256x128xf32>
    %c0_84 = arith.constant 0 : index
    %c0_85 = arith.constant 0 : index
    %60 = vector.load %arg9[%c0_84, %c0_85] : memref<256x128xf32, #tpu.memory_space<vmem>>, vector<256x128xf32>
    tpu.vector_store %arg9[%c0_84, %c0_85], %59 {strides = array<i32>} : memref<256x128xf32, #tpu.memory_space<vmem>>, vector<256x128xf32>,
    %c0_86 = arith.constant 0 : index
    %c0_87 = arith.constant 0 : index
    %61 = vector.load %arg6[%c0_86, %c0_87] : memref<1x128xf32, #tpu.memory_space<vmem>>, vector<1x128xf32>
    %c0_88 = arith.constant 0 : index
    %c0_89 = arith.constant 0 : index
    %62 = tpu.strided_load %arg9[%c0_88, %c0_89] {strides = array<i32: 2, 1>} : memref<256x128xf32, #tpu.memory_space<vmem>>, vector<128x128xf32>
    %c1_90 = arith.constant 1 : index
    %c0_91 = arith.constant 0 : index
    %63 = tpu.strided_load %arg9[%c1_90, %c0_91] {strides = array<i32: 2, 1>} : memref<256x128xf32, #tpu.memory_space<vmem>>, vector<128x128xf32>
    %64 = arith.maximumf %62, %63 : vector<128x128xf32>
    %65 = vector.extract_strided_slice %64 {offsets = [0, 0], sizes = [8, 128], strides = [1, 1]} : vector<128x128xf32> to vector<8x128xf32>
    %66 = vector.extract_strided_slice %64 {offsets = [8, 0], sizes = [8, 128], strides = [1, 1]} : vector<128x128xf32> to vector<8x128xf32>
    %67 = arith.maximumf %65, %66 : vector<8x128xf32>
    %68 = vector.broadcast %61 : vector<1x128xf32> to vector<8x128xf32>
    %69 = arith.addf %67, %68 : vector<8x128xf32>
    %cst_92 = arith.constant 0.000000e+00 : f32
    %70 = vector.broadcast %cst_92 : f32 to vector<8x128xf32>
    %71 = arith.maximumf %69, %70 : vector<8x128xf32>
    %72 = arith.truncf %71 : vector<8x128xf32> to vector<8x128xbf16>
    %c0_93 = arith.constant 0 : index
    %c0_94 = arith.constant 0 : index
    %c0_95 = arith.constant 0 : index
    %c0_96 = arith.constant 0 : index
    %73 = vector.load %arg7[%c0_93, %c0_94, %c0_95, %c0_96] : memref<1x8x8x128xbf16, #tpu.memory_space<vmem>>, vector<1x1x8x128xbf16>
    %74 = vector.shape_cast %73 : vector<1x1x8x128xbf16> to vector<8x128xbf16>
    %75 = vector.shape_cast %72 : vector<8x128xbf16> to vector<1x1x8x128xbf16>
    tpu.vector_store %arg7[%c0_93, %c0_94, %c0_95, %c0_96], %75 {strides = array<i32>} : memref<1x8x8x128xbf16, #tpu.memory_space<vmem>>, vector<1x1x8x128xbf16>,
    %76 = vector.extract_strided_slice %64 {offsets = [16, 0], sizes = [8, 128], strides = [1, 1]} : vector<128x128xf32> to vector<8x128xf32>
    %77 = vector.extract_strided_slice %64 {offsets = [24, 0], sizes = [8, 128], strides = [1, 1]} : vector<128x128xf32> to vector<8x128xf32>
    %78 = arith.maximumf %76, %77 : vector<8x128xf32>
    %79 = vector.broadcast %61 : vector<1x128xf32> to vector<8x128xf32>
    %80 = arith.addf %78, %79 : vector<8x128xf32>
    %cst_97 = arith.constant 0.000000e+00 : f32
    %81 = vector.broadcast %cst_97 : f32 to vector<8x128xf32>
    %82 = arith.maximumf %80, %81 : vector<8x128xf32>
    %83 = arith.truncf %82 : vector<8x128xf32> to vector<8x128xbf16>
    %c0_98 = arith.constant 0 : index
    %c1_99 = arith.constant 1 : index
    %c0_100 = arith.constant 0 : index
    %c0_101 = arith.constant 0 : index
    %84 = vector.load %arg7[%c0_98, %c1_99, %c0_100, %c0_101] : memref<1x8x8x128xbf16, #tpu.memory_space<vmem>>, vector<1x1x8x128xbf16>
    %85 = vector.shape_cast %84 : vector<1x1x8x128xbf16> to vector<8x128xbf16>
    %86 = vector.shape_cast %83 : vector<8x128xbf16> to vector<1x1x8x128xbf16>
    tpu.vector_store %arg7[%c0_98, %c1_99, %c0_100, %c0_101], %86 {strides = array<i32>} : memref<1x8x8x128xbf16, #tpu.memory_space<vmem>>, vector<1x1x8x128xbf16>,
    %87 = vector.extract_strided_slice %64 {offsets = [32, 0], sizes = [8, 128], strides = [1, 1]} : vector<128x128xf32> to vector<8x128xf32>
    %88 = vector.extract_strided_slice %64 {offsets = [40, 0], sizes = [8, 128], strides = [1, 1]} : vector<128x128xf32> to vector<8x128xf32>
    %89 = arith.maximumf %87, %88 : vector<8x128xf32>
    %90 = vector.broadcast %61 : vector<1x128xf32> to vector<8x128xf32>
    %91 = arith.addf %89, %90 : vector<8x128xf32>
    %cst_102 = arith.constant 0.000000e+00 : f32
    %92 = vector.broadcast %cst_102 : f32 to vector<8x128xf32>
    %93 = arith.maximumf %91, %92 : vector<8x128xf32>
    %94 = arith.truncf %93 : vector<8x128xf32> to vector<8x128xbf16>
    %c0_103 = arith.constant 0 : index
    %c2_104 = arith.constant 2 : index
    %c0_105 = arith.constant 0 : index
    %c0_106 = arith.constant 0 : index
    %95 = vector.load %arg7[%c0_103, %c2_104, %c0_105, %c0_106] : memref<1x8x8x128xbf16, #tpu.memory_space<vmem>>, vector<1x1x8x128xbf16>
    %96 = vector.shape_cast %95 : vector<1x1x8x128xbf16> to vector<8x128xbf16>
    %97 = vector.shape_cast %94 : vector<8x128xbf16> to vector<1x1x8x128xbf16>
    tpu.vector_store %arg7[%c0_103, %c2_104, %c0_105, %c0_106], %97 {strides = array<i32>} : memref<1x8x8x128xbf16, #tpu.memory_space<vmem>>, vector<1x1x8x128xbf16>,
    %98 = vector.extract_strided_slice %64 {offsets = [48, 0], sizes = [8, 128], strides = [1, 1]} : vector<128x128xf32> to vector<8x128xf32>
    %99 = vector.extract_strided_slice %64 {offsets = [56, 0], sizes = [8, 128], strides = [1, 1]} : vector<128x128xf32> to vector<8x128xf32>
    %100 = arith.maximumf %98, %99 : vector<8x128xf32>
    %101 = vector.broadcast %61 : vector<1x128xf32> to vector<8x128xf32>
    %102 = arith.addf %100, %101 : vector<8x128xf32>
    %cst_107 = arith.constant 0.000000e+00 : f32
    %103 = vector.broadcast %cst_107 : f32 to vector<8x128xf32>
    %104 = arith.maximumf %102, %103 : vector<8x128xf32>
    %105 = arith.truncf %104 : vector<8x128xf32> to vector<8x128xbf16>
    %c0_108 = arith.constant 0 : index
    %c3 = arith.constant 3 : index
    %c0_109 = arith.constant 0 : index
    %c0_110 = arith.constant 0 : index
    %106 = vector.load %arg7[%c0_108, %c3, %c0_109, %c0_110] : memref<1x8x8x128xbf16, #tpu.memory_space<vmem>>, vector<1x1x8x128xbf16>
    %107 = vector.shape_cast %106 : vector<1x1x8x128xbf16> to vector<8x128xbf16>
    %108 = vector.shape_cast %105 : vector<8x128xbf16> to vector<1x1x8x128xbf16>
    tpu.vector_store %arg7[%c0_108, %c3, %c0_109, %c0_110], %108 {strides = array<i32>} : memref<1x8x8x128xbf16, #tpu.memory_space<vmem>>, vector<1x1x8x128xbf16>,
    %109 = vector.extract_strided_slice %64 {offsets = [64, 0], sizes = [8, 128], strides = [1, 1]} : vector<128x128xf32> to vector<8x128xf32>
    %110 = vector.extract_strided_slice %64 {offsets = [72, 0], sizes = [8, 128], strides = [1, 1]} : vector<128x128xf32> to vector<8x128xf32>
    %111 = arith.maximumf %109, %110 : vector<8x128xf32>
    %112 = vector.broadcast %61 : vector<1x128xf32> to vector<8x128xf32>
    %113 = arith.addf %111, %112 : vector<8x128xf32>
    %cst_111 = arith.constant 0.000000e+00 : f32
    %114 = vector.broadcast %cst_111 : f32 to vector<8x128xf32>
    %115 = arith.maximumf %113, %114 : vector<8x128xf32>
    %116 = arith.truncf %115 : vector<8x128xf32> to vector<8x128xbf16>
    %c0_112 = arith.constant 0 : index
    %c4 = arith.constant 4 : index
    %c0_113 = arith.constant 0 : index
    %c0_114 = arith.constant 0 : index
    %117 = vector.load %arg7[%c0_112, %c4, %c0_113, %c0_114] : memref<1x8x8x128xbf16, #tpu.memory_space<vmem>>, vector<1x1x8x128xbf16>
    %118 = vector.shape_cast %117 : vector<1x1x8x128xbf16> to vector<8x128xbf16>
    %119 = vector.shape_cast %116 : vector<8x128xbf16> to vector<1x1x8x128xbf16>
    tpu.vector_store %arg7[%c0_112, %c4, %c0_113, %c0_114], %119 {strides = array<i32>} : memref<1x8x8x128xbf16, #tpu.memory_space<vmem>>, vector<1x1x8x128xbf16>,
    %120 = vector.extract_strided_slice %64 {offsets = [80, 0], sizes = [8, 128], strides = [1, 1]} : vector<128x128xf32> to vector<8x128xf32>
    %121 = vector.extract_strided_slice %64 {offsets = [88, 0], sizes = [8, 128], strides = [1, 1]} : vector<128x128xf32> to vector<8x128xf32>
    %122 = arith.maximumf %120, %121 : vector<8x128xf32>
    %123 = vector.broadcast %61 : vector<1x128xf32> to vector<8x128xf32>
    %124 = arith.addf %122, %123 : vector<8x128xf32>
    %cst_115 = arith.constant 0.000000e+00 : f32
    %125 = vector.broadcast %cst_115 : f32 to vector<8x128xf32>
    %126 = arith.maximumf %124, %125 : vector<8x128xf32>
    %127 = arith.truncf %126 : vector<8x128xf32> to vector<8x128xbf16>
    %c0_116 = arith.constant 0 : index
    %c5 = arith.constant 5 : index
    %c0_117 = arith.constant 0 : index
    %c0_118 = arith.constant 0 : index
    %128 = vector.load %arg7[%c0_116, %c5, %c0_117, %c0_118] : memref<1x8x8x128xbf16, #tpu.memory_space<vmem>>, vector<1x1x8x128xbf16>
    %129 = vector.shape_cast %128 : vector<1x1x8x128xbf16> to vector<8x128xbf16>
    %130 = vector.shape_cast %127 : vector<8x128xbf16> to vector<1x1x8x128xbf16>
    tpu.vector_store %arg7[%c0_116, %c5, %c0_117, %c0_118], %130 {strides = array<i32>} : memref<1x8x8x128xbf16, #tpu.memory_space<vmem>>, vector<1x1x8x128xbf16>,
    %131 = vector.extract_strided_slice %64 {offsets = [96, 0], sizes = [8, 128], strides = [1, 1]} : vector<128x128xf32> to vector<8x128xf32>
    %132 = vector.extract_strided_slice %64 {offsets = [104, 0], sizes = [8, 128], strides = [1, 1]} : vector<128x128xf32> to vector<8x128xf32>
    %133 = arith.maximumf %131, %132 : vector<8x128xf32>
    %134 = vector.broadcast %61 : vector<1x128xf32> to vector<8x128xf32>
    %135 = arith.addf %133, %134 : vector<8x128xf32>
    %cst_119 = arith.constant 0.000000e+00 : f32
    %136 = vector.broadcast %cst_119 : f32 to vector<8x128xf32>
    %137 = arith.maximumf %135, %136 : vector<8x128xf32>
    %138 = arith.truncf %137 : vector<8x128xf32> to vector<8x128xbf16>
    %c0_120 = arith.constant 0 : index
    %c6 = arith.constant 6 : index
    %c0_121 = arith.constant 0 : index
    %c0_122 = arith.constant 0 : index
    %139 = vector.load %arg7[%c0_120, %c6, %c0_121, %c0_122] : memref<1x8x8x128xbf16, #tpu.memory_space<vmem>>, vector<1x1x8x128xbf16>
    %140 = vector.shape_cast %139 : vector<1x1x8x128xbf16> to vector<8x128xbf16>
    %141 = vector.shape_cast %138 : vector<8x128xbf16> to vector<1x1x8x128xbf16>
    tpu.vector_store %arg7[%c0_120, %c6, %c0_121, %c0_122], %141 {strides = array<i32>} : memref<1x8x8x128xbf16, #tpu.memory_space<vmem>>, vector<1x1x8x128xbf16>,
    %142 = vector.extract_strided_slice %64 {offsets = [112, 0], sizes = [8, 128], strides = [1, 1]} : vector<128x128xf32> to vector<8x128xf32>
    %143 = vector.extract_strided_slice %64 {offsets = [120, 0], sizes = [8, 128], strides = [1, 1]} : vector<128x128xf32> to vector<8x128xf32>
    %144 = arith.maximumf %142, %143 : vector<8x128xf32>
    %145 = vector.broadcast %61 : vector<1x128xf32> to vector<8x128xf32>
    %146 = arith.addf %144, %145 : vector<8x128xf32>
    %cst_123 = arith.constant 0.000000e+00 : f32
    %147 = vector.broadcast %cst_123 : f32 to vector<8x128xf32>
    %148 = arith.maximumf %146, %147 : vector<8x128xf32>
    %149 = arith.truncf %148 : vector<8x128xf32> to vector<8x128xbf16>
    %c0_124 = arith.constant 0 : index
    %c7 = arith.constant 7 : index
    %c0_125 = arith.constant 0 : index
    %c0_126 = arith.constant 0 : index
    %150 = vector.load %arg7[%c0_124, %c7, %c0_125, %c0_126] : memref<1x8x8x128xbf16, #tpu.memory_space<vmem>>, vector<1x1x8x128xbf16>
    %151 = vector.shape_cast %150 : vector<1x1x8x128xbf16> to vector<8x128xbf16>
    %152 = vector.shape_cast %149 : vector<8x128xbf16> to vector<1x1x8x128xbf16>
    tpu.vector_store %arg7[%c0_124, %c7, %c0_125, %c0_126], %152 {strides = array<i32>} : memref<1x8x8x128xbf16, #tpu.memory_space<vmem>>, vector<1x1x8x128xbf16>,
    return
  }
  func.func @transform_0(%arg0: i32, %arg1: i32) -> (i32, i32, i32, i32) {
    %c0_i32 = arith.constant 0 : i32
    %c0_i32_0 = arith.constant 0 : i32
    %c0_i32_1 = arith.constant 0 : i32
    return %arg0, %arg1, %c0_i32, %c0_i32_0 : i32, i32, i32, i32
  }
  func.func @transform_1(%arg0: i32, %arg1: i32) -> (i32, i32, i32, i32) {
    %c16_i32 = arith.constant 16 : i32
    %0 = arith.muli %arg1, %c16_i32 : i32
    %c16_i32_0 = arith.constant 16 : i32
    %1 = arith.addi %0, %c16_i32_0 : i32
    %c0_i32 = arith.constant 0 : i32
    %c0_i32_1 = arith.constant 0 : i32
    %c0_i32_2 = arith.constant 0 : i32
    return %arg0, %1, %c0_i32, %c0_i32_1 : i32, i32, i32, i32
  }
  func.func @transform_2(%arg0: i32, %arg1: i32) -> (i32, i32, i32, i32) {
    %c16_i32 = arith.constant 16 : i32
    %0 = arith.muli %arg1, %c16_i32 : i32
    %c16_i32_0 = arith.constant 16 : i32
    %1 = arith.addi %0, %c16_i32_0 : i32
    %c1_i32 = arith.constant 1 : i32
    %2 = arith.addi %1, %c1_i32 : i32
    %c0_i32 = arith.constant 0 : i32
    %c0_i32_1 = arith.constant 0 : i32
    %c0_i32_2 = arith.constant 0 : i32
    return %arg0, %2, %c0_i32, %c0_i32_1 : i32, i32, i32, i32
  }
  func.func @transform_3(%arg0: i32, %arg1: i32) -> (i32, i32, i32) {
    %c0_i32 = arith.constant 0 : i32
    %c0_i32_0 = arith.constant 0 : i32
    %c0_i32_1 = arith.constant 0 : i32
    %c0_i32_2 = arith.constant 0 : i32
    return %c0_i32, %c0_i32_0, %c0_i32_1 : i32, i32, i32
  }
  func.func @transform_4(%arg0: i32, %arg1: i32) -> (i32, i32) {
    %c0_i32 = arith.constant 0 : i32
    %c0_i32_0 = arith.constant 0 : i32
    %c0_i32_1 = arith.constant 0 : i32
    return %c0_i32, %c0_i32_0 : i32, i32
  }
  func.func @transform_5(%arg0: i32, %arg1: i32) -> (i32, i32, i32, i32) {
    %c0_i32 = arith.constant 0 : i32
    %c0_i32_0 = arith.constant 0 : i32
    %c0_i32_1 = arith.constant 0 : i32
    return %arg0, %arg1, %c0_i32, %c0_i32_0 : i32, i32, i32, i32
  }
}

module attributes {stable_mosaic.version = 11 : i64} {
  func.func @kernel(%arg0: i32, %arg1: memref<1024x32xbf16, #tpu.memory_space<vmem>>, %arg2: memref<32x128xbf16, #tpu.memory_space<vmem>>, %arg3: memref<1x128xf32, #tpu.memory_space<vmem>>, %arg4: memref<1024x128xbf16, #tpu.memory_space<vmem>>) attributes {dimension_semantics = [#tpu.dimension_semantics<parallel>], iteration_bounds = array<i64: 1>, scalar_prefetch = 0 : i64, scratch_operands = 0 : i64, tpu.core_type = #tpu.core_type<tc>, window_params = [{transform_indices = @transform_0, window_bounds = array<i64: 1024, 32>}, {pipeline_mode = #tpu.pipeline_mode<synchronous>, transform_indices = @transform_1, window_bounds = array<i64: 32, 128>}, {pipeline_mode = #tpu.pipeline_mode<synchronous>, transform_indices = @transform_2, window_bounds = array<i64: 1, 128>}, {transform_indices = @transform_3, window_bounds = array<i64: 1024, 128>}]} {
    %c0 = arith.constant 0 : index
    %c0_0 = arith.constant 0 : index
    %0 = vector.load %arg1[%c0, %c0_0] : memref<1024x32xbf16, #tpu.memory_space<vmem>>, vector<1024x32xbf16>
    %c0_1 = arith.constant 0 : index
    %c0_2 = arith.constant 0 : index
    %1 = vector.load %arg2[%c0_1, %c0_2] : memref<32x128xbf16, #tpu.memory_space<vmem>>, vector<32x128xbf16>
    %cst = arith.constant dense<0.000000e+00> : vector<1024x128xf32>
    %2 = tpu.matmul %0, %1, %cst {dimension_numbers = #tpu.dot_dimension_numbers<[1], [0], [0], [1], [0, 0, 1, 1], [], []>} : vector<1024x32xbf16>, vector<32x128xbf16>, vector<1024x128xf32> -> vector<1024x128xf32>
    %c0_3 = arith.constant 0 : index
    %c0_4 = arith.constant 0 : index
    %3 = vector.load %arg3[%c0_3, %c0_4] : memref<1x128xf32, #tpu.memory_space<vmem>>, vector<1x128xf32>
    %4 = vector.broadcast %3 : vector<1x128xf32> to vector<1024x128xf32>
    %5 = arith.addf %2, %4 : vector<1024x128xf32>
    %cst_5 = arith.constant 0.000000e+00 : f32
    %6 = vector.broadcast %cst_5 : f32 to vector<1024x128xf32>
    %7 = arith.maximumf %5, %6 : vector<1024x128xf32>
    %8 = arith.truncf %7 : vector<1024x128xf32> to vector<1024x128xbf16>
    %c0_6 = arith.constant 0 : index
    %c0_7 = arith.constant 0 : index
    %9 = vector.load %arg4[%c0_6, %c0_7] : memref<1024x128xbf16, #tpu.memory_space<vmem>>, vector<1024x128xbf16>
    tpu.vector_store %arg4[%c0_6, %c0_7], %8 {strides = array<i32>} : memref<1024x128xbf16, #tpu.memory_space<vmem>>, vector<1024x128xbf16>,
    return
  }
  func.func @transform_0(%arg0: i32) -> (i32, i32) {
    %c0_i32 = arith.constant 0 : i32
    %c0_i32_0 = arith.constant 0 : i32
    return %arg0, %c0_i32 : i32, i32
  }
  func.func @transform_1(%arg0: i32) -> (i32, i32) {
    %c0_i32 = arith.constant 0 : i32
    %c0_i32_0 = arith.constant 0 : i32
    %c0_i32_1 = arith.constant 0 : i32
    return %c0_i32, %c0_i32_0 : i32, i32
  }
  func.func @transform_2(%arg0: i32) -> (i32, i32) {
    %c0_i32 = arith.constant 0 : i32
    %c0_i32_0 = arith.constant 0 : i32
    %c0_i32_1 = arith.constant 0 : i32
    return %c0_i32, %c0_i32_0 : i32, i32
  }
  func.func @transform_3(%arg0: i32) -> (i32, i32) {
    %c0_i32 = arith.constant 0 : i32
    %c0_i32_0 = arith.constant 0 : i32
    return %arg0, %c0_i32 : i32, i32
  }
}

module attributes {stable_mosaic.version = 11 : i64} {
  func.func @kernel(%arg0: i32, %arg1: i32, %arg2: memref<1x8x10x128xbf16, #tpu.memory_space<vmem>>, %arg3: memref<1x1x10x128xbf16, #tpu.memory_space<vmem>>, %arg4: memref<1x1x10x128xbf16, #tpu.memory_space<vmem>>, %arg5: memref<3x384x128xbf16, #tpu.memory_space<vmem>>, %arg6: memref<1x128xf32, #tpu.memory_space<vmem>>, %arg7: memref<1x8x8x128xbf16, #tpu.memory_space<vmem>>, %arg8: memref<10x8x384xbf16, #tpu.memory_space<vmem>>, %arg9: memref<64x128xf32, #tpu.memory_space<vmem>>) attributes {dimension_semantics = [#tpu.dimension_semantics<parallel>, #tpu.dimension_semantics<parallel>], iteration_bounds = array<i64: 4, 1>, scalar_prefetch = 0 : i64, scratch_operands = 2 : i64, tpu.core_type = #tpu.core_type<tc>, window_params = [{transform_indices = @transform_0, window_bounds = array<i64: 1, 8, 10, 128>}, {transform_indices = @transform_1, window_bounds = array<i64: 1, 1, 10, 128>}, {transform_indices = @transform_2, window_bounds = array<i64: 1, 1, 10, 128>}, {pipeline_mode = #tpu.pipeline_mode<synchronous>, transform_indices = @transform_3, window_bounds = array<i64: 3, 384, 128>}, {pipeline_mode = #tpu.pipeline_mode<synchronous>, transform_indices = @transform_4, window_bounds = array<i64: 1, 128>}, {transform_indices = @transform_5, window_bounds = array<i64: 1, 8, 8, 128>}]} {
    %c0 = arith.constant 0 : index
    %c0_0 = arith.constant 0 : index
    %c0_1 = arith.constant 0 : index
    %c0_2 = arith.constant 0 : index
    %0 = vector.load %arg2[%c0, %c0_0, %c0_1, %c0_2] : memref<1x8x10x128xbf16, #tpu.memory_space<vmem>>, vector<1x8x8x128xbf16>
    %1 = vector.shape_cast %0 : vector<1x8x8x128xbf16> to vector<8x8x128xbf16>
    %c0_3 = arith.constant 0 : index
    %c0_4 = arith.constant 0 : index
    %c0_5 = arith.constant 0 : index
    %2 = vector.load %arg8[%c0_3, %c0_4, %c0_5] : memref<10x8x384xbf16, #tpu.memory_space<vmem>>, vector<8x8x128xbf16>
    tpu.vector_store %arg8[%c0_3, %c0_4, %c0_5], %1 {strides = array<i32>} : memref<10x8x384xbf16, #tpu.memory_space<vmem>>, vector<8x8x128xbf16>,
    %c0_6 = arith.constant 0 : index
    %c0_7 = arith.constant 0 : index
    %c0_8 = arith.constant 0 : index
    %c0_9 = arith.constant 0 : index
    %3 = vector.load %arg3[%c0_6, %c0_7, %c0_8, %c0_9] : memref<1x1x10x128xbf16, #tpu.memory_space<vmem>>, vector<1x1x8x128xbf16>
    %4 = vector.shape_cast %3 : vector<1x1x8x128xbf16> to vector<8x128xbf16>
    %c8 = arith.constant 8 : index
    %c0_10 = arith.constant 0 : index
    %c0_11 = arith.constant 0 : index
    %5 = vector.load %arg8[%c8, %c0_10, %c0_11] : memref<10x8x384xbf16, #tpu.memory_space<vmem>>, vector<1x8x128xbf16>
    %6 = vector.shape_cast %5 : vector<1x8x128xbf16> to vector<8x128xbf16>
    %7 = vector.shape_cast %4 : vector<8x128xbf16> to vector<1x8x128xbf16>
    tpu.vector_store %arg8[%c8, %c0_10, %c0_11], %7 {strides = array<i32>} : memref<10x8x384xbf16, #tpu.memory_space<vmem>>, vector<1x8x128xbf16>,
    %c0_12 = arith.constant 0 : index
    %c0_13 = arith.constant 0 : index
    %c0_14 = arith.constant 0 : index
    %c0_15 = arith.constant 0 : index
    %8 = vector.load %arg4[%c0_12, %c0_13, %c0_14, %c0_15] : memref<1x1x10x128xbf16, #tpu.memory_space<vmem>>, vector<1x1x8x128xbf16>
    %9 = vector.shape_cast %8 : vector<1x1x8x128xbf16> to vector<8x128xbf16>
    %c9 = arith.constant 9 : index
    %c0_16 = arith.constant 0 : index
    %c0_17 = arith.constant 0 : index
    %10 = vector.load %arg8[%c9, %c0_16, %c0_17] : memref<10x8x384xbf16, #tpu.memory_space<vmem>>, vector<1x8x128xbf16>
    %11 = vector.shape_cast %10 : vector<1x8x128xbf16> to vector<8x128xbf16>
    %12 = vector.shape_cast %9 : vector<8x128xbf16> to vector<1x8x128xbf16>
    tpu.vector_store %arg8[%c9, %c0_16, %c0_17], %12 {strides = array<i32>} : memref<10x8x384xbf16, #tpu.memory_space<vmem>>, vector<1x8x128xbf16>,
    %c0_18 = arith.constant 0 : index
    %c0_19 = arith.constant 0 : index
    %c1 = arith.constant 1 : index
    %c0_20 = arith.constant 0 : index
    %13 = vector.load %arg2[%c0_18, %c0_19, %c1, %c0_20] : memref<1x8x10x128xbf16, #tpu.memory_space<vmem>>, vector<1x8x8x128xbf16>
    %14 = vector.shape_cast %13 : vector<1x8x8x128xbf16> to vector<8x8x128xbf16>
    %c0_21 = arith.constant 0 : index
    %c0_22 = arith.constant 0 : index
    %c128 = arith.constant 128 : index
    %15 = vector.load %arg8[%c0_21, %c0_22, %c128] : memref<10x8x384xbf16, #tpu.memory_space<vmem>>, vector<8x8x128xbf16>
    tpu.vector_store %arg8[%c0_21, %c0_22, %c128], %14 {strides = array<i32>} : memref<10x8x384xbf16, #tpu.memory_space<vmem>>, vector<8x8x128xbf16>,
    %c0_23 = arith.constant 0 : index
    %c0_24 = arith.constant 0 : index
    %c1_25 = arith.constant 1 : index
    %c0_26 = arith.constant 0 : index
    %16 = vector.load %arg3[%c0_23, %c0_24, %c1_25, %c0_26] : memref<1x1x10x128xbf16, #tpu.memory_space<vmem>>, vector<1x1x8x128xbf16>
    %17 = vector.shape_cast %16 : vector<1x1x8x128xbf16> to vector<8x128xbf16>
    %c8_27 = arith.constant 8 : index
    %c0_28 = arith.constant 0 : index
    %c128_29 = arith.constant 128 : index
    %18 = vector.load %arg8[%c8_27, %c0_28, %c128_29] : memref<10x8x384xbf16, #tpu.memory_space<vmem>>, vector<1x8x128xbf16>
    %19 = vector.shape_cast %18 : vector<1x8x128xbf16> to vector<8x128xbf16>
    %20 = vector.shape_cast %17 : vector<8x128xbf16> to vector<1x8x128xbf16>
    tpu.vector_store %arg8[%c8_27, %c0_28, %c128_29], %20 {strides = array<i32>} : memref<10x8x384xbf16, #tpu.memory_space<vmem>>, vector<1x8x128xbf16>,
    %c0_30 = arith.constant 0 : index
    %c0_31 = arith.constant 0 : index
    %c1_32 = arith.constant 1 : index
    %c0_33 = arith.constant 0 : index
    %21 = vector.load %arg4[%c0_30, %c0_31, %c1_32, %c0_33] : memref<1x1x10x128xbf16, #tpu.memory_space<vmem>>, vector<1x1x8x128xbf16>
    %22 = vector.shape_cast %21 : vector<1x1x8x128xbf16> to vector<8x128xbf16>
    %c9_34 = arith.constant 9 : index
    %c0_35 = arith.constant 0 : index
    %c128_36 = arith.constant 128 : index
    %23 = vector.load %arg8[%c9_34, %c0_35, %c128_36] : memref<10x8x384xbf16, #tpu.memory_space<vmem>>, vector<1x8x128xbf16>
    %24 = vector.shape_cast %23 : vector<1x8x128xbf16> to vector<8x128xbf16>
    %25 = vector.shape_cast %22 : vector<8x128xbf16> to vector<1x8x128xbf16>
    tpu.vector_store %arg8[%c9_34, %c0_35, %c128_36], %25 {strides = array<i32>} : memref<10x8x384xbf16, #tpu.memory_space<vmem>>, vector<1x8x128xbf16>,
    %c0_37 = arith.constant 0 : index
    %c0_38 = arith.constant 0 : index
    %c2 = arith.constant 2 : index
    %c0_39 = arith.constant 0 : index
    %26 = vector.load %arg2[%c0_37, %c0_38, %c2, %c0_39] : memref<1x8x10x128xbf16, #tpu.memory_space<vmem>>, vector<1x8x8x128xbf16>
    %27 = vector.shape_cast %26 : vector<1x8x8x128xbf16> to vector<8x8x128xbf16>
    %c0_40 = arith.constant 0 : index
    %c0_41 = arith.constant 0 : index
    %c256 = arith.constant 256 : index
    %28 = vector.load %arg8[%c0_40, %c0_41, %c256] : memref<10x8x384xbf16, #tpu.memory_space<vmem>>, vector<8x8x128xbf16>
    tpu.vector_store %arg8[%c0_40, %c0_41, %c256], %27 {strides = array<i32>} : memref<10x8x384xbf16, #tpu.memory_space<vmem>>, vector<8x8x128xbf16>,
    %c0_42 = arith.constant 0 : index
    %c0_43 = arith.constant 0 : index
    %c2_44 = arith.constant 2 : index
    %c0_45 = arith.constant 0 : index
    %29 = vector.load %arg3[%c0_42, %c0_43, %c2_44, %c0_45] : memref<1x1x10x128xbf16, #tpu.memory_space<vmem>>, vector<1x1x8x128xbf16>
    %30 = vector.shape_cast %29 : vector<1x1x8x128xbf16> to vector<8x128xbf16>
    %c8_46 = arith.constant 8 : index
    %c0_47 = arith.constant 0 : index
    %c256_48 = arith.constant 256 : index
    %31 = vector.load %arg8[%c8_46, %c0_47, %c256_48] : memref<10x8x384xbf16, #tpu.memory_space<vmem>>, vector<1x8x128xbf16>
    %32 = vector.shape_cast %31 : vector<1x8x128xbf16> to vector<8x128xbf16>
    %33 = vector.shape_cast %30 : vector<8x128xbf16> to vector<1x8x128xbf16>
    tpu.vector_store %arg8[%c8_46, %c0_47, %c256_48], %33 {strides = array<i32>} : memref<10x8x384xbf16, #tpu.memory_space<vmem>>, vector<1x8x128xbf16>,
    %c0_49 = arith.constant 0 : index
    %c0_50 = arith.constant 0 : index
    %c2_51 = arith.constant 2 : index
    %c0_52 = arith.constant 0 : index
    %34 = vector.load %arg4[%c0_49, %c0_50, %c2_51, %c0_52] : memref<1x1x10x128xbf16, #tpu.memory_space<vmem>>, vector<1x1x8x128xbf16>
    %35 = vector.shape_cast %34 : vector<1x1x8x128xbf16> to vector<8x128xbf16>
    %c9_53 = arith.constant 9 : index
    %c0_54 = arith.constant 0 : index
    %c256_55 = arith.constant 256 : index
    %36 = vector.load %arg8[%c9_53, %c0_54, %c256_55] : memref<10x8x384xbf16, #tpu.memory_space<vmem>>, vector<1x8x128xbf16>
    %37 = vector.shape_cast %36 : vector<1x8x128xbf16> to vector<8x128xbf16>
    %38 = vector.shape_cast %35 : vector<8x128xbf16> to vector<1x8x128xbf16>
    tpu.vector_store %arg8[%c9_53, %c0_54, %c256_55], %38 {strides = array<i32>} : memref<10x8x384xbf16, #tpu.memory_space<vmem>>, vector<1x8x128xbf16>,
    %c0_56 = arith.constant 0 : index
    %c0_57 = arith.constant 0 : index
    %c0_58 = arith.constant 0 : index
    %39 = vector.load %arg8[%c0_56, %c0_57, %c0_58] : memref<10x8x384xbf16, #tpu.memory_space<vmem>>, vector<8x8x384xbf16>
    %40 = vector.shape_cast %39 : vector<8x8x384xbf16> to vector<64x384xbf16>
    %c0_59 = arith.constant 0 : index
    %c0_60 = arith.constant 0 : index
    %c0_61 = arith.constant 0 : index
    %41 = vector.load %arg5[%c0_59, %c0_60, %c0_61] : memref<3x384x128xbf16, #tpu.memory_space<vmem>>, vector<1x384x128xbf16>
    %42 = vector.shape_cast %41 : vector<1x384x128xbf16> to vector<384x128xbf16>
    %cst = arith.constant dense<0.000000e+00> : vector<64x128xf32>
    %43 = tpu.matmul %40, %42, %cst {dimension_numbers = #tpu.dot_dimension_numbers<[1], [0], [0], [1], [0, 0, 1, 1], [], []>} : vector<64x384xbf16>, vector<384x128xbf16>, vector<64x128xf32> -> vector<64x128xf32>
    %c0_62 = arith.constant 0 : index
    %c0_63 = arith.constant 0 : index
    %44 = vector.load %arg9[%c0_62, %c0_63] : memref<64x128xf32, #tpu.memory_space<vmem>>, vector<64x128xf32>
    tpu.vector_store %arg9[%c0_62, %c0_63], %43 {strides = array<i32>} : memref<64x128xf32, #tpu.memory_space<vmem>>, vector<64x128xf32>,
    %c1_64 = arith.constant 1 : index
    %c0_65 = arith.constant 0 : index
    %c0_66 = arith.constant 0 : index
    %45 = vector.load %arg8[%c1_64, %c0_65, %c0_66] : memref<10x8x384xbf16, #tpu.memory_space<vmem>>, vector<8x8x384xbf16>
    %46 = vector.shape_cast %45 : vector<8x8x384xbf16> to vector<64x384xbf16>
    %c1_67 = arith.constant 1 : index
    %c0_68 = arith.constant 0 : index
    %c0_69 = arith.constant 0 : index
    %47 = vector.load %arg5[%c1_67, %c0_68, %c0_69] : memref<3x384x128xbf16, #tpu.memory_space<vmem>>, vector<1x384x128xbf16>
    %48 = vector.shape_cast %47 : vector<1x384x128xbf16> to vector<384x128xbf16>
    %cst_70 = arith.constant dense<0.000000e+00> : vector<64x128xf32>
    %49 = tpu.matmul %46, %48, %cst_70 {dimension_numbers = #tpu.dot_dimension_numbers<[1], [0], [0], [1], [0, 0, 1, 1], [], []>} : vector<64x384xbf16>, vector<384x128xbf16>, vector<64x128xf32> -> vector<64x128xf32>
    %c0_71 = arith.constant 0 : index
    %c0_72 = arith.constant 0 : index
    %50 = vector.load %arg9[%c0_71, %c0_72] : memref<64x128xf32, #tpu.memory_space<vmem>>, vector<64x128xf32>
    %51 = arith.addf %50, %49 : vector<64x128xf32>
    %c0_73 = arith.constant 0 : index
    %c0_74 = arith.constant 0 : index
    %52 = vector.load %arg9[%c0_73, %c0_74] : memref<64x128xf32, #tpu.memory_space<vmem>>, vector<64x128xf32>
    tpu.vector_store %arg9[%c0_73, %c0_74], %51 {strides = array<i32>} : memref<64x128xf32, #tpu.memory_space<vmem>>, vector<64x128xf32>,
    %c2_75 = arith.constant 2 : index
    %c0_76 = arith.constant 0 : index
    %c0_77 = arith.constant 0 : index
    %53 = vector.load %arg8[%c2_75, %c0_76, %c0_77] : memref<10x8x384xbf16, #tpu.memory_space<vmem>>, vector<8x8x384xbf16>
    %54 = vector.shape_cast %53 : vector<8x8x384xbf16> to vector<64x384xbf16>
    %c2_78 = arith.constant 2 : index
    %c0_79 = arith.constant 0 : index
    %c0_80 = arith.constant 0 : index
    %55 = vector.load %arg5[%c2_78, %c0_79, %c0_80] : memref<3x384x128xbf16, #tpu.memory_space<vmem>>, vector<1x384x128xbf16>
    %56 = vector.shape_cast %55 : vector<1x384x128xbf16> to vector<384x128xbf16>
    %cst_81 = arith.constant dense<0.000000e+00> : vector<64x128xf32>
    %57 = tpu.matmul %54, %56, %cst_81 {dimension_numbers = #tpu.dot_dimension_numbers<[1], [0], [0], [1], [0, 0, 1, 1], [], []>} : vector<64x384xbf16>, vector<384x128xbf16>, vector<64x128xf32> -> vector<64x128xf32>
    %c0_82 = arith.constant 0 : index
    %c0_83 = arith.constant 0 : index
    %58 = vector.load %arg9[%c0_82, %c0_83] : memref<64x128xf32, #tpu.memory_space<vmem>>, vector<64x128xf32>
    %59 = arith.addf %58, %57 : vector<64x128xf32>
    %c0_84 = arith.constant 0 : index
    %c0_85 = arith.constant 0 : index
    %60 = vector.load %arg9[%c0_84, %c0_85] : memref<64x128xf32, #tpu.memory_space<vmem>>, vector<64x128xf32>
    tpu.vector_store %arg9[%c0_84, %c0_85], %59 {strides = array<i32>} : memref<64x128xf32, #tpu.memory_space<vmem>>, vector<64x128xf32>,
    %c0_86 = arith.constant 0 : index
    %c0_87 = arith.constant 0 : index
    %61 = vector.load %arg6[%c0_86, %c0_87] : memref<1x128xf32, #tpu.memory_space<vmem>>, vector<1x128xf32>
    %c0_88 = arith.constant 0 : index
    %c0_89 = arith.constant 0 : index
    %62 = vector.load %arg9[%c0_88, %c0_89] : memref<64x128xf32, #tpu.memory_space<vmem>>, vector<64x128xf32>
    %63 = vector.broadcast %61 : vector<1x128xf32> to vector<64x128xf32>
    %64 = arith.addf %62, %63 : vector<64x128xf32>
    %cst_90 = arith.constant 0.000000e+00 : f32
    %65 = vector.broadcast %cst_90 : f32 to vector<64x128xf32>
    %66 = arith.maximumf %64, %65 : vector<64x128xf32>
    %67 = arith.truncf %66 : vector<64x128xf32> to vector<64x128xbf16>
    %68 = vector.shape_cast %67 : vector<64x128xbf16> to vector<8x8x128xbf16>
    %c0_91 = arith.constant 0 : index
    %c0_92 = arith.constant 0 : index
    %c0_93 = arith.constant 0 : index
    %c0_94 = arith.constant 0 : index
    %69 = vector.load %arg7[%c0_91, %c0_92, %c0_93, %c0_94] : memref<1x8x8x128xbf16, #tpu.memory_space<vmem>>, vector<1x8x8x128xbf16>
    %70 = vector.shape_cast %69 : vector<1x8x8x128xbf16> to vector<8x8x128xbf16>
    %71 = vector.shape_cast %68 : vector<8x8x128xbf16> to vector<1x8x8x128xbf16>
    tpu.vector_store %arg7[%c0_91, %c0_92, %c0_93, %c0_94], %71 {strides = array<i32>} : memref<1x8x8x128xbf16, #tpu.memory_space<vmem>>, vector<1x8x8x128xbf16>,
    return
  }
  func.func @transform_0(%arg0: i32, %arg1: i32) -> (i32, i32, i32, i32) {
    %c0_i32 = arith.constant 0 : i32
    %c0_i32_0 = arith.constant 0 : i32
    %c0_i32_1 = arith.constant 0 : i32
    return %arg0, %arg1, %c0_i32, %c0_i32_0 : i32, i32, i32, i32
  }
  func.func @transform_1(%arg0: i32, %arg1: i32) -> (i32, i32, i32, i32) {
    %c8_i32 = arith.constant 8 : i32
    %0 = arith.muli %arg1, %c8_i32 : i32
    %c8_i32_0 = arith.constant 8 : i32
    %1 = arith.addi %0, %c8_i32_0 : i32
    %c0_i32 = arith.constant 0 : i32
    %c0_i32_1 = arith.constant 0 : i32
    %c0_i32_2 = arith.constant 0 : i32
    return %arg0, %1, %c0_i32, %c0_i32_1 : i32, i32, i32, i32
  }
  func.func @transform_2(%arg0: i32, %arg1: i32) -> (i32, i32, i32, i32) {
    %c8_i32 = arith.constant 8 : i32
    %0 = arith.muli %arg1, %c8_i32 : i32
    %c8_i32_0 = arith.constant 8 : i32
    %1 = arith.addi %0, %c8_i32_0 : i32
    %c1_i32 = arith.constant 1 : i32
    %2 = arith.addi %1, %c1_i32 : i32
    %c0_i32 = arith.constant 0 : i32
    %c0_i32_1 = arith.constant 0 : i32
    %c0_i32_2 = arith.constant 0 : i32
    return %arg0, %2, %c0_i32, %c0_i32_1 : i32, i32, i32, i32
  }
  func.func @transform_3(%arg0: i32, %arg1: i32) -> (i32, i32, i32) {
    %c0_i32 = arith.constant 0 : i32
    %c0_i32_0 = arith.constant 0 : i32
    %c0_i32_1 = arith.constant 0 : i32
    %c0_i32_2 = arith.constant 0 : i32
    return %c0_i32, %c0_i32_0, %c0_i32_1 : i32, i32, i32
  }
  func.func @transform_4(%arg0: i32, %arg1: i32) -> (i32, i32) {
    %c0_i32 = arith.constant 0 : i32
    %c0_i32_0 = arith.constant 0 : i32
    %c0_i32_1 = arith.constant 0 : i32
    return %c0_i32, %c0_i32_0 : i32, i32
  }
  func.func @transform_5(%arg0: i32, %arg1: i32) -> (i32, i32, i32, i32) {
    %c0_i32 = arith.constant 0 : i32
    %c0_i32_0 = arith.constant 0 : i32
    %c0_i32_1 = arith.constant 0 : i32
    return %arg0, %arg1, %c0_i32, %c0_i32_0 : i32, i32, i32, i32
  }
}

module attributes {stable_mosaic.version = 11 : i64} {
  func.func @kernel(%arg0: i32, %arg1: i32, %arg2: memref<64x128xbf16, #tpu.memory_space<vmem>>, %arg3: memref<64x128xbf16, #tpu.memory_space<vmem>>, %arg4: memref<1x1x128xf32, #tpu.memory_space<vmem>>) attributes {dimension_semantics = [#tpu.dimension_semantics<parallel>, #tpu.dimension_semantics<arbitrary>], iteration_bounds = array<i64: 2, 1>, scalar_prefetch = 0 : i64, scratch_operands = 0 : i64, tpu.core_type = #tpu.core_type<tc>, window_params = [{transform_indices = @transform_0, window_bounds = array<i64: 64, 128>}, {transform_indices = @transform_1, window_bounds = array<i64: 64, 128>}, {transform_indices = @transform_2, window_bounds = array<i64: 1, 1, 128>}]} {
    %c0_i32 = arith.constant 0 : i32
    %0 = arith.cmpi eq, %arg1, %c0_i32 : i32
    %1 = arith.extui %0 : i1 to i32
    %c0_i32_0 = arith.constant 0 : i32
    %2 = arith.cmpi ne, %1, %c0_i32_0 : i32
    scf.if %2 {
      %cst_10 = arith.constant 0.000000e+00 : f32
      %17 = vector.broadcast %cst_10 : f32 to vector<1x128xf32>
      %c0_11 = arith.constant 0 : index
      %c0_12 = arith.constant 0 : index
      %c0_13 = arith.constant 0 : index
      %18 = vector.load %arg4[%c0_11, %c0_12, %c0_13] : memref<1x1x128xf32, #tpu.memory_space<vmem>>, vector<1x1x128xf32>
      %19 = vector.shape_cast %18 : vector<1x1x128xf32> to vector<1x128xf32>
      %20 = vector.shape_cast %17 : vector<1x128xf32> to vector<1x1x128xf32>
      tpu.vector_store %arg4[%c0_11, %c0_12, %c0_13], %20 {strides = array<i32>} : memref<1x1x128xf32, #tpu.memory_space<vmem>>, vector<1x1x128xf32>,
    } else {
    }
    %c0 = arith.constant 0 : index
    %c0_1 = arith.constant 0 : index
    %3 = vector.load %arg2[%c0, %c0_1] : memref<64x128xbf16, #tpu.memory_space<vmem>>, vector<64x128xbf16>
    %4 = arith.extf %3 : vector<64x128xbf16> to vector<64x128xf32>
    %c0_2 = arith.constant 0 : index
    %c0_3 = arith.constant 0 : index
    %5 = vector.load %arg3[%c0_2, %c0_3] : memref<64x128xbf16, #tpu.memory_space<vmem>>, vector<64x128xbf16>
    %6 = arith.extf %5 : vector<64x128xbf16> to vector<64x128xf32>
    %7 = arith.subf %4, %6 : vector<64x128xf32>
    %c0_4 = arith.constant 0 : index
    %c0_5 = arith.constant 0 : index
    %c0_6 = arith.constant 0 : index
    %8 = vector.load %arg4[%c0_4, %c0_5, %c0_6] : memref<1x1x128xf32, #tpu.memory_space<vmem>>, vector<1x1x128xf32>
    %9 = vector.shape_cast %8 : vector<1x1x128xf32> to vector<1x128xf32>
    %10 = arith.mulf %7, %7 : vector<64x128xf32>
    %cst = arith.constant dense<0.000000e+00> : vector<128xf32>
    %11 = vector.multi_reduction <add>, %10, %cst [0] : vector<64x128xf32> to vector<128xf32>
    %12 = vector.shape_cast %11 : vector<128xf32> to vector<1x128xf32>
    %13 = arith.addf %9, %12 : vector<1x128xf32>
    %c0_7 = arith.constant 0 : index
    %c0_8 = arith.constant 0 : index
    %c0_9 = arith.constant 0 : index
    %14 = vector.load %arg4[%c0_7, %c0_8, %c0_9] : memref<1x1x128xf32, #tpu.memory_space<vmem>>, vector<1x1x128xf32>
    %15 = vector.shape_cast %14 : vector<1x1x128xf32> to vector<1x128xf32>
    %16 = vector.shape_cast %13 : vector<1x128xf32> to vector<1x1x128xf32>
    tpu.vector_store %arg4[%c0_7, %c0_8, %c0_9], %16 {strides = array<i32>} : memref<1x1x128xf32, #tpu.memory_space<vmem>>, vector<1x1x128xf32>,
    return
  }
  func.func @transform_0(%arg0: i32, %arg1: i32) -> (i32, i32) {
    %c1_i32 = arith.constant 1 : i32
    %0 = arith.muli %arg0, %c1_i32 : i32
    %1 = arith.addi %0, %arg1 : i32
    %c0_i32 = arith.constant 0 : i32
    %c0_i32_0 = arith.constant 0 : i32
    return %1, %c0_i32 : i32, i32
  }
  func.func @transform_1(%arg0: i32, %arg1: i32) -> (i32, i32) {
    %c1_i32 = arith.constant 1 : i32
    %0 = arith.muli %arg0, %c1_i32 : i32
    %c2_i32 = arith.constant 2 : i32
    %1 = arith.addi %c2_i32, %0 : i32
    %2 = arith.addi %1, %arg1 : i32
    %c0_i32 = arith.constant 0 : i32
    %c0_i32_0 = arith.constant 0 : i32
    return %2, %c0_i32 : i32, i32
  }
  func.func @transform_2(%arg0: i32, %arg1: i32) -> (i32, i32, i32) {
    %c0_i32 = arith.constant 0 : i32
    %c0_i32_0 = arith.constant 0 : i32
    %c0_i32_1 = arith.constant 0 : i32
    return %arg0, %c0_i32, %c0_i32_0 : i32, i32, i32
  }
}

</mosaic_0001>

<bundles_post_ra>
// kernel: vgg_loss.5
= control target key start
LH: loop header
LB: loop body
LE: loop exit
PB: predicated region body
PF: predicated region fallthrough
CT: control target
= control target key end

     0   :  { %vm483_vm0 = vcmask 261120   ;;  %s2774_s1 = inlined_call_operand.vmem [shape: bf16[32,128], index: 1, kind: input, shape index: {}]   ;;  %s2775_s0 = inlined_call_operand.vmem [shape: bf16[1024,32], index: 0, kind: input, shape index: {}]   ;;  %s2776_s2 = inlined_call_operand.vmem [shape: f32[1,128], index: 2, kind: input, shape index: {}]   ;;  %s2777_s3 = inlined_call_operand.vmem [shape: bf16[1024,128], index: 3, kind: output, shape index: {}]  }
   0x1   :  { %v1786_v0 = vld [vmem:[%s2774_s1 + $0x8] sm:$0xff]  ;;  %v1785_v1 = vld [vmem:[%s2774_s1] sm:$0xff]  ;;  %v1723_v10 = vld [vmem:[%s2775_s0 + $0x10] sm:$0xff] }
   0x2   :  { %682 = vmatpush.bf16.msra.mxu0 %v1786_v0  ;;  %2170 = vmatpush.bf16.msra.mxu1 %v1786_v0  ;;  %v1721_v2 = vld [vmem:[%s2775_s0] sm:$0xff]  ;;  %v1722_v6 = vld [vmem:[%s2775_s0 + $0x8] sm:$0xff]  ;;  %v1739_v11 = vld [vmem:[%s2775_s0 + $0x90] sm:$0xff] }
   0x3   :  { %2171 = vmatpush.bf16.msra.mxu2 %v1786_v0  ;;  %2172 = vmatpush.bf16.msra.mxu3 %v1786_v0  ;;  %v1737_v3 = vld [vmem:[%s2775_s0 + $0x80] sm:$0xff]  ;;  %v1738_v7 = vld [vmem:[%s2775_s0 + $0x88] sm:$0xff]  ;;  %v1755_v12 = vld [vmem:[%s2775_s0 + $0x110] sm:$0xff] }
   0x4   :  { %v1753_v4 = vld [vmem:[%s2775_s0 + $0x100] sm:$0xff]  ;;  %v1754_v8 = vld [vmem:[%s2775_s0 + $0x108] sm:$0xff]  ;;  %v1771_v13 = vld [vmem:[%s2775_s0 + $0x190] sm:$0xff] }
   0x5   :  { %v1769_v5 = vld [vmem:[%s2775_s0 + $0x180] sm:$0xff]  ;;  %v1770_v9 = vld [vmem:[%s2775_s0 + $0x188] sm:$0xff]  ;;  %v1724_v14 = vld [vmem:[%s2775_s0 + $0x18] sm:$0xff] }
   0x6   :  { %683 = vmatpush.bf16.msra.mxu0 %v1785_v1  ;;  %2173 = vmatpush.bf16.msra.mxu1 %v1785_v1  ;;  %v1740_v15 = vld [vmem:[%s2775_s0 + $0x98] sm:$0xff]  ;;  %v1725_v18 = vld [vmem:[%s2775_s0 + $0x20] sm:$0xff]  ;;  %v1726_v22 = vld [vmem:[%s2775_s0 + $0x28] sm:$0xff] }
   0x7   :  { %2174 = vmatpush.bf16.msra.mxu2 %v1785_v1  ;;  %2175 = vmatpush.bf16.msra.mxu3 %v1785_v1  ;;  %v1756_v16 = vld [vmem:[%s2775_s0 + $0x118] sm:$0xff]  ;;  %v1741_v19 = vld [vmem:[%s2775_s0 + $0xa0] sm:$0xff]  ;;  %v1742_v23 = vld [vmem:[%s2775_s0 + $0xa8] sm:$0xff] }
   0x8   :  { %v1772_v17 = vld [vmem:[%s2775_s0 + $0x198] sm:$0xff]  ;;  %v1757_v20 = vld [vmem:[%s2775_s0 + $0x120] sm:$0xff]  ;;  %v1758_v24 = vld [vmem:[%s2775_s0 + $0x128] sm:$0xff] }
   0x9   :  { %1657 = vmatmul.msk.bf16.vlgmr.msra.gmra.mxu0 %vm483_vm0, %v1721_v2  ;;  %1673 = vmatmul.msk.bf16.vlgmr.msra.gmra.mxu1 %vm483_vm0, %v1737_v3  ;;  %v1773_v21 = vld [vmem:[%s2775_s0 + $0x1a0] sm:$0xff]  ;;  %v1774_v25 = vld [vmem:[%s2775_s0 + $0x1a8] sm:$0xff]  ;;  %v1727_v26 = vld [vmem:[%s2775_s0 + $0x30] sm:$0xff] }
   0xa   :  { %1689 = vmatmul.msk.bf16.vlgmr.msra.gmra.mxu2 %vm483_vm0, %v1753_v4  ;;  %1705 = vmatmul.msk.bf16.vlgmr.msra.gmra.mxu3 %vm483_vm0, %v1769_v5  ;;  %v1743_v27 = vld [vmem:[%s2775_s0 + $0xb0] sm:$0xff]  ;;  %v1728_v30 = vld [vmem:[%s2775_s0 + $0x38] sm:$0xff]  ;;  %v1729_v34 = vld [vmem:[%s2775_s0 + $0x40] sm:$0xff] }
   0xb   :  { %v1759_v28 = vld [vmem:[%s2775_s0 + $0x130] sm:$0xff]  ;;  %v1744_v31 = vld [vmem:[%s2775_s0 + $0xb8] sm:$0xff]  ;;  %v1745_v35 = vld [vmem:[%s2775_s0 + $0xc0] sm:$0xff] }
   0xc   :  { %v1775_v29 = vld [vmem:[%s2775_s0 + $0x1b0] sm:$0xff]  ;;  %v1760_v32 = vld [vmem:[%s2775_s0 + $0x138] sm:$0xff]  ;;  %v1761_v38 = vld [vmem:[%s2775_s0 + $0x140] sm:$0xff] }
   0xd   :  { %v1776_v33 = vld [vmem:[%s2775_s0 + $0x1b8] sm:$0xff]  ;;  %v1777_v39 = vld [vmem:[%s2775_s0 + $0x1c0] sm:$0xff]  ;;  %v1730_v59 = vld [vmem:[%s2775_s0 + $0x48] sm:$0xff] }
   0xe   :  { %v2347_v40 = vld [vmem:[%s2776_s2] ss:$0 sm:$0xff]  ;;  %v1746_v60 = vld [vmem:[%s2775_s0 + $0xc8] sm:$0xff] }
   0xf   :  { %v1762_v1 = vld [vmem:[%s2775_s0 + $0x148] sm:$0xff] }
  0x10   :  { %v1778_v2 = vld [vmem:[%s2775_s0 + $0x1c8] sm:$0xff] }
  0x19   :  { %1658 = vmatmul.msk.bf16.gmra.mxu0 %vm483_vm0, %v1722_v6  ;;  %1674 = vmatmul.msk.bf16.gmra.mxu1 %vm483_vm0, %v1738_v7 }
  0x1a   :  { %1690 = vmatmul.msk.bf16.gmra.mxu2 %vm483_vm0, %v1754_v8  ;;  %1706 = vmatmul.msk.bf16.gmra.mxu3 %vm483_vm0, %v1770_v9 }
  0x29   :  { %1659 = vmatmul.msk.bf16.gmra.mxu0 %vm483_vm0, %v1723_v10  ;;  %1675 = vmatmul.msk.bf16.gmra.mxu1 %vm483_vm0, %v1739_v11 }
  0x2a   :  { %1691 = vmatmul.msk.bf16.gmra.mxu2 %vm483_vm0, %v1755_v12  ;;  %1707 = vmatmul.msk.bf16.gmra.mxu3 %vm483_vm0, %v1771_v13 }
  0x39   :  { %1660 = vmatmul.msk.bf16.gmra.mxu0 %vm483_vm0, %v1724_v14  ;;  %1676 = vmatmul.msk.bf16.gmra.mxu1 %vm483_vm0, %v1740_v15 }
  0x3a   :  { %1692 = vmatmul.msk.bf16.gmra.mxu2 %vm483_vm0, %v1756_v16  ;;  %1708 = vmatmul.msk.bf16.gmra.mxu3 %vm483_vm0, %v1772_v17 }
  0x49   :  { %1661 = vmatmul.msk.bf16.gmra.mxu0 %vm483_vm0, %v1725_v18  ;;  %1677 = vmatmul.msk.bf16.gmra.mxu1 %vm483_vm0, %v1741_v19 }
  0x4a   :  { %1693 = vmatmul.msk.bf16.gmra.mxu2 %vm483_vm0, %v1757_v20  ;;  %1709 = vmatmul.msk.bf16.gmra.mxu3 %vm483_vm0, %v1773_v21 }
  0x59   :  { %1662 = vmatmul.msk.bf16.gmra.mxu0 %vm483_vm0, %v1726_v22  ;;  %1678 = vmatmul.msk.bf16.gmra.mxu1 %vm483_vm0, %v1742_v23 }
  0x5a   :  { %1694 = vmatmul.msk.bf16.gmra.mxu2 %vm483_vm0, %v1758_v24  ;;  %1710 = vmatmul.msk.bf16.gmra.mxu3 %vm483_vm0, %v1774_v25 }
  0x69   :  { %1663 = vmatmul.msk.bf16.gmra.mxu0 %vm483_vm0, %v1727_v26  ;;  %1679 = vmatmul.msk.bf16.gmra.mxu1 %vm483_vm0, %v1743_v27  ;;  %v1731_v27 = vld [vmem:[%s2775_s0 + $0x50] sm:$0xff] }
  0x6a   :  { %1695 = vmatmul.msk.bf16.gmra.mxu2 %vm483_vm0, %v1759_v28  ;;  %1711 = vmatmul.msk.bf16.gmra.mxu3 %vm483_vm0, %v1775_v29  ;;  %v1747_v28 = vld [vmem:[%s2775_s0 + $0xd0] sm:$0xff] }
  0x79   :  { %1664 = vmatmul.msk.bf16.gmra.mxu0 %vm483_vm0, %v1728_v30  ;;  %1680 = vmatmul.msk.bf16.gmra.mxu1 %vm483_vm0, %v1744_v31 }
  0x7a   :  { %1696 = vmatmul.msk.bf16.gmra.mxu2 %vm483_vm0, %v1760_v32  ;;  %1712 = vmatmul.msk.bf16.gmra.mxu3 %vm483_vm0, %v1776_v33  ;;  %v1763_v33 = vld [vmem:[%s2775_s0 + $0x150] sm:$0xff] }
  0x86   :  { %v685_v36 = vpop.f32.mrf.mxu0  ;;  %v765_v37 = vpop.f32.mrf.mxu1 }
  0x87   :  { %v686_v41 = vadd.f32 %v2347_v40, %v685_v36  ;;  %v766_v42 = vadd.f32 %v2347_v40, %v765_v37 }
  0x89   :  { %1665 = vmatmul.msk.bf16.gmra.mxu0 %vm483_vm0, %v1729_v34  ;;  %1681 = vmatmul.msk.bf16.gmra.mxu1 %vm483_vm0, %v1745_v35  ;;  %v1005_v49 = vmax.f32 %v686_v41, 0.0  ;;  %v1037_v50 = vmax.f32 %v766_v42, 0.0  ;;  %v1779_v34 = vld [vmem:[%s2775_s0 + $0x1d0] sm:$0xff] }
  0x8a   :  { %1697 = vmatmul.msk.bf16.gmra.mxu2 %vm483_vm0, %v1761_v38  ;;  %1713 = vmatmul.msk.bf16.gmra.mxu3 %vm483_vm0, %v1777_v39 }
  0x8d   :  { %v845_v43 = vpop.f32.mrf.mxu2  ;;  %v925_v44 = vpop.f32.mrf.mxu3 }
  0x8e   :  { %v687_v45 = vpop.f32.mrf.mxu0  ;;  %v767_v46 = vpop.f32.mrf.mxu1  ;;  %v846_v55 = vadd.f32 %v2347_v40, %v845_v43  ;;  %v926_v56 = vadd.f32 %v2347_v40, %v925_v44 }
  0x8f   :  { %v688_v47 = vadd.f32 %v2347_v40, %v687_v45  ;;  %v768_v48 = vadd.f32 %v2347_v40, %v767_v46 }
  0x90   :  { %v1069_v3 = vmax.f32 %v846_v55, 0.0  ;;  %v1101_v4 = vmax.f32 %v926_v56, 0.0 }
  0x91   :  { %v1006_v51 = vmax.f32 %v688_v47, 0.0  ;;  %v1038_v52 = vmax.f32 %v768_v48, 0.0 }
  0x93   :  { %v1790_v53 = vpack.c.bf16 %v1006_v51, %v1005_v49  ;;  %v1870_v54 = vpack.c.bf16 %v1038_v52, %v1037_v50 }
  0x95   :  { %1791 = vst [vmem:[%s2777_s3] sm:$0xff] %v1790_v53   ;;  %v847_v57 = vpop.f32.mrf.mxu2  ;;  %v927_v58 = vpop.f32.mrf.mxu3 }
  0x96   :  { %2122 = vst [vmem:[%s2777_s3 + $0x80] sm:$0xff] %v1870_v54   ;;  %v848_v61 = vadd.f32 %v2347_v40, %v847_v57  ;;  %v928_v62 = vadd.f32 %v2347_v40, %v927_v58  ;;  %v690_v63 = vpop.f32.mrf.mxu0  ;;  %v770_v0 = vpop.f32.mrf.mxu1 }
  0x97   :  { %v691_v9 = vadd.f32 %v2347_v40, %v690_v63  ;;  %v771_v10 = vadd.f32 %v2347_v40, %v770_v0 }
  0x98   :  { %v1070_v5 = vmax.f32 %v848_v61, 0.0  ;;  %v1102_v6 = vmax.f32 %v928_v62, 0.0  ;;  %v1748_v61 = vld [vmem:[%s2775_s0 + $0xd8] sm:$0xff] }
  0x99   :  { %1666 = vmatmul.msk.bf16.gmra.mxu0 %vm483_vm0, %v1730_v59  ;;  %1682 = vmatmul.msk.bf16.gmra.mxu1 %vm483_vm0, %v1746_v60  ;;  %v1007_v17 = vmax.f32 %v691_v9, 0.0  ;;  %v1039_v18 = vmax.f32 %v771_v10, 0.0  ;;  %v1732_v60 = vld [vmem:[%s2775_s0 + $0x58] sm:$0xff] }
  0x9a   :  { %v1950_v7 = vpack.c.bf16 %v1070_v5, %v1069_v3  ;;  %v2030_v8 = vpack.c.bf16 %v1102_v6, %v1101_v4  ;;  %1698 = vmatmul.msk.bf16.gmra.mxu2 %vm483_vm0, %v1762_v1  ;;  %1714 = vmatmul.msk.bf16.gmra.mxu3 %vm483_vm0, %v1778_v2  ;;  %v1764_v2 = vld [vmem:[%s2775_s0 + $0x158] sm:$0xff] }
  0x9b   :  { %v1780_v3 = vld [vmem:[%s2775_s0 + $0x1d8] sm:$0xff] }
  0x9c   :  { %2138 = vst [vmem:[%s2777_s3 + $0x100] sm:$0xff] %v1950_v7  }
  0x9d   :  { %2154 = vst [vmem:[%s2777_s3 + $0x180] sm:$0xff] %v2030_v8   ;;  %v850_v11 = vpop.f32.mrf.mxu2  ;;  %v930_v12 = vpop.f32.mrf.mxu3 }
  0x9e   :  { %v692_v13 = vpop.f32.mrf.mxu0  ;;  %v772_v14 = vpop.f32.mrf.mxu1  ;;  %v851_v23 = vadd.f32 %v2347_v40, %v850_v11  ;;  %v931_v24 = vadd.f32 %v2347_v40, %v930_v12 }
  0x9f   :  { %v693_v15 = vadd.f32 %v2347_v40, %v692_v13  ;;  %v773_v16 = vadd.f32 %v2347_v40, %v772_v14 }
  0xa0   :  { %v1071_v35 = vmax.f32 %v851_v23, 0.0  ;;  %v1103_v36 = vmax.f32 %v931_v24, 0.0 }
  0xa1   :  { %v1008_v19 = vmax.f32 %v693_v15, 0.0  ;;  %v1040_v20 = vmax.f32 %v773_v16, 0.0 }
  0xa3   :  { %v1795_v21 = vpack.c.bf16 %v1008_v19, %v1007_v17  ;;  %v1875_v22 = vpack.c.bf16 %v1040_v20, %v1039_v18 }
  0xa5   :  { %2107 = vst [vmem:[%s2777_s3 + $0x8] sm:$0xff] %v1795_v21   ;;  %v852_v25 = vpop.f32.mrf.mxu2  ;;  %v932_v26 = vpop.f32.mrf.mxu3 }
  0xa6   :  { %2123 = vst [vmem:[%s2777_s3 + $0x88] sm:$0xff] %v1875_v22   ;;  %v853_v29 = vadd.f32 %v2347_v40, %v852_v25  ;;  %v933_v30 = vadd.f32 %v2347_v40, %v932_v26  ;;  %v695_v31 = vpop.f32.mrf.mxu0  ;;  %v775_v32 = vpop.f32.mrf.mxu1 }
  0xa7   :  { %v696_v42 = vadd.f32 %v2347_v40, %v695_v31  ;;  %v776_v43 = vadd.f32 %v2347_v40, %v775_v32 }
  0xa8   :  { %v1072_v37 = vmax.f32 %v853_v29, 0.0  ;;  %v1104_v38 = vmax.f32 %v933_v30, 0.0  ;;  %v1749_v29 = vld [vmem:[%s2775_s0 + $0xe0] sm:$0xff] }
  0xa9   :  { %1667 = vmatmul.msk.bf16.gmra.mxu0 %vm483_vm0, %v1731_v27  ;;  %1683 = vmatmul.msk.bf16.gmra.mxu1 %vm483_vm0, %v1747_v28  ;;  %v1009_v50 = vmax.f32 %v696_v42, 0.0  ;;  %v1041_v51 = vmax.f32 %v776_v43, 0.0  ;;  %v1733_v28 = vld [vmem:[%s2775_s0 + $0x60] sm:$0xff] }
  0xaa   :  { %v1955_v39 = vpack.c.bf16 %v1072_v37, %v1071_v35  ;;  %v2035_v41 = vpack.c.bf16 %v1104_v38, %v1103_v36  ;;  %1699 = vmatmul.msk.bf16.gmra.mxu2 %vm483_vm0, %v1763_v33  ;;  %1715 = vmatmul.msk.bf16.gmra.mxu3 %vm483_vm0, %v1779_v34  ;;  %v1765_v34 = vld [vmem:[%s2775_s0 + $0x160] sm:$0xff] }
  0xab   :  { %v1781_v35 = vld [vmem:[%s2775_s0 + $0x1e0] sm:$0xff] }
  0xac   :  { %2139 = vst [vmem:[%s2777_s3 + $0x108] sm:$0xff] %v1955_v39  }
  0xad   :  { %2155 = vst [vmem:[%s2777_s3 + $0x188] sm:$0xff] %v2035_v41   ;;  %v855_v44 = vpop.f32.mrf.mxu2  ;;  %v935_v45 = vpop.f32.mrf.mxu3 }
  0xae   :  { %v697_v46 = vpop.f32.mrf.mxu0  ;;  %v777_v47 = vpop.f32.mrf.mxu1  ;;  %v856_v56 = vadd.f32 %v2347_v40, %v855_v44  ;;  %v936_v57 = vadd.f32 %v2347_v40, %v935_v45 }
  0xaf   :  { %v698_v48 = vadd.f32 %v2347_v40, %v697_v46  ;;  %v778_v49 = vadd.f32 %v2347_v40, %v777_v47 }
  0xb0   :  { %v1073_v4 = vmax.f32 %v856_v56, 0.0  ;;  %v1105_v5 = vmax.f32 %v936_v57, 0.0 }
  0xb1   :  { %v1010_v52 = vmax.f32 %v698_v48, 0.0  ;;  %v1042_v53 = vmax.f32 %v778_v49, 0.0 }
  0xb3   :  { %v1800_v54 = vpack.c.bf16 %v1010_v52, %v1009_v50  ;;  %v1880_v55 = vpack.c.bf16 %v1042_v53, %v1041_v51 }
  0xb5   :  { %2108 = vst [vmem:[%s2777_s3 + $0x10] sm:$0xff] %v1800_v54   ;;  %v857_v58 = vpop.f32.mrf.mxu2  ;;  %v937_v59 = vpop.f32.mrf.mxu3 }
  0xb6   :  { %2124 = vst [vmem:[%s2777_s3 + $0x90] sm:$0xff] %v1880_v55   ;;  %v858_v62 = vadd.f32 %v2347_v40, %v857_v58  ;;  %v938_v63 = vadd.f32 %v2347_v40, %v937_v59  ;;  %v700_v0 = vpop.f32.mrf.mxu0  ;;  %v780_v1 = vpop.f32.mrf.mxu1 }
  0xb7   :  { %v701_v10 = vadd.f32 %v2347_v40, %v700_v0  ;;  %v781_v11 = vadd.f32 %v2347_v40, %v780_v1 }
  0xb8   :  { %v1074_v6 = vmax.f32 %v858_v62, 0.0  ;;  %v1106_v7 = vmax.f32 %v938_v63, 0.0  ;;  %v1750_v62 = vld [vmem:[%s2775_s0 + $0xe8] sm:$0xff] }
  0xb9   :  { %1668 = vmatmul.msk.bf16.gmra.mxu0 %vm483_vm0, %v1732_v60  ;;  %1684 = vmatmul.msk.bf16.gmra.mxu1 %vm483_vm0, %v1748_v61  ;;  %v1011_v18 = vmax.f32 %v701_v10, 0.0  ;;  %v1043_v19 = vmax.f32 %v781_v11, 0.0  ;;  %v1734_v61 = vld [vmem:[%s2775_s0 + $0x68] sm:$0xff] }
  0xba   :  { %v1960_v8 = vpack.c.bf16 %v1074_v6, %v1073_v4  ;;  %v2040_v9 = vpack.c.bf16 %v1106_v7, %v1105_v5  ;;  %1700 = vmatmul.msk.bf16.gmra.mxu2 %vm483_vm0, %v1764_v2  ;;  %1716 = vmatmul.msk.bf16.gmra.mxu3 %vm483_vm0, %v1780_v3  ;;  %v1766_v3 = vld [vmem:[%s2775_s0 + $0x168] sm:$0xff] }
  0xbb   :  { %v1782_v4 = vld [vmem:[%s2775_s0 + $0x1e8] sm:$0xff] }
  0xbc   :  { %2140 = vst [vmem:[%s2777_s3 + $0x110] sm:$0xff] %v1960_v8  }
  0xbd   :  { %2156 = vst [vmem:[%s2777_s3 + $0x190] sm:$0xff] %v2040_v9   ;;  %v860_v12 = vpop.f32.mrf.mxu2  ;;  %v940_v13 = vpop.f32.mrf.mxu3 }
  0xbe   :  { %v702_v14 = vpop.f32.mrf.mxu0  ;;  %v782_v15 = vpop.f32.mrf.mxu1  ;;  %v861_v24 = vadd.f32 %v2347_v40, %v860_v12  ;;  %v941_v25 = vadd.f32 %v2347_v40, %v940_v13 }
  0xbf   :  { %v703_v16 = vadd.f32 %v2347_v40, %v702_v14  ;;  %v783_v17 = vadd.f32 %v2347_v40, %v782_v15 }
  0xc0   :  { %v1075_v36 = vmax.f32 %v861_v24, 0.0  ;;  %v1107_v37 = vmax.f32 %v941_v25, 0.0 }
  0xc1   :  { %v1012_v20 = vmax.f32 %v703_v16, 0.0  ;;  %v1044_v21 = vmax.f32 %v783_v17, 0.0 }
  0xc3   :  { %v1805_v22 = vpack.c.bf16 %v1012_v20, %v1011_v18  ;;  %v1885_v23 = vpack.c.bf16 %v1044_v21, %v1043_v19 }
  0xc5   :  { %2109 = vst [vmem:[%s2777_s3 + $0x18] sm:$0xff] %v1805_v22   ;;  %v862_v26 = vpop.f32.mrf.mxu2  ;;  %v942_v27 = vpop.f32.mrf.mxu3 }
  0xc6   :  { %2125 = vst [vmem:[%s2777_s3 + $0x98] sm:$0xff] %v1885_v23   ;;  %v863_v30 = vadd.f32 %v2347_v40, %v862_v26  ;;  %v943_v31 = vadd.f32 %v2347_v40, %v942_v27  ;;  %v705_v32 = vpop.f32.mrf.mxu0  ;;  %v785_v33 = vpop.f32.mrf.mxu1 }
  0xc7   :  { %v706_v43 = vadd.f32 %v2347_v40, %v705_v32  ;;  %v786_v44 = vadd.f32 %v2347_v40, %v785_v33 }
  0xc8   :  { %v1076_v38 = vmax.f32 %v863_v30, 0.0  ;;  %v1108_v39 = vmax.f32 %v943_v31, 0.0  ;;  %v1751_v30 = vld [vmem:[%s2775_s0 + $0xf0] sm:$0xff] }
  0xc9   :  { %1669 = vmatmul.msk.bf16.gmra.mxu0 %vm483_vm0, %v1733_v28  ;;  %1685 = vmatmul.msk.bf16.gmra.mxu1 %vm483_vm0, %v1749_v29  ;;  %v1013_v51 = vmax.f32 %v706_v43, 0.0  ;;  %v1045_v52 = vmax.f32 %v786_v44, 0.0  ;;  %v1735_v29 = vld [vmem:[%s2775_s0 + $0x70] sm:$0xff] }
  0xca   :  { %v1965_v41 = vpack.c.bf16 %v1076_v38, %v1075_v36  ;;  %v2045_v42 = vpack.c.bf16 %v1108_v39, %v1107_v37  ;;  %1701 = vmatmul.msk.bf16.gmra.mxu2 %vm483_vm0, %v1765_v34  ;;  %1717 = vmatmul.msk.bf16.gmra.mxu3 %vm483_vm0, %v1781_v35  ;;  %v1767_v35 = vld [vmem:[%s2775_s0 + $0x170] sm:$0xff] }
  0xcb   :  { %v1783_v36 = vld [vmem:[%s2775_s0 + $0x1f0] sm:$0xff] }
  0xcc   :  { %2141 = vst [vmem:[%s2777_s3 + $0x118] sm:$0xff] %v1965_v41  }
  0xcd   :  { %2157 = vst [vmem:[%s2777_s3 + $0x198] sm:$0xff] %v2045_v42   ;;  %v865_v45 = vpop.f32.mrf.mxu2  ;;  %v945_v46 = vpop.f32.mrf.mxu3 }
  0xce   :  { %v707_v47 = vpop.f32.mrf.mxu0  ;;  %v787_v48 = vpop.f32.mrf.mxu1  ;;  %v866_v57 = vadd.f32 %v2347_v40, %v865_v45  ;;  %v946_v58 = vadd.f32 %v2347_v40, %v945_v46 }
  0xcf   :  { %v708_v49 = vadd.f32 %v2347_v40, %v707_v47  ;;  %v788_v50 = vadd.f32 %v2347_v40, %v787_v48 }
  0xd0   :  { %v1077_v5 = vmax.f32 %v866_v57, 0.0  ;;  %v1109_v6 = vmax.f32 %v946_v58, 0.0 }
  0xd1   :  { %v1014_v53 = vmax.f32 %v708_v49, 0.0  ;;  %v1046_v54 = vmax.f32 %v788_v50, 0.0 }
  0xd3   :  { %v1810_v55 = vpack.c.bf16 %v1014_v53, %v1013_v51  ;;  %v1890_v56 = vpack.c.bf16 %v1046_v54, %v1045_v52 }
  0xd5   :  { %2110 = vst [vmem:[%s2777_s3 + $0x20] sm:$0xff] %v1810_v55   ;;  %v867_v59 = vpop.f32.mrf.mxu2  ;;  %v947_v60 = vpop.f32.mrf.mxu3 }
  0xd6   :  { %2126 = vst [vmem:[%s2777_s3 + $0xa0] sm:$0xff] %v1890_v56   ;;  %v868_v63 = vadd.f32 %v2347_v40, %v867_v59  ;;  %v948_v0 = vadd.f32 %v2347_v40, %v947_v60  ;;  %v710_v1 = vpop.f32.mrf.mxu0  ;;  %v790_v2 = vpop.f32.mrf.mxu1 }
  0xd7   :  { %v711_v11 = vadd.f32 %v2347_v40, %v710_v1  ;;  %v791_v12 = vadd.f32 %v2347_v40, %v790_v2 }
  0xd8   :  { %v1078_v7 = vmax.f32 %v868_v63, 0.0  ;;  %v1110_v8 = vmax.f32 %v948_v0, 0.0  ;;  %v1752_v63 = vld [vmem:[%s2775_s0 + $0xf8] sm:$0xff] }
  0xd9   :  { %1670 = vmatmul.msk.bf16.gmra.mxu0 %vm483_vm0, %v1734_v61  ;;  %1686 = vmatmul.msk.bf16.gmra.mxu1 %vm483_vm0, %v1750_v62  ;;  %v1015_v19 = vmax.f32 %v711_v11, 0.0  ;;  %v1047_v20 = vmax.f32 %v791_v12, 0.0  ;;  %v1736_v62 = vld [vmem:[%s2775_s0 + $0x78] sm:$0xff] }
  0xda   :  { %v1970_v9 = vpack.c.bf16 %v1078_v7, %v1077_v5  ;;  %v2050_v10 = vpack.c.bf16 %v1110_v8, %v1109_v6  ;;  %1702 = vmatmul.msk.bf16.gmra.mxu2 %vm483_vm0, %v1766_v3  ;;  %1718 = vmatmul.msk.bf16.gmra.mxu3 %vm483_vm0, %v1782_v4  ;;  %v1768_v4 = vld [vmem:[%s2775_s0 + $0x178] sm:$0xff] }
  0xdb   :  { %v1784_v5 = vld [vmem:[%s2775_s0 + $0x1f8] sm:$0xff] }
  0xdc   :  { %2142 = vst [vmem:[%s2777_s3 + $0x120] sm:$0xff] %v1970_v9  }
  0xdd   :  { %2158 = vst [vmem:[%s2777_s3 + $0x1a0] sm:$0xff] %v2050_v10   ;;  %v870_v13 = vpop.f32.mrf.mxu2  ;;  %v950_v14 = vpop.f32.mrf.mxu3 }
  0xde   :  { %v712_v15 = vpop.f32.mrf.mxu0  ;;  %v792_v16 = vpop.f32.mrf.mxu1  ;;  %v871_v25 = vadd.f32 %v2347_v40, %v870_v13  ;;  %v951_v26 = vadd.f32 %v2347_v40, %v950_v14 }
  0xdf   :  { %v713_v17 = vadd.f32 %v2347_v40, %v712_v15  ;;  %v793_v18 = vadd.f32 %v2347_v40, %v792_v16 }
  0xe0   :  { %v1079_v37 = vmax.f32 %v871_v25, 0.0  ;;  %v1111_v38 = vmax.f32 %v951_v26, 0.0 }
  0xe1   :  { %v1016_v21 = vmax.f32 %v713_v17, 0.0  ;;  %v1048_v22 = vmax.f32 %v793_v18, 0.0 }
  0xe3   :  { %v1815_v23 = vpack.c.bf16 %v1016_v21, %v1015_v19  ;;  %v1895_v24 = vpack.c.bf16 %v1048_v22, %v1047_v20 }
  0xe5   :  { %2111 = vst [vmem:[%s2777_s3 + $0x28] sm:$0xff] %v1815_v23   ;;  %v872_v27 = vpop.f32.mrf.mxu2  ;;  %v952_v28 = vpop.f32.mrf.mxu3 }
  0xe6   :  { %2127 = vst [vmem:[%s2777_s3 + $0xa8] sm:$0xff] %v1895_v24   ;;  %v873_v31 = vadd.f32 %v2347_v40, %v872_v27  ;;  %v953_v32 = vadd.f32 %v2347_v40, %v952_v28  ;;  %v715_v33 = vpop.f32.mrf.mxu0  ;;  %v795_v34 = vpop.f32.mrf.mxu1 }
  0xe7   :  { %v716_v44 = vadd.f32 %v2347_v40, %v715_v33  ;;  %v796_v45 = vadd.f32 %v2347_v40, %v795_v34 }
  0xe8   :  { %v1080_v39 = vmax.f32 %v873_v31, 0.0  ;;  %v1112_v41 = vmax.f32 %v953_v32, 0.0 }
  0xe9   :  { %1671 = vmatmul.msk.bf16.gmra.mxu0 %vm483_vm0, %v1735_v29  ;;  %1687 = vmatmul.msk.bf16.gmra.mxu1 %vm483_vm0, %v1751_v30  ;;  %v1017_v52 = vmax.f32 %v716_v44, 0.0  ;;  %v1049_v53 = vmax.f32 %v796_v45, 0.0 }
  0xea   :  { %v1975_v42 = vpack.c.bf16 %v1080_v39, %v1079_v37  ;;  %v2055_v43 = vpack.c.bf16 %v1112_v41, %v1111_v38  ;;  %1703 = vmatmul.msk.bf16.gmra.mxu2 %vm483_vm0, %v1767_v35  ;;  %1719 = vmatmul.msk.bf16.gmra.mxu3 %vm483_vm0, %v1783_v36 }
  0xec   :  { %2143 = vst [vmem:[%s2777_s3 + $0x128] sm:$0xff] %v1975_v42  }
  0xed   :  { %2159 = vst [vmem:[%s2777_s3 + $0x1a8] sm:$0xff] %v2055_v43   ;;  %v875_v46 = vpop.f32.mrf.mxu2  ;;  %v955_v47 = vpop.f32.mrf.mxu3 }
  0xee   :  { %v717_v48 = vpop.f32.mrf.mxu0  ;;  %v797_v49 = vpop.f32.mrf.mxu1  ;;  %v876_v58 = vadd.f32 %v2347_v40, %v875_v46  ;;  %v956_v59 = vadd.f32 %v2347_v40, %v955_v47 }
  0xef   :  { %v718_v50 = vadd.f32 %v2347_v40, %v717_v48  ;;  %v798_v51 = vadd.f32 %v2347_v40, %v797_v49 }
  0xf0   :  { %v1081_v6 = vmax.f32 %v876_v58, 0.0  ;;  %v1113_v7 = vmax.f32 %v956_v59, 0.0 }
  0xf1   :  { %v1018_v54 = vmax.f32 %v718_v50, 0.0  ;;  %v1050_v55 = vmax.f32 %v798_v51, 0.0 }
  0xf3   :  { %v1820_v56 = vpack.c.bf16 %v1018_v54, %v1017_v52  ;;  %v1900_v57 = vpack.c.bf16 %v1050_v55, %v1049_v53 }
  0xf5   :  { %2112 = vst [vmem:[%s2777_s3 + $0x30] sm:$0xff] %v1820_v56   ;;  %v877_v60 = vpop.f32.mrf.mxu2  ;;  %v957_v61 = vpop.f32.mrf.mxu3 }
  0xf6   :  { %2128 = vst [vmem:[%s2777_s3 + $0xb0] sm:$0xff] %v1900_v57   ;;  %v878_v0 = vadd.f32 %v2347_v40, %v877_v60  ;;  %v958_v1 = vadd.f32 %v2347_v40, %v957_v61  ;;  %v720_v2 = vpop.f32.mrf.mxu0  ;;  %v800_v3 = vpop.f32.mrf.mxu1 }
  0xf7   :  { %v721_v12 = vadd.f32 %v2347_v40, %v720_v2  ;;  %v801_v13 = vadd.f32 %v2347_v40, %v800_v3 }
  0xf8   :  { %v1082_v8 = vmax.f32 %v878_v0, 0.0  ;;  %v1114_v9 = vmax.f32 %v958_v1, 0.0 }
  0xf9   :  { %1672 = vmatmul.msk.bf16.gmra.mxu0 %vm483_vm0, %v1736_v62  ;;  %1688 = vmatmul.msk.bf16.gmra.mxu1 %vm483_vm0, %v1752_v63  ;;  %v1019_v20 = vmax.f32 %v721_v12, 0.0  ;;  %v1051_v21 = vmax.f32 %v801_v13, 0.0 }
  0xfa   :  { %v1980_v10 = vpack.c.bf16 %v1082_v8, %v1081_v6  ;;  %v2060_v11 = vpack.c.bf16 %v1114_v9, %v1113_v7  ;;  %1704 = vmatmul.msk.bf16.gmra.mxu2 %vm483_vm0, %v1768_v4  ;;  %1720 = vmatmul.msk.bf16.gmra.mxu3 %vm483_vm0, %v1784_v5 }
  0xfc   :  { %2144 = vst [vmem:[%s2777_s3 + $0x130] sm:$0xff] %v1980_v10  }
  0xfd   :  { %2160 = vst [vmem:[%s2777_s3 + $0x1b0] sm:$0xff] %v2060_v11   ;;  %v880_v14 = vpop.f32.mrf.mxu2  ;;  %v960_v15 = vpop.f32.mrf.mxu3 }
  0xfe   :  { %v722_v16 = vpop.f32.mrf.mxu0  ;;  %v802_v17 = vpop.f32.mrf.mxu1  ;;  %v881_v26 = vadd.f32 %v2347_v40, %v880_v14  ;;  %v961_v27 = vadd.f32 %v2347_v40, %v960_v15 }
  0xff   :  { %v723_v18 = vadd.f32 %v2347_v40, %v722_v16  ;;  %v803_v19 = vadd.f32 %v2347_v40, %v802_v17 }
 0x100   :  { %v1083_v34 = vmax.f32 %v881_v26, 0.0  ;;  %v1115_v35 = vmax.f32 %v961_v27, 0.0 }
 0x101   :  { %v1020_v22 = vmax.f32 %v723_v18, 0.0  ;;  %v1052_v23 = vmax.f32 %v803_v19, 0.0 }
 0x103   :  { %v1825_v24 = vpack.c.bf16 %v1020_v22, %v1019_v20  ;;  %v1905_v25 = vpack.c.bf16 %v1052_v23, %v1051_v21 }
 0x105   :  { %2113 = vst [vmem:[%s2777_s3 + $0x38] sm:$0xff] %v1825_v24   ;;  %v882_v28 = vpop.f32.mrf.mxu2  ;;  %v962_v29 = vpop.f32.mrf.mxu3 }
 0x106   :  { %2129 = vst [vmem:[%s2777_s3 + $0xb8] sm:$0xff] %v1905_v25   ;;  %v883_v30 = vadd.f32 %v2347_v40, %v882_v28  ;;  %v963_v31 = vadd.f32 %v2347_v40, %v962_v29  ;;  %v725_v32 = vpop.f32.mrf.mxu0  ;;  %v805_v33 = vpop.f32.mrf.mxu1 }
 0x107   :  { %v726_v41 = vadd.f32 %v2347_v40, %v725_v32  ;;  %v806_v42 = vadd.f32 %v2347_v40, %v805_v33 }
 0x108   :  { %v1084_v36 = vmax.f32 %v883_v30, 0.0  ;;  %v1116_v37 = vmax.f32 %v963_v31, 0.0 }
 0x109   :  { %v1021_v49 = vmax.f32 %v726_v41, 0.0  ;;  %v1053_v50 = vmax.f32 %v806_v42, 0.0 }
 0x10a   :  { %v1985_v38 = vpack.c.bf16 %v1084_v36, %v1083_v34  ;;  %v2065_v39 = vpack.c.bf16 %v1116_v37, %v1115_v35 }
 0x10c   :  { %2145 = vst [vmem:[%s2777_s3 + $0x138] sm:$0xff] %v1985_v38  }
 0x10d   :  { %2161 = vst [vmem:[%s2777_s3 + $0x1b8] sm:$0xff] %v2065_v39   ;;  %v885_v43 = vpop.f32.mrf.mxu2  ;;  %v965_v44 = vpop.f32.mrf.mxu3 }
 0x10e   :  { %v727_v45 = vpop.f32.mrf.mxu0  ;;  %v807_v46 = vpop.f32.mrf.mxu1  ;;  %v886_v55 = vadd.f32 %v2347_v40, %v885_v43  ;;  %v966_v56 = vadd.f32 %v2347_v40, %v965_v44 }
 0x10f   :  { %v728_v47 = vadd.f32 %v2347_v40, %v727_v45  ;;  %v808_v48 = vadd.f32 %v2347_v40, %v807_v46 }
 0x110   :  { %v1085_v63 = vmax.f32 %v886_v55, 0.0  ;;  %v1117_v0 = vmax.f32 %v966_v56, 0.0 }
 0x111   :  { %v1022_v51 = vmax.f32 %v728_v47, 0.0  ;;  %v1054_v52 = vmax.f32 %v808_v48, 0.0 }
 0x113   :  { %v1830_v53 = vpack.c.bf16 %v1022_v51, %v1021_v49  ;;  %v1910_v54 = vpack.c.bf16 %v1054_v52, %v1053_v50 }
 0x115   :  { %2114 = vst [vmem:[%s2777_s3 + $0x40] sm:$0xff] %v1830_v53   ;;  %v887_v57 = vpop.f32.mrf.mxu2  ;;  %v967_v58 = vpop.f32.mrf.mxu3 }
 0x116   :  { %2130 = vst [vmem:[%s2777_s3 + $0xc0] sm:$0xff] %v1910_v54   ;;  %v888_v59 = vadd.f32 %v2347_v40, %v887_v57  ;;  %v968_v60 = vadd.f32 %v2347_v40, %v967_v58  ;;  %v730_v61 = vpop.f32.mrf.mxu0  ;;  %v810_v62 = vpop.f32.mrf.mxu1 }
 0x117   :  { %v731_v5 = vadd.f32 %v2347_v40, %v730_v61  ;;  %v811_v6 = vadd.f32 %v2347_v40, %v810_v62 }
 0x118   :  { %v1086_v1 = vmax.f32 %v888_v59, 0.0  ;;  %v1118_v2 = vmax.f32 %v968_v60, 0.0 }
 0x119   :  { %v1023_v13 = vmax.f32 %v731_v5, 0.0  ;;  %v1055_v14 = vmax.f32 %v811_v6, 0.0 }
 0x11a   :  { %v1990_v3 = vpack.c.bf16 %v1086_v1, %v1085_v63  ;;  %v2070_v4 = vpack.c.bf16 %v1118_v2, %v1117_v0 }
 0x11c   :  { %2146 = vst [vmem:[%s2777_s3 + $0x140] sm:$0xff] %v1990_v3  }
 0x11d   :  { %2162 = vst [vmem:[%s2777_s3 + $0x1c0] sm:$0xff] %v2070_v4   ;;  %v890_v7 = vpop.f32.mrf.mxu2  ;;  %v970_v8 = vpop.f32.mrf.mxu3 }
 0x11e   :  { %v732_v9 = vpop.f32.mrf.mxu0  ;;  %v812_v10 = vpop.f32.mrf.mxu1  ;;  %v891_v19 = vadd.f32 %v2347_v40, %v890_v7  ;;  %v971_v20 = vadd.f32 %v2347_v40, %v970_v8 }
 0x11f   :  { %v733_v11 = vadd.f32 %v2347_v40, %v732_v9  ;;  %v813_v12 = vadd.f32 %v2347_v40, %v812_v10 }
 0x120   :  { %v1087_v27 = vmax.f32 %v891_v19, 0.0  ;;  %v1119_v28 = vmax.f32 %v971_v20, 0.0 }
 0x121   :  { %v1024_v15 = vmax.f32 %v733_v11, 0.0  ;;  %v1056_v16 = vmax.f32 %v813_v12, 0.0 }
 0x123   :  { %v1835_v17 = vpack.c.bf16 %v1024_v15, %v1023_v13  ;;  %v1915_v18 = vpack.c.bf16 %v1056_v16, %v1055_v14 }
 0x125   :  { %2115 = vst [vmem:[%s2777_s3 + $0x48] sm:$0xff] %v1835_v17   ;;  %v892_v21 = vpop.f32.mrf.mxu2  ;;  %v972_v22 = vpop.f32.mrf.mxu3 }
 0x126   :  { %2131 = vst [vmem:[%s2777_s3 + $0xc8] sm:$0xff] %v1915_v18   ;;  %v893_v23 = vadd.f32 %v2347_v40, %v892_v21  ;;  %v973_v24 = vadd.f32 %v2347_v40, %v972_v22  ;;  %v735_v25 = vpop.f32.mrf.mxu0  ;;  %v815_v26 = vpop.f32.mrf.mxu1 }
 0x127   :  { %v736_v33 = vadd.f32 %v2347_v40, %v735_v25  ;;  %v816_v34 = vadd.f32 %v2347_v40, %v815_v26 }
 0x128   :  { %v1088_v29 = vmax.f32 %v893_v23, 0.0  ;;  %v1120_v30 = vmax.f32 %v973_v24, 0.0 }
 0x129   :  { %v1025_v42 = vmax.f32 %v736_v33, 0.0  ;;  %v1057_v43 = vmax.f32 %v816_v34, 0.0 }
 0x12a   :  { %v1995_v31 = vpack.c.bf16 %v1088_v29, %v1087_v27  ;;  %v2075_v32 = vpack.c.bf16 %v1120_v30, %v1119_v28 }
 0x12c   :  { %2147 = vst [vmem:[%s2777_s3 + $0x148] sm:$0xff] %v1995_v31  }
 0x12d   :  { %2163 = vst [vmem:[%s2777_s3 + $0x1c8] sm:$0xff] %v2075_v32   ;;  %v895_v35 = vpop.f32.mrf.mxu2  ;;  %v975_v36 = vpop.f32.mrf.mxu3 }
 0x12e   :  { %v737_v37 = vpop.f32.mrf.mxu0  ;;  %v817_v38 = vpop.f32.mrf.mxu1  ;;  %v896_v48 = vadd.f32 %v2347_v40, %v895_v35  ;;  %v976_v49 = vadd.f32 %v2347_v40, %v975_v36 }
 0x12f   :  { %v738_v39 = vadd.f32 %v2347_v40, %v737_v37  ;;  %v818_v41 = vadd.f32 %v2347_v40, %v817_v38 }
 0x130   :  { %v1089_v56 = vmax.f32 %v896_v48, 0.0  ;;  %v1121_v57 = vmax.f32 %v976_v49, 0.0 }
 0x131   :  { %v1026_v44 = vmax.f32 %v738_v39, 0.0  ;;  %v1058_v45 = vmax.f32 %v818_v41, 0.0 }
 0x133   :  { %v1840_v46 = vpack.c.bf16 %v1026_v44, %v1025_v42  ;;  %v1920_v47 = vpack.c.bf16 %v1058_v45, %v1057_v43 }
 0x135   :  { %2116 = vst [vmem:[%s2777_s3 + $0x50] sm:$0xff] %v1840_v46   ;;  %v897_v50 = vpop.f32.mrf.mxu2  ;;  %v977_v51 = vpop.f32.mrf.mxu3 }
 0x136   :  { %2132 = vst [vmem:[%s2777_s3 + $0xd0] sm:$0xff] %v1920_v47   ;;  %v898_v52 = vadd.f32 %v2347_v40, %v897_v50  ;;  %v978_v53 = vadd.f32 %v2347_v40, %v977_v51  ;;  %v740_v54 = vpop.f32.mrf.mxu0  ;;  %v820_v55 = vpop.f32.mrf.mxu1 }
 0x137   :  { %v741_v62 = vadd.f32 %v2347_v40, %v740_v54  ;;  %v821_v63 = vadd.f32 %v2347_v40, %v820_v55 }
 0x138   :  { %v1090_v58 = vmax.f32 %v898_v52, 0.0  ;;  %v1122_v59 = vmax.f32 %v978_v53, 0.0 }
 0x139   :  { %v1027_v6 = vmax.f32 %v741_v62, 0.0  ;;  %v1059_v7 = vmax.f32 %v821_v63, 0.0 }
 0x13a   :  { %v2000_v60 = vpack.c.bf16 %v1090_v58, %v1089_v56  ;;  %v2080_v61 = vpack.c.bf16 %v1122_v59, %v1121_v57 }
 0x13c   :  { %2148 = vst [vmem:[%s2777_s3 + $0x150] sm:$0xff] %v2000_v60  }
 0x13d   :  { %2164 = vst [vmem:[%s2777_s3 + $0x1d0] sm:$0xff] %v2080_v61   ;;  %v900_v0 = vpop.f32.mrf.mxu2  ;;  %v980_v1 = vpop.f32.mrf.mxu3 }
 0x13e   :  { %v742_v2 = vpop.f32.mrf.mxu0  ;;  %v822_v3 = vpop.f32.mrf.mxu1  ;;  %v901_v12 = vadd.f32 %v2347_v40, %v900_v0  ;;  %v981_v13 = vadd.f32 %v2347_v40, %v980_v1 }
 0x13f   :  { %v743_v4 = vadd.f32 %v2347_v40, %v742_v2  ;;  %v823_v5 = vadd.f32 %v2347_v40, %v822_v3 }
 0x140   :  { %v1091_v20 = vmax.f32 %v901_v12, 0.0  ;;  %v1123_v21 = vmax.f32 %v981_v13, 0.0 }
 0x141   :  { %v1028_v8 = vmax.f32 %v743_v4, 0.0  ;;  %v1060_v9 = vmax.f32 %v823_v5, 0.0 }
 0x143   :  { %v1845_v10 = vpack.c.bf16 %v1028_v8, %v1027_v6  ;;  %v1925_v11 = vpack.c.bf16 %v1060_v9, %v1059_v7 }
 0x145   :  { %2117 = vst [vmem:[%s2777_s3 + $0x58] sm:$0xff] %v1845_v10   ;;  %v902_v14 = vpop.f32.mrf.mxu2  ;;  %v982_v15 = vpop.f32.mrf.mxu3 }
 0x146   :  { %2133 = vst [vmem:[%s2777_s3 + $0xd8] sm:$0xff] %v1925_v11   ;;  %v903_v16 = vadd.f32 %v2347_v40, %v902_v14  ;;  %v983_v17 = vadd.f32 %v2347_v40, %v982_v15  ;;  %v745_v18 = vpop.f32.mrf.mxu0  ;;  %v825_v19 = vpop.f32.mrf.mxu1 }
 0x147   :  { %v746_v26 = vadd.f32 %v2347_v40, %v745_v18  ;;  %v826_v27 = vadd.f32 %v2347_v40, %v825_v19 }
 0x148   :  { %v1092_v22 = vmax.f32 %v903_v16, 0.0  ;;  %v1124_v23 = vmax.f32 %v983_v17, 0.0 }
 0x149   :  { %v1029_v34 = vmax.f32 %v746_v26, 0.0  ;;  %v1061_v35 = vmax.f32 %v826_v27, 0.0 }
 0x14a   :  { %v2005_v24 = vpack.c.bf16 %v1092_v22, %v1091_v20  ;;  %v2085_v25 = vpack.c.bf16 %v1124_v23, %v1123_v21 }
 0x14c   :  { %2149 = vst [vmem:[%s2777_s3 + $0x158] sm:$0xff] %v2005_v24  }
 0x14d   :  { %2165 = vst [vmem:[%s2777_s3 + $0x1d8] sm:$0xff] %v2085_v25   ;;  %v905_v28 = vpop.f32.mrf.mxu2  ;;  %v985_v29 = vpop.f32.mrf.mxu3  ;;  %v2177_v25 = vld [vmem:[%s2776_s2] ss:$0 sm:$0xff] }
 0x14e   :  { %v747_v30 = vpop.f32.mrf.mxu0  ;;  %v827_v31 = vpop.f32.mrf.mxu1  ;;  %v906_v41 = vadd.f32 %v2347_v40, %v905_v28  ;;  %v986_v42 = vadd.f32 %v2347_v40, %v985_v29 }
 0x14f   :  { %v748_v32 = vadd.f32 %v2347_v40, %v747_v30  ;;  %v828_v33 = vadd.f32 %v2347_v40, %v827_v31 }
 0x150   :  { %v1093_v49 = vmax.f32 %v906_v41, 0.0  ;;  %v1125_v50 = vmax.f32 %v986_v42, 0.0 }
 0x151   :  { %v1030_v36 = vmax.f32 %v748_v32, 0.0  ;;  %v1062_v37 = vmax.f32 %v828_v33, 0.0 }
 0x153   :  { %v1850_v38 = vpack.c.bf16 %v1030_v36, %v1029_v34  ;;  %v1930_v39 = vpack.c.bf16 %v1062_v37, %v1061_v35 }
 0x155   :  { %2118 = vst [vmem:[%s2777_s3 + $0x60] sm:$0xff] %v1850_v38   ;;  %v907_v43 = vpop.f32.mrf.mxu2  ;;  %v987_v44 = vpop.f32.mrf.mxu3 }
 0x156   :  { %2134 = vst [vmem:[%s2777_s3 + $0xe0] sm:$0xff] %v1930_v39   ;;  %v908_v45 = vadd.f32 %v2347_v40, %v907_v43  ;;  %v988_v46 = vadd.f32 %v2347_v40, %v987_v44  ;;  %v750_v47 = vpop.f32.mrf.mxu0  ;;  %v830_v48 = vpop.f32.mrf.mxu1 }
 0x157   :  { %v751_v55 = vadd.f32 %v2347_v40, %v750_v47  ;;  %v831_v56 = vadd.f32 %v2347_v40, %v830_v48 }
 0x158   :  { %v1094_v51 = vmax.f32 %v908_v45, 0.0  ;;  %v1126_v52 = vmax.f32 %v988_v46, 0.0 }
 0x159   :  { %v1031_v63 = vmax.f32 %v751_v55, 0.0  ;;  %v1063_v0 = vmax.f32 %v831_v56, 0.0 }
 0x15a   :  { %v2010_v53 = vpack.c.bf16 %v1094_v51, %v1093_v49  ;;  %v2090_v54 = vpack.c.bf16 %v1126_v52, %v1125_v50 }
 0x15c   :  { %2150 = vst [vmem:[%s2777_s3 + $0x160] sm:$0xff] %v2010_v53  }
 0x15d   :  { %2166 = vst [vmem:[%s2777_s3 + $0x1e0] sm:$0xff] %v2090_v54   ;;  %v910_v57 = vpop.f32.mrf.mxu2  ;;  %v990_v58 = vpop.f32.mrf.mxu3 }
 0x15e   :  { %v752_v59 = vpop.f32.mrf.mxu0  ;;  %v832_v60 = vpop.f32.mrf.mxu1  ;;  %v911_v5 = vadd.f32 %v2347_v40, %v910_v57  ;;  %v991_v6 = vadd.f32 %v2347_v40, %v990_v58 }
 0x15f   :  { %v753_v61 = vadd.f32 %v2347_v40, %v752_v59  ;;  %v833_v62 = vadd.f32 %v2347_v40, %v832_v60 }
 0x160   :  { %v1095_v13 = vmax.f32 %v911_v5, 0.0  ;;  %v1127_v14 = vmax.f32 %v991_v6, 0.0 }
 0x161   :  { %v1032_v1 = vmax.f32 %v753_v61, 0.0  ;;  %v1064_v2 = vmax.f32 %v833_v62, 0.0 }
 0x163   :  { %v1855_v3 = vpack.c.bf16 %v1032_v1, %v1031_v63  ;;  %v1935_v4 = vpack.c.bf16 %v1064_v2, %v1063_v0 }
 0x165   :  { %2119 = vst [vmem:[%s2777_s3 + $0x68] sm:$0xff] %v1855_v3   ;;  %v912_v7 = vpop.f32.mrf.mxu2  ;;  %v992_v8 = vpop.f32.mrf.mxu3 }
 0x166   :  { %2135 = vst [vmem:[%s2777_s3 + $0xe8] sm:$0xff] %v1935_v4   ;;  %v913_v9 = vadd.f32 %v2347_v40, %v912_v7  ;;  %v993_v10 = vadd.f32 %v2347_v40, %v992_v8  ;;  %v755_v11 = vpop.f32.mrf.mxu0  ;;  %v835_v12 = vpop.f32.mrf.mxu1 }
 0x167   :  { %v756_v19 = vadd.f32 %v2347_v40, %v755_v11  ;;  %v836_v20 = vadd.f32 %v2347_v40, %v835_v12 }
 0x168   :  { %v1096_v15 = vmax.f32 %v913_v9, 0.0  ;;  %v1128_v16 = vmax.f32 %v993_v10, 0.0 }
 0x169   :  { %v1033_v28 = vmax.f32 %v756_v19, 0.0  ;;  %v1065_v29 = vmax.f32 %v836_v20, 0.0 }
 0x16a   :  { %v2015_v17 = vpack.c.bf16 %v1096_v15, %v1095_v13  ;;  %v2095_v18 = vpack.c.bf16 %v1128_v16, %v1127_v14 }
 0x16c   :  { %2151 = vst [vmem:[%s2777_s3 + $0x168] sm:$0xff] %v2015_v17  }
 0x16d   :  { %2167 = vst [vmem:[%s2777_s3 + $0x1e8] sm:$0xff] %v2095_v18   ;;  %v915_v21 = vpop.f32.mrf.mxu2  ;;  %v995_v22 = vpop.f32.mrf.mxu3 }
 0x16e   :  { %v757_v23 = vpop.f32.mrf.mxu0  ;;  %v837_v24 = vpop.f32.mrf.mxu1  ;;  %v916_v34 = vadd.f32 %v2177_v25, %v915_v21  ;;  %v996_v35 = vadd.f32 %v2177_v25, %v995_v22 }
 0x16f   :  { %v758_v26 = vadd.f32 %v2177_v25, %v757_v23  ;;  %v838_v27 = vadd.f32 %v2177_v25, %v837_v24 }
 0x170   :  { %v1097_v42 = vmax.f32 %v916_v34, 0.0  ;;  %v1129_v43 = vmax.f32 %v996_v35, 0.0 }
 0x171   :  { %v1034_v30 = vmax.f32 %v758_v26, 0.0  ;;  %v1066_v31 = vmax.f32 %v838_v27, 0.0 }
 0x173   :  { %v1860_v32 = vpack.c.bf16 %v1034_v30, %v1033_v28  ;;  %v1940_v33 = vpack.c.bf16 %v1066_v31, %v1065_v29 }
 0x175   :  { %2120 = vst [vmem:[%s2777_s3 + $0x70] sm:$0xff] %v1860_v32   ;;  %v917_v40 = vpop.f32.mrf.mxu2  ;;  %v997_v36 = vpop.f32.mrf.mxu3 }
 0x176   :  { %2136 = vst [vmem:[%s2777_s3 + $0xf0] sm:$0xff] %v1940_v33   ;;  %v918_v37 = vadd.f32 %v2177_v25, %v917_v40  ;;  %v998_v38 = vadd.f32 %v2177_v25, %v997_v36  ;;  %v760_v39 = vpop.f32.mrf.mxu0  ;;  %v840_v41 = vpop.f32.mrf.mxu1 }
 0x177   :  { %v761_v48 = vadd.f32 %v2177_v25, %v760_v39  ;;  %v841_v49 = vadd.f32 %v2177_v25, %v840_v41 }
 0x178   :  { %v1098_v44 = vmax.f32 %v918_v37, 0.0  ;;  %v1130_v45 = vmax.f32 %v998_v38, 0.0 }
 0x179   :  { %v1035_v56 = vmax.f32 %v761_v48, 0.0  ;;  %v1067_v57 = vmax.f32 %v841_v49, 0.0 }
 0x17a   :  { %v2020_v46 = vpack.c.bf16 %v1098_v44, %v1097_v42  ;;  %v2100_v47 = vpack.c.bf16 %v1130_v45, %v1129_v43 }
 0x17c   :  { %2152 = vst [vmem:[%s2777_s3 + $0x170] sm:$0xff] %v2020_v46  }
 0x17d   :  { %2168 = vst [vmem:[%s2777_s3 + $0x1f0] sm:$0xff] %v2100_v47   ;;  %v920_v50 = vpop.f32.mrf.mxu2  ;;  %v1000_v51 = vpop.f32.mrf.mxu3 }
 0x17e   :  { %v762_v52 = vpop.f32.mrf.mxu0  ;;  %v842_v53 = vpop.f32.mrf.mxu1  ;;  %v921_v62 = vadd.f32 %v2177_v25, %v920_v50  ;;  %v1001_v63 = vadd.f32 %v2177_v25, %v1000_v51 }
 0x17f   :  { %v763_v54 = vadd.f32 %v2177_v25, %v762_v52  ;;  %v843_v55 = vadd.f32 %v2177_v25, %v842_v53 }
 0x180   :  { %v1099_v4 = vmax.f32 %v921_v62, 0.0  ;;  %v1131_v5 = vmax.f32 %v1001_v63, 0.0 }
 0x181   :  { %v1036_v58 = vmax.f32 %v763_v54, 0.0  ;;  %v1068_v59 = vmax.f32 %v843_v55, 0.0 }
 0x183   :  { %v1865_v60 = vpack.c.bf16 %v1036_v58, %v1035_v56  ;;  %v1945_v61 = vpack.c.bf16 %v1068_v59, %v1067_v57 }
 0x185   :  { %2121 = vst [vmem:[%s2777_s3 + $0x78] sm:$0xff] %v1865_v60   ;;  %v922_v0 = vpop.f32.mrf.mxu2  ;;  %v1002_v1 = vpop.f32.mrf.mxu3 }
 0x186   :  { %2137 = vst [vmem:[%s2777_s3 + $0xf8] sm:$0xff] %v1945_v61   ;;  %v923_v2 = vadd.f32 %v2177_v25, %v922_v0  ;;  %v1003_v3 = vadd.f32 %v2177_v25, %v1002_v1 }
 0x188   :  { %v1100_v6 = vmax.f32 %v923_v2, 0.0  ;;  %v1132_v7 = vmax.f32 %v1003_v3, 0.0 }
 0x18a   :  { %v2025_v8 = vpack.c.bf16 %v1100_v6, %v1099_v4  ;;  %v2105_v9 = vpack.c.bf16 %v1132_v7, %v1131_v5 }
 0x18c   :  { %2153 = vst [vmem:[%s2777_s3 + $0x178] sm:$0xff] %v2025_v8  }
 0x18d   :  { %2169 = vst [vmem:[%s2777_s3 + $0x1f8] sm:$0xff] %v2105_v9  }

// kernel: vgg_loss.9
= control target key start
LH: loop header
LB: loop body
LE: loop exit
PB: predicated region body
PF: predicated region fallthrough
CT: control target
= control target key end

     0   :  { %s449_s9 = smov 0   ;;  %s451_s10 = smov 0   ;;  %s490_s0 = inlined_call_operand.vmem [shape: bf16[256,128], index: 0, kind: input, shape index: {}, may-alias: {0,1}]   ;;  %s491_s1 = inlined_call_operand.vmem [shape: bf16[256,128], index: 1, kind: input, shape index: {}, may-alias: {0,1}]   ;;  %s492_s2 = inlined_call_operand.vmem [shape: f32[2,1,128], index: 2, kind: output, shape index: {}]  }
   0x1   :  { %s453_s11 = smov 0  }
   0x2 LB: > { %s24_s12 = sadd.s32 1, %s427_s10  ;;  %p337_p0 = scmp.ge.s32.totalorder %s431_s11, 1  ;;  %s431_s11 = sphi %s453_s11, %s12_s11   ;;  %s427_s10 = sphi %s451_s10, %s494_s10   ;;  %s423_s9 = sphi %s449_s9, %s493_s9  }
   0x3   : > { %p26_p1 = scmp.ge.s32.totalorder %s24_s12, 2  ;;  %p148_p2 = scmp.lt.s32.totalorder %s431_s11, 3 }
   0x5   : > { %s496_s12 = smov (%p26_p1, %s24_s12), 0  ;;  %p149_p3 = pnand %p337_p0, %p148_p2 }
   0x6   : > { %p194_p4 = scmp.lt.s32.totalorder (!%p149_p3), %s423_s9, 1  ;;  %s338_s13 = sshll.u32 (!%p149_p3), %s423_s9, 3 }
   0x7   : > { %152 = sbr.rel (%p149_p3) target bundleno = 53 (0x35), region = 28  ;;  %p178_p5 = scmp.lt.s32.totalorder (!%p149_p3), %s338_s13, 31 }
   0x8   : > { %s345_s14 = sadd.s32 (!%p149_p3), 16, %s338_s13 }
   0x9   : > { %p187_p6 = scmp.lt.s32.totalorder (!%p149_p3), %s345_s14, 31 }
   0xc   : > { %s498_s9 = smov (!%p194_p4, %s423_s9), 1  ;;  %s500_s13 = smov (!%p178_p5, %s338_s13), 31  ;;  %v433_v0 = vmov 0.0  }
   0xd   : > { %s470_s17 = scalar_lea.vmem %s492_s2, %s498_s9  ;;  %s339_s18 = sshll.u32 %s500_s13, 2 }
   0xe   : > { %201 = vst [vmem:[%s470_s17] sm:$0x1] %v433_v0  ;;  %s181_s21 = scalar_lea.vmem %s490_s0, %s339_s18  ;;  %s502_s14 = smov (!%p187_p6, %s345_s14), 31 }
   0xf   : > { %v347_v1 = vld [vmem:[%s181_s21] sm:$0xff]   ;;  %v378_v2 = vld [vmem:[%s181_s21 + $0x8] sm:$0xff]   ;;  %v379_v3 = vld [vmem:[%s181_s21 + $0x10] sm:$0xff]   ;;  %s341_s22 = sshll.u32 %s502_s14, 2 }
  0x10   : > { %s190_s25 = scalar_lea.vmem %s491_s1, %s341_s22  ;;  %v348_v4 = vunpack.c.l.bf16 %v347_v1  ;;  %v349_v5 = vunpack.c.h.bf16 %v347_v1  ;;  %v352_v6 = vunpack.c.l.bf16 %v378_v2  ;;  %v353_v7 = vunpack.c.h.bf16 %v378_v2  ;;  %v380_v12 = vld [vmem:[%s181_s21 + $0x18] sm:$0xff]  }
  0x11   : > { %v356_v8 = vunpack.c.l.bf16 %v379_v3  ;;  %v363_v9 = vld [vmem:[%s190_s25] sm:$0xff]   ;;  %v381_v10 = vld [vmem:[%s190_s25 + $0x8] sm:$0xff]   ;;  %v382_v11 = vld [vmem:[%s190_s25 + $0x10] sm:$0xff]   ;;  %v357_v18 = vunpack.c.h.bf16 %v379_v3  ;;  %v360_v25 = vunpack.c.l.bf16 %v380_v12  ;;  %v361_v31 = vunpack.c.h.bf16 %v380_v12 }
  0x12   : > { %v364_v13 = vunpack.c.l.bf16 %v363_v9  ;;  %v365_v14 = vunpack.c.h.bf16 %v363_v9  ;;  %v368_v15 = vunpack.c.l.bf16 %v381_v10  ;;  %v369_v16 = vunpack.c.h.bf16 %v381_v10  ;;  %v383_v17 = vld [vmem:[%s190_s25 + $0x18] sm:$0xff]  }
  0x13   : > { %v372_v19 = vunpack.c.l.bf16 %v382_v11  ;;  %v373_v20 = vunpack.c.h.bf16 %v382_v11  ;;  %v376_v26 = vunpack.c.l.bf16 %v383_v17  ;;  %v377_v32 = vunpack.c.h.bf16 %v383_v17 }
  0x14   : > { %v234_v21 = vsub.f32 %v348_v4, %v364_v13  ;;  %v235_v22 = vsub.f32 %v349_v5, %v365_v14  ;;  %v236_v23 = vsub.f32 %v352_v6, %v368_v15  ;;  %v237_v24 = vsub.f32 %v353_v7, %v369_v16 }
  0x15   : > { %v238_v27 = vsub.f32 %v356_v8, %v372_v19  ;;  %v239_v33 = vsub.f32 %v357_v18, %v373_v20  ;;  %v240_v36 = vsub.f32 %v360_v25, %v376_v26  ;;  %v241_v39 = vsub.f32 %v361_v31, %v377_v32  ;;  %v242_v53 = vld [vmem:[%s470_s17] sm:$0x1] }
  0x16   : > { %v243_v28 = vmul.f32 %v234_v21, %v234_v21  ;;  %v244_v29 = vmul.f32 %v235_v22, %v235_v22  ;;  %v245_v30 = vmul.f32 %v236_v23, %v236_v23  ;;  %v246_v34 = vmul.f32 %v237_v24, %v237_v24 }
  0x17   : > { %v247_v37 = vmul.f32 %v238_v27, %v238_v27  ;;  %v248_v40 = vmul.f32 %v239_v33, %v239_v33  ;;  %v249_v42 = vmul.f32 %v240_v36, %v240_v36  ;;  %v250_v44 = vmul.f32 %v241_v39, %v241_v39 }
  0x18   : > { %v251_v35 = vadd.f32 %v244_v29, %v243_v28 }
  0x1a   : > { %v252_v38 = vadd.f32 %v251_v35, %v245_v30 }
  0x1c   : > { %v253_v41 = vadd.f32 %v252_v38, %v246_v34 }
  0x1e   : > { %v254_v43 = vadd.f32 %v253_v41, %v247_v37 }
  0x20   : > { %v255_v45 = vadd.f32 %v254_v43, %v248_v40 }
  0x22   : > { %v256_v46 = vadd.f32 %v255_v45, %v249_v42 }
  0x24   : > { %v257_v47 = vadd.f32 %v256_v46, %v250_v44 }
  0x26   : > { %v258_v48 = vrot.slane %v257_v47, 4 }
  0x28   : > { %v259_v49 = vadd.f32 %v258_v48, %v257_v47 }
  0x2a   : > { %v260_v50 = vrot.slane %v259_v49, 2 }
  0x2c   : > { %v261_v51 = vadd.f32 %v260_v50, %v259_v49 }
  0x2e   : > { %v262_v52 = vrot.slane %v261_v51, 1 }
  0x30   : > { %v263_v54 = vadd.f32 %v262_v52, %v261_v51 }
  0x32   : > { %v264_v55 = vadd.f32 %v263_v54, %v242_v53 }
  0x34   : > { %265 = vst [vmem:[%s470_s17] sm:$0x1] %v264_v55 }
  0x35 PF: > { %s12_s11 = sadd.s32 1, %s431_s11   ;;  %s493_s9 = smov %s427_s10 }
  0x36   : > { %p9_p7 = scmp.ge.s32.totalorder %s12_s11, 4   ;;  %s494_s10 = smov %s496_s12 }
  0x38   :  { %11 = sbr.rel (!%p9_p7) target bundleno = 2 (0x2), region = 65 }

// kernel: vgg_loss.6
= control target key start
LH: loop header
LB: loop body
LE: loop exit
PB: predicated region body
PF: predicated region fallthrough
CT: control target
= control target key end

     0   :  { %s5483_s18 = smov 0   ;;  %s5485_s19 = smov 0   ;;  %s6268_s0 = inlined_call_operand.vmem [shape: bf16[4,18,18,128], index: 0, kind: input, shape index: {}, may-alias: {0,1,2}]   ;;  %s6269_s1 = inlined_call_operand.vmem [shape: bf16[4,18,18,128], index: 1, kind: input, shape index: {}, may-alias: {0,1,2}]   ;;  %s6270_s2 = inlined_call_operand.vmem [shape: bf16[4,18,18,128], index: 2, kind: input, shape index: {}, may-alias: {0,1,2}]   ;;  %s6271_s3 = inlined_call_operand.vmem [shape: bf16[3,384,128], index: 3, kind: input, shape index: {}]   ;;  %s6272_s4 = inlined_call_operand.vmem [shape: f32[1,128], index: 4, kind: input, shape index: {}]   ;;  %s6273_s5 = inlined_call_operand.vmem [shape: bf16[4,8,8,128], index: 5, kind: output, shape index: {}]  }
   0x1   :  { %s5487_s20 = smov 0  }
   0x2 LB: > { %s27_s21 = sadd.s32 1, %s5447_s19  ;;  %p4163_p0 = scmp.ge.s32.totalorder %s5451_s20, 1  ;;  %s5451_s20 = sphi %s5487_s20, %s15_s20   ;;  %s5447_s19 = sphi %s5485_s19, %s6279_s19   ;;  %s5443_s18 = sphi %s5483_s18, %s6278_s18  }
   0x3   : > { %p29_p1 = scmp.ge.s32.totalorder %s27_s21, 4  ;;  %p267_p2 = scmp.lt.s32.totalorder %s5451_s20, 5 }
   0x5   : > { %s6281_s21 = smov (%p29_p1, %s27_s21), 0  ;;  %p268_p3 = pnand %p4163_p0, %p267_p2 }
   0x6   : > { %p337_p4 = scmp.lt.s32.totalorder (!%p268_p3), %s5443_s18, 3 }
   0x7   : > { %271 = sbr.rel (%p268_p3) target bundleno = 771 (0x303), region = 40 }
   0xc   : > { %v5216_v0 = vld [vmem:[%s6271_s3 + $0x38] sm:$0xff]  ;;  %v5215_v1 = vld [vmem:[%s6271_s3 + $0x30] sm:$0xff]  ;;  %s6283_s18 = smov (!%p337_p4, %s5443_s18), 3  ;;  %v5214_v2 = vld [vmem:[%s6271_s3 + $0x28] sm:$0xff]  ;;  %vm510_vm0 = vsmask.f32 3328 }
   0xd   : > { %5377 = vmatpush.bf16.msra.mxu1 %v5216_v0  ;;  %5378 = vmatpush.bf16.msra.mxu2 %v5216_v0  ;;  %s5510_s26 = smul.u32 216, %s6283_s18  ;;  %v5213_v8 = vld [vmem:[%s6271_s3 + $0x20] sm:$0xff]  ;;  %v5212_v13 = vld [vmem:[%s6271_s3 + $0x18] sm:$0xff]  ;;  %v5211_v18 = vld [vmem:[%s6271_s3 + $0x10] sm:$0xff]  ;;  %vm511_vm1 = vsmask.f32 7440 }
   0xe   : > { %5379 = vmatpush.bf16.msra.mxu3 %v5216_v0  ;;  %1844 = vmatpush.bf16.msra.mxu0 %v5216_v0  ;;  %v5210_v22 = vld [vmem:[%s6271_s3 + $0x8] sm:$0xff]  ;;  %v5209_v25 = vld [vmem:[%s6271_s3] sm:$0xff]  ;;  %v5224_v38 = vld [vmem:[%s6271_s3 + $0x78] sm:$0xff]  ;;  %vm1119_vm2 = vcmask 1042432   ;;  %vm1120_vm4 = vcmask 1046532   ;;  %s5160_s17 = sshll.u32 %s6283_s18, 5 }
   0xf   : > { %s5519_s6 = scalar_lea.vmem %s6268_s0, %s5510_s26  ;;  %v5232_v39 = vld [vmem:[%s6271_s3 + $0xb8] sm:$0xff]  ;;  %v5223_v48 = vld [vmem:[%s6271_s3 + $0x70] sm:$0xff]  ;;  %v5222_v52 = vld [vmem:[%s6271_s3 + $0x68] sm:$0xff]  ;;  %s5157_s28 = sadd.s32 192, %s5510_s26 }
  0x10   : > { %v396_v3 = vld [vmem:[%s5519_s6 + $0x30] sm:$0xf]  ;;  %v397_v4 = vld [vmem:[%s5519_s6 + $0x34] sm:$0xf]  ;;  %v404_v5 = vld [vmem:[%s5519_s6 + $0x60] sm:$0xf]  ;;  %s6065_s7 = scalar_lea.vmem %s6269_s1, %s5157_s28  ;;  %s6187_s24 = scalar_lea.vmem %s6273_s5, %s5160_s17 }
  0x11   : > { %5380 = vmatpush.bf16.msra.mxu1 %v5215_v1  ;;  %5381 = vmatpush.bf16.msra.mxu2 %v5215_v1  ;;  %428 = vst [vmem:[#allocation2 + $0x60] sm:$0xf] %v396_v3  ;;  %v405_v6 = vld [vmem:[%s5519_s6 + $0x64] sm:$0xf]  ;;  %v412_v7 = vld [vmem:[%s5519_s6 + $0x90] sm:$0xf]  ;;  %vm5665_vm3 = vmor %vm510_vm0, %vm511_vm1 }
  0x12   : > { %5382 = vmatpush.bf16.msra.mxu3 %v5215_v1  ;;  %1845 = vmatpush.bf16.msra.mxu0 %v5215_v1  ;;  %429 = vst [vmem:[#allocation2 + $0x6c] sm:$0xf] %v397_v4  ;;  %v413_v9 = vld [vmem:[%s5519_s6 + $0x94] sm:$0xf]  ;;  %v388_v10 = vld [vmem:[%s5519_s6] sm:$0xf]  ;;  %vm5676_vm5 = vmor %vm1119_vm2, %vm1120_vm4 }
  0x13   : > { %436 = vst [vmem:[#allocation2 + $0xc0] sm:$0xf] %v404_v5  ;;  %v389_v11 = vld [vmem:[%s5519_s6 + $0x4] sm:$0xf]  ;;  %v398_v12 = vld [vmem:[%s5519_s6 + $0x3c] sm:$0xf] }
  0x14   : > { %437 = vst [vmem:[#allocation2 + $0xcc] sm:$0xf] %v405_v6  ;;  %v399_v14 = vld [vmem:[%s5519_s6 + $0x40] sm:$0xf]  ;;  %v406_v15 = vld [vmem:[%s5519_s6 + $0x6c] sm:$0xf] }
  0x15   : > { %5383 = vmatpush.bf16.msra.mxu1 %v5214_v2  ;;  %5384 = vmatpush.bf16.msra.mxu2 %v5214_v2  ;;  %444 = vst [vmem:[#allocation2 + $0x120] sm:$0xf] %v412_v7  ;;  %v407_v16 = vld [vmem:[%s5519_s6 + $0x70] sm:$0xf]  ;;  %v414_v17 = vld [vmem:[%s5519_s6 + $0x9c] sm:$0xf] }
  0x16   : > { %5385 = vmatpush.bf16.msra.mxu3 %v5214_v2  ;;  %1846 = vmatpush.bf16.msra.mxu0 %v5214_v2  ;;  %445 = vst [vmem:[#allocation2 + $0x12c] sm:$0xf] %v413_v9  ;;  %v415_v19 = vld [vmem:[%s5519_s6 + $0xa0] sm:$0xf]  ;;  %v390_v20 = vld [vmem:[%s5519_s6 + $0xc] sm:$0xf] }
  0x17   : > { %420 = vst [vmem:[#allocation2] sm:$0xf] %v388_v10  ;;  %v391_v21 = vld [vmem:[%s5519_s6 + $0x10] sm:$0xf]  ;;  %v400_v23 = vld [vmem:[%s5519_s6 + $0x48] sm:$0xf] }
  0x18   : > { %421 = vst [vmem:[#allocation2 + $0xc] sm:$0xf] %v389_v11  ;;  %v401_v24 = vld [vmem:[%s5519_s6 + $0x4c] sm:$0xf]  ;;  %v4237_v26 = vld [vmem:[#allocation2 + $0x60] sm:$0xf] }
  0x19   : > { %5386 = vmatpush.bf16.msra.mxu1 %v5213_v8  ;;  %5387 = vmatpush.bf16.msra.mxu2 %v5213_v8  ;;  %430 = vst [vmem:[#allocation2 + $0x78] sm:$0xf] %v398_v12  ;;  %v5174_v27 = vld [vmem:[#allocation2 + $0x68] sm:$0xf0]  ;;  %v408_v30 = vld [vmem:[%s5519_s6 + $0x78] sm:$0xf] }
  0x1a   : > { %5388 = vmatpush.bf16.msra.mxu3 %v5213_v8  ;;  %1847 = vmatpush.bf16.msra.mxu0 %v5213_v8  ;;  %431 = vst [vmem:[#allocation2 + $0x84] sm:$0xf] %v399_v14  ;;  %v4285_v28 = vld [vmem:[#allocation2 + $0xc0] sm:$0xf]  ;;  %v409_v33 = vld [vmem:[%s5519_s6 + $0x7c] sm:$0xf]  ;;  %v4238_v41 = vor.u32 %v5174_v27, %v4237_v26 }
  0x1b   : > { %438 = vst [vmem:[#allocation2 + $0xd8] sm:$0xf] %v406_v15  ;;  %v5186_v29 = vld [vmem:[#allocation2 + $0xc8] sm:$0xf0]  ;;  %v416_v35 = vld [vmem:[%s5519_s6 + $0xa8] sm:$0xf] }
  0x1c   : > { %439 = vst [vmem:[#allocation2 + $0xe4] sm:$0xf] %v407_v16  ;;  %v4333_v31 = vld [vmem:[#allocation2 + $0x120] sm:$0xf]  ;;  %v417_v37 = vld [vmem:[%s5519_s6 + $0xac] sm:$0xf]  ;;  %v4286_v42 = vor.u32 %v5186_v29, %v4285_v28 }
  0x1d   : > { %5389 = vmatpush.bf16.msra.mxu1 %v5212_v13  ;;  %5390 = vmatpush.bf16.msra.mxu2 %v5212_v13  ;;  %446 = vst [vmem:[#allocation2 + $0x138] sm:$0xf] %v414_v17  ;;  %v5198_v32 = vld [vmem:[#allocation2 + $0x128] sm:$0xf0]  ;;  %v392_v40 = vld [vmem:[%s5519_s6 + $0x18] sm:$0xf] }
  0x1e   : > { %5391 = vmatpush.bf16.msra.mxu3 %v5212_v13  ;;  %1848 = vmatpush.bf16.msra.mxu0 %v5212_v13  ;;  %447 = vst [vmem:[#allocation2 + $0x144] sm:$0xf] %v415_v19  ;;  %v4189_v34 = vld [vmem:[#allocation2] sm:$0xf]  ;;  %v393_v43 = vld [vmem:[%s5519_s6 + $0x1c] sm:$0xf]  ;;  %v4334_v44 = vor.u32 %v5198_v32, %v4333_v31 }
  0x1f   : > { %422 = vst [vmem:[#allocation2 + $0x18] sm:$0xf] %v390_v20  ;;  %v5162_v36 = vld [vmem:[#allocation2 + $0x8] sm:$0xf0]  ;;  %v5288_v46 = vld [vmem:[%s6271_s3 + $0xf8] sm:$0xff]  ;;  %v5231_v49 = vld [vmem:[%s6271_s3 + $0xb0] sm:$0xff] }
  0x20   : > { %423 = vst [vmem:[#allocation2 + $0x24] sm:$0xf] %v391_v21  ;;  %v4190_v45 = vor.u32 %v5162_v36, %v4189_v34  ;;  %v5296_v47 = vld [vmem:[%s6271_s3 + $0x138] sm:$0xff]  ;;  %v5287_v50 = vld [vmem:[%s6271_s3 + $0xf0] sm:$0xff]  ;;  %v5230_v53 = vld [vmem:[%s6271_s3 + $0xa8] sm:$0xff]  ;;  %s5159_s18 = sadd.s32 204, %s5510_s26 }
  0x21   : > { %5392 = vmatpush.bf16.msra.mxu1 %v5211_v18  ;;  %5393 = vmatpush.bf16.msra.mxu2 %v5211_v18  ;;  %432 = vst [vmem:[#allocation2 + $0x90] sm:$0xf] %v400_v23  ;;  %v5295_v51 = vld [vmem:[%s6271_s3 + $0x130] sm:$0xff]  ;;  %v5286_v54 = vld [vmem:[%s6271_s3 + $0xe8] sm:$0xff]  ;;  %v5221_v55 = vld [vmem:[%s6271_s3 + $0x60] sm:$0xff]  ;;  %s6203_s27 = scalar_lea.vmem %s6270_s2, %s5159_s18 }
  0x22   : > { %5394 = vmatpush.bf16.msra.mxu3 %v5211_v18  ;;  %1849 = vmatpush.bf16.msra.mxu0 %v5211_v18  ;;  %433 = vst [vmem:[#allocation2 + $0x9c] sm:$0xf] %v401_v24  ;;  %v5229_v56 = vld [vmem:[%s6271_s3 + $0xa0] sm:$0xff]  ;;  %v5294_v57 = vld [vmem:[%s6271_s3 + $0x128] sm:$0xff]  ;;  %v402_v58 = vld [vmem:[%s5519_s6 + $0x54] sm:$0xf] }
  0x23   : > { %440 = vst [vmem:[#allocation2 + $0xf0] sm:$0xf] %v408_v30  ;;  %v403_v59 = vld [vmem:[%s5519_s6 + $0x58] sm:$0xf]  ;;  %v410_v60 = vld [vmem:[%s5519_s6 + $0x84] sm:$0xf] }
  0x24   : > { %441 = vst [vmem:[#allocation2 + $0xfc] sm:$0xf] %v409_v33  ;;  %v411_v61 = vld [vmem:[%s5519_s6 + $0x88] sm:$0xf]  ;;  %v4249_v62 = vld [vmem:[#allocation2 + $0x78] sm:$0xf] }
  0x25   : > { %5395 = vmatpush.bf16.msra.mxu1 %v5210_v22  ;;  %5396 = vmatpush.bf16.msra.mxu2 %v5210_v22  ;;  %448 = vst [vmem:[#allocation2 + $0x150] sm:$0xf] %v416_v35  ;;  %v5177_v63 = vld [vmem:[#allocation2 + $0x80] sm:$0xf0]  ;;  %v4297_v0 = vld [vmem:[#allocation2 + $0xd8] sm:$0xf] }
  0x26   : > { %5397 = vmatpush.bf16.msra.mxu3 %v5210_v22  ;;  %1850 = vmatpush.bf16.msra.mxu0 %v5210_v22  ;;  %449 = vst [vmem:[#allocation2 + $0x15c] sm:$0xf] %v417_v37  ;;  %v5189_v1 = vld [vmem:[#allocation2 + $0xe0] sm:$0xf0]  ;;  %v418_v2 = vld [vmem:[%s5519_s6 + $0xb4] sm:$0xf]  ;;  %v4250_v14 = vor.u32 %v5177_v63, %v4249_v62 }
  0x27   : > { %424 = vst [vmem:[#allocation2 + $0x30] sm:$0xf] %v392_v40  ;;  %v4345_v3 = vld [vmem:[#allocation2 + $0x138] sm:$0xf]  ;;  %v5201_v4 = vld [vmem:[#allocation2 + $0x140] sm:$0xf0]  ;;  %v4298_v15 = vor.u32 %v5189_v1, %v4297_v0 }
  0x28   : > { %425 = vst [vmem:[#allocation2 + $0x3c] sm:$0xf] %v393_v43  ;;  %v4201_v5 = vld [vmem:[#allocation2 + $0x18] sm:$0xf]  ;;  %v5165_v7 = vld [vmem:[#allocation2 + $0x20] sm:$0xf0]  ;;  %v4346_v16 = vor.u32 %v5201_v4, %v4345_v3 }
  0x29   : > { %5398 = vmatpush.bf16.msra.mxu1 %v5209_v25  ;;  %5399 = vmatpush.bf16.msra.mxu2 %v5209_v25  ;;  %434 = vst [vmem:[#allocation2 + $0xa8] sm:$0xf] %v402_v58  ;;  %v419_v6 = vld [vmem:[%s5519_s6 + $0xb8] sm:$0xf]  ;;  %v394_v8 = vld [vmem:[%s5519_s6 + $0x24] sm:$0xf]  ;;  %v4202_v17 = vor.u32 %v5165_v7, %v4201_v5 }
  0x2a   : > { %5400 = vmatpush.bf16.msra.mxu3 %v5209_v25  ;;  %1851 = vmatpush.bf16.msra.mxu0 %v5209_v25  ;;  %435 = vst [vmem:[#allocation2 + $0xb4] sm:$0xf] %v403_v59  ;;  %v5285_v9 = vld [vmem:[%s6271_s3 + $0xe0] sm:$0xff]  ;;  %v395_v11 = vld [vmem:[%s5519_s6 + $0x28] sm:$0xf]  ;;  %v5220_v12 = vld [vmem:[%s6271_s3 + $0x58] sm:$0xff] }
  0x2b   : > { %442 = vst [vmem:[#allocation2 + $0x108] sm:$0xf] %v410_v60  ;;  %v5293_v10 = vld [vmem:[%s6271_s3 + $0x120] sm:$0xff]  ;;  %v5228_v13 = vld [vmem:[%s6271_s3 + $0x98] sm:$0xff]  ;;  %v5219_v24 = vld [vmem:[%s6271_s3 + $0x50] sm:$0xff] }
  0x2c   : > { %1872 = vmatmul.bf16.vlgmr.msra.gmra.mxu1 %v4238_v41  ;;  %1892 = vmatmul.bf16.vlgmr.msra.gmra.mxu2 %v4286_v42  ;;  %443 = vst [vmem:[#allocation2 + $0x114] sm:$0xf] %v411_v61  ;;  %v462_v18 = vld [vmem:[%s5519_s6] sm:$0xf]  ;;  %v5284_v19 = vld [vmem:[%s6271_s3 + $0xd8] sm:$0xff]  ;;  %v5227_v25 = vld [vmem:[%s6271_s3 + $0x90] sm:$0xff] }
  0x2d   : > { %1933 = vmatpush.bf16.msrb.mxu1 %v5224_v38  ;;  %2022 = vmatpush.bf16.msrb.mxu2 %v5232_v39  ;;  %450 = vst [vmem:[#allocation2 + $0x168] sm:$0xf] %v418_v2  ;;  %v5292_v20 = vld [vmem:[%s6271_s3 + $0x118] sm:$0xff]  ;;  %v463_v21 = vld [vmem:[%s5519_s6 + $0x4] sm:$0xf]  ;;  %v514_v22 = vshrl.u32 %v462_v18, 16 }
  0x2e   : > { %1912 = vmatmul.bf16.vlgmr.msra.gmra.mxu3 %v4334_v44  ;;  %1852 = vmatmul.bf16.vlgmr.msra.gmra.mxu0 %v4190_v45  ;;  %451 = vst [vmem:[#allocation2 + $0x174] sm:$0xf] %v419_v6  ;;  %v517_v23 = vshll.u32 %v462_v18, 16  ;;  %v523_v26 = vshll.u32 %v463_v21, 16  ;;  %v527_v27 = vshrl.u32 %v463_v21, 16  ;;  %v5283_v31 = vld [vmem:[%s6271_s3 + $0xd0] sm:$0xff] }
  0x2f   : > { %2657 = vmatpush.bf16.msrb.mxu3 %v5288_v46  ;;  %2746 = vmatpush.bf16.msrb.mxu0 %v5296_v47  ;;  %426 = vst [vmem:[#allocation2 + $0x48] sm:$0xf] %v394_v8  ;;  %v516_v28 = vrot.slane %v514_v22, 4  ;;  %v465_v30 = vld [vmem:[%s5519_s6 + $0xc] sm:$0xf]  ;;  %v5291_v32 = vld [vmem:[%s6271_s3 + $0x110] sm:$0xff] }
  0x30   : > { %427 = vst [vmem:[#allocation2 + $0x54] sm:$0xf] %v395_v11  ;;  %v519_v29 = vrot.slane %v517_v23, 5  ;;  %v5218_v34 = vld [vmem:[%s6271_s3 + $0x48] sm:$0xff]  ;;  %v525_v36 = vrot.slane %v523_v26, 5  ;;  %v529_v37 = vrot.slane %v527_v27, 4 }
  0x31   : > { %1934 = vmatpush.bf16.msrb.mxu1 %v5223_v48  ;;  %2023 = vmatpush.bf16.msrb.mxu2 %v5231_v49  ;;  %v5226_v35 = vld [vmem:[%s6271_s3 + $0x88] sm:$0xff]  ;;  %v466_v40 = vld [vmem:[%s5519_s6 + $0x10] sm:$0xf]  ;;  %v5217_v41 = vld [vmem:[%s6271_s3 + $0x40] sm:$0xff]  ;;  %v538_v47 = vshrl.u32 %v465_v30, 16 }
  0x32   : > { %v520_v33 = vor.u32 %v519_v29, %v516_v28  ;;  %v5282_v38 = vld [vmem:[%s6271_s3 + $0xc8] sm:$0xff]  ;;  %v5225_v42 = vld [vmem:[%s6271_s3 + $0x80] sm:$0xff]  ;;  %v530_v46 = vor.u32 %v529_v37, %v525_v36  ;;  %v5204_v58 = vld [vmem:[#allocation2 + $0x158] sm:$0xf0]  ;;  %v547_v6 = vshll.u32 %v466_v40, 16  ;;  %v551_v7 = vshrl.u32 %v466_v40, 16 }
  0x33   : > { %2658 = vmatpush.bf16.msrb.mxu3 %v5287_v50  ;;  %2747 = vmatpush.bf16.msrb.mxu0 %v5295_v51  ;;  %v5290_v43 = vld [vmem:[%s6271_s3 + $0x108] sm:$0xff]  ;;  %v1023_v50 = vld [vmem:[%s5519_s6] sm:$0xe]  ;;  %v1024_v51 = vld [vmem:[%s5519_s6 + $0x4] sm:$0xf]  ;;  %v540_v3 = vrot.slane %v538_v47, 4 }
  0x34   : > { %v521_v39 = vrot.slane %v520_v33, 4  ;;  %v464_v44 = vld [vmem:[%s5519_s6 + $0x8] sm:$0x1]  ;;  %v531_v59 = vrot.slane %v530_v46, 4  ;;  %v4169_v62 = vrot.slane %v1023_v50, 9  ;;  %v1124_v0 = vrot.slane %v1024_v51, 5 }
  0x35   : > { %1935 = vmatpush.bf16.msrb.mxu1 %v5222_v52  ;;  %2024 = vmatpush.bf16.msrb.mxu2 %v5230_v53  ;;  %v533_v49 = vshll.u32 %v464_v44, 16  ;;  %v541_v52 = vshll.u32 %v465_v30, 16  ;;  %v4261_v53 = vld [vmem:[#allocation2 + $0x90] sm:$0xf]  ;;  %v1025_v60 = vld [vmem:[%s5519_s6 + $0x8] sm:$0x1] }
  0x36   : > { %v526_v48 = vsel %vm5665_vm3, %v521_v39, %v525_v36  ;;  %v1127_v1 = vrot.slane %v1025_v60, 5  ;;  %v467_v2 = vld [vmem:[%s5519_s6 + $0x14] sm:$0x1]  ;;  %v4213_v4 = vld [vmem:[#allocation2 + $0x30] sm:$0xf]  ;;  %v5289_v11 = vld [vmem:[%s6271_s3 + $0x100] sm:$0xff] }
  0x37   : > { %2659 = vmatpush.bf16.msrb.mxu3 %v5286_v54  ;;  %2748 = vmatpush.bf16.msrb.mxu0 %v5294_v57  ;;  %v5180_v54 = vld [vmem:[#allocation2 + $0x98] sm:$0xf0]  ;;  %v4357_v57 = vld [vmem:[#allocation2 + $0x150] sm:$0xf]  ;;  %929 = vst [vmem:[#allocation2 + $0x4] sm:$0xf] %v526_v48 }
  0x38   : > { %v535_v63 = vrot.slane %v533_v49, 5  ;;  %v543_v5 = vrot.slane %v541_v52, 5  ;;  %v557_v8 = vshll.u32 %v467_v2, 16  ;;  %v4262_v18 = vor.u32 %v5180_v54, %v4261_v53  ;;  %v468_v26 = vld [vmem:[%s5519_s6 + $0x18] sm:$0xf] }
  0x39   : > { %1936 = vmatpush.bf16.msrb.mxu1 %v5221_v55  ;;  %2025 = vmatpush.bf16.msrb.mxu2 %v5229_v56  ;;  %v4309_v55 = vld [vmem:[#allocation2 + $0xf0] sm:$0xf]  ;;  %v5192_v56 = vld [vmem:[#allocation2 + $0xf8] sm:$0xf0]  ;;  %v562_v30 = vshrl.u32 %v468_v26, 16 }
  0x3a   : > { %v469_v29 = vld [vmem:[%s5519_s6 + $0x1c] sm:$0xf]  ;;  %v470_v49 = vld [vmem:[%s5519_s6 + $0x20] sm:$0x1]  ;;  %v5195_v60 = vld [vmem:[#allocation2 + $0x110] sm:$0xf0] }
  0x3b   : > { %2660 = vmatpush.bf16.msrb.mxu3 %v5285_v9  ;;  %2749 = vmatpush.bf16.msrb.mxu0 %v5293_v10  ;;  %v5168_v9 = vld [vmem:[#allocation2 + $0x38] sm:$0xf0]  ;;  %v5281_v10 = vld [vmem:[%s6271_s3 + $0xc0] sm:$0xff]  ;;  %v564_v36 = vrot.slane %v562_v30, 4  ;;  %v571_v37 = vshll.u32 %v469_v29, 16 }
  0x3c   : > { %1877 = vmatmul.bf16.gmra.mxu1 %v4250_v14  ;;  %1897 = vmatmul.bf16.gmra.mxu2 %v4298_v15  ;;  %v1126_v14 = vrot.slane %v1124_v0, 4  ;;  %v544_v15 = vor.u32 %v543_v5, %v540_v3  ;;  %v4214_v22 = vor.u32 %v5168_v9, %v4213_v4  ;;  %v5376_v39 = vld [vmem:[%s6271_s3 + $0x238] sm:$0xff]  ;;  %v5207_v2 = vld [vmem:[#allocation2 + $0x170] sm:$0xf0]  ;;  %v4225_v3 = vld [vmem:[#allocation2 + $0x48] sm:$0xf] }
  0x3d   : > { %1937 = vmatpush.bf16.msrb.mxu1 %v5220_v12  ;;  %2026 = vmatpush.bf16.msrb.mxu2 %v5228_v13  ;;  %v536_v12 = vsel %vm5665_vm3, %v531_v59, %v535_v63  ;;  %v1125_v13 = vsel %vm5676_vm5, %v4169_v62, %v1124_v0  ;;  %v573_v50 = vrot.slane %v571_v37, 5  ;;  %v4369_v62 = vld [vmem:[#allocation2 + $0x168] sm:$0xf]  ;;  %v5171_v4 = vld [vmem:[#allocation2 + $0x50] sm:$0xf0] }
  0x3e   : > { %1917 = vmatmul.bf16.gmra.mxu3 %v4346_v16  ;;  %1857 = vmatmul.bf16.gmra.mxu0 %v4202_v17  ;;  %930 = vst [vmem:[#allocation2 + $0x10] sm:$0xf] %v536_v12  ;;  %v549_v16 = vrot.slane %v547_v6, 5  ;;  %v553_v17 = vrot.slane %v551_v7, 4  ;;  %v1128_v21 = vsel %vm5676_vm5, %v1126_v14, %v1127_v1  ;;  %v545_v23 = vrot.slane %v544_v15, 4 }
  0x3f   : > { %2661 = vmatpush.bf16.msrb.mxu3 %v5284_v19  ;;  %2750 = vmatpush.bf16.msrb.mxu0 %v5292_v20  ;;  %v4310_v19 = vor.u32 %v5192_v56, %v4309_v55  ;;  %v4358_v20 = vor.u32 %v5204_v58, %v4357_v57  ;;  %1266 = vst [vmem:[#allocation2 + $0x8] sm:$0xf] %v1125_v13  ;;  %v581_v55 = vshll.u32 %v470_v49, 16  ;;  %v4273_v56 = vld [vmem:[#allocation2 + $0xa8] sm:$0xf] }
  0x40   : > { %1267 = vst [vmem:[#allocation2 + $0x14] sm:$0xf] %v1128_v21  ;;  %v550_v27 = vsel %vm5665_vm3, %v545_v23, %v549_v16  ;;  %v5183_v57 = vld [vmem:[#allocation2 + $0xb0] sm:$0xf0]  ;;  %v4321_v58 = vld [vmem:[#allocation2 + $0x108] sm:$0xf]  ;;  %v4370_v9 = vor.u32 %v5207_v2, %v4369_v62 }
  0x41   : > { %1938 = vmatpush.bf16.msrb.mxu1 %v5219_v24  ;;  %2027 = vmatpush.bf16.msrb.mxu2 %v5227_v25  ;;  %v554_v24 = vor.u32 %v553_v17, %v549_v16  ;;  %v559_v25 = vrot.slane %v557_v8, 5  ;;  %931 = vst [vmem:[#allocation2 + $0x1c] sm:$0xf] %v550_v27  ;;  %v583_v1 = vrot.slane %v581_v55, 5  ;;  %v4274_v6 = vor.u32 %v5183_v57, %v4273_v56  ;;  %v472_v12 = vld [vmem:[%s5519_s6 + $0x28] sm:$0xf] }
  0x42   : > { %v4322_v7 = vor.u32 %v5195_v60, %v4321_v58  ;;  %v595_v15 = vshll.u32 %v472_v12, 16  ;;  %v599_v16 = vshrl.u32 %v472_v12, 16  ;;  %v1030_v17 = vld [vmem:[%s5519_s6 + $0x1c] sm:$0xf]  ;;  %v1029_v23 = vld [vmem:[%s5519_s6 + $0x18] sm:$0xe] }
  0x43   : > { %2662 = vmatpush.bf16.msrb.mxu3 %v5283_v31  ;;  %2751 = vmatpush.bf16.msrb.mxu0 %v5291_v32  ;;  %v555_v28 = vrot.slane %v554_v24, 4  ;;  %v565_v31 = vshll.u32 %v468_v26, 16  ;;  %v5304_v32 = vld [vmem:[%s6271_s3 + $0x178] sm:$0xff]  ;;  %v1031_v24 = vld [vmem:[%s5519_s6 + $0x20] sm:$0x1]  ;;  %v4171_v27 = vrot.slane %v1029_v23, 9 }
  0x44   : > { %v1141_v30 = vrot.slane %v1031_v24, 5  ;;  %v5303_v58 = vld [vmem:[%s6271_s3 + $0x170] sm:$0xff] }
  0x45   : > { %1939 = vmatpush.bf16.msrb.mxu1 %v5218_v34  ;;  %2028 = vmatpush.bf16.msrb.mxu2 %v5226_v35  ;;  %v560_v33 = vsel %vm5665_vm3, %v555_v28, %v559_v25  ;;  %v5360_v34 = vld [vmem:[%s6271_s3 + $0x1b8] sm:$0xff]  ;;  %v567_v40 = vrot.slane %v565_v31, 5  ;;  %v601_v25 = vrot.slane %v599_v16, 4 }
  0x46   : > { %v5368_v35 = vld [vmem:[%s6271_s3 + $0x1f8] sm:$0xff]  ;;  %932 = vst [vmem:[#allocation2 + $0x28] sm:$0xf] %v560_v33 }
  0x47   : > { %2663 = vmatpush.bf16.msrb.mxu3 %v5282_v38  ;;  %2752 = vmatpush.bf16.msrb.mxu0 %v5290_v43  ;;  %v575_v38 = vshrl.u32 %v469_v29, 16  ;;  %v1028_v43 = vld [vmem:[%s5519_s6 + $0x14] sm:$0x1]  ;;  %v568_v47 = vor.u32 %v567_v40, %v564_v36  ;;  %v5234_v40 = vld [vmem:[#allocation2 + $0x20] sm:$0xf0] }
  0x48   : > { %v1134_v48 = vrot.slane %v1028_v43, 5  ;;  %v5163_v43 = vld [vmem:[#allocation2 + $0x10] sm:$0xf0] }
  0x49   : > { %1940 = vmatpush.bf16.msrb.mxu1 %v5217_v41  ;;  %2029 = vmatpush.bf16.msrb.mxu2 %v5225_v42  ;;  %v1026_v41 = vld [vmem:[%s5519_s6 + $0xc] sm:$0xe]  ;;  %v1027_v42 = vld [vmem:[%s5519_s6 + $0x10] sm:$0xf]  ;;  %v577_v51 = vrot.slane %v575_v38, 4  ;;  %v569_v54 = vrot.slane %v568_v47, 4 }
  0x4a   : > { %v4170_v44 = vrot.slane %v1026_v41, 9  ;;  %v1131_v46 = vrot.slane %v1027_v42, 5  ;;  %v4191_v38 = vld [vmem:[#allocation2 + $0xc] sm:$0xf0]  ;;  %v4197_v42 = vld [vmem:[#allocation2 + $0x8] sm:$0xf] }
  0x4b   : > { %2664 = vmatpush.bf16.msrb.mxu3 %v5281_v10  ;;  %2753 = vmatpush.bf16.msrb.mxu0 %v5289_v11  ;;  %v578_v59 = vor.u32 %v577_v51, %v573_v50  ;;  %v574_v0 = vsel %vm5665_vm3, %v569_v54, %v573_v50  ;;  %v4226_v10 = vor.u32 %v5171_v4, %v4225_v3  ;;  %v471_v11 = vld [vmem:[%s5519_s6 + $0x24] sm:$0xf]  ;;  %v1033_v4 = vld [vmem:[%s5519_s6 + $0x28] sm:$0xf] }
  0x4c   : > { %1882 = vmatmul.bf16.gmra.mxu1 %v4262_v18  ;;  %1902 = vmatmul.bf16.gmra.mxu2 %v4310_v19  ;;  %v1132_v52 = vsel %vm5676_vm5, %v4170_v44, %v1131_v46  ;;  %v1133_v53 = vrot.slane %v1131_v46, 4  ;;  %933 = vst [vmem:[#allocation2 + $0x34] sm:$0xf] %v574_v0  ;;  %v586_v13 = vshrl.u32 %v471_v11, 16  ;;  %v589_v14 = vshll.u32 %v471_v11, 16  ;;  %v5375_v0 = vld [vmem:[%s6271_s3 + $0x230] sm:$0xff] }
  0x4d   : > { %2835 = vmatpush.bf16.msra.mxu1 %v5304_v32  ;;  %3534 = vmatpush.bf16.msra.mxu2 %v5360_v34  ;;  %1268 = vst [vmem:[#allocation2 + $0x20] sm:$0xf] %v1132_v52  ;;  %v579_v5 = vrot.slane %v578_v59, 4  ;;  %v1138_v18 = vrot.slane %v1030_v17, 5  ;;  %v473_v19 = vld [vmem:[%s5519_s6 + $0x2c] sm:$0x1]  ;;  %v4198_v49 = vor.u32 %v5163_v43, %v4197_v42 }
  0x4e   : > { %1922 = vmatmul.bf16.gmra.mxu3 %v4358_v20  ;;  %1862 = vmatmul.bf16.gmra.mxu0 %v4214_v22  ;;  %v1135_v63 = vsel %vm5676_vm5, %v1133_v53, %v1134_v48  ;;  %v588_v20 = vrot.slane %v586_v13, 4  ;;  %v591_v21 = vrot.slane %v589_v14, 5  ;;  %v597_v22 = vrot.slane %v595_v15, 5  ;;  %v5233_v46 = vld [vmem:[#allocation2 + $0x1c] sm:$0xf]  ;;  %v5359_v59 = vld [vmem:[%s6271_s3 + $0x1b0] sm:$0xff] }
  0x4f   : > { %3623 = vmatpush.bf16.msra.mxu3 %v5368_v35  ;;  %3712 = vmatpush.bf16.msra.mxu0 %v5376_v39  ;;  %1269 = vst [vmem:[#allocation2 + $0x2c] sm:$0xf] %v1135_v63  ;;  %v584_v8 = vsel %vm5665_vm3, %v579_v5, %v583_v1  ;;  %v605_v26 = vshll.u32 %v473_v19, 16  ;;  %v1140_v28 = vrot.slane %v1138_v18, 4  ;;  %v1139_v32 = vsel %vm5676_vm5, %v4171_v27, %v1138_v18  ;;  %v5161_v35 = vld [vmem:[#allocation2 + $0x4] sm:$0xf] }
  0x50   : > { %934 = vst [vmem:[#allocation2 + $0x40] sm:$0xf] %v584_v8  ;;  %v592_v29 = vor.u32 %v591_v21, %v588_v20  ;;  %v602_v31 = vor.u32 %v601_v25, %v597_v22  ;;  %v4525_v39 = vld [vmem:[#allocation2 + $0x18] sm:$0xf]  ;;  %v4527_v47 = vld [vmem:[#allocation2 + $0x24] sm:$0xf0]  ;;  %v4194_v48 = vor.u32 %v5161_v35, %v4191_v38 }
  0x51   : > { %v607_v34 = vrot.slane %v605_v26, 5  ;;  %v1142_v36 = vsel %vm5676_vm5, %v1140_v28, %v1141_v30  ;;  %1270 = vst [vmem:[#allocation2 + $0x38] sm:$0xf] %v1139_v32  ;;  %v4526_v50 = vor.u32 %v5234_v40, %v4525_v39  ;;  %v4530_v51 = vor.u32 %v5233_v46, %v4527_v47  ;;  %v474_v52 = vld [vmem:[%s5519_s6 + $0x30] sm:$0xf]  ;;  %2836 = vmatpush.bf16.msra.mxu1 %v5303_v58 }
  0x52   : > { %v593_v33 = vrot.slane %v592_v29, 4  ;;  %v603_v37 = vrot.slane %v602_v31, 4  ;;  %1271 = vst [vmem:[#allocation2 + $0x44] sm:$0xf] %v1142_v36  ;;  %v475_v53 = vld [vmem:[%s5519_s6 + $0x34] sm:$0xf]  ;;  %3535 = vmatpush.bf16.msra.mxu2 %v5359_v59 }
  0x53   : > { %v610_v54 = vshrl.u32 %v474_v52, 16  ;;  %v613_v55 = vshll.u32 %v474_v52, 16  ;;  %v619_v56 = vshll.u32 %v475_v53, 16  ;;  %v623_v57 = vshrl.u32 %v475_v53, 16  ;;  %v5367_v63 = vld [vmem:[%s6271_s3 + $0x1f0] sm:$0xff]  ;;  %3713 = vmatpush.bf16.msra.mxu0 %v5375_v0 }
  0x54   : > { %v598_v41 = vsel %vm5665_vm3, %v593_v33, %v597_v22  ;;  %v608_v44 = vsel %vm5665_vm3, %v603_v37, %v607_v34  ;;  %v1032_v3 = vld [vmem:[%s5519_s6 + $0x24] sm:$0xe]  ;;  %3624 = vmatpush.bf16.msra.mxu3 %v5367_v63  ;;  %v1145_v8 = vrot.slane %v1033_v4, 5  ;;  %v5164_v17 = vld [vmem:[#allocation2 + $0x1c] sm:$0xf] }
  0x55   : > { %935 = vst [vmem:[#allocation2 + $0x4c] sm:$0xf] %v598_v41  ;;  %v612_v60 = vrot.slane %v610_v54, 4  ;;  %v615_v62 = vrot.slane %v613_v55, 5  ;;  %v621_v1 = vrot.slane %v619_v56, 5  ;;  %v625_v2 = vrot.slane %v623_v57, 4 }
  0x56   : > { %936 = vst [vmem:[#allocation2 + $0x58] sm:$0xf] %v608_v44  ;;  %v1147_v15 = vrot.slane %v1145_v8, 4  ;;  %v4203_v18 = vld [vmem:[#allocation2 + $0x24] sm:$0xf0] }
  0x57   : > { %v616_v5 = vor.u32 %v615_v62, %v612_v60  ;;  %v4209_v21 = vld [vmem:[#allocation2 + $0x20] sm:$0xf]  ;;  %v4537_v22 = vld [vmem:[#allocation2 + $0x30] sm:$0xf]  ;;  %v5166_v24 = vld [vmem:[#allocation2 + $0x28] sm:$0xf0]  ;;  %v4206_v29 = vor.u32 %v5164_v17, %v4203_v18 }
  0x58   : > { %v5237_v25 = vld [vmem:[#allocation2 + $0x38] sm:$0xf0]  ;;  %v5236_v27 = vld [vmem:[#allocation2 + $0x34] sm:$0xf]  ;;  %v4539_v28 = vld [vmem:[#allocation2 + $0x3c] sm:$0xf0]  ;;  %v4210_v30 = vor.u32 %v5166_v24, %v4209_v21 }
  0x59   : > { %v617_v12 = vrot.slane %v616_v5, 4  ;;  %v4538_v31 = vor.u32 %v5237_v25, %v4537_v22  ;;  %v4542_v32 = vor.u32 %v5236_v27, %v4539_v28  ;;  %v477_v33 = vld [vmem:[%s5519_s6 + $0x3c] sm:$0xf]  ;;  %v478_v34 = vld [vmem:[%s5519_s6 + $0x40] sm:$0xf] }
  0x5a   : > { %v634_v35 = vshrl.u32 %v477_v33, 16  ;;  %v637_v36 = vshll.u32 %v477_v33, 16  ;;  %v643_v37 = vshll.u32 %v478_v34, 16  ;;  %v647_v38 = vshrl.u32 %v478_v34, 16  ;;  %v1036_v39 = vld [vmem:[%s5519_s6 + $0x34] sm:$0xf] }
  0x5b   : > { %v622_v19 = vsel %vm5665_vm3, %v617_v12, %v621_v1  ;;  %v1152_v40 = vrot.slane %v1036_v39, 5  ;;  %v479_v41 = vld [vmem:[%s5519_s6 + $0x44] sm:$0x1]  ;;  %v1035_v44 = vld [vmem:[%s5519_s6 + $0x30] sm:$0xe]  ;;  %v5374_v34 = vld [vmem:[%s6271_s3 + $0x228] sm:$0xff] }
  0x5c   : > { %1887 = vmatmul.bf16.gmra.mxu1 %v4274_v6  ;;  %1907 = vmatmul.bf16.gmra.mxu2 %v4322_v7  ;;  %v1034_v6 = vld [vmem:[%s5519_s6 + $0x2c] sm:$0x1]  ;;  %v4172_v7 = vrot.slane %v1032_v3, 9  ;;  %937 = vst [vmem:[#allocation2 + $0x64] sm:$0xf] %v622_v19  ;;  %v636_v42 = vrot.slane %v634_v35, 4 }
  0x5d   : > { %v1148_v11 = vrot.slane %v1034_v6, 5  ;;  %v639_v43 = vrot.slane %v637_v36, 5  ;;  %v1037_v46 = vld [vmem:[%s5519_s6 + $0x38] sm:$0x1]  ;;  %v645_v47 = vrot.slane %v643_v37, 5  ;;  %v653_v54 = vshll.u32 %v479_v41, 16  ;;  %3714 = vmatpush.bf16.msra.mxu0 %v5374_v34 }
  0x5e   : > { %1927 = vmatmul.bf16.gmra.mxu3 %v4370_v9  ;;  %1867 = vmatmul.bf16.gmra.mxu0 %v4226_v10  ;;  %v476_v9 = vld [vmem:[%s5519_s6 + $0x38] sm:$0x1]  ;;  %v626_v10 = vor.u32 %v625_v2, %v621_v1  ;;  %v1146_v14 = vsel %vm5676_vm5, %v4172_v7, %v1145_v8  ;;  %v5167_v58 = vld [vmem:[#allocation2 + $0x34] sm:$0xf]  ;;  %v4215_v59 = vld [vmem:[#allocation2 + $0x3c] sm:$0xf0] }
  0x5f   : > { %v629_v13 = vshll.u32 %v476_v9, 16  ;;  %1272 = vst [vmem:[#allocation2 + $0x50] sm:$0xf] %v1146_v14  ;;  %v1149_v23 = vsel %vm5676_vm5, %v1147_v15, %v1148_v11  ;;  %v640_v52 = vor.u32 %v639_v43, %v636_v42  ;;  %v655_v62 = vrot.slane %v653_v54, 5  ;;  %v4221_v63 = vld [vmem:[#allocation2 + $0x38] sm:$0xf] }
  0x60   : > { %v627_v16 = vrot.slane %v626_v10, 4  ;;  %1273 = vst [vmem:[#allocation2 + $0x5c] sm:$0xf] %v1149_v23  ;;  %v4549_v0 = vld [vmem:[#allocation2 + $0x48] sm:$0xf]  ;;  %v4218_v7 = vor.u32 %v5167_v58, %v4215_v59 }
  0x61   : > { %v631_v20 = vrot.slane %v629_v13, 5  ;;  %v641_v57 = vrot.slane %v640_v52, 4  ;;  %v5169_v2 = vld [vmem:[#allocation2 + $0x40] sm:$0xf0]  ;;  %v5240_v3 = vld [vmem:[#allocation2 + $0x50] sm:$0xf0] }
  0x62   : > { %v5239_v5 = vld [vmem:[#allocation2 + $0x4c] sm:$0xf]  ;;  %v4551_v6 = vld [vmem:[#allocation2 + $0x54] sm:$0xf0]  ;;  %v4222_v8 = vor.u32 %v5169_v2, %v4221_v63  ;;  %v4550_v9 = vor.u32 %v5240_v3, %v4549_v0  ;;  %v480_v11 = vld [vmem:[%s5519_s6 + $0x48] sm:$0xf] }
  0x63   : > { %v632_v26 = vsel %vm5665_vm3, %v627_v16, %v631_v20  ;;  %v646_v1 = vsel %vm5665_vm3, %v641_v57, %v645_v47  ;;  %v4554_v10 = vor.u32 %v5239_v5, %v4551_v6  ;;  %v481_v12 = vld [vmem:[%s5519_s6 + $0x4c] sm:$0xf]  ;;  %v658_v13 = vshrl.u32 %v480_v11, 16  ;;  %v1039_v20 = vld [vmem:[%s5519_s6 + $0x40] sm:$0xf] }
  0x64   : > { %938 = vst [vmem:[#allocation2 + $0x70] sm:$0xf] %v632_v26  ;;  %v661_v14 = vshll.u32 %v480_v11, 16  ;;  %v5302_v15 = vld [vmem:[%s6271_s3 + $0x168] sm:$0xff]  ;;  %v667_v17 = vshll.u32 %v481_v12, 16  ;;  %v671_v18 = vshrl.u32 %v481_v12, 16 }
  0x65   : > { %939 = vst [vmem:[#allocation2 + $0x7c] sm:$0xf] %v646_v1  ;;  %v5358_v16 = vld [vmem:[%s6271_s3 + $0x1a8] sm:$0xff]  ;;  %v482_v21 = vld [vmem:[%s5519_s6 + $0x50] sm:$0x1]  ;;  %v660_v22 = vrot.slane %v658_v13, 4  ;;  %2837 = vmatpush.bf16.msra.mxu1 %v5302_v15 }
  0x66   : > { %v5366_v19 = vld [vmem:[%s6271_s3 + $0x1e8] sm:$0xff]  ;;  %3536 = vmatpush.bf16.msra.mxu2 %v5358_v16  ;;  %v1038_v23 = vld [vmem:[%s5519_s6 + $0x3c] sm:$0xe]  ;;  %v1040_v24 = vld [vmem:[%s5519_s6 + $0x44] sm:$0x1]  ;;  %v1159_v25 = vrot.slane %v1039_v20, 5 }
  0x67   : > { %v663_v26 = vrot.slane %v661_v14, 5  ;;  %3625 = vmatpush.bf16.msra.mxu3 %v5366_v19  ;;  %v4174_v27 = vrot.slane %v1038_v23, 9  ;;  %v1162_v28 = vrot.slane %v1040_v24, 5  ;;  %v677_v33 = vshll.u32 %v482_v21, 16  ;;  %v5170_v37 = vld [vmem:[#allocation2 + $0x4c] sm:$0xf] }
  0x68   : > { %v4233_v42 = vld [vmem:[#allocation2 + $0x50] sm:$0xf]  ;;  %v484_v57 = vld [vmem:[%s5519_s6 + $0x58] sm:$0xf]  ;;  %v1041_v3 = vld [vmem:[%s5519_s6 + $0x48] sm:$0xe] }
  0x69   : > { %v1160_v35 = vsel %vm5676_vm5, %v4174_v27, %v1159_v25  ;;  %v679_v41 = vrot.slane %v677_v33, 5  ;;  %v691_v2 = vshll.u32 %v484_v57, 16  ;;  %v695_v5 = vshrl.u32 %v484_v57, 16  ;;  %v5173_v16 = vld [vmem:[#allocation2 + $0x64] sm:$0xf] }
  0x6a   : > { %1276 = vst [vmem:[#allocation2 + $0x80] sm:$0xf] %v1160_v35  ;;  %v4573_v23 = vld [vmem:[#allocation2 + $0x78] sm:$0xf]  ;;  %v486_v34 = vld [vmem:[%s5519_s6 + $0x60] sm:$0xf] }
  0x6b   : > { %v693_v11 = vrot.slane %v691_v2, 5  ;;  %v697_v12 = vrot.slane %v695_v5, 4 }
  0x6c   : > { %1941 = vmatmul.bf16.vlgmr.msrb.gmra.mxu1 %v4194_v48  ;;  %2030 = vmatmul.bf16.vlgmr.msrb.gmra.mxu2 %v4198_v49  ;;  %v649_v48 = vrot.slane %v647_v38, 4  ;;  %v4173_v49 = vrot.slane %v1035_v44, 9  ;;  %v4227_v38 = vld [vmem:[#allocation2 + $0x54] sm:$0xf0]  ;;  %v5172_v44 = vld [vmem:[#allocation2 + $0x58] sm:$0xf0] }
  0x6d   : > { %v4230_v52 = vor.u32 %v5170_v37, %v4227_v38  ;;  %v706_v37 = vshrl.u32 %v486_v34, 16  ;;  %v709_v38 = vshll.u32 %v486_v34, 16  ;;  %v5176_v2 = vld [vmem:[#allocation2 + $0x7c] sm:$0xf]  ;;  %v491_v34 = vld [vmem:[%s5519_s6 + $0x74] sm:$0x1] }
  0x6e   : > { %2665 = vmatmul.bf16.vlgmr.msrb.gmra.mxu3 %v4526_v50  ;;  %2754 = vmatmul.bf16.vlgmr.msrb.gmra.mxu0 %v4530_v51  ;;  %v1154_v50 = vrot.slane %v1152_v40, 4  ;;  %v1155_v51 = vrot.slane %v1037_v46, 5  ;;  %v650_v53 = vor.u32 %v649_v48, %v645_v47  ;;  %v1153_v55 = vsel %vm5676_vm5, %v4173_v49, %v1152_v40  ;;  %v4561_v46 = vld [vmem:[#allocation2 + $0x60] sm:$0xf]  ;;  %v5243_v47 = vld [vmem:[#allocation2 + $0x68] sm:$0xf0] }
  0x6f   : > { %1274 = vst [vmem:[#allocation2 + $0x68] sm:$0xf] %v1153_v55  ;;  %v5242_v49 = vld [vmem:[#allocation2 + $0x64] sm:$0xf]  ;;  %v4562_v54 = vor.u32 %v5243_v47, %v4561_v46  ;;  %v488_v46 = vld [vmem:[%s5519_s6 + $0x68] sm:$0x1] }
  0x70   : > { %v1156_v56 = vsel %vm5676_vm5, %v1154_v50, %v1155_v51  ;;  %v651_v60 = vrot.slane %v650_v53, 4  ;;  %v4563_v50 = vld [vmem:[#allocation2 + $0x6c] sm:$0xf0]  ;;  %v4234_v53 = vor.u32 %v5172_v44, %v4233_v42  ;;  %v1045_v44 = vld [vmem:[%s5519_s6 + $0x58] sm:$0xf]  ;;  %v708_v47 = vrot.slane %v706_v37, 4 }
  0x71   : > { %1275 = vst [vmem:[#allocation2 + $0x74] sm:$0xf] %v1156_v56  ;;  %v4566_v55 = vor.u32 %v5242_v49, %v4563_v50  ;;  %v483_v56 = vld [vmem:[%s5519_s6 + $0x54] sm:$0xf] }
  0x72   : > { %v656_v4 = vsel %vm5665_vm3, %v651_v60, %v655_v62  ;;  %v682_v58 = vshrl.u32 %v483_v56, 16  ;;  %v685_v59 = vshll.u32 %v483_v56, 16  ;;  %v1042_v60 = vld [vmem:[%s5519_s6 + $0x4c] sm:$0xf]  ;;  %v485_v62 = vld [vmem:[%s5519_s6 + $0x5c] sm:$0x1] }
  0x73   : > { %940 = vst [vmem:[#allocation2 + $0x88] sm:$0xf] %v656_v4  ;;  %v1166_v63 = vrot.slane %v1042_v60, 5  ;;  %v1043_v4 = vld [vmem:[%s5519_s6 + $0x50] sm:$0x1]  ;;  %v701_v6 = vshll.u32 %v485_v62, 16 }
  0x74   : > { %v684_v0 = vrot.slane %v682_v58, 4  ;;  %v687_v1 = vrot.slane %v685_v59, 5  ;;  %v1044_v50 = vld [vmem:[%s5519_s6 + $0x54] sm:$0xe]  ;;  %v725_v60 = vshll.u32 %v488_v46, 16 }
  0x75   : > { %v703_v19 = vrot.slane %v701_v6, 5 }
  0x76   : > { %v4245_v20 = vld [vmem:[#allocation2 + $0x68] sm:$0xf]  ;;  %v727_v6 = vrot.slane %v725_v60, 5 }
  0x78   : > { %v5175_v21 = vld [vmem:[#allocation2 + $0x70] sm:$0xf0] }
  0x7a   : > { %v4575_v27 = vld [vmem:[#allocation2 + $0x84] sm:$0xf0] }
  0x7c   : > { %1946 = vmatmul.bf16.gmra.mxu1 %v4206_v29  ;;  %2035 = vmatmul.bf16.gmra.mxu2 %v4210_v30  ;;  %v669_v29 = vrot.slane %v667_v17, 5  ;;  %v673_v30 = vrot.slane %v671_v18, 4  ;;  %v4239_v17 = vld [vmem:[#allocation2 + $0x6c] sm:$0xf0]  ;;  %v698_v18 = vor.u32 %v697_v12, %v693_v11 }
  0x7e   : > { %2670 = vmatmul.bf16.gmra.mxu3 %v4538_v31  ;;  %2759 = vmatmul.bf16.gmra.mxu0 %v4542_v32  ;;  %v1161_v31 = vrot.slane %v1159_v25, 4  ;;  %v664_v32 = vor.u32 %v663_v26, %v660_v22  ;;  %v674_v36 = vor.u32 %v673_v30, %v669_v29  ;;  %v699_v24 = vrot.slane %v698_v18, 4  ;;  %v5246_v25 = vld [vmem:[#allocation2 + $0x80] sm:$0xf0]  ;;  %v5245_v26 = vld [vmem:[#allocation2 + $0x7c] sm:$0xf] }
  0x7f   : > { %v4246_v30 = vor.u32 %v5175_v21, %v4245_v20  ;;  %v4578_v33 = vor.u32 %v5245_v26, %v4575_v27 }
  0x80   : > { %v1163_v39 = vsel %vm5676_vm5, %v1161_v31, %v1162_v28  ;;  %v665_v40 = vrot.slane %v664_v32, 4  ;;  %v675_v43 = vrot.slane %v674_v36, 4  ;;  %v704_v28 = vsel %vm5665_vm3, %v699_v24, %v703_v19  ;;  %v487_v36 = vld [vmem:[%s5519_s6 + $0x64] sm:$0xf]  ;;  %v489_v24 = vld [vmem:[%s5519_s6 + $0x6c] sm:$0xf] }
  0x81   : > { %1277 = vst [vmem:[#allocation2 + $0x8c] sm:$0xf] %v1163_v39  ;;  %v4574_v32 = vor.u32 %v5246_v25, %v4573_v23  ;;  %v5301_v39 = vld [vmem:[%s6271_s3 + $0x160] sm:$0xff]  ;;  %v715_v42 = vshll.u32 %v487_v36, 16  ;;  %v490_v25 = vld [vmem:[%s5519_s6 + $0x70] sm:$0xf] }
  0x82   : > { %v670_v48 = vsel %vm5665_vm3, %v665_v40, %v669_v29  ;;  %v680_v51 = vsel %vm5665_vm3, %v675_v43, %v679_v41  ;;  %v4242_v29 = vor.u32 %v5173_v16, %v4239_v17  ;;  %944 = vst [vmem:[#allocation2 + $0xb8] sm:$0xf] %v704_v28  ;;  %v5357_v40 = vld [vmem:[%s6271_s3 + $0x1a0] sm:$0xff]  ;;  %v719_v43 = vshrl.u32 %v487_v36, 16  ;;  %2838 = vmatpush.bf16.msra.mxu1 %v5301_v39 }
  0x83   : > { %941 = vst [vmem:[#allocation2 + $0x94] sm:$0xf] %v670_v48  ;;  %v5365_v41 = vld [vmem:[%s6271_s3 + $0x1e0] sm:$0xff]  ;;  %v711_v48 = vrot.slane %v709_v38, 5  ;;  %3537 = vmatpush.bf16.msra.mxu2 %v5357_v40  ;;  %v717_v58 = vrot.slane %v715_v42, 5  ;;  %v730_v27 = vshrl.u32 %v489_v24, 16 }
  0x84   : > { %942 = vst [vmem:[#allocation2 + $0xa0] sm:$0xf] %v680_v51  ;;  %v1046_v51 = vld [vmem:[%s5519_s6 + $0x5c] sm:$0x1]  ;;  %3626 = vmatpush.bf16.msra.mxu3 %v5365_v41  ;;  %v721_v59 = vrot.slane %v719_v43, 4  ;;  %v733_v28 = vshll.u32 %v489_v24, 16 }
  0x85   : > { %v712_v57 = vor.u32 %v711_v48, %v708_v47  ;;  %v732_v36 = vrot.slane %v730_v27, 4  ;;  %v1047_v39 = vld [vmem:[%s5519_s6 + $0x60] sm:$0xe]  ;;  %v1049_v40 = vld [vmem:[%s5519_s6 + $0x68] sm:$0x1]  ;;  %v5356_v24 = vld [vmem:[%s6271_s3 + $0x198] sm:$0xff] }
  0x86   : > { %v722_v5 = vor.u32 %v721_v59, %v717_v58  ;;  %v735_v37 = vrot.slane %v733_v28, 5  ;;  %v4177_v43 = vrot.slane %v1047_v39, 9  ;;  %v1183_v46 = vrot.slane %v1049_v40, 5 }
  0x87   : > { %3538 = vmatpush.bf16.msra.mxu2 %v5356_v24 }
  0x88   : > { %v736_v48 = vor.u32 %v735_v37, %v732_v36  ;;  %v1052_v36 = vld [vmem:[%s5519_s6 + $0x74] sm:$0x1] }
  0x8a   : > { %v737_v59 = vrot.slane %v736_v48, 4 }
  0x8c   : > { %1951 = vmatmul.bf16.gmra.mxu1 %v4218_v7  ;;  %2040 = vmatmul.bf16.gmra.mxu2 %v4222_v8  ;;  %v4175_v7 = vrot.slane %v1041_v3, 9  ;;  %v1168_v8 = vrot.slane %v1166_v63, 4  ;;  %v4251_v3 = vld [vmem:[#allocation2 + $0x84] sm:$0xf0] }
  0x8d   : > { %v4254_v19 = vor.u32 %v5176_v2, %v4251_v3  ;;  %v4597_v2 = vld [vmem:[#allocation2 + $0xa8] sm:$0xf]  ;;  %v5252_v3 = vld [vmem:[#allocation2 + $0xb0] sm:$0xf0] }
  0x8e   : > { %2675 = vmatmul.bf16.gmra.mxu3 %v4550_v9  ;;  %2764 = vmatmul.bf16.gmra.mxu0 %v4554_v10  ;;  %v1169_v9 = vrot.slane %v1043_v4, 5  ;;  %v688_v10 = vor.u32 %v687_v1, %v684_v0  ;;  %v1167_v13 = vsel %vm5676_vm5, %v4175_v7, %v1166_v63  ;;  %v5373_v63 = vld [vmem:[%s6271_s3 + $0x220] sm:$0xff]  ;;  %v713_v4 = vrot.slane %v712_v57, 4  ;;  %v5179_v57 = vld [vmem:[#allocation2 + $0x94] sm:$0xf] }
  0x8f   : > { %1278 = vst [vmem:[#allocation2 + $0x98] sm:$0xf] %v1167_v13  ;;  %v4257_v7 = vld [vmem:[#allocation2 + $0x80] sm:$0xf]  ;;  %3715 = vmatpush.bf16.msra.mxu0 %v5373_v63  ;;  %v723_v13 = vrot.slane %v722_v5, 4 }
  0x90   : > { %v1170_v14 = vsel %vm5676_vm5, %v1168_v8, %v1169_v9  ;;  %v689_v15 = vrot.slane %v688_v10, 4  ;;  %v5178_v8 = vld [vmem:[#allocation2 + $0x88] sm:$0xf0]  ;;  %v4585_v9 = vld [vmem:[#allocation2 + $0x90] sm:$0xf]  ;;  %v718_v12 = vsel %vm5665_vm3, %v713_v4, %v717_v58 }
  0x91   : > { %1279 = vst [vmem:[#allocation2 + $0xa4] sm:$0xf] %v1170_v14  ;;  %v5248_v14 = vld [vmem:[#allocation2 + $0x94] sm:$0xf]  ;;  %v728_v17 = vsel %vm5665_vm3, %v723_v13, %v727_v6  ;;  %v4258_v20 = vor.u32 %v5178_v8, %v4257_v7  ;;  %v4263_v58 = vld [vmem:[#allocation2 + $0x9c] sm:$0xf0] }
  0x92   : > { %v694_v22 = vsel %vm5665_vm3, %v689_v15, %v693_v11  ;;  %v5249_v11 = vld [vmem:[#allocation2 + $0x98] sm:$0xf0]  ;;  %v4587_v15 = vld [vmem:[#allocation2 + $0x9c] sm:$0xf0]  ;;  %945 = vst [vmem:[#allocation2 + $0xc4] sm:$0xf] %v718_v12 }
  0x93   : > { %943 = vst [vmem:[#allocation2 + $0xac] sm:$0xf] %v694_v22  ;;  %v4586_v22 = vor.u32 %v5249_v11, %v4585_v9  ;;  %v4590_v23 = vor.u32 %v5248_v14, %v4587_v15  ;;  %v4599_v7 = vld [vmem:[#allocation2 + $0xb4] sm:$0xf0]  ;;  %v4266_v11 = vor.u32 %v5179_v57, %v4263_v58  ;;  %v4598_v14 = vor.u32 %v5252_v3, %v4597_v2  ;;  %v4609_v3 = vld [vmem:[#allocation2 + $0xc0] sm:$0xf] }
  0x94   : > { %946 = vst [vmem:[#allocation2 + $0xd0] sm:$0xf] %v728_v17  ;;  %v492_v17 = vld [vmem:[%s5519_s6 + $0x78] sm:$0xf] }
  0x9a   : > { %v5251_v6 = vld [vmem:[#allocation2 + $0xac] sm:$0xf] }
  0x9b   : > { %v4602_v15 = vor.u32 %v5251_v6, %v4599_v7 }
  0x9c   : > { %1956 = vmatmul.bf16.gmra.mxu1 %v4230_v52  ;;  %2045 = vmatmul.bf16.gmra.mxu2 %v4234_v53  ;;  %v4176_v53 = vrot.slane %v1044_v50, 9 }
  0x9e   : > { %2680 = vmatmul.bf16.gmra.mxu3 %v4562_v54  ;;  %2769 = vmatmul.bf16.gmra.mxu0 %v4566_v55  ;;  %v1173_v54 = vrot.slane %v1045_v44, 5  ;;  %v1176_v55 = vrot.slane %v1046_v51, 5  ;;  %v749_v51 = vshll.u32 %v491_v34, 16  ;;  %v1050_v34 = vld [vmem:[%s5519_s6 + $0x6c] sm:$0xe] }
  0x9f   : > { %v4178_v40 = vrot.slane %v1050_v34, 9 }
  0xa0   : > { %v1174_v0 = vsel %vm5676_vm5, %v4176_v53, %v1173_v54  ;;  %v1175_v1 = vrot.slane %v1173_v54, 4  ;;  %v751_v63 = vrot.slane %v749_v51, 5 }
  0xa1   : > { %1280 = vst [vmem:[#allocation2 + $0xb0] sm:$0xf] %v1174_v0  ;;  %v4269_v0 = vld [vmem:[#allocation2 + $0x98] sm:$0xf] }
  0xa2   : > { %v1177_v10 = vsel %vm5676_vm5, %v1175_v1, %v1176_v55  ;;  %v5181_v1 = vld [vmem:[#allocation2 + $0xa0] sm:$0xf0] }
  0xa3   : > { %1281 = vst [vmem:[#allocation2 + $0xbc] sm:$0xf] %v1177_v10  ;;  %v4270_v12 = vor.u32 %v5181_v1, %v4269_v0  ;;  %v4275_v1 = vld [vmem:[#allocation2 + $0xb4] sm:$0xf0] }
  0xa8   : > { %v4281_v2 = vld [vmem:[#allocation2 + $0xb0] sm:$0xf] }
  0xa9   : > { %v5817_v31 = vpop.f32.mrf.mxu1 }
  0xab   : > { %v5820_v35 = vpop.f32.mrf.mxu0 }
  0xac   : > { %1961 = vmatmul.bf16.gmra.mxu1 %v4242_v29  ;;  %2050 = vmatmul.bf16.gmra.mxu2 %v4246_v30  ;;  %v739_v29 = vshll.u32 %v490_v25, 16  ;;  %v1048_v30 = vld [vmem:[%s5519_s6 + $0x64] sm:$0xf] }
  0xae   : > { %2685 = vmatmul.bf16.gmra.mxu3 %v4574_v32  ;;  %2774 = vmatmul.bf16.gmra.mxu0 %v4578_v33  ;;  %v743_v32 = vshrl.u32 %v490_v25, 16  ;;  %v1180_v33 = vrot.slane %v1048_v30, 5  ;;  %v741_v41 = vrot.slane %v739_v29, 5  ;;  %v757_v25 = vshll.u32 %v492_v17, 16  ;;  %v5364_v29 = vld [vmem:[%s6271_s3 + $0x1d8] sm:$0xff] }
  0xaf   : > { %v5834_v49 = vpop.f32.mrf.mxu2  ;;  %v1051_v30 = vld [vmem:[%s5519_s6 + $0x70] sm:$0xf]  ;;  %3627 = vmatpush.bf16.msra.mxu3 %v5364_v29  ;;  %v496_v29 = vld [vmem:[%s5519_s6 + $0x88] sm:$0xf] }
  0xb0   : > { %v1182_v44 = vrot.slane %v1180_v33, 4  ;;  %v745_v50 = vrot.slane %v743_v32, 4  ;;  %v1181_v54 = vsel %vm5676_vm5, %v4177_v43, %v1180_v33  ;;  %v742_v4 = vsel %vm5665_vm3, %v737_v59, %v741_v41  ;;  %v494_v32 = vld [vmem:[%s5519_s6 + $0x80] sm:$0x1]  ;;  %v5182_v59 = vld [vmem:[#allocation2 + $0xac] sm:$0xf] }
  0xb1   : > { %v5838_v52 = vpop.f32.mrf.mxu3  ;;  %v5840_v56 = vpop.f32.mrf.mxu1  ;;  %1282 = vst [vmem:[#allocation2 + $0xc8] sm:$0xf] %v1181_v54  ;;  %v1190_v43 = vrot.slane %v1052_v36, 5  ;;  %v773_v51 = vshll.u32 %v494_v32, 16  ;;  %v787_v36 = vshll.u32 %v496_v29, 16 }
  0xb2   : > { %v1184_v55 = vsel %vm5676_vm5, %v1182_v44, %v1183_v46  ;;  %v746_v60 = vor.u32 %v745_v50, %v741_v41  ;;  %947 = vst [vmem:[#allocation2 + $0xdc] sm:$0xf] %v742_v4  ;;  %v1187_v41 = vrot.slane %v1051_v30, 5  ;;  %v759_v46 = vrot.slane %v757_v25, 5 }
  0xb3   : > { %v5842_v62 = vpop.f32.mrf.mxu0  ;;  %1283 = vst [vmem:[#allocation2 + $0xd4] sm:$0xf] %v1184_v55  ;;  %v5372_v55 = vld [vmem:[%s6271_s3 + $0x218] sm:$0xff]  ;;  %v775_v0 = vrot.slane %v773_v51, 5 }
  0xb4   : > { %v747_v5 = vrot.slane %v746_v60, 4  ;;  %v1188_v57 = vsel %vm5676_vm5, %v4178_v40, %v1187_v41  ;;  %v1189_v58 = vrot.slane %v1187_v41, 4  ;;  %3716 = vmatpush.bf16.msra.mxu0 %v5372_v55  ;;  %v1054_v40 = vld [vmem:[%s5519_s6 + $0x7c] sm:$0xf]  ;;  %v497_v41 = vld [vmem:[%s5519_s6 + $0x8c] sm:$0x1] }
  0xb5   : > { %1284 = vst [vmem:[#allocation2 + $0xe0] sm:$0xf] %v1188_v57  ;;  %v797_v55 = vshll.u32 %v497_v41, 16 }
  0xb6   : > { %v752_v9 = vsel %vm5665_vm3, %v747_v5, %v751_v63  ;;  %v1191_v4 = vsel %vm5676_vm5, %v1189_v58, %v1190_v43  ;;  %v5184_v5 = vld [vmem:[#allocation2 + $0xb8] sm:$0xf0]  ;;  %v1053_v58 = vld [vmem:[%s5519_s6 + $0x78] sm:$0xe] }
  0xb7   : > { %v5853_v16 = vpop.f32.mrf.mxu2  ;;  %948 = vst [vmem:[#allocation2 + $0xe8] sm:$0xf] %v752_v9  ;;  %v5255_v9 = vld [vmem:[#allocation2 + $0xc8] sm:$0xf0] }
  0xb8   : > { %1285 = vst [vmem:[#allocation2 + $0xec] sm:$0xf] %v1191_v4  ;;  %v4610_v25 = vor.u32 %v5255_v9, %v4609_v3 }
  0xb9   : > { %v5857_v18 = vpop.f32.mrf.mxu3  ;;  %v5859_v21 = vpop.f32.mrf.mxu1 }
  0xbb   : > { %v5863_v26 = vpop.f32.mrf.mxu0 }
  0xbc   : > { %1966 = vmatmul.bf16.gmra.mxu1 %v4254_v19  ;;  %2055 = vmatmul.bf16.gmra.mxu2 %v4258_v20  ;;  %v493_v20 = vld [vmem:[%s5519_s6 + $0x7c] sm:$0xf] }
  0xbd   : > { %v763_v27 = vshll.u32 %v493_v20, 16  ;;  %v767_v28 = vshrl.u32 %v493_v20, 16 }
  0xbe   : > { %2690 = vmatmul.bf16.gmra.mxu3 %v4586_v22  ;;  %2779 = vmatmul.bf16.gmra.mxu0 %v4590_v23  ;;  %v754_v22 = vshrl.u32 %v492_v17, 16  ;;  %v5300_v23 = vld [vmem:[%s6271_s3 + $0x158] sm:$0xff] }
  0xbf   : > { %v5867_v38 = vpop.f32.mrf.mxu2  ;;  %2839 = vmatpush.bf16.msra.mxu1 %v5300_v23  ;;  %v765_v48 = vrot.slane %v763_v27, 5  ;;  %v769_v50 = vrot.slane %v767_v28, 4  ;;  %v4282_v23 = vor.u32 %v5184_v5, %v4281_v2  ;;  %v495_v28 = vld [vmem:[%s5519_s6 + $0x84] sm:$0xf] }
  0xc0   : > { %v756_v37 = vrot.slane %v754_v22, 4  ;;  %v4278_v22 = vor.u32 %v5182_v59, %v4275_v1  ;;  %v778_v32 = vshrl.u32 %v495_v28, 16  ;;  %v781_v34 = vshll.u32 %v495_v28, 16  ;;  %v1055_v59 = vld [vmem:[%s5519_s6 + $0x80] sm:$0x1] }
  0xc1   : > { %v5871_v42 = vpop.f32.mrf.mxu3  ;;  %v5873_v47 = vpop.f32.mrf.mxu1  ;;  %v770_v63 = vor.u32 %v769_v50, %v765_v48  ;;  %v789_v50 = vrot.slane %v787_v36, 5  ;;  %v1197_v2 = vrot.slane %v1055_v59, 5  ;;  %v4621_v28 = vld [vmem:[#allocation2 + $0xd8] sm:$0xf] }
  0xc2   : > { %v760_v60 = vor.u32 %v759_v46, %v756_v37  ;;  %v791_v37 = vshrl.u32 %v496_v29, 16  ;;  %v780_v43 = vrot.slane %v778_v32, 4  ;;  %v783_v46 = vrot.slane %v781_v34, 5  ;;  %v5258_v29 = vld [vmem:[#allocation2 + $0xe0] sm:$0xf0] }
  0xc3   : > { %v5875_v53 = vpop.f32.mrf.mxu0  ;;  %v771_v7 = vrot.slane %v770_v63, 4  ;;  %v5257_v32 = vld [vmem:[#allocation2 + $0xdc] sm:$0xf]  ;;  %v4623_v34 = vld [vmem:[#allocation2 + $0xe4] sm:$0xf0] }
  0xc4   : > { %v761_v6 = vrot.slane %v760_v60, 4  ;;  %v793_v51 = vrot.slane %v791_v37, 4  ;;  %v784_v60 = vor.u32 %v783_v46, %v780_v43  ;;  %v4622_v46 = vor.u32 %v5258_v29, %v4621_v28 }
  0xc5   : > { %v776_v17 = vsel %vm5665_vm3, %v771_v7, %v775_v0  ;;  %v4179_v0 = vrot.slane %v1053_v58, 9 }
  0xc6   : > { %950 = vst [vmem:[#allocation2 + $0x100] sm:$0xf] %v776_v17  ;;  %v794_v3 = vor.u32 %v793_v51, %v789_v50  ;;  %v785_v5 = vrot.slane %v784_v60, 4  ;;  %v4287_v17 = vld [vmem:[#allocation2 + $0xcc] sm:$0xf0] }
  0xc7   : > { %v5883_v8 = vpop.f32.mrf.mxu2  ;;  %v5299_v60 = vld [vmem:[%s6271_s3 + $0x150] sm:$0xff] }
  0xc8   : > { %2840 = vmatpush.bf16.msra.mxu1 %v5299_v60  ;;  %v4305_v60 = vld [vmem:[#allocation2 + $0xe0] sm:$0xf] }
  0xc9   : > { %v5887_v10 = vpop.f32.mrf.mxu3  ;;  %v5889_v13 = vpop.f32.mrf.mxu1 }
  0xcb   : > { %v5892_v19 = vpop.f32.mrf.mxu0 }
  0xcc   : > { %1971 = vmatmul.bf16.gmra.mxu1 %v4266_v11  ;;  %2060 = vmatmul.bf16.gmra.mxu2 %v4270_v12  ;;  %v5254_v11 = vld [vmem:[#allocation2 + $0xc4] sm:$0xf]  ;;  %v4611_v12 = vld [vmem:[#allocation2 + $0xcc] sm:$0xf0] }
  0xcd   : > { %v4614_v27 = vor.u32 %v5254_v11, %v4611_v12  ;;  %v795_v12 = vrot.slane %v794_v3, 4 }
  0xce   : > { %2695 = vmatmul.bf16.gmra.mxu3 %v4598_v14  ;;  %2784 = vmatmul.bf16.gmra.mxu0 %v4602_v15  ;;  %v766_v15 = vsel %vm5665_vm3, %v761_v6, %v765_v48  ;;  %v1194_v48 = vrot.slane %v1054_v40, 5  ;;  %v799_v6 = vrot.slane %v797_v55, 5  ;;  %v499_v55 = vld [vmem:[%s5519_s6 + $0x94] sm:$0xf] }
  0xcf   : > { %v5906_v33 = vpop.f32.mrf.mxu2  ;;  %949 = vst [vmem:[#allocation2 + $0xf4] sm:$0xf] %v766_v15  ;;  %v5185_v15 = vld [vmem:[#allocation2 + $0xc4] sm:$0xf] }
  0xd0   : > { %v1196_v1 = vrot.slane %v1194_v48, 4  ;;  %v1195_v9 = vsel %vm5676_vm5, %v4179_v0, %v1194_v48  ;;  %v4290_v40 = vor.u32 %v5185_v15, %v4287_v17  ;;  %v4626_v48 = vor.u32 %v5257_v32, %v4623_v34  ;;  %v5355_v0 = vld [vmem:[%s6271_s3 + $0x190] sm:$0xff]  ;;  %v1056_v15 = vld [vmem:[%s5519_s6 + $0x84] sm:$0xe]  ;;  %v1058_v17 = vld [vmem:[%s5519_s6 + $0x8c] sm:$0x1] }
  0xd1   : > { %v5910_v39 = vpop.f32.mrf.mxu3  ;;  %v5912_v44 = vpop.f32.mrf.mxu1  ;;  %1286 = vst [vmem:[#allocation2 + $0xf8] sm:$0xf] %v1195_v9  ;;  %v500_v9 = vld [vmem:[%s5519_s6 + $0x98] sm:$0x1]  ;;  %3539 = vmatpush.bf16.msra.mxu2 %v5355_v0  ;;  %v4180_v28 = vrot.slane %v1056_v15, 9  ;;  %v1204_v29 = vrot.slane %v1058_v17, 5 }
  0xd2   : > { %v1198_v11 = vsel %vm5676_vm5, %v1196_v1, %v1197_v2  ;;  %v811_v1 = vshll.u32 %v499_v55, 16  ;;  %v815_v2 = vshrl.u32 %v499_v55, 16  ;;  %v821_v55 = vshll.u32 %v500_v9, 16  ;;  %v4635_v17 = vld [vmem:[#allocation2 + $0xfc] sm:$0xf0] }
  0xd3   : > { %v5914_v54 = vpop.f32.mrf.mxu0  ;;  %1287 = vst [vmem:[#allocation2 + $0x104] sm:$0xf] %v1198_v11 }
  0xd6   : > { %v5260_v15 = vld [vmem:[#allocation2 + $0xf4] sm:$0xf] }
  0xd7   : > { %v5923_v14 = vpop.f32.mrf.mxu2 }
  0xd9   : > { %v5929_v20 = vpop.f32.mrf.mxu3  ;;  %v5931_v24 = vpop.f32.mrf.mxu1 }
  0xdb   : > { %v5935_v30 = vpop.f32.mrf.mxu0 }
  0xdc   : > { %1976 = vmatmul.bf16.gmra.mxu1 %v4278_v22  ;;  %2065 = vmatmul.bf16.gmra.mxu2 %v4282_v23  ;;  %v790_v22 = vsel %vm5665_vm3, %v785_v5, %v789_v50  ;;  %v4293_v23 = vld [vmem:[#allocation2 + $0xc8] sm:$0xf]  ;;  %v498_v50 = vld [vmem:[%s5519_s6 + $0x90] sm:$0xf] }
  0xdd   : > { %951 = vst [vmem:[#allocation2 + $0x10c] sm:$0xf] %v790_v22  ;;  %v802_v58 = vshrl.u32 %v498_v50, 16  ;;  %v805_v59 = vshll.u32 %v498_v50, 16  ;;  %v5363_v5 = vld [vmem:[%s6271_s3 + $0x1d0] sm:$0xff] }
  0xde   : > { %2700 = vmatmul.bf16.gmra.mxu3 %v4610_v25  ;;  %2789 = vmatmul.bf16.gmra.mxu0 %v4614_v27  ;;  %v5187_v25 = vld [vmem:[#allocation2 + $0xd0] sm:$0xf0]  ;;  %v800_v27 = vsel %vm5665_vm3, %v795_v12, %v799_v6  ;;  %v1057_v6 = vld [vmem:[%s5519_s6 + $0x88] sm:$0xf] }
  0xdf   : > { %v5939_v57 = vpop.f32.mrf.mxu2  ;;  %952 = vst [vmem:[#allocation2 + $0x118] sm:$0xf] %v800_v27  ;;  %v4294_v41 = vor.u32 %v5187_v25, %v4293_v23  ;;  %v804_v11 = vrot.slane %v802_v58, 4  ;;  %v1201_v22 = vrot.slane %v1057_v6, 5  ;;  %v807_v23 = vrot.slane %v805_v59, 5  ;;  %3628 = vmatpush.bf16.msra.mxu3 %v5363_v5 }
  0xe0   : > { %v5188_v58 = vld [vmem:[#allocation2 + $0xdc] sm:$0xf]  ;;  %v4299_v59 = vld [vmem:[#allocation2 + $0xe4] sm:$0xf0]  ;;  %v5190_v5 = vld [vmem:[#allocation2 + $0xe8] sm:$0xf0] }
  0xe1   : > { %v5943_v63 = vpop.f32.mrf.mxu3  ;;  %v5945_v4 = vpop.f32.mrf.mxu1  ;;  %v1202_v50 = vsel %vm5676_vm5, %v4180_v28, %v1201_v22  ;;  %v5261_v6 = vld [vmem:[#allocation2 + $0xf8] sm:$0xf0]  ;;  %v4302_v28 = vor.u32 %v5188_v58, %v4299_v59  ;;  %v1060_v59 = vld [vmem:[%s5519_s6 + $0x94] sm:$0xf] }
  0xe2   : > { %1288 = vst [vmem:[#allocation2 + $0x110] sm:$0xf] %v1202_v50 }
  0xe3   : > { %v5947_v7 = vpop.f32.mrf.mxu0 }
  0xe7   : > { %v5957_v36 = vpop.f32.mrf.mxu2 }
  0xe9   : > { %v5959_v37 = vpop.f32.mrf.mxu3  ;;  %v1942_v43 = vpop.f32.mrf.mxu1 }
  0xea   : > { %v1943_v3 = vadd.f32 %v1942_v43, %v5820_v35  ;;  %v813_v35 = vrot.slane %v811_v1, 5  ;;  %v817_v43 = vrot.slane %v815_v2, 4  ;;  %v4633_v2 = vld [vmem:[#allocation2 + $0xf0] sm:$0xf] }
  0xeb   : > { %v2755_v51 = vpop.f32.mrf.mxu0 }
  0xec   : > { %1981 = vmatmul.bf16.gmra.mxu1 %v4290_v40  ;;  %2070 = vmatmul.bf16.gmra.mxu2 %v4294_v41  ;;  %v1203_v40 = vrot.slane %v1201_v22, 4  ;;  %v808_v41 = vor.u32 %v807_v23, %v804_v11  ;;  %v818_v1 = vor.u32 %v817_v43, %v813_v35  ;;  %v4638_v43 = vor.u32 %v5260_v15, %v4635_v17 }
  0xee   : > { %2705 = vmatmul.bf16.gmra.mxu3 %v4622_v46  ;;  %2794 = vmatmul.bf16.gmra.mxu0 %v4626_v48  ;;  %v5371_v48 = vld [vmem:[%s6271_s3 + $0x210] sm:$0xff]  ;;  %v809_v0 = vrot.slane %v808_v41, 4  ;;  %v4634_v41 = vor.u32 %v5261_v6, %v4633_v2  ;;  %v1061_v6 = vld [vmem:[%s5519_s6 + $0x98] sm:$0x1] }
  0xef   : > { %v2031_v12 = vpop.f32.mrf.mxu2  ;;  %3717 = vmatpush.bf16.msra.mxu0 %v5371_v48 }
  0xf0   : > { %v2032_v25 = vadd.f32 %v2031_v12, %v1943_v3  ;;  %v823_v3 = vrot.slane %v821_v55, 5  ;;  %v814_v11 = vsel %vm5665_vm3, %v809_v0, %v813_v35  ;;  %v819_v12 = vrot.slane %v818_v1, 4  ;;  %v503_v0 = vld [vmem:[%s5519_s6 + $0xa4] sm:$0x1] }
  0xf1   : > { %v2666_v27 = vpop.f32.mrf.mxu3  ;;  %v1944_v34 = vpop.f32.mrf.mxu1  ;;  %953 = vst [vmem:[#allocation2 + $0x124] sm:$0xf] %v814_v11 }
  0xf2   : > { %v5977_v32 = vadd.f32 %v2755_v51, %v2666_v27  ;;  %2111 = vst [vmem:[#allocation3] sm:$0xff] %v2032_v25  ;;  %v1205_v51 = vsel %vm5676_vm5, %v1203_v40, %v1204_v29  ;;  %v1945_v9 = vadd.f32 %v1944_v34, %v5842_v62  ;;  %v824_v23 = vsel %vm5665_vm3, %v819_v12, %v823_v3  ;;  %v501_v62 = vld [vmem:[%s5519_s6 + $0x9c] sm:$0xf]  ;;  %v502_v34 = vld [vmem:[%s5519_s6 + $0xa0] sm:$0xf] }
  0xf3   : > { %v2757_v46 = vpop.f32.mrf.mxu0  ;;  %1289 = vst [vmem:[#allocation2 + $0x11c] sm:$0xf] %v1205_v51  ;;  %v4306_v29 = vor.u32 %v5190_v5, %v4305_v60  ;;  %v826_v50 = vshrl.u32 %v501_v62, 16  ;;  %v829_v55 = vshll.u32 %v501_v62, 16  ;;  %v835_v58 = vshll.u32 %v502_v34, 16 }
  0xf4   : > { %954 = vst [vmem:[#allocation2 + $0x130] sm:$0xf] %v824_v23  ;;  %v1208_v51 = vrot.slane %v1060_v59, 5  ;;  %v839_v2 = vshrl.u32 %v502_v34, 16  ;;  %v1059_v5 = vld [vmem:[%s5519_s6 + $0x90] sm:$0xe] }
  0xf5   : > { %v831_v1 = vrot.slane %v829_v55, 5  ;;  %v837_v11 = vrot.slane %v835_v58, 5  ;;  %v4181_v15 = vrot.slane %v1059_v5, 9  ;;  %v4317_v62 = vld [vmem:[#allocation2 + $0xf8] sm:$0xf] }
  0xf6   : > { %v1210_v17 = vrot.slane %v1208_v51, 4  ;;  %v5193_v55 = vld [vmem:[#allocation2 + $0x100] sm:$0xf0]  ;;  %v4645_v59 = vld [vmem:[#allocation2 + $0x108] sm:$0xf] }
  0xf7   : > { %v2033_v22 = vpop.f32.mrf.mxu2 }
  0xf8   : > { %v2034_v25 = vadd.f32 %v2033_v22, %v1945_v9 }
  0xf9   : > { %v2668_v27 = vpop.f32.mrf.mxu3  ;;  %v1947_v35 = vpop.f32.mrf.mxu1 }
  0xfa   : > { %v5991_v40 = vadd.f32 %v2757_v46, %v2668_v27  ;;  %2112 = vst [vmem:[#allocation3 + $0x8] sm:$0xff] %v2034_v25  ;;  %v828_v46 = vrot.slane %v826_v50, 4  ;;  %v1948_v60 = vadd.f32 %v1947_v35, %v5863_v26  ;;  %v1211_v25 = vrot.slane %v1061_v6, 5 }
  0xfb   : > { %v2760_v48 = vpop.f32.mrf.mxu0  ;;  %v845_v35 = vshll.u32 %v503_v0, 16  ;;  %v5263_v0 = vld [vmem:[#allocation2 + $0x10c] sm:$0xf] }
  0xfc   : > { %1986 = vmatmul.bf16.gmra.mxu1 %v4302_v28  ;;  %2075 = vmatmul.bf16.gmra.mxu2 %v4306_v29  ;;  %v832_v27 = vor.u32 %v831_v1, %v828_v46  ;;  %v841_v28 = vrot.slane %v839_v2, 4  ;;  %v1209_v29 = vsel %vm5676_vm5, %v4181_v15, %v1208_v51  ;;  %v1212_v34 = vsel %vm5676_vm5, %v1210_v17, %v1211_v25  ;;  %v5264_v46 = vld [vmem:[#allocation2 + $0x110] sm:$0xf0]  ;;  %v4647_v2 = vld [vmem:[#allocation2 + $0x114] sm:$0xf0] }
  0xfd   : > { %1290 = vst [vmem:[#allocation2 + $0x128] sm:$0xf] %v1209_v29  ;;  %v847_v58 = vrot.slane %v845_v35, 5  ;;  %v4318_v15 = vor.u32 %v5193_v55, %v4317_v62  ;;  %v4646_v25 = vor.u32 %v5264_v46, %v4645_v59  ;;  %v1062_v46 = vld [vmem:[%s5519_s6 + $0x9c] sm:$0xe] }
  0xfe   : > { %2710 = vmatmul.bf16.gmra.mxu3 %v4634_v41  ;;  %2799 = vmatmul.bf16.gmra.mxu0 %v4638_v43  ;;  %v5191_v41 = vld [vmem:[#allocation2 + $0xf4] sm:$0xf]  ;;  %v4311_v43 = vld [vmem:[#allocation2 + $0xfc] sm:$0xf0]  ;;  %v833_v50 = vrot.slane %v832_v27, 4  ;;  %v4650_v27 = vor.u32 %v5263_v0, %v4647_v2  ;;  %v4182_v0 = vrot.slane %v1062_v46, 9 }
  0xff   : > { %v2036_v3 = vpop.f32.mrf.mxu2  ;;  %1291 = vst [vmem:[#allocation2 + $0x134] sm:$0xf] %v1212_v34  ;;  %v4659_v46 = vld [vmem:[#allocation2 + $0x12c] sm:$0xf0] }
 0x100   : > { %v2037_v12 = vadd.f32 %v2036_v3, %v1948_v60  ;;  %v838_v60 = vsel %vm5665_vm3, %v833_v50, %v837_v11  ;;  %v5362_v50 = vld [vmem:[%s6271_s3 + $0x1c8] sm:$0xff] }
 0x101   : > { %v2671_v9 = vpop.f32.mrf.mxu3  ;;  %v1949_v23 = vpop.f32.mrf.mxu1  ;;  %955 = vst [vmem:[#allocation2 + $0x13c] sm:$0xf] %v838_v60  ;;  %v1064_v60 = vld [vmem:[%s5519_s6 + $0xa4] sm:$0x1]  ;;  %3629 = vmatpush.bf16.msra.mxu3 %v5362_v50 }
 0x102   : > { %v6000_v22 = vadd.f32 %v2760_v48, %v2671_v9  ;;  %2113 = vst [vmem:[#allocation3 + $0x10] sm:$0xff] %v2037_v12  ;;  %v842_v48 = vor.u32 %v841_v28, %v837_v11  ;;  %v1950_v51 = vadd.f32 %v1949_v23, %v5875_v53  ;;  %v4314_v9 = vor.u32 %v5191_v41, %v4311_v43  ;;  %v504_v28 = vld [vmem:[%s5519_s6 + $0xa8] sm:$0xf]  ;;  %v505_v23 = vld [vmem:[%s5519_s6 + $0xac] sm:$0xf] }
 0x103   : > { %v2762_v26 = vpop.f32.mrf.mxu0  ;;  %v850_v29 = vshrl.u32 %v504_v28, 16  ;;  %v853_v35 = vshll.u32 %v504_v28, 16  ;;  %v5354_v41 = vld [vmem:[%s6271_s3 + $0x188] sm:$0xff]  ;;  %v859_v62 = vshll.u32 %v505_v23, 16 }
 0x104   : > { %v843_v1 = vrot.slane %v842_v48, 4  ;;  %v1063_v48 = vld [vmem:[%s5519_s6 + $0xa0] sm:$0xf]  ;;  %3540 = vmatpush.bf16.msra.mxu2 %v5354_v41  ;;  %v5196_v41 = vld [vmem:[#allocation2 + $0x118] sm:$0xf0] }
 0x105   : > { %v852_v43 = vrot.slane %v850_v29, 4  ;;  %v855_v55 = vrot.slane %v853_v35, 5  ;;  %v1215_v2 = vrot.slane %v1063_v48, 5  ;;  %v4323_v29 = vld [vmem:[#allocation2 + $0x114] sm:$0xf0] }
 0x106   : > { %v848_v5 = vsel %vm5665_vm3, %v843_v1, %v847_v58  ;;  %v863_v58 = vshrl.u32 %v505_v23, 16  ;;  %v5194_v23 = vld [vmem:[#allocation2 + $0x10c] sm:$0xf]  ;;  %v4329_v35 = vld [vmem:[#allocation2 + $0x110] sm:$0xf] }
 0x107   : > { %v2038_v3 = vpop.f32.mrf.mxu2  ;;  %956 = vst [vmem:[#allocation2 + $0x148] sm:$0xf] %v848_v5  ;;  %v5266_v48 = vld [vmem:[#allocation2 + $0x124] sm:$0xf] }
 0x108   : > { %v2039_v6 = vadd.f32 %v2038_v3, %v1950_v51  ;;  %v506_v3 = vld [vmem:[%s5519_s6 + $0xb0] sm:$0x1]  ;;  %v865_v28 = vrot.slane %v863_v58, 4 }
 0x109   : > { %v2673_v12 = vpop.f32.mrf.mxu3  ;;  %v1952_v11 = vpop.f32.mrf.mxu1 }
 0x10a   : > { %v6011_v17 = vadd.f32 %v2762_v26, %v2673_v12  ;;  %2114 = vst [vmem:[#allocation3 + $0x18] sm:$0xff] %v2039_v6  ;;  %v5298_v26 = vld [vmem:[%s6271_s3 + $0x148] sm:$0xff]  ;;  %v1953_v34 = vadd.f32 %v1952_v11, %v5892_v19  ;;  %v1218_v6 = vrot.slane %v1064_v60, 5  ;;  %v856_v12 = vor.u32 %v855_v55, %v852_v43  ;;  %v4657_v43 = vld [vmem:[#allocation2 + $0x120] sm:$0xf] }
 0x10b   : > { %v2765_v53 = vpop.f32.mrf.mxu0  ;;  %2841 = vmatpush.bf16.msra.mxu1 %v5298_v26  ;;  %v5370_v11 = vld [vmem:[%s6271_s3 + $0x208] sm:$0xff]  ;;  %v869_v26 = vshll.u32 %v506_v3, 16  ;;  %v4330_v3 = vor.u32 %v5196_v41, %v4329_v35  ;;  %v509_v35 = vld [vmem:[%s5519_s6 + $0xbc] sm:$0x1] }
 0x10c   : > { %1991 = vmatmul.bf16.gmra.mxu1 %v4314_v9  ;;  %2080 = vmatmul.bf16.gmra.mxu2 %v4318_v15  ;;  %v861_v9 = vrot.slane %v859_v62, 5  ;;  %v5267_v62 = vld [vmem:[#allocation2 + $0x128] sm:$0xf0] }
 0x10d   : > { %3718 = vmatpush.bf16.msra.mxu0 %v5370_v11  ;;  %v871_v58 = vrot.slane %v869_v26, 5  ;;  %v4658_v11 = vor.u32 %v5267_v62, %v4657_v43 }
 0x10e   : > { %2715 = vmatmul.bf16.gmra.mxu3 %v4646_v25  ;;  %2804 = vmatmul.bf16.gmra.mxu0 %v4650_v27  ;;  %v1216_v25 = vsel %vm5676_vm5, %v4182_v0, %v1215_v2  ;;  %v1217_v27 = vrot.slane %v1215_v2, 4  ;;  %v866_v50 = vor.u32 %v865_v28, %v861_v9  ;;  %v4326_v2 = vor.u32 %v5194_v23, %v4323_v29 }
 0x10f   : > { %v2041_v59 = vpop.f32.mrf.mxu2  ;;  %1292 = vst [vmem:[#allocation2 + $0x140] sm:$0xf] %v1216_v25  ;;  %v4662_v25 = vor.u32 %v5266_v48, %v4659_v46  ;;  %v1067_v48 = vld [vmem:[%s5519_s6 + $0xb0] sm:$0x1] }
 0x110   : > { %v2042_v1 = vadd.f32 %v2041_v59, %v1953_v34  ;;  %v1219_v34 = vsel %vm5676_vm5, %v1217_v27, %v1218_v6  ;;  %v867_v60 = vrot.slane %v866_v50, 4  ;;  %v1065_v50 = vld [vmem:[%s5519_s6 + $0xa8] sm:$0xe] }
 0x111   : > { %v2676_v51 = vpop.f32.mrf.mxu3  ;;  %v1954_v19 = vpop.f32.mrf.mxu1  ;;  %1293 = vst [vmem:[#allocation2 + $0x14c] sm:$0xf] %v1219_v34 }
 0x112   : > { %v6029_v5 = vadd.f32 %v2765_v53, %v2676_v51  ;;  %2115 = vst [vmem:[#allocation3 + $0x20] sm:$0xff] %v2042_v1  ;;  %v857_v53 = vrot.slane %v856_v12, 4  ;;  %v1955_v59 = vadd.f32 %v1954_v19, %v5914_v54  ;;  %v872_v6 = vsel %vm5665_vm3, %v867_v60, %v871_v58  ;;  %v507_v54 = vld [vmem:[%s5519_s6 + $0xb4] sm:$0xf]  ;;  %v508_v19 = vld [vmem:[%s5519_s6 + $0xb8] sm:$0xf] }
 0x113   : > { %v2767_v15 = vpop.f32.mrf.mxu0  ;;  %958 = vst [vmem:[#allocation2 + $0x160] sm:$0xf] %v872_v6  ;;  %v874_v28 = vshrl.u32 %v507_v54, 16  ;;  %v877_v23 = vshll.u32 %v507_v54, 16  ;;  %v883_v29 = vshll.u32 %v508_v19, 16  ;;  %v887_v62 = vshrl.u32 %v508_v19, 16 }
 0x114   : > { %v862_v55 = vsel %vm5665_vm3, %v857_v53, %v861_v9  ;;  %v893_v58 = vshll.u32 %v509_v35, 16  ;;  %v4183_v60 = vrot.slane %v1065_v50, 9  ;;  %v4335_v54 = vld [vmem:[#allocation2 + $0x12c] sm:$0xf0]  ;;  %v5270_v35 = vld [vmem:[#allocation2 + $0x140] sm:$0xf0] }
 0x115   : > { %957 = vst [vmem:[#allocation2 + $0x154] sm:$0xf] %v862_v55  ;;  %v876_v53 = vrot.slane %v874_v28, 4  ;;  %v879_v43 = vrot.slane %v877_v23, 5  ;;  %v885_v55 = vrot.slane %v883_v29, 5  ;;  %v889_v6 = vrot.slane %v887_v62, 4 }
 0x116   : > { %v895_v23 = vrot.slane %v893_v58, 5  ;;  %v5199_v29 = vld [vmem:[#allocation2 + $0x130] sm:$0xf0]  ;;  %v4671_v62 = vld [vmem:[#allocation2 + $0x144] sm:$0xf0] }
 0x117   : > { %v2043_v1 = vpop.f32.mrf.mxu2  ;;  %v890_v28 = vor.u32 %v889_v6, %v885_v55 }
 0x118   : > { %v2044_v51 = vadd.f32 %v2043_v1, %v1955_v59 }
 0x119   : > { %v2678_v0 = vpop.f32.mrf.mxu3  ;;  %v1957_v9 = vpop.f32.mrf.mxu1 }
 0x11a   : > { %v6043_v12 = vadd.f32 %v2767_v15, %v2678_v0  ;;  %2116 = vst [vmem:[#allocation3 + $0x28] sm:$0xff] %v2044_v51  ;;  %v1066_v15 = vld [vmem:[%s5519_s6 + $0xac] sm:$0xf]  ;;  %v1958_v26 = vadd.f32 %v1957_v9, %v5935_v30  ;;  %v1225_v51 = vrot.slane %v1067_v48, 5 }
 0x11b   : > { %v2770_v27 = vpop.f32.mrf.mxu0  ;;  %v1222_v41 = vrot.slane %v1066_v15, 5  ;;  %v4669_v15 = vld [vmem:[#allocation2 + $0x138] sm:$0xf] }
 0x11c   : > { %1996 = vmatmul.bf16.gmra.mxu1 %v4326_v2  ;;  %2085 = vmatmul.bf16.gmra.mxu2 %v4330_v3  ;;  %v880_v3 = vor.u32 %v879_v43, %v876_v53  ;;  %v5269_v43 = vld [vmem:[#allocation2 + $0x13c] sm:$0xf] }
 0x11d   : > { %v1224_v1 = vrot.slane %v1222_v41, 4  ;;  %v1223_v9 = vsel %vm5676_vm5, %v4183_v60, %v1222_v41  ;;  %v4670_v60 = vor.u32 %v5270_v35, %v4669_v15  ;;  %v1068_v35 = vld [vmem:[%s5519_s6 + $0xb4] sm:$0xe] }
 0x11e   : > { %2720 = vmatmul.bf16.gmra.mxu3 %v4658_v11  ;;  %2809 = vmatmul.bf16.gmra.mxu0 %v4662_v25  ;;  %v5197_v25 = vld [vmem:[#allocation2 + $0x124] sm:$0xf]  ;;  %1294 = vst [vmem:[#allocation2 + $0x158] sm:$0xf] %v1223_v9  ;;  %v881_v19 = vrot.slane %v880_v3, 4 }
 0x11f   : > { %v2046_v34 = vpop.f32.mrf.mxu2  ;;  %v1226_v11 = vsel %vm5676_vm5, %v1224_v1, %v1225_v51  ;;  %v4674_v1 = vor.u32 %v5269_v43, %v4671_v62  ;;  %v961_v51 = vld [vmem:[%s6065_s7] sm:$0xf]  ;;  %v962_v3 = vld [vmem:[%s6065_s7 + $0x4] sm:$0xf]  ;;  %v4184_v43 = vrot.slane %v1068_v35, 9 }
 0x120   : > { %v2047_v59 = vadd.f32 %v2046_v34, %v1958_v26  ;;  %1295 = vst [vmem:[#allocation2 + $0x164] sm:$0xf] %v1226_v11  ;;  %v886_v53 = vsel %vm5665_vm3, %v881_v19, %v885_v55  ;;  %v891_v26 = vrot.slane %v890_v28, 4  ;;  %v4338_v55 = vor.u32 %v5197_v25, %v4335_v54  ;;  %v5353_v11 = vld [vmem:[%s6271_s3 + $0x180] sm:$0xff] }
 0x121   : > { %v2681_v46 = vpop.f32.mrf.mxu3  ;;  %v1959_v2 = vpop.f32.mrf.mxu1  ;;  %959 = vst [vmem:[#allocation2 + $0x16c] sm:$0xf] %v886_v53  ;;  %v965_v6 = vshrl.u32 %v961_v51, 16  ;;  %v968_v9 = vshll.u32 %v961_v51, 16  ;;  %v974_v54 = vshll.u32 %v962_v3, 16  ;;  %v5361_v28 = vld [vmem:[%s6271_s3 + $0x1c0] sm:$0xff]  ;;  %3541 = vmatpush.bf16.msra.mxu2 %v5353_v11 }
 0x122   : > { %v6052_v0 = vadd.f32 %v2770_v27, %v2681_v46  ;;  %2117 = vst [vmem:[#allocation3 + $0x30] sm:$0xff] %v2047_v59  ;;  %v4341_v27 = vld [vmem:[#allocation2 + $0x128] sm:$0xf]  ;;  %v1960_v41 = vadd.f32 %v1959_v2, %v5947_v7  ;;  %v896_v50 = vsel %vm5665_vm3, %v891_v26, %v895_v23  ;;  %v1069_v23 = vld [vmem:[%s5519_s6 + $0xb8] sm:$0xf]  ;;  %3630 = vmatpush.bf16.msra.mxu3 %v5361_v28 }
 0x123   : > { %v2772_v30 = vpop.f32.mrf.mxu0  ;;  %v4342_v59 = vor.u32 %v5199_v29, %v4341_v27  ;;  %960 = vst [vmem:[#allocation2 + $0x178] sm:$0xf] %v896_v50  ;;  %v967_v25 = vrot.slane %v965_v6, 4  ;;  %v970_v27 = vrot.slane %v968_v9, 5  ;;  %v978_v29 = vshrl.u32 %v962_v3, 16 }
 0x124   : > { %v1070_v53 = vld [vmem:[%s5519_s6 + $0xbc] sm:$0x1]  ;;  %v1229_v62 = vrot.slane %v1069_v23, 5  ;;  %v452_v51 = vld [vmem:[%s6065_s7] sm:$0xf] }
 0x125   : > { %v980_v3 = vrot.slane %v978_v29, 4  ;;  %v5200_v6 = vld [vmem:[#allocation2 + $0x13c] sm:$0xf]  ;;  %v4353_v9 = vld [vmem:[#allocation2 + $0x140] sm:$0xf] }
 0x126   : > { %v5273_v28 = vld [vmem:[#allocation2 + $0x158] sm:$0xf0]  ;;  %455 = vst [vmem:[#allocation2 + $0x180] sm:$0xf] %v452_v51 }
 0x127   : > { %v2048_v34 = vpop.f32.mrf.mxu2 }
 0x128   : > { %v2049_v48 = vadd.f32 %v2048_v34, %v1960_v41  ;;  %v963_v34 = vld [vmem:[%s6065_s7 + $0x8] sm:$0x1] }
 0x129   : > { %v2683_v58 = vpop.f32.mrf.mxu3  ;;  %v1962_v46 = vpop.f32.mrf.mxu1 }
 0x12a   : > { %v6069_v7 = vadd.f32 %v2772_v30, %v2683_v58  ;;  %2118 = vst [vmem:[#allocation3 + $0x38] sm:$0xff] %v2049_v48  ;;  %v5297_v30 = vld [vmem:[%s6271_s3 + $0x140] sm:$0xff]  ;;  %v1963_v19 = vadd.f32 %v1962_v46, %v5817_v31  ;;  %v1232_v48 = vrot.slane %v1070_v53, 5  ;;  %v971_v58 = vor.u32 %v970_v27, %v967_v25 }
 0x12b   : > { %v2775_v2 = vpop.f32.mrf.mxu0  ;;  %2842 = vmatpush.bf16.msra.mxu1 %v5297_v30  ;;  %v5369_v46 = vld [vmem:[%s6271_s3 + $0x200] sm:$0xff]  ;;  %v984_v25 = vshll.u32 %v963_v34, 16 }
 0x12c   : > { %2001 = vmatmul.bf16.gmra.mxu1 %v4338_v55  ;;  %2090 = vmatmul.bf16.gmra.mxu2 %v4342_v59  ;;  %v976_v55 = vrot.slane %v974_v54, 5  ;;  %v453_v30 = vld [vmem:[%s6065_s7 + $0x4] sm:$0xf]  ;;  %v972_v11 = vrot.slane %v971_v58, 4  ;;  %v5202_v54 = vld [vmem:[#allocation2 + $0x148] sm:$0xf0] }
 0x12d   : > { %3719 = vmatpush.bf16.msra.mxu0 %v5369_v46  ;;  %v986_v35 = vrot.slane %v984_v25, 5  ;;  %456 = vst [vmem:[#allocation2 + $0x18c] sm:$0xf] %v453_v30  ;;  %v4354_v46 = vor.u32 %v5202_v54, %v4353_v9  ;;  %v4359_v25 = vld [vmem:[#allocation2 + $0x15c] sm:$0xf0] }
 0x12e   : > { %2725 = vmatmul.bf16.gmra.mxu3 %v4670_v60  ;;  %2814 = vmatmul.bf16.gmra.mxu0 %v4674_v1  ;;  %v1230_v60 = vsel %vm5676_vm5, %v4184_v43, %v1229_v62  ;;  %v1231_v1 = vrot.slane %v1229_v62, 4  ;;  %v981_v27 = vor.u32 %v980_v3, %v976_v55  ;;  %v977_v29 = vsel %vm5665_vm3, %v972_v11, %v976_v55  ;;  %v5203_v11 = vld [vmem:[#allocation2 + $0x154] sm:$0xf]  ;;  %v4365_v54 = vld [vmem:[#allocation2 + $0x158] sm:$0xf] }
 0x12f   : > { %v2051_v15 = vpop.f32.mrf.mxu2  ;;  %1296 = vst [vmem:[#allocation2 + $0x170] sm:$0xf] %v1230_v60 }
 0x130   : > { %v2052_v26 = vadd.f32 %v2051_v15, %v1963_v19  ;;  %v4681_v19 = vld [vmem:[#allocation2 + $0x150] sm:$0xf]  ;;  %v1233_v23 = vsel %vm5676_vm5, %v1231_v1, %v1232_v48  ;;  %v5272_v15 = vld [vmem:[#allocation2 + $0x154] sm:$0xf]  ;;  %990 = vst [vmem:[#allocation2 + $0x184] sm:$0xf] %v977_v29 }
 0x131   : > { %v2686_v41 = vpop.f32.mrf.mxu3  ;;  %v1964_v50 = vpop.f32.mrf.mxu1  ;;  %1297 = vst [vmem:[#allocation2 + $0x17c] sm:$0xf] %v1233_v23  ;;  %v4682_v51 = vor.u32 %v5273_v28, %v4681_v19  ;;  %v5205_v19 = vld [vmem:[#allocation2 + $0x160] sm:$0xf0]  ;;  %v4693_v28 = vld [vmem:[#allocation2 + $0x168] sm:$0xf] }
 0x132   : > { %v6087_v31 = vadd.f32 %v2775_v2, %v2686_v41  ;;  %2119 = vst [vmem:[#allocation3 + $0x40] sm:$0xff] %v2052_v26  ;;  %v4347_v2 = vld [vmem:[#allocation2 + $0x144] sm:$0xf0]  ;;  %v1965_v53 = vadd.f32 %v1964_v50, %v5840_v56  ;;  %v4683_v26 = vld [vmem:[#allocation2 + $0x15c] sm:$0xf0]  ;;  %v982_v41 = vrot.slane %v981_v27, 4 }
 0x133   : > { %v2777_v59 = vpop.f32.mrf.mxu0  ;;  %v4350_v58 = vor.u32 %v5200_v6, %v4347_v2  ;;  %v4686_v55 = vor.u32 %v5272_v15, %v4683_v26  ;;  %v5276_v27 = vld [vmem:[#allocation2 + $0x170] sm:$0xf0]  ;;  %v5275_v15 = vld [vmem:[#allocation2 + $0x16c] sm:$0xf]  ;;  %v4695_v29 = vld [vmem:[#allocation2 + $0x174] sm:$0xf0]  ;;  %v4362_v26 = vor.u32 %v5203_v11, %v4359_v25 }
 0x134   : > { %v987_v48 = vsel %vm5665_vm3, %v982_v41, %v986_v35  ;;  %v4366_v41 = vor.u32 %v5205_v19, %v4365_v54  ;;  %v5279_v25 = vld [vmem:[#allocation2 + $0x188] sm:$0xf0] }
 0x135   : > { %991 = vst [vmem:[#allocation2 + $0x190] sm:$0xf] %v987_v48 }
 0x137   : > { %v2053_v43 = vpop.f32.mrf.mxu2  ;;  %v5278_v54 = vld [vmem:[#allocation2 + $0x184] sm:$0xf] }
 0x138   : > { %v2054_v62 = vadd.f32 %v2053_v43, %v1965_v53 }
 0x139   : > { %v2688_v34 = vpop.f32.mrf.mxu3  ;;  %v1967_v1 = vpop.f32.mrf.mxu1 }
 0x13a   : > { %v6103_v60 = vadd.f32 %v2777_v59, %v2688_v34  ;;  %2120 = vst [vmem:[#allocation3 + $0x48] sm:$0xff] %v2054_v62  ;;  %v1968_v50 = vadd.f32 %v1967_v1, %v5859_v21  ;;  %v4694_v34 = vor.u32 %v5276_v27, %v4693_v28 }
 0x13b   : > { %v2780_v56 = vpop.f32.mrf.mxu0 }
 0x13c   : > { %2006 = vmatmul.bf16.gmra.mxu1 %v4350_v58  ;;  %2095 = vmatmul.bf16.gmra.mxu2 %v4354_v46  ;;  %v4698_v58 = vor.u32 %v5275_v15, %v4695_v29  ;;  %v4707_v19 = vld [vmem:[#allocation2 + $0x18c] sm:$0xf0] }
 0x13e   : > { %2730 = vmatmul.bf16.gmra.mxu3 %v4682_v51  ;;  %2819 = vmatmul.bf16.gmra.mxu0 %v4686_v55 }
 0x13f   : > { %v2056_v3 = vpop.f32.mrf.mxu2 }
 0x140   : > { %v2057_v6 = vadd.f32 %v2056_v3, %v1968_v50  ;;  %v5206_v3 = vld [vmem:[#allocation2 + $0x16c] sm:$0xf] }
 0x141   : > { %v2691_v2 = vpop.f32.mrf.mxu3  ;;  %v1969_v30 = vpop.f32.mrf.mxu1 }
 0x142   : > { %v6106_v9 = vadd.f32 %v2780_v56, %v2691_v2  ;;  %2121 = vst [vmem:[#allocation3 + $0x50] sm:$0xff] %v2057_v6  ;;  %v1970_v23 = vadd.f32 %v1969_v30, %v5873_v47  ;;  %v4371_v6 = vld [vmem:[#allocation2 + $0x174] sm:$0xf0]  ;;  %v4377_v2 = vld [vmem:[#allocation2 + $0x170] sm:$0xf] }
 0x143   : > { %v2782_v59 = vpop.f32.mrf.mxu0  ;;  %v5208_v30 = vld [vmem:[#allocation2 + $0x178] sm:$0xf0]  ;;  %v4374_v27 = vor.u32 %v5206_v3, %v4371_v6  ;;  %v4863_v6 = vld [vmem:[#allocation2 + $0x3c] sm:$0xf0] }
 0x144   : > { %v4378_v15 = vor.u32 %v5208_v30, %v4377_v2  ;;  %v4869_v2 = vld [vmem:[#allocation2 + $0x38] sm:$0xf]  ;;  %v5307_v30 = vld [vmem:[#allocation2 + $0x40] sm:$0xf0] }
 0x147   : > { %v2058_v35 = vpop.f32.mrf.mxu2 }
 0x148   : > { %v2059_v21 = vadd.f32 %v2058_v35, %v1970_v23 }
 0x149   : > { %v2693_v53 = vpop.f32.mrf.mxu3  ;;  %v1972_v62 = vpop.f32.mrf.mxu1 }
 0x14a   : > { %v6109_v43 = vadd.f32 %v2782_v59, %v2693_v53  ;;  %2122 = vst [vmem:[#allocation3 + $0x58] sm:$0xff] %v2059_v21  ;;  %v1973_v47 = vadd.f32 %v1972_v62, %v5889_v13  ;;  %v4705_v59 = vld [vmem:[#allocation2 + $0x180] sm:$0xf]  ;;  %v4710_v53 = vor.u32 %v5278_v54, %v4707_v19 }
 0x14b   : > { %v2785_v46 = vpop.f32.mrf.mxu0  ;;  %v4706_v21 = vor.u32 %v5279_v25, %v4705_v59 }
 0x14c   : > { %2011 = vmatmul.bf16.gmra.mxu1 %v4362_v26  ;;  %2100 = vmatmul.bf16.gmra.mxu2 %v4366_v41 }
 0x14e   : > { %2735 = vmatmul.bf16.gmra.mxu3 %v4694_v34  ;;  %2824 = vmatmul.bf16.gmra.mxu0 %v4698_v58 }
 0x14f   : > { %v2061_v48 = vpop.f32.mrf.mxu2 }
 0x150   : > { %v2062_v1 = vadd.f32 %v2061_v48, %v1973_v47  ;;  %v4533_v48 = vld [vmem:[#allocation2 + $0x20] sm:$0xf] }
 0x151   : > { %v2696_v51 = vpop.f32.mrf.mxu3  ;;  %v1974_v56 = vpop.f32.mrf.mxu1 }
 0x152   : > { %v6112_v55 = vadd.f32 %v2785_v46, %v2696_v51  ;;  %2123 = vst [vmem:[#allocation3 + $0x60] sm:$0xff] %v2062_v1  ;;  %v1975_v11 = vadd.f32 %v1974_v56, %v5912_v44  ;;  %v5235_v1 = vld [vmem:[#allocation2 + $0x28] sm:$0xf0]  ;;  %v4861_v51 = vld [vmem:[#allocation2 + $0x30] sm:$0xf] }
 0x153   : > { %v2787_v50 = vpop.f32.mrf.mxu0  ;;  %v5306_v56 = vld [vmem:[#allocation2 + $0x38] sm:$0xf0]  ;;  %v4534_v25 = vor.u32 %v5235_v1, %v4533_v48  ;;  %v4875_v1 = vld [vmem:[#allocation2 + $0x54] sm:$0xf0] }
 0x154   : > { %v4862_v54 = vor.u32 %v5306_v56, %v4861_v51  ;;  %v4881_v51 = vld [vmem:[#allocation2 + $0x50] sm:$0xf]  ;;  %v5310_v56 = vld [vmem:[#allocation2 + $0x58] sm:$0xf0] }
 0x157   : > { %v2063_v28 = vpop.f32.mrf.mxu2 }
 0x158   : > { %v2064_v13 = vadd.f32 %v2063_v28, %v1975_v11 }
 0x159   : > { %v2698_v23 = vpop.f32.mrf.mxu3  ;;  %v1977_v35 = vpop.f32.mrf.mxu1 }
 0x15a   : > { %v6115_v29 = vadd.f32 %v2787_v50, %v2698_v23  ;;  %2124 = vst [vmem:[#allocation3 + $0x68] sm:$0xff] %v2064_v13  ;;  %v1978_v44 = vadd.f32 %v1977_v35, %v5931_v24  ;;  %v5305_v50 = vld [vmem:[#allocation2 + $0x34] sm:$0xf]  ;;  %v4870_v23 = vor.u32 %v5307_v30, %v4869_v2 }
 0x15b   : > { %v2790_v26 = vpop.f32.mrf.mxu0  ;;  %v4866_v13 = vor.u32 %v5305_v50, %v4863_v6 }
 0x15c   : > { %2016 = vmatmul.bf16.gmra.mxu1 %v4374_v27  ;;  %2105 = vmatmul.bf16.gmra.mxu2 %v4378_v15 }
 0x15e   : > { %2740 = vmatmul.bf16.gmra.mxu3 %v4706_v21  ;;  %2829 = vmatmul.bf16.gmra.mxu0 %v4710_v53 }
 0x15f   : > { %v2066_v41 = vpop.f32.mrf.mxu2 }
 0x160   : > { %v2067_v62 = vadd.f32 %v2066_v41, %v1978_v44  ;;  %v4545_v41 = vld [vmem:[#allocation2 + $0x38] sm:$0xf] }
 0x161   : > { %v2701_v34 = vpop.f32.mrf.mxu3  ;;  %v1979_v46 = vpop.f32.mrf.mxu1 }
 0x162   : > { %v6118_v58 = vadd.f32 %v2790_v26, %v2701_v34  ;;  %2125 = vst [vmem:[#allocation3 + $0x70] sm:$0xff] %v2067_v62  ;;  %v1980_v3 = vadd.f32 %v1979_v46, %v5945_v4  ;;  %v5238_v62 = vld [vmem:[#allocation2 + $0x40] sm:$0xf0]  ;;  %v4873_v34 = vld [vmem:[#allocation2 + $0x48] sm:$0xf] }
 0x163   : > { %v2792_v47 = vpop.f32.mrf.mxu0  ;;  %v5309_v46 = vld [vmem:[#allocation2 + $0x50] sm:$0xf0]  ;;  %v4546_v6 = vor.u32 %v5238_v62, %v4545_v41  ;;  %v4887_v62 = vld [vmem:[#allocation2 + $0x6c] sm:$0xf0] }
 0x164   : > { %v4874_v2 = vor.u32 %v5309_v46, %v4873_v34  ;;  %v4893_v34 = vld [vmem:[#allocation2 + $0x68] sm:$0xf]  ;;  %v5313_v46 = vld [vmem:[#allocation2 + $0x70] sm:$0xf0] }
 0x167   : > { %v2068_v59 = vpop.f32.mrf.mxu2 }
 0x168   : > { %v2069_v24 = vadd.f32 %v2068_v59, %v1980_v3 }
 0x169   : > { %v2703_v11 = vpop.f32.mrf.mxu3  ;;  %v1982_v28 = vpop.f32.mrf.mxu1 }
 0x16a   : > { %v6121_v19 = vadd.f32 %v2792_v47, %v2703_v11  ;;  %2126 = vst [vmem:[#allocation3 + $0x78] sm:$0xff] %v2069_v24  ;;  %v1983_v4 = vadd.f32 %v1982_v28, %v5834_v49  ;;  %v5308_v47 = vld [vmem:[#allocation2 + $0x4c] sm:$0xf]  ;;  %v4882_v11 = vor.u32 %v5310_v56, %v4881_v51 }
 0x16b   : > { %v2795_v27 = vpop.f32.mrf.mxu0  ;;  %v4878_v24 = vor.u32 %v5308_v47, %v4875_v1 }
 0x16c   : > { %2843 = vmatmul.bf16.vlgmr.msra.gmra.mxu1 %v4534_v25  ;;  %3542 = vmatmul.bf16.vlgmr.msra.gmra.mxu2 %v4862_v54 }
 0x16e   : > { %3631 = vmatmul.bf16.vlgmr.msra.gmra.mxu3 %v4866_v13  ;;  %3720 = vmatmul.bf16.vlgmr.msra.gmra.mxu0 %v4870_v23 }
 0x16f   : > { %v2071_v15 = vpop.f32.mrf.mxu2 }
 0x170   : > { %v2072_v35 = vadd.f32 %v2071_v15, %v1983_v4  ;;  %v4557_v15 = vld [vmem:[#allocation2 + $0x50] sm:$0xf] }
 0x171   : > { %v2706_v21 = vpop.f32.mrf.mxu3  ;;  %v1984_v26 = vpop.f32.mrf.mxu1 }
 0x172   : > { %v6124_v53 = vadd.f32 %v2795_v27, %v2706_v21  ;;  %2127 = vst [vmem:[#allocation3 + $0x80] sm:$0xff] %v2072_v35  ;;  %v1985_v48 = vadd.f32 %v1984_v26, %v5853_v16  ;;  %v5241_v35 = vld [vmem:[#allocation2 + $0x58] sm:$0xf0]  ;;  %v4885_v21 = vld [vmem:[#allocation2 + $0x60] sm:$0xf] }
 0x173   : > { %v2797_v44 = vpop.f32.mrf.mxu0  ;;  %v5312_v26 = vld [vmem:[#allocation2 + $0x68] sm:$0xf0]  ;;  %v4558_v1 = vor.u32 %v5241_v35, %v4557_v15  ;;  %v4899_v35 = vld [vmem:[#allocation2 + $0x84] sm:$0xf0] }
 0x174   : > { %v4886_v51 = vor.u32 %v5312_v26, %v4885_v21  ;;  %v4905_v21 = vld [vmem:[#allocation2 + $0x80] sm:$0xf]  ;;  %v5316_v26 = vld [vmem:[#allocation2 + $0x88] sm:$0xf0] }
 0x177   : > { %v2073_v50 = vpop.f32.mrf.mxu2 }
 0x178   : > { %v2074_v49 = vadd.f32 %v2073_v50, %v1985_v48 }
 0x179   : > { %v2708_v3 = vpop.f32.mrf.mxu3  ;;  %v1987_v59 = vpop.f32.mrf.mxu1 }
 0x17a   : > { %v6127_v30 = vadd.f32 %v2797_v44, %v2708_v3  ;;  %2128 = vst [vmem:[#allocation3 + $0x88] sm:$0xff] %v2074_v49  ;;  %v1988_v16 = vadd.f32 %v1987_v59, %v5867_v38  ;;  %v5311_v44 = vld [vmem:[#allocation2 + $0x64] sm:$0xf]  ;;  %v4894_v3 = vor.u32 %v5313_v46, %v4893_v34 }
 0x17b   : > { %v2800_v25 = vpop.f32.mrf.mxu0  ;;  %v4890_v49 = vor.u32 %v5311_v44, %v4887_v62 }
 0x17c   : > { %2848 = vmatmul.bf16.gmra.mxu1 %v4546_v6  ;;  %3547 = vmatmul.bf16.gmra.mxu2 %v4874_v2 }
 0x17e   : > { %3636 = vmatmul.bf16.gmra.mxu3 %v4878_v24  ;;  %3725 = vmatmul.bf16.gmra.mxu0 %v4882_v11 }
 0x17f   : > { %v2076_v54 = vpop.f32.mrf.mxu2 }
 0x180   : > { %v2077_v28 = vadd.f32 %v2076_v54, %v1988_v16  ;;  %v4569_v54 = vld [vmem:[#allocation2 + $0x68] sm:$0xf] }
 0x181   : > { %v2711_v13 = vpop.f32.mrf.mxu3  ;;  %v1989_v27 = vpop.f32.mrf.mxu1 }
 0x182   : > { %v6130_v23 = vadd.f32 %v2800_v25, %v2711_v13  ;;  %2129 = vst [vmem:[#allocation3 + $0x90] sm:$0xff] %v2077_v28  ;;  %v1990_v41 = vadd.f32 %v1989_v27, %v5883_v8  ;;  %v5244_v28 = vld [vmem:[#allocation2 + $0x70] sm:$0xf0]  ;;  %v4897_v13 = vld [vmem:[#allocation2 + $0x78] sm:$0xf] }
 0x183   : > { %v2802_v4 = vpop.f32.mrf.mxu0  ;;  %v5315_v27 = vld [vmem:[#allocation2 + $0x80] sm:$0xf0]  ;;  %v4570_v62 = vor.u32 %v5244_v28, %v4569_v54  ;;  %v4911_v28 = vld [vmem:[#allocation2 + $0x9c] sm:$0xf0] }
 0x184   : > { %v4898_v34 = vor.u32 %v5315_v27, %v4897_v13  ;;  %v4917_v13 = vld [vmem:[#allocation2 + $0x98] sm:$0xf]  ;;  %v5319_v27 = vld [vmem:[#allocation2 + $0xa0] sm:$0xf0] }
 0x187   : > { %v2078_v47 = vpop.f32.mrf.mxu2 }
 0x188   : > { %v2079_v38 = vadd.f32 %v2078_v47, %v1990_v41 }
 0x189   : > { %v2713_v48 = vpop.f32.mrf.mxu3  ;;  %v1992_v50 = vpop.f32.mrf.mxu1 }
 0x18a   : > { %v6133_v56 = vadd.f32 %v2802_v4, %v2713_v48  ;;  %2130 = vst [vmem:[#allocation3 + $0x98] sm:$0xff] %v2079_v38  ;;  %v1993_v8 = vadd.f32 %v1992_v50, %v5906_v33  ;;  %v5314_v4 = vld [vmem:[#allocation2 + $0x7c] sm:$0xf]  ;;  %v4906_v48 = vor.u32 %v5316_v26, %v4905_v21 }
 0x18b   : > { %v2805_v6 = vpop.f32.mrf.mxu0  ;;  %v4902_v38 = vor.u32 %v5314_v4, %v4899_v35 }
 0x18c   : > { %2853 = vmatmul.bf16.gmra.mxu1 %v4558_v1  ;;  %3552 = vmatmul.bf16.gmra.mxu2 %v4886_v51 }
 0x18e   : > { %3641 = vmatmul.bf16.gmra.mxu3 %v4890_v49  ;;  %3730 = vmatmul.bf16.gmra.mxu0 %v4894_v3 }
 0x18f   : > { %v2081_v2 = vpop.f32.mrf.mxu2 }
 0x190   : > { %v2082_v59 = vadd.f32 %v2081_v2, %v1993_v8  ;;  %v4581_v2 = vld [vmem:[#allocation2 + $0x80] sm:$0xf] }
 0x191   : > { %v2716_v24 = vpop.f32.mrf.mxu3  ;;  %v1994_v25 = vpop.f32.mrf.mxu1 }
 0x192   : > { %v6136_v11 = vadd.f32 %v2805_v6, %v2716_v24  ;;  %2131 = vst [vmem:[#allocation3 + $0xa0] sm:$0xff] %v2082_v59  ;;  %v1995_v15 = vadd.f32 %v1994_v25, %v5923_v14  ;;  %v5247_v59 = vld [vmem:[#allocation2 + $0x88] sm:$0xf0]  ;;  %v4909_v24 = vld [vmem:[#allocation2 + $0x90] sm:$0xf] }
 0x193   : > { %v2807_v16 = vpop.f32.mrf.mxu0  ;;  %v5318_v25 = vld [vmem:[#allocation2 + $0x98] sm:$0xf0]  ;;  %v4582_v35 = vor.u32 %v5247_v59, %v4581_v2  ;;  %v4923_v59 = vld [vmem:[#allocation2 + $0xb4] sm:$0xf0] }
 0x194   : > { %v4910_v21 = vor.u32 %v5318_v25, %v4909_v24  ;;  %v4929_v24 = vld [vmem:[#allocation2 + $0xb0] sm:$0xf]  ;;  %v5322_v25 = vld [vmem:[#allocation2 + $0xb8] sm:$0xf0] }
 0x197   : > { %v2083_v44 = vpop.f32.mrf.mxu2 }
 0x198   : > { %v2084_v33 = vadd.f32 %v2083_v44, %v1995_v15 }
 0x199   : > { %v2718_v41 = vpop.f32.mrf.mxu3  ;;  %v1997_v47 = vpop.f32.mrf.mxu1 }
 0x19a   : > { %v6139_v46 = vadd.f32 %v2807_v16, %v2718_v41  ;;  %2132 = vst [vmem:[#allocation3 + $0xa8] sm:$0xff] %v2084_v33  ;;  %v1998_v14 = vadd.f32 %v1997_v47, %v5939_v57  ;;  %v5317_v16 = vld [vmem:[#allocation2 + $0x94] sm:$0xf]  ;;  %v4918_v41 = vor.u32 %v5319_v27, %v4917_v13 }
 0x19b   : > { %v2810_v1 = vpop.f32.mrf.mxu0  ;;  %v4914_v33 = vor.u32 %v5317_v16, %v4911_v28 }
 0x19c   : > { %2858 = vmatmul.bf16.gmra.mxu1 %v4570_v62  ;;  %3557 = vmatmul.bf16.gmra.mxu2 %v4898_v34 }
 0x19e   : > { %3646 = vmatmul.bf16.gmra.mxu3 %v4902_v38  ;;  %3735 = vmatmul.bf16.gmra.mxu0 %v4906_v48 }
 0x19f   : > { %v2086_v51 = vpop.f32.mrf.mxu2 }
 0x1a0   : > { %v2087_v50 = vadd.f32 %v2086_v51, %v1998_v14  ;;  %v4593_v51 = vld [vmem:[#allocation2 + $0x98] sm:$0xf] }
 0x1a1   : > { %v2721_v49 = vpop.f32.mrf.mxu3  ;;  %v1999_v6 = vpop.f32.mrf.mxu1 }
 0x1a2   : > { %v6142_v3 = vadd.f32 %v2810_v1, %v2721_v49  ;;  %2133 = vst [vmem:[#allocation3 + $0xb0] sm:$0xff] %v2087_v50  ;;  %v2000_v54 = vadd.f32 %v1999_v6, %v5957_v36  ;;  %v5250_v50 = vld [vmem:[#allocation2 + $0xa0] sm:$0xf0]  ;;  %v4921_v49 = vld [vmem:[#allocation2 + $0xa8] sm:$0xf] }
 0x1a3   : > { %v2812_v8 = vpop.f32.mrf.mxu0  ;;  %v5321_v6 = vld [vmem:[#allocation2 + $0xb0] sm:$0xf0]  ;;  %v4594_v28 = vor.u32 %v5250_v50, %v4593_v51  ;;  %v4935_v50 = vld [vmem:[#allocation2 + $0xcc] sm:$0xf0] }
 0x1a4   : > { %v4922_v13 = vor.u32 %v5321_v6, %v4921_v49  ;;  %v4941_v49 = vld [vmem:[#allocation2 + $0xc8] sm:$0xf]  ;;  %v5325_v6 = vld [vmem:[#allocation2 + $0xd0] sm:$0xf0] }
 0x1a7   : > { %v2088_v4 = vpop.f32.mrf.mxu2 }
 0x1a8   : > { %v2089_v57 = vadd.f32 %v2088_v4, %v2000_v54 }
 0x1a9   : > { %v2723_v15 = vpop.f32.mrf.mxu3  ;;  %v2002_v44 = vpop.f32.mrf.mxu1 }
 0x1aa   : > { %v6145_v26 = vadd.f32 %v2812_v8, %v2723_v15  ;;  %2134 = vst [vmem:[#allocation3 + $0xb8] sm:$0xff] %v2089_v57  ;;  %v2003_v36 = vadd.f32 %v2002_v44, %v5838_v52  ;;  %v5320_v8 = vld [vmem:[#allocation2 + $0xac] sm:$0xf]  ;;  %v4930_v15 = vor.u32 %v5322_v25, %v4929_v24 }
 0x1ab   : > { %v2815_v62 = vpop.f32.mrf.mxu0  ;;  %v4926_v57 = vor.u32 %v5320_v8, %v4923_v59 }
 0x1ac   : > { %2863 = vmatmul.bf16.gmra.mxu1 %v4582_v35  ;;  %3562 = vmatmul.bf16.gmra.mxu2 %v4910_v21 }
 0x1ae   : > { %3651 = vmatmul.bf16.gmra.mxu3 %v4914_v33  ;;  %3740 = vmatmul.bf16.gmra.mxu0 %v4918_v41 }
 0x1af   : > { %v2091_v34 = vpop.f32.mrf.mxu2 }
 0x1b0   : > { %v2092_v47 = vadd.f32 %v2091_v34, %v2003_v36  ;;  %v4605_v34 = vld [vmem:[#allocation2 + $0xb0] sm:$0xf] }
 0x1b1   : > { %v2726_v38 = vpop.f32.mrf.mxu3  ;;  %v2004_v1 = vpop.f32.mrf.mxu1 }
 0x1b2   : > { %v6148_v48 = vadd.f32 %v2815_v62, %v2726_v38  ;;  %2135 = vst [vmem:[#allocation3 + $0xc0] sm:$0xff] %v2092_v47  ;;  %v2005_v2 = vadd.f32 %v2004_v1, %v5857_v18  ;;  %v5253_v47 = vld [vmem:[#allocation2 + $0xb8] sm:$0xf0]  ;;  %v4933_v38 = vld [vmem:[#allocation2 + $0xc0] sm:$0xf] }
 0x1b3   : > { %v2817_v14 = vpop.f32.mrf.mxu0  ;;  %v5324_v1 = vld [vmem:[#allocation2 + $0xc8] sm:$0xf0]  ;;  %v4606_v59 = vor.u32 %v5253_v47, %v4605_v34  ;;  %v4947_v47 = vld [vmem:[#allocation2 + $0xe4] sm:$0xf0] }
 0x1b4   : > { %v4934_v24 = vor.u32 %v5324_v1, %v4933_v38  ;;  %v4953_v38 = vld [vmem:[#allocation2 + $0xe0] sm:$0xf]  ;;  %v5328_v1 = vld [vmem:[#allocation2 + $0xe8] sm:$0xf0] }
 0x1b7   : > { %v2093_v16 = vpop.f32.mrf.mxu2 }
 0x1b8   : > { %v2094_v52 = vadd.f32 %v2093_v16, %v2005_v2 }
 0x1b9   : > { %v2728_v54 = vpop.f32.mrf.mxu3  ;;  %v2007_v4 = vpop.f32.mrf.mxu1 }
 0x1ba   : > { %v6151_v27 = vadd.f32 %v2817_v14, %v2728_v54  ;;  %2136 = vst [vmem:[#allocation3 + $0xc8] sm:$0xff] %v2094_v52  ;;  %v2008_v18 = vadd.f32 %v2007_v4, %v5871_v42  ;;  %v5323_v14 = vld [vmem:[#allocation2 + $0xc4] sm:$0xf]  ;;  %v4942_v54 = vor.u32 %v5325_v6, %v4941_v49 }
 0x1bb   : > { %v2820_v35 = vpop.f32.mrf.mxu0  ;;  %v4938_v52 = vor.u32 %v5323_v14, %v4935_v50 }
 0x1bc   : > { %2868 = vmatmul.bf16.gmra.mxu1 %v4594_v28  ;;  %3567 = vmatmul.bf16.gmra.mxu2 %v4922_v13 }
 0x1be   : > { %3656 = vmatmul.bf16.gmra.mxu3 %v4926_v57  ;;  %3745 = vmatmul.bf16.gmra.mxu0 %v4930_v15 }
 0x1bf   : > { %v2096_v21 = vpop.f32.mrf.mxu2 }
 0x1c0   : > { %v2097_v44 = vadd.f32 %v2096_v21, %v2008_v18  ;;  %v4617_v21 = vld [vmem:[#allocation2 + $0xc8] sm:$0xf] }
 0x1c1   : > { %v2731_v33 = vpop.f32.mrf.mxu3  ;;  %v2009_v62 = vpop.f32.mrf.mxu1 }
 0x1c2   : > { %v6154_v41 = vadd.f32 %v2820_v35, %v2731_v33  ;;  %2137 = vst [vmem:[#allocation3 + $0xd0] sm:$0xff] %v2097_v44  ;;  %v2010_v51 = vadd.f32 %v2009_v62, %v5887_v10  ;;  %v5256_v44 = vld [vmem:[#allocation2 + $0xd0] sm:$0xf0]  ;;  %v4945_v33 = vld [vmem:[#allocation2 + $0xd8] sm:$0xf] }
 0x1c3   : > { %v2822_v36 = vpop.f32.mrf.mxu0  ;;  %v5327_v62 = vld [vmem:[#allocation2 + $0xe0] sm:$0xf0]  ;;  %v4618_v50 = vor.u32 %v5256_v44, %v4617_v21  ;;  %v4959_v44 = vld [vmem:[#allocation2 + $0xfc] sm:$0xf0] }
 0x1c4   : > { %v4946_v49 = vor.u32 %v5327_v62, %v4945_v33  ;;  %v4965_v33 = vld [vmem:[#allocation2 + $0xf8] sm:$0xf]  ;;  %v5331_v62 = vld [vmem:[#allocation2 + $0x100] sm:$0xf0] }
 0x1c7   : > { %v2098_v8 = vpop.f32.mrf.mxu2 }
 0x1c8   : > { %v2099_v42 = vadd.f32 %v2098_v8, %v2010_v51 }
 0x1c9   : > { %v2733_v2 = vpop.f32.mrf.mxu3  ;;  %v2012_v16 = vpop.f32.mrf.mxu1 }
 0x1ca   : > { %v6157_v25 = vadd.f32 %v2822_v36, %v2733_v2  ;;  %2138 = vst [vmem:[#allocation3 + $0xd8] sm:$0xff] %v2099_v42  ;;  %v2013_v10 = vadd.f32 %v2012_v16, %v5910_v39  ;;  %v5326_v36 = vld [vmem:[#allocation2 + $0xdc] sm:$0xf]  ;;  %v4954_v2 = vor.u32 %v5328_v1, %v4953_v38 }
 0x1cb   : > { %v2825_v28 = vpop.f32.mrf.mxu0  ;;  %v4950_v42 = vor.u32 %v5326_v36, %v4947_v47 }
 0x1cc   : > { %2873 = vmatmul.bf16.gmra.mxu1 %v4606_v59  ;;  %3572 = vmatmul.bf16.gmra.mxu2 %v4934_v24 }
 0x1ce   : > { %3661 = vmatmul.bf16.gmra.mxu3 %v4938_v52  ;;  %3750 = vmatmul.bf16.gmra.mxu0 %v4942_v54 }
 0x1cf   : > { %v2101_v13 = vpop.f32.mrf.mxu2 }
 0x1d0   : > { %v2102_v4 = vadd.f32 %v2101_v13, %v2013_v10  ;;  %v4629_v13 = vld [vmem:[#allocation2 + $0xe0] sm:$0xf] }
 0x1d1   : > { %v2736_v57 = vpop.f32.mrf.mxu3  ;;  %v2014_v35 = vpop.f32.mrf.mxu1 }
 0x1d2   : > { %v6160_v15 = vadd.f32 %v2825_v28, %v2736_v57  ;;  %2139 = vst [vmem:[#allocation3 + $0xe0] sm:$0xff] %v2102_v4  ;;  %v2015_v34 = vadd.f32 %v2014_v35, %v5929_v20  ;;  %v5259_v4 = vld [vmem:[#allocation2 + $0xe8] sm:$0xf0]  ;;  %v4957_v57 = vld [vmem:[#allocation2 + $0xf0] sm:$0xf] }
 0x1d3   : > { %v2827_v18 = vpop.f32.mrf.mxu0  ;;  %v5330_v35 = vld [vmem:[#allocation2 + $0xf8] sm:$0xf0]  ;;  %v4630_v47 = vor.u32 %v5259_v4, %v4629_v13  ;;  %v4969_v13 = vld [vmem:[#allocation2 + $0x108] sm:$0xf]  ;;  %v5333_v4 = vld [vmem:[#allocation2 + $0x110] sm:$0xf0] }
 0x1d4   : > { %v4958_v38 = vor.u32 %v5330_v35, %v4957_v57  ;;  %v5332_v57 = vld [vmem:[#allocation2 + $0x10c] sm:$0xf]  ;;  %v4971_v35 = vld [vmem:[#allocation2 + $0x114] sm:$0xf0] }
 0x1d7   : > { %v2103_v14 = vpop.f32.mrf.mxu2 }
 0x1d8   : > { %v2104_v39 = vadd.f32 %v2103_v14, %v2015_v34 }
 0x1d9   : > { %v2738_v51 = vpop.f32.mrf.mxu3  ;;  %v2017_v8 = vpop.f32.mrf.mxu1 }
 0x1da   : > { %v6163_v6 = vadd.f32 %v2827_v18, %v2738_v51  ;;  %2140 = vst [vmem:[#allocation3 + $0xe8] sm:$0xff] %v2104_v39  ;;  %v2018_v20 = vadd.f32 %v2017_v8, %v5943_v63  ;;  %v5329_v18 = vld [vmem:[#allocation2 + $0xf4] sm:$0xf]  ;;  %v4966_v51 = vor.u32 %v5331_v62, %v4965_v33 }
 0x1db   : > { %v2830_v59 = vpop.f32.mrf.mxu0  ;;  %v4962_v39 = vor.u32 %v5329_v18, %v4959_v44  ;;  %v4977_v18 = vld [vmem:[#allocation2 + $0x110] sm:$0xf] }
 0x1dc   : > { %2878 = vmatmul.bf16.gmra.mxu1 %v4618_v50  ;;  %3577 = vmatmul.bf16.gmra.mxu2 %v4946_v49 }
 0x1de   : > { %3666 = vmatmul.bf16.gmra.mxu3 %v4950_v42  ;;  %3755 = vmatmul.bf16.gmra.mxu0 %v4954_v2 }
 0x1df   : > { %v2106_v24 = vpop.f32.mrf.mxu2 }
 0x1e0   : > { %v2107_v16 = vadd.f32 %v2106_v24, %v2018_v20 }
 0x1e1   : > { %v2741_v52 = vpop.f32.mrf.mxu3  ;;  %v2019_v28 = vpop.f32.mrf.mxu1 }
 0x1e2   : > { %v6166_v54 = vadd.f32 %v2830_v59, %v2741_v52  ;;  %2141 = vst [vmem:[#allocation3 + $0xf0] sm:$0xff] %v2107_v16  ;;  %v2020_v21 = vadd.f32 %v2019_v28, %v5959_v37  ;;  %v2924_v59 = vld [vmem:[#allocation3] sm:$0xff]  ;;  %v4641_v52 = vld [vmem:[#allocation2 + $0xf8] sm:$0xf]  ;;  %v5262_v28 = vld [vmem:[#allocation2 + $0x100] sm:$0xf0] }
 0x1e3   : > { %v2832_v10 = vpop.f32.mrf.mxu0  ;;  %v4642_v62 = vor.u32 %v5262_v28, %v4641_v52  ;;  %v4653_v28 = vld [vmem:[#allocation2 + $0x110] sm:$0xf] }
 0x1e7   : > { %v2108_v36 = vpop.f32.mrf.mxu2 }
 0x1e8   : > { %v2109_v63 = vadd.f32 %v2108_v36, %v2020_v21  ;;  %v5334_v21 = vld [vmem:[#allocation2 + $0x118] sm:$0xf0]  ;;  %v4970_v36 = vor.u32 %v5333_v4, %v4969_v13  ;;  %v5336_v4 = vld [vmem:[#allocation2 + $0x128] sm:$0xf0] }
 0x1e9   : > { %v2743_v34 = vpop.f32.mrf.mxu3  ;;  %v2844_v14 = vpop.f32.mrf.mxu1 }
 0x1ea   : > { %v6169_v1 = vadd.f32 %v2832_v10, %v2743_v34  ;;  %2142 = vst [vmem:[#allocation3 + $0xf8] sm:$0xff] %v2109_v63  ;;  %v2845_v37 = vadd.f32 %v2844_v14, %v5977_v32  ;;  %v2925_v14 = vld [vmem:[#allocation3 + $0x8] sm:$0xff] }
 0x1eb   : > { %v3721_v50 = vpop.f32.mrf.mxu0 }
 0x1ec   : > { %2883 = vmatmul.bf16.gmra.mxu1 %v4630_v47  ;;  %3582 = vmatmul.bf16.gmra.mxu2 %v4958_v38  ;;  %v2956_v24 = vadd.f32 %v2924_v59, %v2845_v37  ;;  %v4974_v47 = vor.u32 %v5332_v57, %v4971_v35  ;;  %v4978_v38 = vor.u32 %v5334_v21, %v4977_v18  ;;  %v2926_v59 = vld [vmem:[#allocation3 + $0x10] sm:$0xff]  ;;  %v4983_v35 = vld [vmem:[#allocation2 + $0x12c] sm:$0xf0]  ;;  %v4989_v18 = vld [vmem:[#allocation2 + $0x128] sm:$0xf] }
 0x1ed   : > { %v5335_v57 = vld [vmem:[#allocation2 + $0x124] sm:$0xf]  ;;  %v5337_v21 = vld [vmem:[#allocation2 + $0x130] sm:$0xf0] }
 0x1ee   : > { %3671 = vmatmul.bf16.gmra.mxu3 %v4962_v39  ;;  %3760 = vmatmul.bf16.gmra.mxu0 %v4966_v51 }
 0x1ef   : > { %v3543_v49 = vpop.f32.mrf.mxu2 }
 0x1f1   : > { %v3632_v8 = vpop.f32.mrf.mxu3  ;;  %v2846_v2 = vpop.f32.mrf.mxu1 }
 0x1f2   : > { %v3633_v42 = vadd.f32 %v3632_v8, %v3543_v49  ;;  %v2847_v32 = vadd.f32 %v2846_v2, %v5991_v40 }
 0x1f3   : > { %v3723_v20 = vpop.f32.mrf.mxu0 }
 0x1f4   : > { %v3722_v16 = vadd.f32 %v3721_v50, %v3633_v42  ;;  %v2957_v51 = vadd.f32 %v2925_v14, %v2847_v32 }
 0x1f6   : > { %v3833_v10 = vadd.f32 %v3722_v16, %v2956_v24 }
 0x1f7   : > { %v3545_v44 = vpop.f32.mrf.mxu2 }
 0x1f8   : > { %3865 = vst [vmem:[#allocation3] sm:$0xff] %v3833_v10  ;;  %v5265_v10 = vld [vmem:[#allocation2 + $0x118] sm:$0xf0] }
 0x1f9   : > { %v3634_v33 = vpop.f32.mrf.mxu3  ;;  %v2849_v34 = vpop.f32.mrf.mxu1 }
 0x1fa   : > { %v3635_v63 = vadd.f32 %v3634_v33, %v3545_v44  ;;  %v2850_v40 = vadd.f32 %v2849_v34, %v6000_v22  ;;  %v4654_v33 = vor.u32 %v5265_v10, %v4653_v28  ;;  %v4986_v34 = vor.u32 %v5335_v57, %v4983_v35  ;;  %v5268_v28 = vld [vmem:[#allocation2 + $0x130] sm:$0xf0]  ;;  %v4993_v10 = vld [vmem:[#allocation2 + $0x138] sm:$0xf]  ;;  %v5338_v57 = vld [vmem:[#allocation2 + $0x13c] sm:$0xf] }
 0x1fb   : > { %v3726_v39 = vpop.f32.mrf.mxu0  ;;  %v4995_v35 = vld [vmem:[#allocation2 + $0x144] sm:$0xf0] }
 0x1fc   : > { %v3724_v50 = vadd.f32 %v3723_v20, %v3635_v63  ;;  %2888 = vmatmul.bf16.gmra.mxu1 %v4642_v62  ;;  %3587 = vmatmul.bf16.gmra.mxu2 %v4970_v36  ;;  %v2958_v16 = vadd.f32 %v2926_v59, %v2850_v40  ;;  %v4981_v20 = vld [vmem:[#allocation2 + $0x120] sm:$0xf] }
 0x1fd   : > { %v4982_v62 = vor.u32 %v5336_v4, %v4981_v20  ;;  %v5339_v20 = vld [vmem:[#allocation2 + $0x140] sm:$0xf0] }
 0x1fe   : > { %v3834_v37 = vadd.f32 %v3724_v50, %v2957_v51  ;;  %3676 = vmatmul.bf16.gmra.mxu3 %v4974_v47  ;;  %3765 = vmatmul.bf16.gmra.mxu0 %v4978_v38  ;;  %v4990_v47 = vor.u32 %v5337_v21, %v4989_v18  ;;  %v2927_v38 = vld [vmem:[#allocation3 + $0x18] sm:$0xff]  ;;  %v5001_v18 = vld [vmem:[#allocation2 + $0x140] sm:$0xf] }
 0x1ff   : > { %v3548_v49 = vpop.f32.mrf.mxu2 }
 0x200   : > { %3866 = vst [vmem:[#allocation3 + $0x8] sm:$0xff] %v3834_v37 }
 0x201   : > { %v3637_v8 = vpop.f32.mrf.mxu3  ;;  %v2851_v2 = vpop.f32.mrf.mxu1 }
 0x202   : > { %v3638_v42 = vadd.f32 %v3637_v8, %v3548_v49  ;;  %v2852_v22 = vadd.f32 %v2851_v2, %v6011_v17 }
 0x203   : > { %v3728_v24 = vpop.f32.mrf.mxu0 }
 0x204   : > { %v3727_v52 = vadd.f32 %v3726_v39, %v3638_v42  ;;  %v2959_v39 = vadd.f32 %v2927_v38, %v2852_v22  ;;  %v2928_v42 = vld [vmem:[#allocation3 + $0x20] sm:$0xff]  ;;  %v5340_v22 = vld [vmem:[#allocation2 + $0x148] sm:$0xf0] }
 0x206   : > { %v3835_v13 = vadd.f32 %v3727_v52, %v2958_v16  ;;  %v4665_v52 = vld [vmem:[#allocation2 + $0x128] sm:$0xf] }
 0x207   : > { %v3550_v32 = vpop.f32.mrf.mxu2 }
 0x208   : > { %3867 = vst [vmem:[#allocation3 + $0x10] sm:$0xff] %v3835_v13  ;;  %v3930_v13 = vld [vmem:[#allocation3 + $0x1] ss:$2 sm:$0xff] }
 0x209   : > { %v3639_v44 = vpop.f32.mrf.mxu3  ;;  %v2854_v63 = vpop.f32.mrf.mxu1 }
 0x20a   : > { %v3640_v36 = vadd.f32 %v3639_v44, %v3550_v32  ;;  %v2855_v17 = vadd.f32 %v2854_v63, %v6029_v5 }
 0x20b   : > { %v3731_v14 = vpop.f32.mrf.mxu0 }
 0x20c   : > { %v3729_v51 = vadd.f32 %v3728_v24, %v3640_v36  ;;  %2893 = vmatmul.bf16.gmra.mxu1 %v4654_v33  ;;  %3592 = vmatmul.bf16.gmra.mxu2 %v4982_v62  ;;  %v2960_v59 = vadd.f32 %v2928_v42, %v2855_v17  ;;  %v3898_v24 = vld [vmem:[#allocation3] ss:$2 sm:$0xff]  ;;  %v6179_v33 = vld [vmem:[%s6272_s4] ss:$0 sm:$0xff] }
 0x20d   : > { %v3961_v32 = vmax.f32 %v3898_v24, %v3930_v13  ;;  %v2929_v17 = vld [vmem:[#allocation3 + $0x28] sm:$0xff] }
 0x20e   : > { %v3836_v50 = vadd.f32 %v3729_v51, %v2959_v39  ;;  %3681 = vmatmul.bf16.gmra.mxu3 %v4986_v34  ;;  %3770 = vmatmul.bf16.gmra.mxu0 %v4990_v47  ;;  %v4666_v34 = vor.u32 %v5268_v28, %v4665_v52  ;;  %v4994_v47 = vor.u32 %v5339_v20, %v4993_v10  ;;  %v1298_v20 = vld [vmem:[%s6065_s7] sm:$0xe] }
 0x20f   : > { %v3553_v37 = vpop.f32.mrf.mxu2  ;;  %v4998_v51 = vor.u32 %v5338_v57, %v4995_v35  ;;  %v2930_v57 = vld [vmem:[#allocation3 + $0x30] sm:$0xff] }
 0x210   : > { %3868 = vst [vmem:[#allocation3 + $0x18] sm:$0xff] %v3836_v50  ;;  %v5002_v50 = vor.u32 %v5340_v22, %v5001_v18  ;;  %v4185_v18 = vrot.slane %v1298_v20, 9 }
 0x211   : > { %v3642_v40 = vpop.f32.mrf.mxu3  ;;  %v2856_v8 = vpop.f32.mrf.mxu1 }
 0x212   : > { %v3643_v49 = vadd.f32 %v3642_v40, %v3553_v37  ;;  %v2857_v62 = vadd.f32 %v2856_v8, %v6043_v12 }
 0x213   : > { %v3733_v2 = vpop.f32.mrf.mxu0 }
 0x214   : > { %v3732_v16 = vadd.f32 %v3731_v14, %v3643_v49  ;;  %v2961_v49 = vadd.f32 %v2929_v17, %v2857_v62  ;;  %v5005_v62 = vld [vmem:[#allocation2 + $0x150] sm:$0xf] }
 0x216   : > { %v3837_v4 = vadd.f32 %v3732_v16, %v2960_v59 }
 0x217   : > { %v3900_v21 = vld [vmem:[#allocation3 + $0x10] ss:$2 sm:$0xff]  ;;  %v3932_v5 = vld [vmem:[#allocation3 + $0x11] ss:$2 sm:$0xff]  ;;  %v3555_v36 = vpop.f32.mrf.mxu2 }
 0x218   : > { %v3962_v44 = vmax.f32 %v3900_v21, %v3932_v5  ;;  %3869 = vst [vmem:[#allocation3 + $0x20] sm:$0xff] %v3837_v4  ;;  %v1300_v4 = vld [vmem:[%s6065_s7 + $0x8] sm:$0x1] }
 0x219   : > { %v3644_v63 = vpop.f32.mrf.mxu3  ;;  %v2859_v39 = vpop.f32.mrf.mxu1  ;;  %v1309_v5 = vrot.slane %v1300_v4, 5 }
 0x21a   : > { %v3977_v38 = vmax.f32 %v3961_v32, %v3962_v44  ;;  %v3645_v14 = vadd.f32 %v3644_v63, %v3555_v36  ;;  %v2860_v16 = vadd.f32 %v2859_v39, %v6052_v0  ;;  %v4677_v44 = vld [vmem:[#allocation2 + $0x140] sm:$0xf]  ;;  %v5271_v0 = vld [vmem:[#allocation2 + $0x148] sm:$0xf0]  ;;  %v5342_v36 = vld [vmem:[#allocation2 + $0x158] sm:$0xf0] }
 0x21b   : > { %v3736_v37 = vpop.f32.mrf.mxu0  ;;  %v5013_v39 = vld [vmem:[#allocation2 + $0x158] sm:$0xf] }
 0x21c   : > { %v3981_v40 = vadd.f32 %v6179_v33, %v3977_v38  ;;  %v3734_v42 = vadd.f32 %v3733_v2, %v3645_v14  ;;  %2898 = vmatmul.bf16.gmra.mxu1 %v4666_v34  ;;  %3597 = vmatmul.bf16.gmra.mxu2 %v4994_v47  ;;  %v1299_v2 = vld [vmem:[%s6065_s7 + $0x4] sm:$0xf]  ;;  %v2962_v22 = vadd.f32 %v2930_v57, %v2860_v16  ;;  %v5341_v38 = vld [vmem:[#allocation2 + $0x154] sm:$0xf]  ;;  %v5007_v14 = vld [vmem:[#allocation2 + $0x15c] sm:$0xf0] }
 0x21d   : > { %v1306_v10 = vrot.slane %v1299_v2, 5  ;;  %v2931_v16 = vld [vmem:[#allocation3 + $0x38] sm:$0xff] }
 0x21e   : > { %v3982_v12 = vmax.f32 %v3981_v40, 0.0  ;;  %v3838_v8 = vadd.f32 %v3734_v42, %v2961_v49  ;;  %3686 = vmatmul.bf16.gmra.mxu3 %v4998_v51  ;;  %3775 = vmatmul.bf16.gmra.mxu0 %v5002_v50  ;;  %v5343_v51 = vld [vmem:[#allocation2 + $0x160] sm:$0xf0]  ;;  %v4678_v40 = vor.u32 %v5271_v0, %v4677_v44  ;;  %v5006_v49 = vor.u32 %v5342_v36, %v5005_v62 }
 0x21f   : > { %v3558_v52 = vpop.f32.mrf.mxu2  ;;  %v1308_v21 = vrot.slane %v1306_v10, 4  ;;  %v1307_v63 = vsel %vm5676_vm5, %v4185_v18, %v1306_v10  ;;  %v993_v10 = vld [vmem:[%s6203_s27 + $0x4] sm:$0xf]  ;;  %v994_v18 = vld [vmem:[%s6203_s27 + $0x8] sm:$0x1] }
 0x220   : > { %v3983_v59 = vpack.c.bf16 %v3982_v12, %v3982_v12  ;;  %3870 = vst [vmem:[#allocation3 + $0x28] sm:$0xff] %v3838_v8  ;;  %v5010_v8 = vor.u32 %v5341_v38, %v5007_v14  ;;  %v1015_v0 = vshll.u32 %v994_v18, 16  ;;  %v1316_v62 = vld [vmem:[%s6203_s27 + $0x4] sm:$0xf]  ;;  %v1317_v38 = vld [vmem:[%s6203_s27 + $0x8] sm:$0x1] }
 0x221   : > { %v3647_v28 = vpop.f32.mrf.mxu3  ;;  %v2861_v13 = vpop.f32.mrf.mxu1  ;;  %v1310_v34 = vsel %vm5676_vm5, %v1308_v21, %v1309_v5  ;;  %1313 = vst [vmem:[#allocation2 + $0x188] sm:$0xf] %v1307_v63  ;;  %v1005_v21 = vshll.u32 %v993_v10, 16  ;;  %v1009_v5 = vshrl.u32 %v993_v10, 16  ;;  %v5025_v10 = vld [vmem:[#allocation2 + $0x170] sm:$0xf] }
 0x222   : > { %3984 = vst [vmem:[%s6187_s24] sm:$0xf] %v3983_v59  ;;  %v3648_v24 = vadd.f32 %v3647_v28, %v3558_v52  ;;  %v2862_v50 = vadd.f32 %v2861_v13, %v6069_v7  ;;  %v5014_v59 = vor.u32 %v5343_v51, %v5013_v39  ;;  %v992_v28 = vld [vmem:[%s6203_s27] sm:$0xf]  ;;  %v5346_v18 = vld [vmem:[#allocation2 + $0x178] sm:$0xf0] }
 0x223   : > { %v3738_v35 = vpop.f32.mrf.mxu0  ;;  %1314 = vst [vmem:[#allocation2 + $0x194] sm:$0xf] %v1310_v34  ;;  %v996_v20 = vshrl.u32 %v992_v28, 16  ;;  %v999_v4 = vshll.u32 %v992_v28, 16  ;;  %v1007_v34 = vrot.slane %v1005_v21, 5 }
 0x224   : > { %v3737_v32 = vadd.f32 %v3736_v37, %v3648_v24  ;;  %v2963_v2 = vadd.f32 %v2931_v16, %v2862_v50  ;;  %v1017_v50 = vrot.slane %v1015_v0, 5  ;;  %v5019_v28 = vld [vmem:[#allocation2 + $0x174] sm:$0xf0] }
 0x225   : > { %v1001_v44 = vrot.slane %v999_v4, 5  ;;  %v1326_v4 = vrot.slane %v1317_v38, 5 }
 0x226   : > { %v3839_v47 = vadd.f32 %v3737_v32, %v2962_v22  ;;  %v998_v32 = vrot.slane %v996_v20, 4 }
 0x227   : > { %v3560_v17 = vpop.f32.mrf.mxu2 }
 0x228   : > { %3871 = vst [vmem:[#allocation3 + $0x30] sm:$0xff] %v3839_v47  ;;  %v1011_v47 = vrot.slane %v1009_v5, 4  ;;  %v1002_v51 = vor.u32 %v1001_v44, %v998_v32 }
 0x229   : > { %v3649_v37 = vpop.f32.mrf.mxu3  ;;  %v2864_v12 = vpop.f32.mrf.mxu1 }
 0x22a   : > { %v3650_v42 = vadd.f32 %v3649_v37, %v3560_v17  ;;  %v2865_v13 = vadd.f32 %v2864_v12, %v6087_v31  ;;  %v1315_v31 = vld [vmem:[%s6203_s27] sm:$0xe]  ;;  %v3902_v17 = vld [vmem:[#allocation3 + $0x20] ss:$2 sm:$0xff]  ;;  %v3934_v37 = vld [vmem:[#allocation3 + $0x21] ss:$2 sm:$0xff] }
 0x22b   : > { %v3741_v52 = vpop.f32.mrf.mxu0  ;;  %v5017_v12 = vld [vmem:[#allocation2 + $0x168] sm:$0xf]  ;;  %v4186_v16 = vrot.slane %v1315_v31, 9  ;;  %v1003_v20 = vrot.slane %v1002_v51, 4 }
 0x22c   : > { %v3739_v7 = vadd.f32 %v3738_v35, %v3650_v42  ;;  %2903 = vmatmul.bf16.gmra.mxu1 %v4678_v40  ;;  %3602 = vmatmul.bf16.gmra.mxu2 %v5006_v49  ;;  %v2932_v35 = vld [vmem:[#allocation3 + $0x40] sm:$0xff]  ;;  %v4689_v49 = vld [vmem:[#allocation2 + $0x158] sm:$0xf]  ;;  %v5274_v42 = vld [vmem:[#allocation2 + $0x160] sm:$0xf0] }
 0x22d   : > { %v2964_v14 = vadd.f32 %v2932_v35, %v2865_v13  ;;  %v458_v13 = vld [vmem:[%s6203_s27 + $0x4] sm:$0xf]  ;;  %v1008_v32 = vsel %vm5665_vm3, %v1003_v20, %v1007_v34  ;;  %v4690_v38 = vor.u32 %v5274_v42, %v4689_v49  ;;  %v4701_v20 = vld [vmem:[#allocation2 + $0x170] sm:$0xf] }
 0x22e   : > { %v3840_v24 = vadd.f32 %v3739_v7, %v2963_v2  ;;  %3691 = vmatmul.bf16.gmra.mxu3 %v5010_v8  ;;  %3780 = vmatmul.bf16.gmra.mxu0 %v5014_v59  ;;  %v5345_v8 = vld [vmem:[#allocation2 + $0x170] sm:$0xf0]  ;;  %v1012_v59 = vor.u32 %v1011_v47, %v1007_v34  ;;  %v1323_v2 = vrot.slane %v1316_v62, 5  ;;  %v5344_v7 = vld [vmem:[#allocation2 + $0x16c] sm:$0xf] }
 0x22f   : > { %v3563_v57 = vpop.f32.mrf.mxu2  ;;  %461 = vst [vmem:[#allocation2 + $0x1a4] sm:$0xf] %v458_v13 }
 0x230   : > { %3872 = vst [vmem:[#allocation3 + $0x38] sm:$0xff] %v3840_v24  ;;  %v457_v24 = vld [vmem:[%s6203_s27] sm:$0xf]  ;;  %v1013_v21 = vrot.slane %v1012_v59, 4  ;;  %v1325_v5 = vrot.slane %v1323_v2, 4  ;;  %v1324_v47 = vsel %vm5676_vm5, %v4186_v16, %v1323_v2  ;;  %v5026_v59 = vor.u32 %v5346_v18, %v5025_v10 }
 0x231   : > { %v3652_v22 = vpop.f32.mrf.mxu3  ;;  %v2866_v63 = vpop.f32.mrf.mxu1  ;;  %460 = vst [vmem:[#allocation2 + $0x198] sm:$0xf] %v457_v24  ;;  %v2934_v10 = vld [vmem:[#allocation3 + $0x50] sm:$0xff] }
 0x232   : > { %v3653_v36 = vadd.f32 %v3652_v22, %v3563_v57  ;;  %v2867_v0 = vadd.f32 %v2866_v63, %v6103_v60  ;;  %1021 = vst [vmem:[#allocation2 + $0x19c] sm:$0xf] %v1008_v32  ;;  %v1327_v51 = vsel %vm5676_vm5, %v1325_v5, %v1326_v4  ;;  %v2933_v60 = vld [vmem:[#allocation3 + $0x48] sm:$0xff]  ;;  %v5029_v18 = vld [vmem:[#allocation2 + $0x180] sm:$0xf] }
 0x233   : > { %v3743_v39 = vpop.f32.mrf.mxu0  ;;  %1330 = vst [vmem:[#allocation2 + $0x1a0] sm:$0xf] %v1324_v47  ;;  %v5277_v4 = vld [vmem:[#allocation2 + $0x178] sm:$0xf0]  ;;  %v5347_v5 = vld [vmem:[#allocation2 + $0x184] sm:$0xf] }
 0x234   : > { %v3742_v40 = vadd.f32 %v3741_v52, %v3653_v36  ;;  %v3963_v52 = vmax.f32 %v3902_v17, %v3934_v37  ;;  %v1018_v36 = vsel %vm5665_vm3, %v1013_v21, %v1017_v50  ;;  %v2965_v50 = vadd.f32 %v2933_v60, %v2867_v0  ;;  %1331 = vst [vmem:[#allocation2 + $0x1ac] sm:$0xf] %v1327_v51  ;;  %v5348_v21 = vld [vmem:[#allocation2 + $0x188] sm:$0xf0] }
 0x235   : > { %1022 = vst [vmem:[#allocation2 + $0x1a8] sm:$0xf] %v1018_v36  ;;  %v4702_v0 = vor.u32 %v5277_v4, %v4701_v20 }
 0x236   : > { %v3841_v57 = vadd.f32 %v3742_v40, %v2964_v14  ;;  %v5018_v14 = vor.u32 %v5345_v8, %v5017_v12  ;;  %v5022_v40 = vor.u32 %v5344_v7, %v5019_v28 }
 0x237   : > { %v3904_v35 = vld [vmem:[#allocation3 + $0x30] ss:$2 sm:$0xff]  ;;  %v3936_v22 = vld [vmem:[#allocation3 + $0x31] ss:$2 sm:$0xff]  ;;  %v3565_v62 = vpop.f32.mrf.mxu2 }
 0x238   : > { %v3964_v44 = vmax.f32 %v3904_v35, %v3936_v22  ;;  %3873 = vst [vmem:[#allocation3 + $0x40] sm:$0xff] %v3841_v57  ;;  %v5037_v35 = vld [vmem:[#allocation2 + $0x188] sm:$0xf]  ;;  %v5349_v22 = vld [vmem:[#allocation2 + $0x190] sm:$0xf0] }
 0x239   : > { %v3654_v31 = vpop.f32.mrf.mxu3  ;;  %v2869_v37 = vpop.f32.mrf.mxu1 }
 0x23a   : > { %v3985_v17 = vmax.f32 %v3963_v52, %v3964_v44  ;;  %v3655_v34 = vadd.f32 %v3654_v31, %v3565_v62  ;;  %v2870_v12 = vadd.f32 %v2869_v37, %v6106_v9  ;;  %v5031_v52 = vld [vmem:[#allocation2 + $0x18c] sm:$0xf0]  ;;  %v5030_v62 = vor.u32 %v5348_v21, %v5029_v18 }
 0x23b   : > { %v3746_v63 = vpop.f32.mrf.mxu0  ;;  %v5034_v31 = vor.u32 %v5347_v5, %v5031_v52  ;;  %v5352_v20 = vld [vmem:[#allocation2 + $0x1a8] sm:$0xf0] }
 0x23c   : > { %v3986_v45 = vadd.f32 %v6179_v33, %v3985_v17  ;;  %v3744_v16 = vadd.f32 %v3743_v39, %v3655_v34  ;;  %2908 = vmatmul.bf16.gmra.mxu1 %v4690_v38  ;;  %3607 = vmatmul.bf16.gmra.mxu2 %v5018_v14  ;;  %v2966_v13 = vadd.f32 %v2934_v10, %v2870_v12  ;;  %v2935_v14 = vld [vmem:[#allocation3 + $0x58] sm:$0xff]  ;;  %v5041_v12 = vld [vmem:[#allocation2 + $0x198] sm:$0xf]  ;;  %v5350_v10 = vld [vmem:[#allocation2 + $0x19c] sm:$0xf] }
 0x23d   : > { %v5038_v38 = vor.u32 %v5349_v22, %v5037_v35 }
 0x23e   : > { %v3987_v49 = vmax.f32 %v3986_v45, 0.0  ;;  %v3842_v61 = vadd.f32 %v3744_v16, %v2965_v50  ;;  %3696 = vmatmul.bf16.gmra.mxu3 %v5022_v40  ;;  %3785 = vmatmul.bf16.gmra.mxu0 %v5026_v59  ;;  %v2936_v45 = vld [vmem:[#allocation3 + $0x60] sm:$0xff] }
 0x23f   : > { %v3568_v8 = vpop.f32.mrf.mxu2 }
 0x240   : > { %v3988_v42 = vpack.c.bf16 %v3987_v49, %v3987_v49  ;;  %3874 = vst [vmem:[#allocation3 + $0x48] sm:$0xff] %v3842_v61  ;;  %v4713_v61 = vld [vmem:[#allocation2 + $0x188] sm:$0xf] }
 0x241   : > { %v3657_v2 = vpop.f32.mrf.mxu3  ;;  %v2871_v28 = vpop.f32.mrf.mxu1 }
 0x242   : > { %5147 = vst [vmem:[%s6187_s24 + $0x4] sm:$0xf] %v3988_v42  ;;  %v3658_v7 = vadd.f32 %v3657_v2, %v3568_v8  ;;  %v2872_v9 = vadd.f32 %v2871_v28, %v6109_v43  ;;  %v5280_v42 = vld [vmem:[#allocation2 + $0x190] sm:$0xf0] }
 0x243   : > { %v3748_v24 = vpop.f32.mrf.mxu0  ;;  %v4714_v52 = vor.u32 %v5280_v42, %v4713_v61 }
 0x244   : > { %v3747_v39 = vadd.f32 %v3746_v63, %v3658_v7  ;;  %v2967_v17 = vadd.f32 %v2935_v14, %v2872_v9  ;;  %v5351_v7 = vld [vmem:[#allocation2 + $0x1a0] sm:$0xf0] }
 0x245   : > { %v5042_v35 = vor.u32 %v5351_v7, %v5041_v12 }
 0x246   : > { %v3843_v57 = vadd.f32 %v3747_v39, %v2966_v13  ;;  %v5049_v13 = vld [vmem:[#allocation2 + $0x1a0] sm:$0xf] }
 0x247   : > { %v3570_v32 = vpop.f32.mrf.mxu2  ;;  %v3906_v8 = vld [vmem:[#allocation3 + $0x40] ss:$2 sm:$0xff]  ;;  %v3938_v2 = vld [vmem:[#allocation3 + $0x41] ss:$2 sm:$0xff] }
 0x248   : > { %3875 = vst [vmem:[#allocation3 + $0x50] sm:$0xff] %v3843_v57  ;;  %v3965_v4 = vmax.f32 %v3906_v8, %v3938_v2  ;;  %v2939_v8 = vld [vmem:[#allocation3 + $0x78] sm:$0xff] }
 0x249   : > { %v3659_v44 = vpop.f32.mrf.mxu3  ;;  %v2874_v47 = vpop.f32.mrf.mxu1 }
 0x24a   : > { %v3660_v36 = vadd.f32 %v3659_v44, %v3570_v32  ;;  %v2875_v43 = vadd.f32 %v2874_v47, %v6112_v55 }
 0x24b   : > { %v3751_v51 = vpop.f32.mrf.mxu0 }
 0x24c   : > { %v3749_v34 = vadd.f32 %v3748_v24, %v3660_v36  ;;  %2913 = vmatmul.bf16.gmra.mxu1 %v4702_v0  ;;  %3612 = vmatmul.bf16.gmra.mxu2 %v5030_v62  ;;  %v2968_v16 = vadd.f32 %v2936_v45, %v2875_v43  ;;  %v5043_v24 = vld [vmem:[#allocation2 + $0x1a4] sm:$0xf0]  ;;  %v5050_v0 = vor.u32 %v5352_v20, %v5049_v13  ;;  %v2937_v62 = vld [vmem:[#allocation3 + $0x68] sm:$0xff]  ;;  %v2940_v20 = vld [vmem:[#allocation3 + $0x80] sm:$0xff] }
 0x24d   : > { %v5046_v44 = vor.u32 %v5350_v10, %v5043_v24 }
 0x24e   : > { %v3844_v37 = vadd.f32 %v3749_v34, %v2967_v17  ;;  %3701 = vmatmul.bf16.gmra.mxu3 %v5034_v31  ;;  %3790 = vmatmul.bf16.gmra.mxu0 %v5038_v38 }
 0x24f   : > { %v3573_v40 = vpop.f32.mrf.mxu2 }
 0x250   : > { %3876 = vst [vmem:[#allocation3 + $0x58] sm:$0xff] %v3844_v37 }
 0x251   : > { %v3662_v59 = vpop.f32.mrf.mxu3  ;;  %v2876_v63 = vpop.f32.mrf.mxu1 }
 0x252   : > { %v3663_v60 = vadd.f32 %v3662_v59, %v3573_v40  ;;  %v2877_v18 = vadd.f32 %v2876_v63, %v6115_v29  ;;  %v2938_v59 = vld [vmem:[#allocation3 + $0x70] sm:$0xff] }
 0x253   : > { %v3753_v50 = vpop.f32.mrf.mxu0 }
 0x254   : > { %v3752_v49 = vadd.f32 %v3751_v51, %v3663_v60  ;;  %v2969_v31 = vadd.f32 %v2937_v62, %v2877_v18 }
 0x256   : > { %v3845_v28 = vadd.f32 %v3752_v49, %v2968_v16 }
 0x257   : > { %v3908_v39 = vld [vmem:[#allocation3 + $0x50] ss:$2 sm:$0xff]  ;;  %v3940_v55 = vld [vmem:[#allocation3 + $0x51] ss:$2 sm:$0xff]  ;;  %v3575_v21 = vpop.f32.mrf.mxu2 }
 0x258   : > { %v3966_v57 = vmax.f32 %v3908_v39, %v3940_v55  ;;  %3877 = vst [vmem:[#allocation3 + $0x60] sm:$0xff] %v3845_v28 }
 0x259   : > { %v3664_v5 = vpop.f32.mrf.mxu3  ;;  %v2879_v32 = vpop.f32.mrf.mxu1 }
 0x25a   : > { %v3991_v22 = vmax.f32 %v3965_v4, %v3966_v57  ;;  %v3665_v9 = vadd.f32 %v3664_v5, %v3575_v21  ;;  %v2880_v17 = vadd.f32 %v2879_v32, %v6118_v58 }
 0x25b   : > { %v3756_v36 = vpop.f32.mrf.mxu0 }
 0x25c   : > { %v3992_v47 = vadd.f32 %v6179_v33, %v3991_v22  ;;  %v3754_v38 = vadd.f32 %v3753_v50, %v3665_v9  ;;  %2918 = vmatmul.bf16.gmra.mxu1 %v4714_v52  ;;  %3617 = vmatmul.bf16.gmra.mxu2 %v5042_v35  ;;  %v2970_v63 = vadd.f32 %v2938_v59, %v2880_v17 }
 0x25e   : > { %v3993_v14 = vmax.f32 %v3992_v47, 0.0  ;;  %v3846_v29 = vadd.f32 %v3754_v38, %v2969_v31  ;;  %3706 = vmatmul.bf16.gmra.mxu3 %v5046_v44  ;;  %3795 = vmatmul.bf16.gmra.mxu0 %v5050_v0  ;;  %v2941_v47 = vld [vmem:[#allocation3 + $0x88] sm:$0xff] }
 0x25f   : > { %v3578_v34 = vpop.f32.mrf.mxu2 }
 0x260   : > { %v3994_v51 = vpack.c.bf16 %v3993_v14, %v3993_v14  ;;  %3878 = vst [vmem:[#allocation3 + $0x68] sm:$0xff] %v3846_v29 }
 0x261   : > { %v3667_v37 = vpop.f32.mrf.mxu3  ;;  %v2881_v40 = vpop.f32.mrf.mxu1 }
 0x262   : > { %5148 = vst [vmem:[%s6187_s24 + $0x8] sm:$0xf] %v3994_v51  ;;  %v3668_v43 = vadd.f32 %v3667_v37, %v3578_v34  ;;  %v2882_v16 = vadd.f32 %v2881_v40, %v6121_v19 }
 0x263   : > { %v3758_v60 = vpop.f32.mrf.mxu0 }
 0x264   : > { %v3757_v45 = vadd.f32 %v3756_v36, %v3668_v43  ;;  %v2971_v58 = vadd.f32 %v2939_v8, %v2882_v16 }
 0x266   : > { %v3847_v50 = vadd.f32 %v3757_v45, %v2970_v63 }
 0x267   : > { %v3580_v49 = vpop.f32.mrf.mxu2  ;;  %v3910_v18 = vld [vmem:[#allocation3 + $0x60] ss:$2 sm:$0xff]  ;;  %v3942_v21 = vld [vmem:[#allocation3 + $0x61] ss:$2 sm:$0xff] }
 0x268   : > { %3879 = vst [vmem:[#allocation3 + $0x70] sm:$0xff] %v3847_v50  ;;  %v3967_v22 = vmax.f32 %v3910_v18, %v3942_v21 }
 0x269   : > { %v3669_v61 = vpop.f32.mrf.mxu3  ;;  %v2884_v12 = vpop.f32.mrf.mxu1 }
 0x26a   : > { %v3670_v42 = vadd.f32 %v3669_v61, %v3580_v49  ;;  %v2885_v10 = vadd.f32 %v2884_v12, %v6124_v53 }
 0x26b   : > { %v3761_v2 = vpop.f32.mrf.mxu0 }
 0x26c   : > { %v3759_v7 = vadd.f32 %v3758_v60, %v3670_v42  ;;  %v2972_v57 = vadd.f32 %v2940_v20, %v2885_v10  ;;  %v2942_v60 = vld [vmem:[#allocation3 + $0x90] sm:$0xff]  ;;  %v2944_v20 = vld [vmem:[#allocation3 + $0xa0] sm:$0xff] }
 0x26e   : > { %v3848_v28 = vadd.f32 %v3759_v7, %v2971_v58 }
 0x26f   : > { %v3583_v24 = vpop.f32.mrf.mxu2 }
 0x270   : > { %3880 = vst [vmem:[#allocation3 + $0x78] sm:$0xff] %v3848_v28 }
 0x271   : > { %v3672_v13 = vpop.f32.mrf.mxu3  ;;  %v2886_v55 = vpop.f32.mrf.mxu1 }
 0x272   : > { %v3673_v39 = vadd.f32 %v3672_v13, %v3583_v24  ;;  %v2887_v32 = vadd.f32 %v2886_v55, %v6127_v30 }
 0x273   : > { %v3763_v4 = vpop.f32.mrf.mxu0 }
 0x274   : > { %v3762_v19 = vadd.f32 %v3761_v2, %v3673_v39  ;;  %v2973_v14 = vadd.f32 %v2941_v47, %v2887_v32  ;;  %v2943_v2 = vld [vmem:[#allocation3 + $0x98] sm:$0xff] }
 0x276   : > { %v3849_v5 = vadd.f32 %v3762_v19, %v2972_v57 }
 0x277   : > { %v3912_v52 = vld [vmem:[#allocation3 + $0x70] ss:$2 sm:$0xff]  ;;  %v3944_v35 = vld [vmem:[#allocation3 + $0x71] ss:$2 sm:$0xff]  ;;  %v3585_v44 = vpop.f32.mrf.mxu2 }
 0x278   : > { %v3968_v9 = vmax.f32 %v3912_v52, %v3944_v35  ;;  %3881 = vst [vmem:[#allocation3 + $0x80] sm:$0xff] %v3849_v5 }
 0x279   : > { %v3674_v53 = vpop.f32.mrf.mxu3  ;;  %v2889_v36 = vpop.f32.mrf.mxu1 }
 0x27a   : > { %v3997_v0 = vmax.f32 %v3967_v22, %v3968_v9  ;;  %v3675_v62 = vadd.f32 %v3674_v53, %v3585_v44  ;;  %v2890_v37 = vadd.f32 %v2889_v36, %v6130_v23 }
 0x27b   : > { %v3766_v31 = vpop.f32.mrf.mxu0 }
 0x27c   : > { %v3998_v38 = vadd.f32 %v6179_v33, %v3997_v0  ;;  %v3764_v29 = vadd.f32 %v3763_v4, %v3675_v62  ;;  %v2974_v45 = vadd.f32 %v2942_v60, %v2890_v37  ;;  %v2945_v62 = vld [vmem:[#allocation3 + $0xa8] sm:$0xff] }
 0x27e   : > { %v3999_v51 = vmax.f32 %v3998_v38, 0.0  ;;  %v3850_v17 = vadd.f32 %v3764_v29, %v2973_v14 }
 0x27f   : > { %v3588_v43 = vpop.f32.mrf.mxu2 }
 0x280   : > { %v4000_v34 = vpack.c.bf16 %v3999_v51, %v3999_v51  ;;  %3882 = vst [vmem:[#allocation3 + $0x88] sm:$0xff] %v3850_v17 }
 0x281   : > { %v3677_v30 = vpop.f32.mrf.mxu3  ;;  %v2891_v59 = vpop.f32.mrf.mxu1 }
 0x282   : > { %5149 = vst [vmem:[%s6187_s24 + $0xc] sm:$0xf] %v4000_v34  ;;  %v3678_v40 = vadd.f32 %v3677_v30, %v3588_v43  ;;  %v2892_v49 = vadd.f32 %v2891_v59, %v6133_v56  ;;  %v2946_v30 = vld [vmem:[#allocation3 + $0xb0] sm:$0xff] }
 0x283   : > { %v3768_v63 = vpop.f32.mrf.mxu0 }
 0x284   : > { %v3767_v50 = vadd.f32 %v3766_v31, %v3678_v40  ;;  %v2975_v23 = vadd.f32 %v2943_v2, %v2892_v49 }
 0x286   : > { %v3851_v16 = vadd.f32 %v3767_v50, %v2974_v45 }
 0x287   : > { %v3590_v61 = vpop.f32.mrf.mxu2  ;;  %v3914_v19 = vld [vmem:[#allocation3 + $0x80] ss:$2 sm:$0xff]  ;;  %v3946_v18 = vld [vmem:[#allocation3 + $0x81] ss:$2 sm:$0xff] }
 0x288   : > { %3883 = vst [vmem:[#allocation3 + $0x90] sm:$0xff] %v3851_v16  ;;  %v3969_v35 = vmax.f32 %v3914_v19, %v3946_v18 }
 0x289   : > { %v3679_v42 = vpop.f32.mrf.mxu3  ;;  %v2894_v8 = vpop.f32.mrf.mxu1 }
 0x28a   : > { %v3680_v12 = vadd.f32 %v3679_v42, %v3590_v61  ;;  %v2895_v10 = vadd.f32 %v2894_v8, %v6136_v11  ;;  %v2947_v42 = vld [vmem:[#allocation3 + $0xb8] sm:$0xff] }
 0x28b   : > { %v3771_v58 = vpop.f32.mrf.mxu0 }
 0x28c   : > { %v3769_v7 = vadd.f32 %v3768_v63, %v3680_v12  ;;  %v2976_v57 = vadd.f32 %v2944_v20, %v2895_v10 }
 0x28e   : > { %v3852_v28 = vadd.f32 %v3769_v7, %v2975_v23 }
 0x28f   : > { %v3593_v24 = vpop.f32.mrf.mxu2 }
 0x290   : > { %3884 = vst [vmem:[#allocation3 + $0x98] sm:$0xff] %v3852_v28 }
 0x291   : > { %v3682_v13 = vpop.f32.mrf.mxu3  ;;  %v2896_v55 = vpop.f32.mrf.mxu1 }
 0x292   : > { %v3683_v39 = vadd.f32 %v3682_v13, %v3593_v24  ;;  %v2897_v9 = vadd.f32 %v2896_v55, %v6139_v46  ;;  %v2948_v24 = vld [vmem:[#allocation3 + $0xc0] sm:$0xff] }
 0x293   : > { %v3773_v4 = vpop.f32.mrf.mxu0 }
 0x294   : > { %v3772_v56 = vadd.f32 %v3771_v58, %v3683_v39  ;;  %v2977_v31 = vadd.f32 %v2945_v62, %v2897_v9  ;;  %v2949_v9 = vld [vmem:[#allocation3 + $0xc8] sm:$0xff] }
 0x296   : > { %v3853_v21 = vadd.f32 %v3772_v56, %v2976_v57 }
 0x297   : > { %v3916_v5 = vld [vmem:[#allocation3 + $0x90] ss:$2 sm:$0xff]  ;;  %v3948_v52 = vld [vmem:[#allocation3 + $0x91] ss:$2 sm:$0xff]  ;;  %v3595_v32 = vpop.f32.mrf.mxu2 }
 0x298   : > { %v3970_v22 = vmax.f32 %v3916_v5, %v3948_v52  ;;  %3885 = vst [vmem:[#allocation3 + $0xa0] sm:$0xff] %v3853_v21 }
 0x299   : > { %v3684_v11 = vpop.f32.mrf.mxu3  ;;  %v2899_v0 = vpop.f32.mrf.mxu1 }
 0x29a   : > { %v4003_v44 = vmax.f32 %v3969_v35, %v3970_v22  ;;  %v3685_v53 = vadd.f32 %v3684_v11, %v3595_v32  ;;  %v2900_v17 = vadd.f32 %v2899_v0, %v6142_v3 }
 0x29b   : > { %v3776_v36 = vpop.f32.mrf.mxu0 }
 0x29c   : > { %v4004_v47 = vadd.f32 %v6179_v33, %v4003_v44  ;;  %v3774_v38 = vadd.f32 %v3773_v4, %v3685_v53  ;;  %v2978_v59 = vadd.f32 %v2946_v30, %v2900_v17 }
 0x29e   : > { %v4005_v14 = vmax.f32 %v4004_v47, 0.0  ;;  %v3854_v29 = vadd.f32 %v3774_v38, %v2977_v31 }
 0x29f   : > { %v3598_v34 = vpop.f32.mrf.mxu2 }
 0x2a0   : > { %v4006_v51 = vpack.c.bf16 %v4005_v14, %v4005_v14  ;;  %3886 = vst [vmem:[#allocation3 + $0xa8] sm:$0xff] %v3854_v29  ;;  %v2950_v29 = vld [vmem:[#allocation3 + $0xd0] sm:$0xff] }
 0x2a1   : > { %v3687_v46 = vpop.f32.mrf.mxu3  ;;  %v2901_v43 = vpop.f32.mrf.mxu1 }
 0x2a2   : > { %5150 = vst [vmem:[%s6187_s24 + $0x10] sm:$0xf] %v4006_v51  ;;  %v3688_v37 = vadd.f32 %v3687_v46, %v3598_v34  ;;  %v2902_v45 = vadd.f32 %v2901_v43, %v6145_v26 }
 0x2a3   : > { %v3778_v40 = vpop.f32.mrf.mxu0 }
 0x2a4   : > { %v3777_v60 = vadd.f32 %v3776_v36, %v3688_v37  ;;  %v2979_v3 = vadd.f32 %v2947_v42, %v2902_v45 }
 0x2a6   : > { %v3855_v63 = vadd.f32 %v3777_v60, %v2978_v59  ;;  %v2951_v60 = vld [vmem:[#allocation3 + $0xd8] sm:$0xff] }
 0x2a7   : > { %v3600_v50 = vpop.f32.mrf.mxu2  ;;  %v3918_v55 = vld [vmem:[#allocation3 + $0xa0] ss:$2 sm:$0xff]  ;;  %v3950_v20 = vld [vmem:[#allocation3 + $0xa1] ss:$2 sm:$0xff] }
 0x2a8   : > { %3887 = vst [vmem:[#allocation3 + $0xb0] sm:$0xff] %v3855_v63  ;;  %v3971_v19 = vmax.f32 %v3918_v55, %v3950_v20 }
 0x2a9   : > { %v3689_v16 = vpop.f32.mrf.mxu3  ;;  %v2904_v61 = vpop.f32.mrf.mxu1 }
 0x2aa   : > { %v3690_v49 = vadd.f32 %v3689_v16, %v3600_v50  ;;  %v2905_v58 = vadd.f32 %v2904_v61, %v6148_v48 }
 0x2ab   : > { %v3781_v12 = vpop.f32.mrf.mxu0 }
 0x2ac   : > { %v3779_v8 = vadd.f32 %v3778_v40, %v3690_v49  ;;  %v2980_v39 = vadd.f32 %v2948_v24, %v2905_v58 }
 0x2ae   : > { %v3856_v2 = vadd.f32 %v3779_v8, %v2979_v3  ;;  %v2952_v3 = vld [vmem:[#allocation3 + $0xe0] sm:$0xff] }
 0x2af   : > { %v3603_v23 = vpop.f32.mrf.mxu2 }
 0x2b0   : > { %3888 = vst [vmem:[#allocation3 + $0xb8] sm:$0xff] %v3856_v2 }
 0x2b1   : > { %v3692_v7 = vpop.f32.mrf.mxu3  ;;  %v2906_v10 = vpop.f32.mrf.mxu1 }
 0x2b2   : > { %v3693_v28 = vadd.f32 %v3692_v7, %v3603_v23  ;;  %v2907_v21 = vadd.f32 %v2906_v10, %v6151_v27 }
 0x2b3   : > { %v3783_v13 = vpop.f32.mrf.mxu0 }
 0x2b4   : > { %v3782_v26 = vadd.f32 %v3781_v12, %v3693_v28  ;;  %v2981_v44 = vadd.f32 %v2949_v9, %v2907_v21 }
 0x2b6   : > { %v3857_v4 = vadd.f32 %v3782_v26, %v2980_v39 }
 0x2b7   : > { %v3920_v57 = vld [vmem:[#allocation3 + $0xb0] ss:$2 sm:$0xff]  ;;  %v3952_v56 = vld [vmem:[#allocation3 + $0xb1] ss:$2 sm:$0xff]  ;;  %v3605_v5 = vpop.f32.mrf.mxu2 }
 0x2b8   : > { %v3972_v18 = vmax.f32 %v3920_v57, %v3952_v56  ;;  %3889 = vst [vmem:[#allocation3 + $0xc0] sm:$0xff] %v3857_v4  ;;  %v2953_v4 = vld [vmem:[#allocation3 + $0xe8] sm:$0xff] }
 0x2b9   : > { %v3694_v48 = vpop.f32.mrf.mxu3  ;;  %v2909_v22 = vpop.f32.mrf.mxu1 }
 0x2ba   : > { %v4009_v52 = vmax.f32 %v3971_v19, %v3972_v18  ;;  %v3695_v35 = vadd.f32 %v3694_v48, %v3605_v5  ;;  %v2910_v47 = vadd.f32 %v2909_v22, %v6154_v41 }
 0x2bb   : > { %v3786_v32 = vpop.f32.mrf.mxu0 }
 0x2bc   : > { %v4010_v11 = vadd.f32 %v6179_v33, %v4009_v52  ;;  %v3784_v53 = vadd.f32 %v3783_v13, %v3695_v35  ;;  %v2982_v17 = vadd.f32 %v2950_v29, %v2910_v47 }
 0x2be   : > { %v4011_v0 = vmax.f32 %v4010_v11, 0.0  ;;  %v3858_v62 = vadd.f32 %v3784_v53, %v2981_v44 }
 0x2bf   : > { %v3608_v31 = vpop.f32.mrf.mxu2 }
 0x2c0   : > { %v4012_v36 = vpack.c.bf16 %v4011_v0, %v4011_v0  ;;  %3890 = vst [vmem:[#allocation3 + $0xc8] sm:$0xff] %v3858_v62 }
 0x2c1   : > { %v3697_v27 = vpop.f32.mrf.mxu3  ;;  %v2911_v14 = vpop.f32.mrf.mxu1 }
 0x2c2   : > { %5151 = vst [vmem:[%s6187_s24 + $0x14] sm:$0xf] %v4012_v36  ;;  %v3698_v38 = vadd.f32 %v3697_v27, %v3608_v31  ;;  %v2912_v37 = vadd.f32 %v2911_v14, %v6157_v25  ;;  %v2955_v27 = vld [vmem:[#allocation3 + $0xf8] sm:$0xff] }
 0x2c3   : > { %v3788_v51 = vpop.f32.mrf.mxu0 }
 0x2c4   : > { %v3787_v34 = vadd.f32 %v3786_v32, %v3698_v38  ;;  %v2983_v63 = vadd.f32 %v2951_v60, %v2912_v37  ;;  %v2954_v32 = vld [vmem:[#allocation3 + $0xf0] sm:$0xff] }
 0x2c6   : > { %v3859_v46 = vadd.f32 %v3787_v34, %v2982_v17 }
 0x2c7   : > { %v3610_v43 = vpop.f32.mrf.mxu2  ;;  %v3922_v25 = vld [vmem:[#allocation3 + $0xc0] ss:$2 sm:$0xff]  ;;  %v3954_v58 = vld [vmem:[#allocation3 + $0xc1] ss:$2 sm:$0xff] }
 0x2c8   : > { %3891 = vst [vmem:[#allocation3 + $0xd0] sm:$0xff] %v3859_v46  ;;  %v3973_v24 = vmax.f32 %v3922_v25, %v3954_v58 }
 0x2c9   : > { %v3699_v30 = vpop.f32.mrf.mxu3  ;;  %v2914_v59 = vpop.f32.mrf.mxu1 }
 0x2ca   : > { %v3700_v40 = vadd.f32 %v3699_v30, %v3610_v43  ;;  %v2915_v16 = vadd.f32 %v2914_v59, %v6160_v15 }
 0x2cb   : > { %v3791_v45 = vpop.f32.mrf.mxu0 }
 0x2cc   : > { %v3789_v41 = vadd.f32 %v3788_v51, %v3700_v40  ;;  %v2984_v8 = vadd.f32 %v2952_v3, %v2915_v16 }
 0x2ce   : > { %v3860_v50 = vadd.f32 %v3789_v41, %v2983_v63 }
 0x2cf   : > { %v3613_v49 = vpop.f32.mrf.mxu2 }
 0x2d0   : > { %3892 = vst [vmem:[#allocation3 + $0xd8] sm:$0xff] %v3860_v50 }
 0x2d1   : > { %v3702_v61 = vpop.f32.mrf.mxu3  ;;  %v2916_v12 = vpop.f32.mrf.mxu1 }
 0x2d2   : > { %v3703_v42 = vadd.f32 %v3702_v61, %v3613_v49  ;;  %v2917_v39 = vadd.f32 %v2916_v12, %v6163_v6 }
 0x2d3   : > { %v3793_v10 = vpop.f32.mrf.mxu0 }
 0x2d4   : > { %v3792_v2 = vadd.f32 %v3791_v45, %v3703_v42  ;;  %v2985_v19 = vadd.f32 %v2953_v4, %v2917_v39 }
 0x2d6   : > { %v3861_v23 = vadd.f32 %v3792_v2, %v2984_v8 }
 0x2d7   : > { %v3924_v7 = vld [vmem:[#allocation3 + $0xd0] ss:$2 sm:$0xff]  ;;  %v3956_v28 = vld [vmem:[#allocation3 + $0xd1] ss:$2 sm:$0xff]  ;;  %v3615_v26 = vpop.f32.mrf.mxu2 }
 0x2d8   : > { %v3974_v13 = vmax.f32 %v3924_v7, %v3956_v28  ;;  %3893 = vst [vmem:[#allocation3 + $0xe0] sm:$0xff] %v3861_v23 }
 0x2d9   : > { %v3704_v15 = vpop.f32.mrf.mxu3  ;;  %v2919_v57 = vpop.f32.mrf.mxu1 }
 0x2da   : > { %v4015_v55 = vmax.f32 %v3973_v24, %v3974_v13  ;;  %v3705_v20 = vadd.f32 %v3704_v15, %v3615_v26  ;;  %v2920_v52 = vadd.f32 %v2919_v57, %v6166_v54 }
 0x2db   : > { %v3796_v22 = vpop.f32.mrf.mxu0 }
 0x2dc   : > { %v4016_v56 = vadd.f32 %v6179_v33, %v4015_v55  ;;  %v3794_v18 = vadd.f32 %v3793_v10, %v3705_v20  ;;  %v2986_v11 = vadd.f32 %v2954_v32, %v2920_v52 }
 0x2de   : > { %v4017_v21 = vmax.f32 %v4016_v56, 0.0  ;;  %v3862_v5 = vadd.f32 %v3794_v18, %v2985_v19 }
 0x2df   : > { %v3618_v35 = vpop.f32.mrf.mxu2 }
 0x2e0   : > { %v4018_v48 = vpack.c.bf16 %v4017_v21, %v4017_v21  ;;  %3894 = vst [vmem:[#allocation3 + $0xe8] sm:$0xff] %v3862_v5 }
 0x2e1   : > { %v3707_v6 = vpop.f32.mrf.mxu3  ;;  %v2921_v53 = vpop.f32.mrf.mxu1 }
 0x2e2   : > { %5152 = vst [vmem:[%s6187_s24 + $0x18] sm:$0xf] %v4018_v48  ;;  %v3708_v9 = vadd.f32 %v3707_v6, %v3618_v35  ;;  %v2922_v62 = vadd.f32 %v2921_v53, %v6169_v1 }
 0x2e3   : > { %v3798_v38 = vpop.f32.mrf.mxu0 }
 0x2e4   : > { %v3797_v44 = vadd.f32 %v3796_v22, %v3708_v9  ;;  %v2987_v54 = vadd.f32 %v2955_v27, %v2922_v62 }
 0x2e6   : > { %v3863_v0 = vadd.f32 %v3797_v44, %v2986_v11 }
 0x2e7   : > { %v3620_v36 = vpop.f32.mrf.mxu2  ;;  %v3926_v51 = vld [vmem:[#allocation3 + $0xe0] ss:$2 sm:$0xff]  ;;  %v3958_v17 = vld [vmem:[#allocation3 + $0xe1] ss:$2 sm:$0xff] }
 0x2e8   : > { %3895 = vst [vmem:[#allocation3 + $0xf0] sm:$0xff] %v3863_v0  ;;  %v3975_v37 = vmax.f32 %v3926_v51, %v3958_v17 }
 0x2e9   : > { %v3709_v47 = vpop.f32.mrf.mxu3 }
 0x2ea   : > { %v3710_v31 = vadd.f32 %v3709_v47, %v3620_v36 }
 0x2ec   : > { %v3799_v14 = vadd.f32 %v3798_v38, %v3710_v31 }
 0x2ee   : > { %v3864_v29 = vadd.f32 %v3799_v14, %v2987_v54 }
 0x2f0   : > { %3896 = vst [vmem:[#allocation3 + $0xf8] sm:$0xff] %v3864_v29 }
 0x2f7   : > { %v3928_v34 = vld [vmem:[#allocation3 + $0xf0] ss:$2 sm:$0xff]  ;;  %v3960_v46 = vld [vmem:[#allocation3 + $0xf1] ss:$2 sm:$0xff] }
 0x2f8   : > { %v3976_v43 = vmax.f32 %v3928_v34, %v3960_v46 }
 0x2fa   : > { %v4021_v30 = vmax.f32 %v3975_v37, %v3976_v43 }
 0x2fc   : > { %v4022_v40 = vadd.f32 %v6179_v33, %v4021_v30 }
 0x2fe   : > { %v4023_v1 = vmax.f32 %v4022_v40, 0.0 }
 0x300   : > { %v4024_v59 = vpack.c.bf16 %v4023_v1, %v4023_v1 }
 0x302   : > { %5153 = vst [vmem:[%s6187_s24 + $0x1c] sm:$0xf] %v4024_v59 }
 0x303 PF: > { %s15_s20 = sadd.s32 1, %s5451_s20   ;;  %s6278_s18 = smov %s5447_s19 }
 0x304   : > { %p12_p5 = scmp.ge.s32.totalorder %s15_s20, 6   ;;  %s6279_s19 = smov %s6281_s21 }
 0x306   :  { %14 = sbr.rel (!%p12_p5) target bundleno = 2 (0x2), region = 120 }

// kernel: vgg_loss.7
= control target key start
LH: loop header
LB: loop body
LE: loop exit
PB: predicated region body
PF: predicated region fallthrough
CT: control target
= control target key end

     0   :  { %s2793_s18 = smov 0   ;;  %s2795_s19 = smov 0   ;;  %s3241_s0 = inlined_call_operand.vmem [shape: bf16[4,10,10,128], index: 0, kind: input, shape index: {}, may-alias: {0,1,2}]   ;;  %s3242_s1 = inlined_call_operand.vmem [shape: bf16[4,10,10,128], index: 1, kind: input, shape index: {}, may-alias: {0,1,2}]   ;;  %s3243_s2 = inlined_call_operand.vmem [shape: bf16[4,10,10,128], index: 2, kind: input, shape index: {}, may-alias: {0,1,2}]   ;;  %s3244_s3 = inlined_call_operand.vmem [shape: bf16[3,384,128], index: 3, kind: input, shape index: {}]   ;;  %s3245_s4 = inlined_call_operand.vmem [shape: f32[1,128], index: 4, kind: input, shape index: {}]   ;;  %s3246_s5 = inlined_call_operand.vmem [shape: bf16[4,8,8,128], index: 5, kind: output, shape index: {}]  }
   0x1   :  { %s2797_s20 = smov 0  }
   0x2 LB: > { %s27_s21 = sadd.s32 1, %s2757_s19  ;;  %p2013_p0 = scmp.ge.s32.totalorder %s2761_s20, 1  ;;  %s2761_s20 = sphi %s2797_s20, %s15_s20   ;;  %s2757_s19 = sphi %s2795_s19, %s3252_s19   ;;  %s2753_s18 = sphi %s2793_s18, %s3251_s18  }
   0x3   : > { %p29_p1 = scmp.ge.s32.totalorder %s27_s21, 4  ;;  %p267_p2 = scmp.lt.s32.totalorder %s2761_s20, 5 }
   0x5   : > { %s3254_s21 = smov (%p29_p1, %s27_s21), 0  ;;  %p268_p3 = pnand %p2013_p0, %p267_p2 }
   0x6   : > { %p337_p4 = scmp.lt.s32.totalorder (!%p268_p3), %s2753_s18, 3 }
   0x7   : > { %271 = sbr.rel (%p268_p3) target bundleno = 336 (0x150), region = 40 }
   0xc   : > { %v2583_v0 = vld [vmem:[%s3244_s3 + $0x38] sm:$0xff]  ;;  %v2582_v3 = vld [vmem:[%s3244_s3 + $0x30] sm:$0xff]  ;;  %s3256_s18 = smov (!%p337_p4, %s2753_s18), 3  ;;  %v2581_v6 = vld [vmem:[%s3244_s3 + $0x28] sm:$0xff]  ;;  %vm625_vm0 = vcmask 1042432   ;;  %vm626_vm1 = vcmask 1046532  }
   0xd   : > { %v2599_v1 = vld [vmem:[%s3244_s3 + $0xb8] sm:$0xff]  ;;  %968 = vmatpush.bf16.msra.mxu0 %v2583_v0  ;;  %2695 = vmatpush.bf16.msra.mxu1 %v2583_v0  ;;  %v2598_v4 = vld [vmem:[%s3244_s3 + $0xb0] sm:$0xff]  ;;  %s2832_s9 = smul.u32 80, %s3256_s18  ;;  %v2597_v7 = vld [vmem:[%s3244_s3 + $0xa8] sm:$0xff]  ;;  %vm426_vm3 = vsmask.f32 3328 }
   0xe   : > { %v2619_v2 = vld [vmem:[%s3244_s3 + $0xf8] sm:$0xff]  ;;  %1026 = vmatpush.bf16.msra.mxu2 %v2599_v1  ;;  %v2618_v5 = vld [vmem:[%s3244_s3 + $0xf0] sm:$0xff]  ;;  %v2617_v8 = vld [vmem:[%s3244_s3 + $0xe8] sm:$0xff]  ;;  %vm427_vm4 = vsmask.f32 7440  ;;  %s2563_s26 = sshll.u32 %s3256_s18, 5 }
   0xf   : > { %1337 = vmatpush.bf16.msra.mxu3 %v2619_v2  ;;  %s2841_s14 = scalar_lea.vmem %s3241_s0, %s2832_s9  ;;  %v2580_v10 = vld [vmem:[%s3244_s3 + $0x20] sm:$0xff]  ;;  %vm2868_vm2 = vmor %vm625_vm0, %vm626_vm1  ;;  %v2579_v26 = vld [vmem:[%s3244_s3 + $0x18] sm:$0xff]  ;;  %s2560_s13 = sadd.s32 64, %s2832_s9 }
  0x10   : > { %v388_v9 = vld [vmem:[%s2841_s14] sm:$0xf]  ;;  %v389_v11 = vld [vmem:[%s2841_s14 + $0x8] sm:$0xf]  ;;  %v594_v17 = vld [vmem:[%s2841_s14 + $0x4] sm:$0x1]  ;;  %s3023_s8 = scalar_lea.vmem %s3242_s1, %s2560_s13  ;;  %s3206_s28 = scalar_lea.vmem %s3246_s5, %s2563_s26 }
  0x11   : > { %969 = vmatpush.bf16.msra.mxu0 %v2582_v3  ;;  %2696 = vmatpush.bf16.msra.mxu1 %v2582_v3  ;;  %396 = vst [vmem:[#allocation2] sm:$0xf] %v388_v9  ;;  %v392_v12 = vld [vmem:[%s2841_s14 + $0x20] sm:$0xf]  ;;  %v393_v15 = vld [vmem:[%s2841_s14 + $0x28] sm:$0xf]  ;;  %vm2952_vm5 = vmor %vm426_vm3, %vm427_vm4 }
  0x12   : > { %1027 = vmatpush.bf16.msra.mxu2 %v2598_v4  ;;  %v2596_v13 = vld [vmem:[%s3244_s3 + $0xa0] sm:$0xff]  ;;  %397 = vst [vmem:[#allocation2 + $0xc] sm:$0xf] %v389_v11  ;;  %v595_v18 = vld [vmem:[%s2841_s14 + $0x8] sm:$0xe]  ;;  %v630_v22 = vrot.slane %v594_v17, 5 }
  0x13   : > { %1338 = vmatpush.bf16.msra.mxu3 %v2618_v5  ;;  %v2616_v14 = vld [vmem:[%s3244_s3 + $0xe0] sm:$0xff]  ;;  %400 = vst [vmem:[#allocation2 + $0x30] sm:$0xf] %v392_v12  ;;  %v596_v19 = vld [vmem:[%s2841_s14 + $0xc] sm:$0x1]  ;;  %v2020_v23 = vrot.slane %v595_v18, 9 }
  0x14   : > { %v593_v16 = vld [vmem:[%s2841_s14] sm:$0xe]  ;;  %401 = vst [vmem:[#allocation2 + $0x3c] sm:$0xf] %v393_v15  ;;  %v634_v24 = vrot.slane %v596_v19, 5  ;;  %v2595_v29 = vld [vmem:[%s3244_s3 + $0x98] sm:$0xff] }
  0x15   : > { %970 = vmatpush.bf16.msra.mxu0 %v2581_v6  ;;  %2697 = vmatpush.bf16.msra.mxu1 %v2581_v6  ;;  %v2019_v21 = vrot.slane %v593_v16, 9  ;;  %v390_v25 = vld [vmem:[%s2841_s14 + $0x10] sm:$0xf]  ;;  %v2615_v30 = vld [vmem:[%s3244_s3 + $0xd8] sm:$0xff]  ;;  %v598_v38 = vld [vmem:[%s2841_s14 + $0x14] sm:$0x1] }
  0x16   : > { %1028 = vmatpush.bf16.msra.mxu2 %v2597_v7  ;;  %v635_v28 = vsel %vm2868_vm2, %v2020_v23, %v634_v24  ;;  %398 = vst [vmem:[#allocation2 + $0x18] sm:$0xf] %v390_v25  ;;  %v391_v31 = vld [vmem:[%s2841_s14 + $0x18] sm:$0xf]  ;;  %v394_v32 = vld [vmem:[%s2841_s14 + $0x30] sm:$0xf] }
  0x17   : > { %1339 = vmatpush.bf16.msra.mxu3 %v2617_v8  ;;  %v631_v27 = vsel %vm2868_vm2, %v2019_v21, %v630_v22  ;;  %669 = vst [vmem:[#allocation2 + $0x14] sm:$0xf] %v635_v28  ;;  %v2578_v33 = vld [vmem:[%s3244_s3 + $0x10] sm:$0xff]  ;;  %v395_v34 = vld [vmem:[%s2841_s14 + $0x38] sm:$0xf]  ;;  %v2577_v41 = vld [vmem:[%s3244_s3 + $0x8] sm:$0xff] }
  0x18   : > { %668 = vst [vmem:[#allocation2 + $0x8] sm:$0xf] %v631_v27  ;;  %v2594_v35 = vld [vmem:[%s3244_s3 + $0x90] sm:$0xff]  ;;  %v599_v39 = vld [vmem:[%s2841_s14 + $0x18] sm:$0xe]  ;;  %v638_v43 = vrot.slane %v598_v38, 5 }
  0x19   : > { %971 = vmatpush.bf16.msra.mxu0 %v2580_v10  ;;  %2698 = vmatpush.bf16.msra.mxu1 %v2580_v10  ;;  %399 = vst [vmem:[#allocation2 + $0x24] sm:$0xf] %v391_v31  ;;  %v2614_v36 = vld [vmem:[%s3244_s3 + $0xd0] sm:$0xff]  ;;  %v600_v40 = vld [vmem:[%s2841_s14 + $0x1c] sm:$0x1]  ;;  %v2022_v44 = vrot.slane %v599_v39, 9 }
  0x1a   : > { %1029 = vmatpush.bf16.msra.mxu2 %v2596_v13  ;;  %402 = vst [vmem:[#allocation2 + $0x48] sm:$0xf] %v394_v32  ;;  %v597_v37 = vld [vmem:[%s2841_s14 + $0x10] sm:$0xe]  ;;  %v2593_v45 = vld [vmem:[%s3244_s3 + $0x88] sm:$0xff]  ;;  %v642_v47 = vrot.slane %v600_v40, 5 }
  0x1b   : > { %1340 = vmatpush.bf16.msra.mxu3 %v2616_v14  ;;  %403 = vst [vmem:[#allocation2 + $0x54] sm:$0xf] %v395_v34  ;;  %v2021_v42 = vrot.slane %v597_v37, 9  ;;  %v2613_v46 = vld [vmem:[%s3244_s3 + $0xc8] sm:$0xff]  ;;  %v2576_v48 = vld [vmem:[%s3244_s3] sm:$0xff]  ;;  %v2591_v55 = vld [vmem:[%s3244_s3 + $0x78] sm:$0xff] }
  0x1c   : > { %v2031_v49 = vld [vmem:[#allocation2] sm:$0xf]  ;;  %v2565_v50 = vld [vmem:[#allocation2 + $0x8] sm:$0xf0]  ;;  %v2055_v53 = vld [vmem:[#allocation2 + $0x30] sm:$0xf]  ;;  %v643_v56 = vsel %vm2868_vm2, %v2022_v44, %v642_v47 }
  0x1d   : > { %972 = vmatpush.bf16.msra.mxu0 %v2579_v26  ;;  %2699 = vmatpush.bf16.msra.mxu1 %v2579_v26  ;;  %v639_v51 = vsel %vm2868_vm2, %v2021_v42, %v638_v43  ;;  %v2592_v52 = vld [vmem:[%s3244_s3 + $0x80] sm:$0xff]  ;;  %v2571_v54 = vld [vmem:[#allocation2 + $0x38] sm:$0xf0]  ;;  %v2223_v60 = vld [vmem:[#allocation2 + $0xc] sm:$0xf]  ;;  %v2032_v63 = vor.u32 %v2565_v50, %v2031_v49  ;;  %s2562_s22 = sadd.s32 72, %s2832_s9 }
  0x1e   : > { %1030 = vmatpush.bf16.msra.mxu2 %v2595_v29  ;;  %670 = vst [vmem:[#allocation2 + $0x20] sm:$0xf] %v639_v51  ;;  %v2612_v58 = vld [vmem:[%s3244_s3 + $0xc0] sm:$0xff]  ;;  %v2627_v59 = vld [vmem:[%s3244_s3 + $0x138] sm:$0xff]  ;;  %v2566_v62 = vld [vmem:[#allocation2 + $0x10] sm:$0xf0]  ;;  %v2056_v0 = vor.u32 %v2571_v54, %v2055_v53  ;;  %s3149_s25 = scalar_lea.vmem %s3243_s2, %s2562_s22 }
  0x1f   : > { %1341 = vmatpush.bf16.msra.mxu3 %v2615_v30  ;;  %v2039_v57 = vld [vmem:[#allocation2 + $0x8] sm:$0xf]  ;;  %v2601_v61 = vld [vmem:[#allocation2 + $0x14] sm:$0xf0]  ;;  %671 = vst [vmem:[#allocation2 + $0x2c] sm:$0xf] %v643_v56 }
  0x20   : > { %v2663_v1 = vld [vmem:[%s3244_s3 + $0x1f8] sm:$0xff]  ;;  %v410_v2 = vld [vmem:[%s2841_s14] sm:$0xf]  ;;  %v411_v3 = vld [vmem:[%s2841_s14 + $0x4] sm:$0x1]  ;;  %v2040_v10 = vor.u32 %v2566_v62, %v2039_v57  ;;  %v2224_v16 = vor.u32 %v2601_v61, %v2223_v60 }
  0x21   : > { %973 = vmatpush.bf16.msra.mxu0 %v2578_v33  ;;  %2700 = vmatpush.bf16.msra.mxu1 %v2578_v33  ;;  %v412_v4 = vld [vmem:[%s2841_s14 + $0x8] sm:$0xf]  ;;  %v413_v5 = vld [vmem:[%s2841_s14 + $0xc] sm:$0x1]  ;;  %v430_v6 = vshrl.u32 %v410_v2, 16  ;;  %v433_v7 = vshll.u32 %v410_v2, 16 }
  0x22   : > { %1031 = vmatpush.bf16.msra.mxu2 %v2594_v35  ;;  %v439_v8 = vshll.u32 %v411_v3, 16  ;;  %v444_v9 = vshrl.u32 %v412_v4, 16  ;;  %v447_v11 = vshll.u32 %v412_v4, 16  ;;  %v453_v12 = vshll.u32 %v413_v5, 16  ;;  %v601_v13 = vld [vmem:[%s2841_s14 + $0x20] sm:$0xe] }
  0x23   : > { %1342 = vmatpush.bf16.msra.mxu3 %v2614_v36  ;;  %v602_v14 = vld [vmem:[%s2841_s14 + $0x24] sm:$0x1]  ;;  %v2590_v15 = vld [vmem:[%s3244_s3 + $0x70] sm:$0xff]  ;;  %v432_v17 = vrot.slane %v430_v6, 4  ;;  %v435_v18 = vrot.slane %v433_v7, 5  ;;  %v2655_v23 = vld [vmem:[%s3244_s3 + $0x1b8] sm:$0xff] }
  0x24   : > { %v446_v19 = vrot.slane %v444_v9, 4  ;;  %v603_v21 = vld [vmem:[%s2841_s14 + $0x28] sm:$0xe]  ;;  %v2626_v22 = vld [vmem:[%s3244_s3 + $0x130] sm:$0xff]  ;;  %v441_v24 = vrot.slane %v439_v8, 5  ;;  %v449_v25 = vrot.slane %v447_v11, 5 }
  0x25   : > { %974 = vmatpush.bf16.msra.mxu0 %v2577_v41  ;;  %2701 = vmatpush.bf16.msra.mxu1 %v2577_v41  ;;  %v604_v26 = vld [vmem:[%s2841_s14 + $0x2c] sm:$0x1]  ;;  %v436_v27 = vor.u32 %v435_v18, %v432_v17  ;;  %v2023_v28 = vrot.slane %v601_v13, 9  ;;  %v646_v29 = vrot.slane %v602_v14, 5  ;;  %v2024_v30 = vrot.slane %v603_v21, 9  ;;  %v2662_v42 = vld [vmem:[%s3244_s3 + $0x1f0] sm:$0xff] }
  0x26   : > { %1032 = vmatpush.bf16.msra.mxu2 %v2593_v45  ;;  %v450_v32 = vor.u32 %v449_v25, %v446_v19  ;;  %v455_v33 = vrot.slane %v453_v12, 5  ;;  %v650_v34 = vrot.slane %v604_v26, 5  ;;  %v414_v35 = vld [vmem:[%s2841_s14 + $0x10] sm:$0xf]  ;;  %v415_v36 = vld [vmem:[%s2841_s14 + $0x14] sm:$0x1] }
  0x27   : > { %1343 = vmatpush.bf16.msra.mxu3 %v2613_v46  ;;  %v2589_v37 = vld [vmem:[%s3244_s3 + $0x68] sm:$0xff]  ;;  %v437_v38 = vrot.slane %v436_v27, 4  ;;  %v647_v39 = vsel %vm2868_vm2, %v2023_v28, %v646_v29  ;;  %v458_v40 = vshrl.u32 %v414_v35, 16  ;;  %v461_v41 = vshll.u32 %v414_v35, 16  ;;  %v2654_v44 = vld [vmem:[%s3244_s3 + $0x1b0] sm:$0xff]  ;;  %v2587_v4 = vld [vmem:[%s3244_s3 + $0x58] sm:$0xff] }
  0x28   : > { %v2625_v43 = vld [vmem:[%s3244_s3 + $0x128] sm:$0xff]  ;;  %v451_v45 = vrot.slane %v450_v32, 4  ;;  %v651_v46 = vsel %vm2868_vm2, %v2024_v30, %v650_v34  ;;  %672 = vst [vmem:[#allocation2 + $0x38] sm:$0xf] %v647_v39  ;;  %v467_v47 = vshll.u32 %v415_v36, 16  ;;  %v2586_v35 = vld [vmem:[%s3244_s3 + $0x50] sm:$0xff] }
  0x29   : > { %975 = vmatpush.bf16.msra.mxu0 %v2576_v48  ;;  %2702 = vmatpush.bf16.msra.mxu1 %v2576_v48  ;;  %v2588_v48 = vld [vmem:[%s3244_s3 + $0x60] sm:$0xff]  ;;  %v442_v49 = vsel %vm2952_vm5, %v437_v38, %v441_v24  ;;  %673 = vst [vmem:[#allocation2 + $0x44] sm:$0xf] %v651_v46  ;;  %v460_v50 = vrot.slane %v458_v40, 4  ;;  %v463_v51 = vrot.slane %v461_v41, 5  ;;  %v2661_v57 = vld [vmem:[%s3244_s3 + $0x1e8] sm:$0xff] }
  0x2a   : > { %1033 = vmatpush.bf16.msra.mxu2 %v2592_v52  ;;  %v2624_v52 = vld [vmem:[%s3244_s3 + $0x120] sm:$0xff]  ;;  %v2983_v53 = vld [vmem:[#allocation2 + $0x18] sm:$0xf]  ;;  %549 = vst [vmem:[#allocation2 + $0x4] sm:$0xf] %v442_v49  ;;  %v469_v56 = vrot.slane %v467_v47, 5 }
  0x2b   : > { %1344 = vmatpush.bf16.msra.mxu3 %v2612_v58  ;;  %v2985_v54 = vld [vmem:[#allocation2 + $0x20] sm:$0xf0]  ;;  %v464_v58 = vor.u32 %v463_v51, %v460_v50  ;;  %v417_v60 = vld [vmem:[%s2841_s14 + $0x1c] sm:$0x1]  ;;  %v2067_v61 = vld [vmem:[#allocation2 + $0x48] sm:$0xf] }
  0x2c   : > { %976 = vmatmul.bf16.vlgmr.msra.gmra.mxu0 %v2032_v63  ;;  %986 = vmatmul.bf16.vlgmr.msra.gmra.mxu1 %v2056_v0  ;;  %v2574_v62 = vld [vmem:[#allocation2 + $0x50] sm:$0xf0]  ;;  %v2653_v63 = vld [vmem:[%s3244_s3 + $0x1a8] sm:$0xff]  ;;  %v481_v2 = vshll.u32 %v417_v60, 16  ;;  %v605_v3 = vld [vmem:[%s2841_s14 + $0x30] sm:$0xe]  ;;  %v2044_v17 = vor.u32 %v2985_v54, %v2983_v53 }
  0x2d   : > { %997 = vmatpush.bf16.msrb.mxu1 %v2591_v55  ;;  %1366 = vmatpush.bf16.msrb.mxu0 %v2627_v59  ;;  %v456_v55 = vsel %vm2952_vm5, %v451_v45, %v455_v33  ;;  %v416_v59 = vld [vmem:[%s2841_s14 + $0x18] sm:$0xf]  ;;  %v2051_v5 = vld [vmem:[#allocation2 + $0x20] sm:$0xf]  ;;  %v465_v6 = vrot.slane %v464_v58, 4  ;;  %v2025_v9 = vrot.slane %v605_v3, 9  ;;  %v2068_v29 = vor.u32 %v2574_v62, %v2067_v61 }
  0x2e   : > { %1034 = vmatmul.bf16.vlgmr.msra.gmra.mxu2 %v2040_v10  ;;  %1345 = vmatmul.bf16.vlgmr.msra.gmra.mxu3 %v2224_v16  ;;  %550 = vst [vmem:[#allocation2 + $0x10] sm:$0xf] %v456_v55  ;;  %v472_v0 = vshrl.u32 %v416_v59, 16  ;;  %v606_v7 = vld [vmem:[%s2841_s14 + $0x34] sm:$0x1]  ;;  %v2623_v10 = vld [vmem:[%s3244_s3 + $0x118] sm:$0xff] }
  0x2f   : > { %1751 = vmatpush.bf16.msrb.mxu3 %v2663_v1  ;;  %1722 = vmatpush.bf16.msrb.mxu2 %v2655_v23  ;;  %v475_v1 = vshll.u32 %v416_v59, 16  ;;  %v607_v8 = vld [vmem:[%s2841_s14 + $0x38] sm:$0xe]  ;;  %v2235_v11 = vld [vmem:[#allocation2 + $0x24] sm:$0xf]  ;;  %v654_v16 = vrot.slane %v606_v7, 5  ;;  %v470_v19 = vsel %vm2952_vm5, %v465_v6, %v469_v56 }
  0x30   : > { %v2604_v12 = vld [vmem:[#allocation2 + $0x2c] sm:$0xf0]  ;;  %v474_v13 = vrot.slane %v472_v0, 4  ;;  %v2569_v18 = vld [vmem:[#allocation2 + $0x28] sm:$0xf0]  ;;  %v2026_v21 = vrot.slane %v607_v8, 9 }
  0x31   : > { %998 = vmatpush.bf16.msrb.mxu1 %v2590_v15  ;;  %1367 = vmatpush.bf16.msrb.mxu0 %v2626_v22  ;;  %v477_v14 = vrot.slane %v475_v1, 5  ;;  %v608_v15 = vld [vmem:[%s2841_s14 + $0x3c] sm:$0x1]  ;;  %v418_v23 = vld [vmem:[%s2841_s14 + $0x20] sm:$0xf]  ;;  %v483_v26 = vrot.slane %v481_v2, 5  ;;  %v655_v27 = vsel %vm2868_vm2, %v2025_v9, %v654_v16  ;;  %v2052_v34 = vor.u32 %v2569_v18, %v2051_v5 }
  0x32   : > { %v658_v22 = vrot.slane %v608_v15, 5  ;;  %551 = vst [vmem:[#allocation2 + $0x1c] sm:$0xf] %v470_v19  ;;  %v2652_v24 = vld [vmem:[%s3244_s3 + $0x1a0] sm:$0xff]  ;;  %v486_v32 = vshrl.u32 %v418_v23, 16  ;;  %v489_v33 = vshll.u32 %v418_v23, 16  ;;  %v2236_v38 = vor.u32 %v2604_v12, %v2235_v11 }
  0x33   : > { %1752 = vmatpush.bf16.msrb.mxu3 %v2662_v42  ;;  %1723 = vmatpush.bf16.msrb.mxu2 %v2654_v44  ;;  %v478_v25 = vor.u32 %v477_v14, %v474_v13  ;;  %v419_v28 = vld [vmem:[%s2841_s14 + $0x24] sm:$0x1]  ;;  %674 = vst [vmem:[#allocation2 + $0x50] sm:$0xf] %v655_v27  ;;  %v404_v41 = vld [vmem:[%s3023_s8] sm:$0xf] }
  0x34   : > { %v659_v30 = vsel %vm2868_vm2, %v2026_v21, %v658_v22  ;;  %v488_v39 = vrot.slane %v486_v32, 4  ;;  %v491_v40 = vrot.slane %v489_v33, 5  ;;  %v2622_v42 = vld [vmem:[%s3244_s3 + $0x110] sm:$0xff]  ;;  %406 = vst [vmem:[#allocation2 + $0x60] sm:$0xf] %v404_v41  ;;  %v2585_v51 = vld [vmem:[%s3244_s3 + $0x48] sm:$0xff] }
  0x35   : > { %999 = vmatpush.bf16.msrb.mxu1 %v2589_v37  ;;  %1368 = vmatpush.bf16.msrb.mxu0 %v2625_v43  ;;  %v479_v36 = vrot.slane %v478_v25, 4  ;;  %v495_v37 = vshll.u32 %v419_v28, 16  ;;  %675 = vst [vmem:[#allocation2 + $0x5c] sm:$0xf] %v659_v30  ;;  %v2651_v43 = vld [vmem:[%s3244_s3 + $0x198] sm:$0xff]  ;;  %v2621_v53 = vld [vmem:[%s3244_s3 + $0x108] sm:$0xff] }
  0x36   : > { %v420_v45 = vld [vmem:[%s2841_s14 + $0x28] sm:$0xf]  ;;  %v492_v46 = vor.u32 %v491_v40, %v488_v39  ;;  %v2650_v54 = vld [vmem:[%s3244_s3 + $0x190] sm:$0xff]  ;;  %v2659_v58 = vld [vmem:[%s3244_s3 + $0x1d8] sm:$0xff] }
  0x37   : > { %1753 = vmatpush.bf16.msrb.mxu3 %v2661_v57  ;;  %1724 = vmatpush.bf16.msrb.mxu2 %v2653_v63  ;;  %v484_v44 = vsel %vm2952_vm5, %v479_v36, %v483_v26  ;;  %v497_v47 = vrot.slane %v495_v37, 5  ;;  %v500_v49 = vshrl.u32 %v420_v45, 16  ;;  %v503_v50 = vshll.u32 %v420_v45, 16  ;;  %v2584_v59 = vld [vmem:[%s3244_s3 + $0x40] sm:$0xff]  ;;  %v2635_v61 = vld [vmem:[%s3244_s3 + $0x178] sm:$0xff]  ;;  %v2649_v5 = vld [vmem:[%s3244_s3 + $0x188] sm:$0xff] }
  0x38   : > { %552 = vst [vmem:[#allocation2 + $0x28] sm:$0xf] %v484_v44  ;;  %v2620_v60 = vld [vmem:[%s3244_s3 + $0x100] sm:$0xff]  ;;  %v2033_v0 = vld [vmem:[#allocation2 + $0xc] sm:$0xf0]  ;;  %v2633_v37 = vld [vmem:[%s3244_s3 + $0x168] sm:$0xff] }
  0x39   : > { %1000 = vmatpush.bf16.msrb.mxu1 %v2588_v48  ;;  %1369 = vmatpush.bf16.msrb.mxu0 %v2624_v52  ;;  %v2660_v48 = vld [vmem:[%s3244_s3 + $0x1e0] sm:$0xff]  ;;  %v493_v52 = vrot.slane %v492_v46, 4  ;;  %v502_v55 = vrot.slane %v500_v49, 4  ;;  %v505_v56 = vrot.slane %v503_v50, 5  ;;  %v421_v1 = vld [vmem:[%s2841_s14 + $0x2c] sm:$0x1] }
  0x3a   : > { %v2564_v63 = vld [vmem:[#allocation2 + $0x4] sm:$0xf]  ;;  %v422_v2 = vld [vmem:[%s2841_s14 + $0x30] sm:$0xf]  ;;  %v509_v7 = vshll.u32 %v421_v1, 16  ;;  %v2669_v44 = vld [vmem:[%s3244_s3 + $0x228] sm:$0xff] }
  0x3b   : > { %1725 = vmatpush.bf16.msrb.mxu2 %v2652_v24  ;;  %v498_v57 = vsel %vm2952_vm5, %v493_v52, %v497_v47  ;;  %1754 = vmatpush.bf16.msrb.mxu3 %v2660_v48  ;;  %v506_v62 = vor.u32 %v505_v56, %v502_v55  ;;  %v2600_v3 = vld [vmem:[#allocation2 + $0x10] sm:$0xf]  ;;  %v423_v8 = vld [vmem:[%s2841_s14 + $0x34] sm:$0x1]  ;;  %v514_v9 = vshrl.u32 %v422_v2, 16  ;;  %v2036_v19 = vor.u32 %v2564_v63, %v2033_v0  ;;  %v2632_v48 = vld [vmem:[%s3244_s3 + $0x160] sm:$0xff] }
  0x3c   : > { %981 = vmatmul.bf16.gmra.mxu0 %v2044_v17  ;;  %991 = vmatmul.bf16.gmra.mxu1 %v2068_v29  ;;  %553 = vst [vmem:[#allocation2 + $0x34] sm:$0xf] %v498_v57  ;;  %v2225_v11 = vld [vmem:[#allocation2 + $0x18] sm:$0xf0]  ;;  %v2658_v12 = vld [vmem:[%s3244_s3 + $0x1d0] sm:$0xff]  ;;  %v511_v13 = vrot.slane %v509_v7, 5 }
  0x3d   : > { %1001 = vmatpush.bf16.msrb.mxu1 %v2587_v4  ;;  %1370 = vmatpush.bf16.msrb.mxu0 %v2623_v10  ;;  %v3071_v4 = vld [vmem:[%s3244_s3 + $0x238] sm:$0xff]  ;;  %v507_v6 = vrot.slane %v506_v62, 4  ;;  %v517_v10 = vshll.u32 %v422_v2, 16  ;;  %v523_v14 = vshll.u32 %v423_v8, 16  ;;  %v2572_v16 = vld [vmem:[#allocation2 + $0x40] sm:$0xf0]  ;;  %v2228_v25 = vor.u32 %v2600_v3, %v2225_v11 }
  0x3e   : > { %1039 = vmatmul.bf16.gmra.mxu2 %v2052_v34  ;;  %1350 = vmatmul.bf16.gmra.mxu3 %v2236_v38  ;;  %v2063_v15 = vld [vmem:[#allocation2 + $0x38] sm:$0xf]  ;;  %v516_v17 = vrot.slane %v514_v9, 4  ;;  %v2247_v21 = vld [vmem:[#allocation2 + $0x3c] sm:$0xf]  ;;  %v2634_v23 = vld [vmem:[%s3244_s3 + $0x170] sm:$0xff] }
  0x3f   : > { %1726 = vmatpush.bf16.msrb.mxu2 %v2651_v43  ;;  %1755 = vmatpush.bf16.msrb.mxu3 %v2659_v58  ;;  %v519_v18 = vrot.slane %v517_v10, 5  ;;  %v2607_v22 = vld [vmem:[#allocation2 + $0x44] sm:$0xf0]  ;;  %v512_v24 = vsel %vm2952_vm5, %v507_v6, %v511_v13  ;;  %v525_v27 = vrot.slane %v523_v14, 5  ;;  %v2064_v28 = vor.u32 %v2572_v16, %v2063_v15  ;;  %v2670_v29 = vld [vmem:[%s3244_s3 + $0x230] sm:$0xff]  ;;  %v2648_v34 = vld [vmem:[%s3244_s3 + $0x180] sm:$0xff] }
  0x40   : > { %554 = vst [vmem:[#allocation2 + $0x40] sm:$0xf] %v512_v24  ;;  %v424_v30 = vld [vmem:[%s2841_s14 + $0x38] sm:$0xf]  ;;  %v557_v32 = vld [vmem:[%s3023_s8] sm:$0xf]  ;;  %v2248_v33 = vor.u32 %v2607_v22, %v2247_v21 }
  0x41   : > { %1002 = vmatpush.bf16.msrb.mxu1 %v2586_v35  ;;  %1371 = vmatpush.bf16.msrb.mxu0 %v2622_v42  ;;  %v520_v26 = vor.u32 %v519_v18, %v516_v17  ;;  %v528_v36 = vshrl.u32 %v424_v30, 16  ;;  %v2657_v38 = vld [vmem:[%s3244_s3 + $0x1c8] sm:$0xff]  ;;  %v531_v39 = vshll.u32 %v424_v30, 16  ;;  %v560_v40 = vshrl.u32 %v557_v32, 16  ;;  %v2656_v49 = vld [vmem:[%s3244_s3 + $0x1c0] sm:$0xff]  ;;  %v2630_v8 = vld [vmem:[%s3244_s3 + $0x150] sm:$0xff] }
  0x42   : > { %v563_v41 = vshll.u32 %v557_v32, 16  ;;  %v425_v50 = vld [vmem:[%s2841_s14 + $0x3c] sm:$0x1]  ;;  %v2668_v55 = vld [vmem:[%s3244_s3 + $0x220] sm:$0xff]  ;;  %v2045_v63 = vld [vmem:[#allocation2 + $0x24] sm:$0xf0] }
  0x43   : > { %1727 = vmatpush.bf16.msrb.mxu2 %v2650_v54  ;;  %1756 = vmatpush.bf16.msrb.mxu3 %v2658_v12  ;;  %v521_v35 = vrot.slane %v520_v26, 4  ;;  %v530_v43 = vrot.slane %v528_v36, 4  ;;  %v533_v45 = vrot.slane %v531_v39, 5  ;;  %v562_v46 = vrot.slane %v560_v40, 4  ;;  %v2567_v62 = vld [vmem:[#allocation2 + $0x1c] sm:$0xf] }
  0x44   : > { %v565_v47 = vrot.slane %v563_v41, 5  ;;  %v537_v52 = vshll.u32 %v425_v50, 16  ;;  %v2603_v1 = vld [vmem:[#allocation2 + $0x28] sm:$0xf]  ;;  %v2237_v2 = vld [vmem:[#allocation2 + $0x30] sm:$0xf0]  ;;  %v2048_v9 = vor.u32 %v2567_v62, %v2045_v63 }
  0x45   : > { %1003 = vmatpush.bf16.msrb.mxu1 %v2585_v51  ;;  %1372 = vmatpush.bf16.msrb.mxu0 %v2621_v53  ;;  %v526_v42 = vsel %vm2952_vm5, %v521_v35, %v525_v27  ;;  %v534_v51 = vor.u32 %v533_v45, %v530_v43  ;;  %v558_v53 = vld [vmem:[%s3023_s8 + $0x4] sm:$0x1]  ;;  %v2259_v6 = vld [vmem:[#allocation2 + $0x54] sm:$0xf]  ;;  %v2610_v7 = vld [vmem:[#allocation2 + $0x5c] sm:$0xf0]  ;;  %v2240_v10 = vor.u32 %v2603_v1, %v2237_v2 }
  0x46   : > { %555 = vst [vmem:[#allocation2 + $0x4c] sm:$0xf] %v526_v42  ;;  %v566_v54 = vor.u32 %v565_v47, %v562_v46  ;;  %v569_v57 = vshll.u32 %v558_v53, 16  ;;  %v539_v58 = vrot.slane %v537_v52, 5  ;;  %v2260_v12 = vor.u32 %v2610_v7, %v2259_v6  ;;  %v2629_v13 = vld [vmem:[%s3244_s3 + $0x148] sm:$0xff]  ;;  %v2667_v14 = vld [vmem:[%s3244_s3 + $0x218] sm:$0xff] }
  0x47   : > { %1728 = vmatpush.bf16.msrb.mxu2 %v2649_v5  ;;  %1757 = vmatpush.bf16.msrb.mxu3 %v2657_v38  ;;  %v535_v56 = vrot.slane %v534_v51, 4  ;;  %v2575_v5 = vld [vmem:[#allocation2 + $0x58] sm:$0xf0]  ;;  %v2666_v15 = vld [vmem:[%s3244_s3 + $0x210] sm:$0xff]  ;;  %v2628_v16 = vld [vmem:[%s3244_s3 + $0x140] sm:$0xff] }
  0x48   : > { %v2665_v17 = vld [vmem:[%s3244_s3 + $0x208] sm:$0xff]  ;;  %v2570_v18 = vld [vmem:[#allocation2 + $0x34] sm:$0xf]  ;;  %v2606_v21 = vld [vmem:[#allocation2 + $0x40] sm:$0xf] }
  0x49   : > { %1004 = vmatpush.bf16.msrb.mxu1 %v2584_v59  ;;  %1373 = vmatpush.bf16.msrb.mxu0 %v2620_v60  ;;  %v567_v59 = vrot.slane %v566_v54, 4  ;;  %v2631_v60 = vld [vmem:[%s3244_s3 + $0x158] sm:$0xff]  ;;  %v540_v0 = vsel %vm2952_vm5, %v535_v56, %v539_v58  ;;  %v2637_v24 = vld [vmem:[#allocation2 + $0x20] sm:$0xf0]  ;;  %v2417_v26 = vld [vmem:[#allocation2 + $0x24] sm:$0xf0] }
  0x4a   : > { %556 = vst [vmem:[#allocation2 + $0x58] sm:$0xf] %v540_v0  ;;  %v2664_v27 = vld [vmem:[%s3244_s3 + $0x200] sm:$0xff]  ;;  %v2639_v51 = vld [vmem:[#allocation2 + $0x34] sm:$0xf] }
  0x4b   : > { %1729 = vmatpush.bf16.msrb.mxu2 %v2648_v34  ;;  %1758 = vmatpush.bf16.msrb.mxu3 %v2656_v49  ;;  %v576_v38 = vld [vmem:[%s3149_s25 + $0x4] sm:$0x1]  ;;  %v407_v39 = vld [vmem:[%s3149_s25] sm:$0xf]  ;;  %v2640_v49 = vld [vmem:[#allocation2 + $0x38] sm:$0xf0] }
  0x4c   : > { %1005 = vmatmul.bf16.vlgmr.msrb.gmra.mxu1 %v2036_v19  ;;  %1374 = vmatmul.bf16.vlgmr.msrb.gmra.mxu0 %v2228_v25  ;;  %v2057_v19 = vld [vmem:[#allocation2 + $0x3c] sm:$0xf0]  ;;  %v2636_v25 = vld [vmem:[#allocation2 + $0x1c] sm:$0xf]  ;;  %v587_v41 = vshll.u32 %v576_v38, 16 }
  0x4d   : > { %1395 = vmatpush.bf16.msra.mxu1 %v2635_v61  ;;  %1780 = vmatpush.bf16.msra.mxu0 %v3071_v4  ;;  %v571_v61 = vrot.slane %v569_v57, 5  ;;  %v2249_v22 = vld [vmem:[#allocation2 + $0x48] sm:$0xf0]  ;;  %v2420_v32 = vor.u32 %v2636_v25, %v2417_v26  ;;  %409 = vst [vmem:[#allocation2 + $0x6c] sm:$0xf] %v407_v39 }
  0x4e   : > { %1044 = vmatmul.bf16.gmra.mxu2 %v2064_v28  ;;  %1355 = vmatmul.bf16.gmra.mxu3 %v2248_v33  ;;  %v2060_v28 = vor.u32 %v2570_v18, %v2057_v19  ;;  %v575_v33 = vld [vmem:[%s3149_s25] sm:$0xf]  ;;  %v2573_v42 = vld [vmem:[#allocation2 + $0x4c] sm:$0xf]  ;;  %v677_v58 = vld [vmem:[%s3023_s8 + $0x4] sm:$0x1] }
  0x4f   : > { %2703 = vmatpush.bf16.msra.mxu2 %v3071_v4  ;;  %v572_v3 = vsel %vm2952_vm5, %v567_v59, %v571_v61  ;;  %v2075_v4 = vld [vmem:[#allocation2 + $0x50] sm:$0xf]  ;;  %v578_v34 = vshrl.u32 %v575_v33, 16  ;;  %v581_v35 = vshll.u32 %v575_v33, 16  ;;  %v2429_v52 = vld [vmem:[#allocation2 + $0x3c] sm:$0xf0] }
  0x50   : > { %574 = vst [vmem:[#allocation2 + $0x64] sm:$0xf] %v572_v3  ;;  %v2076_v11 = vor.u32 %v2575_v5, %v2075_v4  ;;  %v2432_v56 = vor.u32 %v2639_v51, %v2429_v52  ;;  %v676_v57 = vld [vmem:[%s3023_s8] sm:$0xe]  ;;  %v682_v61 = vrot.slane %v677_v58, 5 }
  0x51   : > { %1396 = vmatpush.bf16.msra.mxu1 %v2634_v23  ;;  %1781 = vmatpush.bf16.msra.mxu0 %v2670_v29  ;;  %v2415_v23 = vld [vmem:[#allocation2 + $0x18] sm:$0xf]  ;;  %v580_v36 = vrot.slane %v578_v34, 4  ;;  %v686_v59 = vld [vmem:[%s3149_s25] sm:$0xe] }
  0x52   : > { %v2416_v30 = vor.u32 %v2637_v24, %v2415_v23  ;;  %v2069_v45 = vld [vmem:[#allocation2 + $0x54] sm:$0xf0]  ;;  %v687_v62 = vld [vmem:[%s3149_s25 + $0x4] sm:$0x1]  ;;  %v2028_v31 = vrot.slane %v686_v59, 9 }
  0x53   : > { %2704 = vmatpush.bf16.msra.mxu2 %v2670_v29  ;;  %v2252_v29 = vor.u32 %v2606_v21, %v2249_v22  ;;  %v2609_v46 = vld [vmem:[#allocation2 + $0x58] sm:$0xf]  ;;  %v2072_v53 = vor.u32 %v2573_v42, %v2069_v45  ;;  %v692_v63 = vrot.slane %v687_v62, 5  ;;  %v2231_v2 = vld [vmem:[#allocation2 + $0x14] sm:$0xf] }
  0x54   : > { %v2602_v3 = vld [vmem:[#allocation2 + $0x1c] sm:$0xf0]  ;;  %v2638_v5 = vld [vmem:[#allocation2 + $0x28] sm:$0xf0]  ;;  %v2439_v6 = vld [vmem:[#allocation2 + $0x48] sm:$0xf] }
  0x55   : > { %1397 = vmatpush.bf16.msra.mxu1 %v2633_v37  ;;  %1782 = vmatpush.bf16.msra.mxu0 %v2669_v44  ;;  %v583_v37 = vrot.slane %v581_v35, 5  ;;  %v693_v1 = vsel %vm2868_vm2, %v2028_v31, %v692_v63  ;;  %v2423_v4 = vld [vmem:[#allocation2 + $0x20] sm:$0xf]  ;;  %v2643_v7 = vld [vmem:[#allocation2 + $0x50] sm:$0xf0] }
  0x56   : > { %695 = vst [vmem:[#allocation2 + $0x74] sm:$0xf] %v693_v1  ;;  %v2605_v20 = vld [vmem:[#allocation2 + $0x34] sm:$0xf0]  ;;  %v2646_v18 = vld [vmem:[#allocation2 + $0x68] sm:$0xf0] }
  0x57   : > { %2705 = vmatpush.bf16.msra.mxu2 %v2669_v44  ;;  %v584_v40 = vor.u32 %v583_v37, %v580_v36  ;;  %v589_v44 = vrot.slane %v587_v41, 5  ;;  %v2261_v47 = vld [vmem:[#allocation2 + $0x60] sm:$0xf0]  ;;  %v2267_v42 = vld [vmem:[#allocation2 + $0x5c] sm:$0xf] }
  0x58   : > { %v2264_v54 = vor.u32 %v2609_v46, %v2261_v47  ;;  %v2645_v19 = vld [vmem:[#allocation2 + $0x64] sm:$0xf] }
  0x59   : > { %1398 = vmatpush.bf16.msra.mxu1 %v2632_v48  ;;  %1783 = vmatpush.bf16.msra.mxu0 %v2668_v55  ;;  %v585_v43 = vrot.slane %v584_v40, 4  ;;  %v2427_v48 = vld [vmem:[#allocation2 + $0x30] sm:$0xf]  ;;  %v2255_v26 = vld [vmem:[#allocation2 + $0x44] sm:$0xf] }
  0x5b   : > { %2706 = vmatpush.bf16.msra.mxu2 %v2668_v55  ;;  %v590_v50 = vsel %vm2952_vm5, %v585_v43, %v589_v44  ;;  %v2428_v55 = vor.u32 %v2640_v49, %v2427_v48 }
  0x5c   : > { %1010 = vmatmul.bf16.gmra.mxu1 %v2048_v9  ;;  %1379 = vmatmul.bf16.gmra.mxu0 %v2240_v10  ;;  %592 = vst [vmem:[#allocation2 + $0x70] sm:$0xf] %v590_v50  ;;  %v2441_v9 = vld [vmem:[#allocation2 + $0x54] sm:$0xf0]  ;;  %v2232_v10 = vor.u32 %v2602_v3, %v2231_v2 }
  0x5d   : > { %1399 = vmatpush.bf16.msra.mxu1 %v2631_v60  ;;  %1784 = vmatpush.bf16.msra.mxu0 %v2667_v14  ;;  %v2027_v60 = vrot.slane %v676_v57, 9 }
  0x5e   : > { %1049 = vmatmul.bf16.gmra.mxu2 %v2076_v11  ;;  %1360 = vmatmul.bf16.gmra.mxu3 %v2260_v12  ;;  %v2424_v11 = vor.u32 %v2638_v5, %v2423_v4  ;;  %v2440_v12 = vor.u32 %v2643_v7, %v2439_v6 }
  0x5f   : > { %2707 = vmatpush.bf16.msra.mxu2 %v2667_v14  ;;  %v683_v0 = vsel %vm2868_vm2, %v2027_v60, %v682_v61  ;;  %v2243_v14 = vld [vmem:[#allocation2 + $0x2c] sm:$0xf] }
  0x60   : > { %685 = vst [vmem:[#allocation2 + $0x68] sm:$0xf] %v683_v0  ;;  %v2244_v22 = vor.u32 %v2605_v20, %v2243_v14 }
  0x61   : > { %1400 = vmatpush.bf16.msra.mxu1 %v2630_v8  ;;  %1785 = vmatpush.bf16.msra.mxu0 %v2666_v15  ;;  %v2642_v8 = vld [vmem:[#allocation2 + $0x4c] sm:$0xf] }
  0x63   : > { %2708 = vmatpush.bf16.msra.mxu2 %v2666_v15  ;;  %v2435_v15 = vld [vmem:[#allocation2 + $0x38] sm:$0xf]  ;;  %v2453_v21 = vld [vmem:[#allocation2 + $0x6c] sm:$0xf0] }
  0x64   : > { %v2456_v25 = vor.u32 %v2645_v19, %v2453_v21 }
  0x65   : > { %1401 = vmatpush.bf16.msra.mxu1 %v2629_v13  ;;  %1786 = vmatpush.bf16.msra.mxu0 %v2665_v17  ;;  %v2444_v13 = vor.u32 %v2642_v8, %v2441_v9 }
  0x67   : > { %2709 = vmatpush.bf16.msra.mxu2 %v2665_v17  ;;  %v2451_v17 = vld [vmem:[#allocation2 + $0x60] sm:$0xf]  ;;  %v2611_v43 = vld [vmem:[#allocation2 + $0x64] sm:$0xf0] }
  0x68   : > { %v2452_v24 = vor.u32 %v2646_v18, %v2451_v17  ;;  %v2268_v45 = vor.u32 %v2611_v43, %v2267_v42 }
  0x69   : > { %1402 = vmatpush.bf16.msra.mxu1 %v2628_v16  ;;  %1787 = vmatpush.bf16.msra.mxu0 %v2664_v27  ;;  %v2641_v16 = vld [vmem:[#allocation2 + $0x40] sm:$0xf0] }
  0x6a   : > { %v2436_v23 = vor.u32 %v2641_v16, %v2435_v15 }
  0x6b   : > { %2710 = vmatpush.bf16.msra.mxu2 %v2664_v27  ;;  %v2608_v27 = vld [vmem:[#allocation2 + $0x4c] sm:$0xf0] }
  0x6c   : > { %1015 = vmatmul.bf16.gmra.mxu1 %v2060_v28  ;;  %1384 = vmatmul.bf16.gmra.mxu0 %v2252_v29  ;;  %v2447_v28 = vld [vmem:[#allocation2 + $0x50] sm:$0xf]  ;;  %v2644_v29 = vld [vmem:[#allocation2 + $0x58] sm:$0xf0]  ;;  %v2256_v33 = vor.u32 %v2608_v27, %v2255_v26 }
  0x6d   : > { %v2448_v34 = vor.u32 %v2644_v29, %v2447_v28 }
  0x6e   : > { %1730 = vmatmul.bf16.vlgmr.msrb.gmra.mxu2 %v2416_v30  ;;  %1759 = vmatmul.bf16.vlgmr.msrb.gmra.mxu3 %v2420_v32  ;;  %v2459_v30 = vld [vmem:[#allocation2 + $0x68] sm:$0xf]  ;;  %v2647_v32 = vld [vmem:[#allocation2 + $0x70] sm:$0xf0] }
  0x6f   : > { %v2460_v37 = vor.u32 %v2647_v32, %v2459_v30 }
  0x7c   : > { %1020 = vmatmul.bf16.gmra.mxu1 %v2072_v53  ;;  %1389 = vmatmul.bf16.gmra.mxu0 %v2264_v54 }
  0x7e   : > { %1735 = vmatmul.bf16.gmra.mxu2 %v2428_v55  ;;  %1764 = vmatmul.bf16.gmra.mxu3 %v2432_v56 }
  0x8c   : > { %1403 = vmatmul.bf16.vlgmr.msra.gmra.mxu1 %v2232_v10  ;;  %1788 = vmatmul.bf16.vlgmr.msra.gmra.mxu0 %v2424_v11 }
  0x8e   : > { %1740 = vmatmul.bf16.gmra.mxu2 %v2440_v12  ;;  %1769 = vmatmul.bf16.gmra.mxu3 %v2444_v13 }
  0x9c   : > { %1408 = vmatmul.bf16.gmra.mxu1 %v2244_v22  ;;  %1793 = vmatmul.bf16.gmra.mxu0 %v2436_v23 }
  0x9e   : > { %1745 = vmatmul.bf16.gmra.mxu2 %v2452_v24  ;;  %1774 = vmatmul.bf16.gmra.mxu3 %v2456_v25 }
  0xa9   : > { %v977_v35 = vpop.f32.mrf.mxu0  ;;  %v987_v36 = vpop.f32.mrf.mxu1 }
  0xac   : > { %1413 = vmatmul.bf16.gmra.mxu1 %v2256_v33  ;;  %1798 = vmatmul.bf16.gmra.mxu0 %v2448_v34 }
  0xae   : > { %1803 = vmatmul.bf16.vlgmr.msra.gmra.mxu2 %v2460_v37 }
  0xb1   : > { %v1035_v38 = vpop.f32.mrf.mxu2  ;;  %v979_v39 = vpop.f32.mrf.mxu0 }
  0xb2   : > { %v989_v40 = vpop.f32.mrf.mxu1  ;;  %v1346_v41 = vpop.f32.mrf.mxu3 }
  0xb9   : > { %v1037_v44 = vpop.f32.mrf.mxu2  ;;  %v982_v46 = vpop.f32.mrf.mxu0 }
  0xba   : > { %v992_v47 = vpop.f32.mrf.mxu1  ;;  %v3164_v48 = vpop.f32.mrf.mxu3 }
  0xbc   : > { %1418 = vmatmul.bf16.gmra.mxu1 %v2268_v45 }
  0xc1   : > { %v1040_v49 = vpop.f32.mrf.mxu2  ;;  %v984_v50 = vpop.f32.mrf.mxu0 }
  0xc2   : > { %v994_v51 = vpop.f32.mrf.mxu1  ;;  %v1351_v52 = vpop.f32.mrf.mxu3 }
  0xc9   : > { %v1042_v53 = vpop.f32.mrf.mxu2  ;;  %v1375_v55 = vpop.f32.mrf.mxu0 }
  0xca   : > { %v1006_v54 = vpop.f32.mrf.mxu1  ;;  %v1376_v57 = vadd.f32 %v1375_v55, %v1346_v41  ;;  %v3166_v58 = vpop.f32.mrf.mxu3 }
  0xcb   : > { %v1007_v56 = vadd.f32 %v1006_v54, %v977_v35 }
  0xcd   : > { %v1036_v59 = vadd.f32 %v1035_v38, %v1007_v56 }
  0xd1   : > { %v1045_v60 = vpop.f32.mrf.mxu2  ;;  %v1377_v62 = vpop.f32.mrf.mxu0 }
  0xd2   : > { %v1008_v61 = vpop.f32.mrf.mxu1  ;;  %v1356_v63 = vpop.f32.mrf.mxu3 }
  0xd3   : > { %v1009_v31 = vadd.f32 %v1008_v61, %v979_v39 }
  0xd5   : > { %v1038_v0 = vadd.f32 %v1037_v44, %v1009_v31 }
  0xd9   : > { %v1047_v1 = vpop.f32.mrf.mxu2  ;;  %v1380_v3 = vpop.f32.mrf.mxu0 }
  0xda   : > { %v1011_v2 = vpop.f32.mrf.mxu1  ;;  %v1381_v5 = vadd.f32 %v1380_v3, %v1351_v52  ;;  %v3168_v6 = vpop.f32.mrf.mxu3 }
  0xdb   : > { %v1012_v4 = vadd.f32 %v1011_v2, %v982_v46 }
  0xdd   : > { %v3170_v7 = vadd.f32 %v1040_v49, %v1012_v4 }
  0xe1   : > { %v1050_v8 = vpop.f32.mrf.mxu2  ;;  %v3172_v10 = vpop.f32.mrf.mxu0 }
  0xe2   : > { %v1013_v9 = vpop.f32.mrf.mxu1  ;;  %v1361_v13 = vpop.f32.mrf.mxu3 }
  0xe3   : > { %v1014_v11 = vadd.f32 %v1013_v9, %v984_v50 }
  0xe5   : > { %v3174_v12 = vadd.f32 %v1042_v53, %v1014_v11  ;;  %v1383_v11 = vadd.f32 %v3172_v10, %v3166_v58 }
  0xe9   : > { %v1052_v14 = vpop.f32.mrf.mxu2  ;;  %v1385_v15 = vpop.f32.mrf.mxu0 }
  0xea   : > { %v1016_v20 = vpop.f32.mrf.mxu1  ;;  %v3176_v17 = vadd.f32 %v1385_v15, %v1356_v63  ;;  %v3180_v19 = vpop.f32.mrf.mxu3 }
  0xeb   : > { %v1017_v16 = vadd.f32 %v1016_v20, %v987_v36 }
  0xed   : > { %v3178_v18 = vadd.f32 %v1045_v60, %v1017_v16 }
  0xf1   : > { %v1731_v21 = vpop.f32.mrf.mxu2  ;;  %v3182_v23 = vpop.f32.mrf.mxu0 }
  0xf2   : > { %v1018_v22 = vpop.f32.mrf.mxu1  ;;  %v1760_v26 = vpop.f32.mrf.mxu3 }
  0xf3   : > { %v1019_v24 = vadd.f32 %v1018_v22, %v989_v40  ;;  %v1761_v46 = vadd.f32 %v1760_v26, %v1731_v21 }
  0xf5   : > { %v3184_v25 = vadd.f32 %v1047_v1, %v1019_v24 }
  0xf9   : > { %v1733_v27 = vpop.f32.mrf.mxu2  ;;  %v1390_v29 = vpop.f32.mrf.mxu0 }
  0xfa   : > { %v1021_v28 = vpop.f32.mrf.mxu1  ;;  %v3186_v32 = vadd.f32 %v1390_v29, %v1361_v13  ;;  %v1762_v37 = vpop.f32.mrf.mxu3 }
  0xfb   : > { %v1022_v30 = vadd.f32 %v1021_v28, %v992_v47  ;;  %v1378_v47 = vadd.f32 %v1377_v62, %v3164_v48  ;;  %v1763_v54 = vadd.f32 %v1762_v37, %v1733_v27 }
  0xfd   : > { %v3188_v33 = vadd.f32 %v1050_v8, %v1022_v30 }
 0x101   : > { %v1736_v34 = vpop.f32.mrf.mxu2  ;;  %v3190_v36 = vpop.f32.mrf.mxu0 }
 0x102   : > { %v1023_v35 = vpop.f32.mrf.mxu1  ;;  %v1765_v44 = vpop.f32.mrf.mxu3 }
 0x103   : > { %v1024_v38 = vadd.f32 %v1023_v35, %v994_v51  ;;  %v3198_v51 = vld [vmem:[%s3245_s4] ss:$0 sm:$0xff]  ;;  %v1766_v9 = vadd.f32 %v1765_v44, %v1736_v34 }
 0x105   : > { %v3192_v39 = vadd.f32 %v1052_v14, %v1024_v38 }
 0x109   : > { %v1738_v40 = vpop.f32.mrf.mxu2  ;;  %v1789_v42 = vpop.f32.mrf.mxu0 }
 0x10a   : > { %v1404_v41 = vpop.f32.mrf.mxu1  ;;  %v1790_v49 = vadd.f32 %v1789_v42, %v1761_v46  ;;  %v1767_v61 = vpop.f32.mrf.mxu3 }
 0x10b   : > { %v1405_v43 = vadd.f32 %v1404_v41, %v1376_v57  ;;  %v1768_v16 = vadd.f32 %v1767_v61, %v1738_v40 }
 0x10d   : > { %v1432_v45 = vadd.f32 %v1405_v43, %v1036_v59 }
 0x10f   : > { %v1817_v55 = vadd.f32 %v1790_v49, %v1432_v45 }
 0x111   : > { %v1741_v50 = vpop.f32.mrf.mxu2  ;;  %v1791_v53 = vpop.f32.mrf.mxu0  ;;  %v1845_v59 = vadd.f32 %v3198_v51, %v1817_v55 }
 0x112   : > { %v1406_v52 = vpop.f32.mrf.mxu1  ;;  %v1792_v57 = vadd.f32 %v1791_v53, %v1763_v54  ;;  %v1770_v13 = vpop.f32.mrf.mxu3 }
 0x113   : > { %v1407_v56 = vadd.f32 %v1406_v52, %v1378_v47  ;;  %v1853_v2 = vmax.f32 %v1845_v59, 0.0  ;;  %v1771_v41 = vadd.f32 %v1770_v13, %v1741_v50 }
 0x115   : > { %v1433_v60 = vadd.f32 %v1407_v56, %v1038_v0 }
 0x117   : > { %v1818_v31 = vadd.f32 %v1792_v57, %v1433_v60 }
 0x119   : > { %v1846_v48 = vadd.f32 %v3198_v51, %v1818_v31  ;;  %v1743_v62 = vpop.f32.mrf.mxu2  ;;  %v1794_v1 = vpop.f32.mrf.mxu0 }
 0x11a   : > { %v1409_v63 = vpop.f32.mrf.mxu1  ;;  %v1795_v14 = vadd.f32 %v1794_v1, %v1766_v9  ;;  %v1772_v35 = vpop.f32.mrf.mxu3 }
 0x11b   : > { %v1854_v3 = vmax.f32 %v1846_v48, 0.0  ;;  %v1410_v4 = vadd.f32 %v1409_v63, %v1381_v5  ;;  %v1773_v45 = vadd.f32 %v1772_v35, %v1743_v62 }
 0x11d   : > { %v2675_v0 = vpack.c.bf16 %v1854_v3, %v1853_v2  ;;  %v1434_v8 = vadd.f32 %v1410_v4, %v3170_v7 }
 0x11f   : > { %2676 = vst [vmem:[%s3206_s28] sm:$0xff] %v2675_v0   ;;  %v1819_v5 = vadd.f32 %v1795_v14, %v1434_v8 }
 0x121   : > { %v1796_v15 = vpop.f32.mrf.mxu0  ;;  %v1746_v22 = vpop.f32.mrf.mxu2  ;;  %v1847_v27 = vadd.f32 %v3198_v51, %v1819_v5 }
 0x122   : > { %v1411_v20 = vpop.f32.mrf.mxu1  ;;  %v1797_v26 = vadd.f32 %v1796_v15, %v1768_v16  ;;  %v1775_v52 = vpop.f32.mrf.mxu3 }
 0x123   : > { %v1412_v21 = vadd.f32 %v1411_v20, %v1383_v11  ;;  %v1855_v58 = vmax.f32 %v1847_v27, 0.0  ;;  %v1776_v59 = vadd.f32 %v1775_v52, %v1746_v22 }
 0x125   : > { %v1435_v24 = vadd.f32 %v1412_v21, %v3174_v12  ;;  %v1388_v12 = vadd.f32 %v3182_v23, %v3168_v6 }
 0x127   : > { %v1820_v7 = vadd.f32 %v1797_v26, %v1435_v24 }
 0x129   : > { %v1848_v28 = vadd.f32 %v3198_v51, %v1820_v7  ;;  %v1799_v30 = vpop.f32.mrf.mxu0  ;;  %v1748_v40 = vpop.f32.mrf.mxu2 }
 0x12a   : > { %v1414_v29 = vpop.f32.mrf.mxu1  ;;  %v1800_v42 = vadd.f32 %v1799_v30, %v1771_v41  ;;  %v1777_v61 = vpop.f32.mrf.mxu3 }
 0x12b   : > { %v1856_v10 = vmax.f32 %v1848_v28, 0.0  ;;  %v1415_v34 = vadd.f32 %v1414_v29, %v3176_v17  ;;  %v1778_v63 = vadd.f32 %v1777_v61, %v1748_v40 }
 0x12d   : > { %v2680_v37 = vpack.c.bf16 %v1856_v10, %v1855_v58  ;;  %v1436_v38 = vadd.f32 %v1415_v34, %v3178_v18 }
 0x12f   : > { %2692 = vst [vmem:[%s3206_s28 + $0x8] sm:$0xff] %v2680_v37   ;;  %v1821_v46 = vadd.f32 %v1800_v42, %v1436_v38 }
 0x131   : > { %v1801_v44 = vpop.f32.mrf.mxu0  ;;  %v1849_v53 = vadd.f32 %v3198_v51, %v1821_v46  ;;  %v1804_v54 = vpop.f32.mrf.mxu2 }
 0x132   : > { %v1416_v43 = vpop.f32.mrf.mxu1  ;;  %v1802_v17 = vadd.f32 %v1801_v44, %v1773_v45  ;;  %v1805_v31 = vadd.f32 %v1804_v54, %v1776_v59 }
 0x133   : > { %v1417_v47 = vadd.f32 %v1416_v43, %v1388_v12  ;;  %v1857_v56 = vmax.f32 %v1849_v53, 0.0 }
 0x135   : > { %v1437_v49 = vadd.f32 %v1417_v47, %v3184_v25  ;;  %v1393_v25 = vadd.f32 %v3190_v36, %v3180_v19 }
 0x137   : > { %v1822_v18 = vadd.f32 %v1802_v17, %v1437_v49 }
 0x139   : > { %v1850_v50 = vadd.f32 %v3198_v51, %v1822_v18  ;;  %v1806_v48 = vpop.f32.mrf.mxu2 }
 0x13a   : > { %v1419_v55 = vpop.f32.mrf.mxu1  ;;  %v1807_v3 = vadd.f32 %v1806_v48, %v1778_v63 }
 0x13b   : > { %v1858_v6 = vmax.f32 %v1850_v50, 0.0  ;;  %v1420_v23 = vadd.f32 %v1419_v55, %v3186_v32 }
 0x13d   : > { %v2685_v60 = vpack.c.bf16 %v1858_v6, %v1857_v56  ;;  %v1438_v57 = vadd.f32 %v1420_v23, %v3188_v33 }
 0x13f   : > { %2693 = vst [vmem:[%s3206_s28 + $0x10] sm:$0xff] %v2685_v60   ;;  %v1823_v1 = vadd.f32 %v1805_v31, %v1438_v57 }
 0x141   : > { %v1851_v32 = vadd.f32 %v3198_v51, %v1823_v1 }
 0x142   : > { %v1421_v62 = vpop.f32.mrf.mxu1 }
 0x143   : > { %v1422_v2 = vadd.f32 %v1421_v62, %v1393_v25  ;;  %v1859_v8 = vmax.f32 %v1851_v32, 0.0 }
 0x145   : > { %v1439_v4 = vadd.f32 %v1422_v2, %v3192_v39 }
 0x147   : > { %v1824_v0 = vadd.f32 %v1807_v3, %v1439_v4 }
 0x149   : > { %v1852_v33 = vadd.f32 %v3198_v51, %v1824_v0 }
 0x14b   : > { %v1860_v9 = vmax.f32 %v1852_v33, 0.0 }
 0x14d   : > { %v2690_v11 = vpack.c.bf16 %v1860_v9, %v1859_v8 }
 0x14f   : > { %2694 = vst [vmem:[%s3206_s28 + $0x18] sm:$0xff] %v2690_v11  }
 0x150 PF: > { %s15_s20 = sadd.s32 1, %s2761_s20   ;;  %s3251_s18 = smov %s2757_s19 }
 0x151   : > { %p12_p5 = scmp.ge.s32.totalorder %s15_s20, 6   ;;  %s3252_s19 = smov %s3254_s21 }
 0x153   :  { %14 = sbr.rel (!%p12_p5) target bundleno = 2 (0x2), region = 82 }

</bundles_post_ra>
